<compile_context>
chip_gen: v7x
topology: tpu7x:2x2x1
jax: 0.10.0
libtpu: 0.0.40
codegen_flags: <defaults>
</compile_context>

<pallas_src>
import jax
import jax.numpy as jnp
from jax.experimental import pallas as pl
from jax.experimental.pallas import tpu as pltpu


def _make_generator_kernel(d_real: int, p_pad: int):
    """Build the kernel closure; d_real = true feature width (2*hidden), p_pad = padded width."""

    def kernel(z_ref, w_ref, b_ref, s_ref, out_ref):
        # Packed scalars (SMEM): energy decomposition + value conv + gamma.
        s_qk = s_ref[0, 0]   # wq . wk   (coeff of h_i * h_j)
        s_qb = s_ref[0, 1]   # wq . bk   (coeff of h_i)
        s_bk = s_ref[0, 2]   # bq . wk   (coeff of h_j)
        s_bb = s_ref[0, 3]   # bq . bk   (constant)
        wv = s_ref[0, 4]
        bv = s_ref[0, 5]
        gamma = s_ref[0, 6]

        def dense(x, li):
            # bf16 x bf16 matmul on the MXU, f32 accumulation; bias add in f32.
            y = jnp.dot(x.astype(jnp.bfloat16), w_ref[li],
                        preferred_element_type=jnp.float32)
            return y + b_ref[pl.ds(li, 1), :]

        # Linear(latent, hidden) + ReLU ; Linear(hidden, 2*hidden) + ReLU
        h1 = jnp.maximum(dense(z_ref[...], 0), 0.0)
        h2 = jnp.maximum(dense(h1, 1), 0.0)          # (TB, P), cols >= d_real are 0

        # ---- SelfAttention over the feature dimension (rank-2 energy decomposition) ----
        # Mask padded feature columns out of the softmax (over j).
        col = jax.lax.broadcasted_iota(jnp.int32, (1, p_pad), 1)
        neg = jnp.where(col < d_real, 0.0, -1e30).astype(jnp.float32)   # (1, P)

        a_col = (s_qk * h2 + s_bk)[:, :, None]       # (TB, P, 1)  coeff of h_j
        c_col = (s_qb * h2 + s_bb)[:, :, None]       # (TB, P, 1)  per-row constant
        # energy[b,i,j] = a_col[b,i]*h2[b,j] + c_col[b,i]  (+ mask over padded j)
        energy = a_col * h2[:, None, :] + c_col + neg            # (TB, P, P)

        m = jnp.max(energy, axis=-1, keepdims=True)
        pexp = jnp.exp(energy - m)                                # (TB, P, P), f32

        v = h2 * wv + bv                                          # proj_value, (TB, P)
        # Fused softmax: numerator via MXU batched matvec, denominator via row-sum,
        # normalization via approximate reciprocal (EUP) -- `att` is never materialized.
        num = jnp.einsum('bij,bjk->bik', pexp, v[:, :, None],
                         preferred_element_type=jnp.float32)      # (TB, P, 1)
        den = jnp.sum(pexp, axis=-1, keepdims=True)               # (TB, P, 1)
        att = (num * pl.reciprocal(den, approx=True))[:, :, 0]    # (TB, P)

        a = gamma * att + h2

        # Linear(2*hidden, 2*hidden) + ReLU ; Linear(2*hidden, feature_dim) + Sigmoid
        h3 = jnp.maximum(dense(a, 2), 0.0)
        out_ref[...] = jax.nn.sigmoid(dense(h3, 3))

    return kernel


def generator_pallas(z, params, *, block_b=128):
    """Pad to lane-dense shapes, pack params, and run the fused generator kernel."""
    f32 = jnp.float32
    B, L = z.shape
    H = params['w1'].shape[1]
    D = params['w2'].shape[1]          # 2*hidden (self-attention width)
    F = params['w4'].shape[1]

    LANE = 128
    P = max(L, H, D, F)
    P = ((P + LANE - 1) // LANE) * LANE          # single padded feature width (>=128 lanes)

    TB = min(block_b, ((B + 7) // 8) * 8)        # batch block (sublane multiple)
    B_pad = ((B + TB - 1) // TB) * TB

    def pad_w(w):
        return jnp.zeros((P, P), f32).at[:w.shape[0], :w.shape[1]].set(w.astype(f32))

    def pad_b(b):
        b = b.reshape(-1).astype(f32)
        return jnp.zeros((P,), f32).at[:b.shape[0]].set(b)

    # One bf16 weight slab + one f32 bias slab (fewer, larger DMAs; halves weight bytes).
    w_slab = jnp.stack([pad_w(params['w1']), pad_w(params['w2']),
                        pad_w(params['w3']), pad_w(params['w4'])]).astype(jnp.bfloat16)
    b_slab = jnp.stack([pad_b(params['b1']), pad_b(params['b2']),
                        pad_b(params['b3']), pad_b(params['b4'])])

    # Collapse the q/k Conv1d projections into 4 scalars (computed at trace time).
    wq = params['wq'].reshape(-1).astype(f32)
    bq = params['bq'].reshape(-1).astype(f32)
    wk = params['wk'].reshape(-1).astype(f32)
    bk = params['bk'].reshape(-1).astype(f32)
    scal = jnp.stack([
        jnp.sum(wq * wk), jnp.sum(wq * bk), jnp.sum(bq * wk), jnp.sum(bq * bk),
        params['wv'].reshape(-1)[0], params['bv'].reshape(-1)[0],
        params['gamma'].reshape(-1)[0], jnp.float32(0.0),
    ]).astype(f32).reshape(1, 8)

    z_pad = jnp.zeros((B_pad, P), f32).at[:B, :L].set(z.astype(f32))

    kernel = _make_generator_kernel(d_real=D, p_pad=P)

    # TODO(synk): for very large 2*hidden (D >~ 1k) the (TB, P, P) energy tensor should be
    # tiled over query rows with an online softmax to fit v7x's 64 MiB VMEM.
    out = pl.pallas_call(
        kernel,
        out_shape=jax.ShapeDtypeStruct((B_pad, P), f32),
        grid=(B_pad // TB,),
        in_specs=[
            pl.BlockSpec((TB, P), lambda i: (i, 0)),                 # z block
            pl.BlockSpec((4, P, P), lambda i: (0, 0, 0)),            # weights (resident)
            pl.BlockSpec((4, P), lambda i: (0, 0)),                  # biases  (resident)
            pl.BlockSpec((1, 8), lambda i: (0, 0),
                         memory_space=pltpu.MemorySpace.SMEM),       # packed scalars
        ],
        out_specs=pl.BlockSpec((TB, P), lambda i: (i, 0)),
        compiler_params=pltpu.CompilerParams(
            dimension_semantics=("parallel",),
            vmem_limit_bytes=32 * 1024 * 1024),
    )(z_pad, w_slab, b_slab, scal)

    return out[:B, :F]


def generator_ref(z, p):
    """Pure-JAX f32 reference mirroring the PyTorch forward exactly."""
    h1 = jnp.maximum(z @ p['w1'] + p['b1'], 0.0)
    h2 = jnp.maximum(h1 @ p['w2'] + p['b2'], 0.0)
    C = p['wq'].shape[-1]
    q = h2[:, :, None] * p['wq'].reshape(1, 1, C) + p['bq'].reshape(1, 1, C)
    k = h2[:, None, :] * p['wk'].reshape(1, C, 1) + p['bk'].reshape(1, C, 1)
    energy = jnp.einsum('bic,bcj->bij', q, k)
    att = jax.nn.softmax(energy, axis=-1)
    v = h2 * p['wv'][0] + p['bv'][0]
    att_out = jnp.sum(att * v[:, None, :], axis=-1)
    a = p['gamma'][0] * att_out + h2
    h3 = jnp.maximum(a @ p['w3'] + p['b3'], 0.0)
    return jax.nn.sigmoid(h3 @ p['w4'] + p['b4'])


def init_params(key, latent_dim, feature_dim, hidden_dim):
    D = hidden_dim * 2
    C = D // 8
    ks = jax.random.split(key, 12)
    s = 0.1
    p = {
        'w1': jax.random.normal(ks[0], (latent_dim, hidden_dim)) * s,
        'b1': jax.random.normal(ks[1], (1, hidden_dim)) * s,
        'w2': jax.random.normal(ks[2], (hidden_dim, D)) * s,
        'b2': jax.random.normal(ks[3], (1, D)) * s,
        'wq': jax.random.normal(ks[4], (1, C)) * s,
        'bq': jax.random.normal(ks[5], (1, C)) * s,
        'wk': jax.random.normal(ks[6], (1, C)) * s,
        'bk': jax.random.normal(ks[7], (1, C)) * s,
        'wv': jnp.array([0.5], jnp.float32),
        'bv': jnp.array([0.05], jnp.float32),
        # PyTorch inits gamma to 0 (attention then contributes nothing).  Use 0.1 here so
        # the attention path is actually exercised; set to 0.0 to match a fresh PyTorch init.
        'gamma': jnp.array([0.1], jnp.float32),
        'w3': jax.random.normal(ks[8], (D, D)) * s,
        'b3': jax.random.normal(ks[9], (1, D)) * s,
        'w4': jax.random.normal(ks[10], (D, feature_dim)) * s,
        'b4': jax.random.normal(ks[11], (1, feature_dim)) * s,
    }
    return {k: v.astype(jnp.float32) for k, v in p.items()}


if __name__ == "__main__":
    latent_dim, feature_dim, hidden_dim = 16, 16, 32   # D = 64, D//8 = 8
    batch = 8
    key = jax.random.PRNGKey(0)
    kz, kp = jax.random.split(key)
    z = jax.random.normal(kz, (batch, latent_dim), dtype=jnp.float32)
    params = init_params(kp, latent_dim, feature_dim, hidden_dim)

    out = generator_pallas(z, params)
    out = jax.block_until_ready(out)
    ref = generator_ref(z, params)

    assert out.shape == (batch, feature_dim)
    assert bool(jnp.all(jnp.isfinite(out)))
    max_err = float(jnp.max(jnp.abs(out - ref)))
    # bf16 matmuls + approximate reciprocal -> looser tolerance than the pure-f32 version.
    assert max_err < 1e-2, f"max_err={max_err}"
    print("KERNEL_OK")
</pallas_src>

<mosaic_0001>
module attributes {stable_mosaic.version = 11 : i64} {
  func.func @kernel(%arg0: i32, %arg1: memref<8x128xf32, #tpu.memory_space<vmem>>, %arg2: memref<4x128x128xbf16, #tpu.memory_space<vmem>>, %arg3: memref<4x128xf32, #tpu.memory_space<vmem>>, %arg4: memref<1x8xf32, #tpu.memory_space<smem>>, %arg5: memref<8x128xf32, #tpu.memory_space<vmem>>) attributes {dimension_semantics = [#tpu.dimension_semantics<parallel>], iteration_bounds = array<i64: 1>, scalar_prefetch = 0 : i64, scratch_operands = 0 : i64, tpu.core_type = #tpu.core_type<tc>, window_params = [{transform_indices = @transform_0, window_bounds = array<i64: 8, 128>}, {pipeline_mode = #tpu.pipeline_mode<synchronous>, transform_indices = @transform_1, window_bounds = array<i64: 4, 128, 128>}, {pipeline_mode = #tpu.pipeline_mode<synchronous>, transform_indices = @transform_2, window_bounds = array<i64: 4, 128>}, {transform_indices = @transform_3, window_bounds = array<i64: 1, 8>}, {transform_indices = @transform_4, window_bounds = array<i64: 8, 128>}]} {
    %c0 = arith.constant 0 : index
    %c0_0 = arith.constant 0 : index
    %0 = memref.load %arg4[%c0, %c0_0] : memref<1x8xf32, #tpu.memory_space<smem>>
    %c0_1 = arith.constant 0 : index
    %c1 = arith.constant 1 : index
    %1 = memref.load %arg4[%c0_1, %c1] : memref<1x8xf32, #tpu.memory_space<smem>>
    %c0_2 = arith.constant 0 : index
    %c2 = arith.constant 2 : index
    %2 = memref.load %arg4[%c0_2, %c2] : memref<1x8xf32, #tpu.memory_space<smem>>
    %c0_3 = arith.constant 0 : index
    %c3 = arith.constant 3 : index
    %3 = memref.load %arg4[%c0_3, %c3] : memref<1x8xf32, #tpu.memory_space<smem>>
    %c0_4 = arith.constant 0 : index
    %c4 = arith.constant 4 : index
    %4 = memref.load %arg4[%c0_4, %c4] : memref<1x8xf32, #tpu.memory_space<smem>>
    %c0_5 = arith.constant 0 : index
    %c5 = arith.constant 5 : index
    %5 = memref.load %arg4[%c0_5, %c5] : memref<1x8xf32, #tpu.memory_space<smem>>
    %c0_6 = arith.constant 0 : index
    %c6 = arith.constant 6 : index
    %6 = memref.load %arg4[%c0_6, %c6] : memref<1x8xf32, #tpu.memory_space<smem>>
    %c0_7 = arith.constant 0 : index
    %c0_8 = arith.constant 0 : index
    %7 = vector.load %arg1[%c0_7, %c0_8] : memref<8x128xf32, #tpu.memory_space<vmem>>, vector<8x128xf32>
    %8 = arith.truncf %7 : vector<8x128xf32> to vector<8x128xbf16>
    %c0_9 = arith.constant 0 : index
    %c0_10 = arith.constant 0 : index
    %c0_11 = arith.constant 0 : index
    %9 = vector.load %arg2[%c0_9, %c0_10, %c0_11] : memref<4x128x128xbf16, #tpu.memory_space<vmem>>, vector<1x128x128xbf16>
    %10 = vector.shape_cast %9 : vector<1x128x128xbf16> to vector<128x128xbf16>
    %cst = arith.constant dense<0.000000e+00> : vector<8x128xf32>
    %11 = tpu.matmul %8, %10, %cst {dimension_numbers = #tpu.dot_dimension_numbers<[1], [0], [0], [1], [0, 0, 1, 1], [], []>} : vector<8x128xbf16>, vector<128x128xbf16>, vector<8x128xf32> -> vector<8x128xf32>
    %c0_12 = arith.constant 0 : index
    %c0_13 = arith.constant 0 : index
    %12 = vector.load %arg3[%c0_12, %c0_13] : memref<4x128xf32, #tpu.memory_space<vmem>>, vector<1x128xf32>
    %13 = vector.broadcast %12 : vector<1x128xf32> to vector<8x128xf32>
    %14 = arith.addf %11, %13 : vector<8x128xf32>
    %cst_14 = arith.constant 0.000000e+00 : f32
    %15 = vector.broadcast %cst_14 : f32 to vector<8x128xf32>
    %16 = arith.maximumf %14, %15 : vector<8x128xf32>
    %17 = arith.truncf %16 : vector<8x128xf32> to vector<8x128xbf16>
    %c1_15 = arith.constant 1 : index
    %c0_16 = arith.constant 0 : index
    %c0_17 = arith.constant 0 : index
    %18 = vector.load %arg2[%c1_15, %c0_16, %c0_17] : memref<4x128x128xbf16, #tpu.memory_space<vmem>>, vector<1x128x128xbf16>
    %19 = vector.shape_cast %18 : vector<1x128x128xbf16> to vector<128x128xbf16>
    %cst_18 = arith.constant dense<0.000000e+00> : vector<8x128xf32>
    %20 = tpu.matmul %17, %19, %cst_18 {dimension_numbers = #tpu.dot_dimension_numbers<[1], [0], [0], [1], [0, 0, 1, 1], [], []>} : vector<8x128xbf16>, vector<128x128xbf16>, vector<8x128xf32> -> vector<8x128xf32>
    %c1_19 = arith.constant 1 : index
    %c0_20 = arith.constant 0 : index
    %21 = vector.load %arg3[%c1_19, %c0_20] : memref<4x128xf32, #tpu.memory_space<vmem>>, vector<1x128xf32>
    %22 = vector.broadcast %21 : vector<1x128xf32> to vector<8x128xf32>
    %23 = arith.addf %20, %22 : vector<8x128xf32>
    %cst_21 = arith.constant 0.000000e+00 : f32
    %24 = vector.broadcast %cst_21 : f32 to vector<8x128xf32>
    %25 = arith.maximumf %23, %24 : vector<8x128xf32>
    %26 = tpu.iota {dimensions = array<i32: 1>} : vector<1x128xi32>
    %c64_i32 = arith.constant 64 : i32
    %27 = vector.broadcast %c64_i32 : i32 to vector<1x128xi32>
    %28 = arith.cmpi slt, %26, %27 : vector<1x128xi32>
    %cst_22 = arith.constant 0.000000e+00 : f32
    %cst_23 = arith.constant -1.000000e+30 : f32
    %29 = vector.broadcast %cst_22 : f32 to vector<1x128xf32>
    %30 = vector.broadcast %cst_23 : f32 to vector<1x128xf32>
    %31 = arith.select %28, %29, %30 : vector<1x128xi1>, vector<1x128xf32>
    %32 = vector.broadcast %0 : f32 to vector<8x128xf32>
    %33 = arith.mulf %32, %25 : vector<8x128xf32>
    %34 = vector.broadcast %2 : f32 to vector<8x128xf32>
    %35 = arith.addf %33, %34 : vector<8x128xf32>
    %36 = vector.shape_cast %35 : vector<8x128xf32> to vector<8x128x1xf32>
    %37 = vector.broadcast %1 : f32 to vector<8x128xf32>
    %38 = arith.mulf %37, %25 : vector<8x128xf32>
    %39 = vector.broadcast %3 : f32 to vector<8x128xf32>
    %40 = arith.addf %38, %39 : vector<8x128xf32>
    %41 = vector.shape_cast %40 : vector<8x128xf32> to vector<8x128x1xf32>
    %42 = vector.shape_cast %25 : vector<8x128xf32> to vector<8x1x128xf32>
    %43 = vector.broadcast %36 : vector<8x128x1xf32> to vector<8x128x128xf32>
    %44 = vector.broadcast %42 : vector<8x1x128xf32> to vector<8x128x128xf32>
    %45 = arith.mulf %43, %44 : vector<8x128x128xf32>
    %46 = vector.broadcast %41 : vector<8x128x1xf32> to vector<8x128x128xf32>
    %47 = arith.addf %45, %46 : vector<8x128x128xf32>
    %48 = vector.shape_cast %31 : vector<1x128xf32> to vector<1x1x128xf32>
    %49 = vector.broadcast %48 : vector<1x1x128xf32> to vector<8x128x128xf32>
    %50 = arith.addf %47, %49 : vector<8x128x128xf32>
    %cst_24 = arith.constant dense<0xFF800000> : vector<8x128xf32>
    %51 = vector.multi_reduction <maximumf>, %50, %cst_24 [2] : vector<8x128x128xf32> to vector<8x128xf32>
    %52 = vector.shape_cast %51 : vector<8x128xf32> to vector<8x128x1xf32>
    %53 = vector.broadcast %52 : vector<8x128x1xf32> to vector<8x128x128xf32>
    %54 = arith.subf %50, %53 : vector<8x128x128xf32>
    %55 = math.exp %54 : vector<8x128x128xf32>
    %56 = vector.broadcast %4 : f32 to vector<8x128xf32>
    %57 = arith.mulf %25, %56 : vector<8x128xf32>
    %58 = vector.broadcast %5 : f32 to vector<8x128xf32>
    %59 = arith.addf %57, %58 : vector<8x128xf32>
    %60 = vector.shape_cast %59 : vector<8x128xf32> to vector<8x128x1xf32>
    "tpu.trace_start"() <{level = 10 : i32, message = "bij,bjk->bik"}> : () -> ()
    %cst_25 = arith.constant dense<0.000000e+00> : vector<8x128x1xf32>
    %61 = tpu.matmul %55, %60, %cst_25 {dimension_numbers = #tpu.dot_dimension_numbers<[2], [1], [1], [2], [0, 0, 0, 1, 1, 2], [0], [0]>} : vector<8x128x128xf32>, vector<8x128x1xf32>, vector<8x128x1xf32> -> vector<8x128x1xf32>
    "tpu.trace_stop"() : () -> ()
    %cst_26 = arith.constant dense<0.000000e+00> : vector<8x128xf32>
    %62 = vector.multi_reduction <add>, %55, %cst_26 [2] : vector<8x128x128xf32> to vector<8x128xf32>
    %63 = vector.shape_cast %62 : vector<8x128xf32> to vector<8x128x1xf32>
    %64 = tpu.reciprocal %63 {approx = true} : vector<8x128x1xf32> -> vector<8x128x1xf32>
    %65 = arith.mulf %61, %64 : vector<8x128x1xf32>
    %66 = vector.shape_cast %65 : vector<8x128x1xf32> to vector<8x128xf32>
    %67 = vector.broadcast %6 : f32 to vector<8x128xf32>
    %68 = arith.mulf %67, %66 : vector<8x128xf32>
    %69 = arith.addf %68, %25 : vector<8x128xf32>
    %70 = arith.truncf %69 : vector<8x128xf32> to vector<8x128xbf16>
    %c2_27 = arith.constant 2 : index
    %c0_28 = arith.constant 0 : index
    %c0_29 = arith.constant 0 : index
    %71 = vector.load %arg2[%c2_27, %c0_28, %c0_29] : memref<4x128x128xbf16, #tpu.memory_space<vmem>>, vector<1x128x128xbf16>
    %72 = vector.shape_cast %71 : vector<1x128x128xbf16> to vector<128x128xbf16>
    %cst_30 = arith.constant dense<0.000000e+00> : vector<8x128xf32>
    %73 = tpu.matmul %70, %72, %cst_30 {dimension_numbers = #tpu.dot_dimension_numbers<[1], [0], [0], [1], [0, 0, 1, 1], [], []>} : vector<8x128xbf16>, vector<128x128xbf16>, vector<8x128xf32> -> vector<8x128xf32>
    %c2_31 = arith.constant 2 : index
    %c0_32 = arith.constant 0 : index
    %74 = vector.load %arg3[%c2_31, %c0_32] : memref<4x128xf32, #tpu.memory_space<vmem>>, vector<1x128xf32>
    %75 = vector.broadcast %74 : vector<1x128xf32> to vector<8x128xf32>
    %76 = arith.addf %73, %75 : vector<8x128xf32>
    %cst_33 = arith.constant 0.000000e+00 : f32
    %77 = vector.broadcast %cst_33 : f32 to vector<8x128xf32>
    %78 = arith.maximumf %76, %77 : vector<8x128xf32>
    %79 = arith.truncf %78 : vector<8x128xf32> to vector<8x128xbf16>
    %c3_34 = arith.constant 3 : index
    %c0_35 = arith.constant 0 : index
    %c0_36 = arith.constant 0 : index
    %80 = vector.load %arg2[%c3_34, %c0_35, %c0_36] : memref<4x128x128xbf16, #tpu.memory_space<vmem>>, vector<1x128x128xbf16>
    %81 = vector.shape_cast %80 : vector<1x128x128xbf16> to vector<128x128xbf16>
    %cst_37 = arith.constant dense<0.000000e+00> : vector<8x128xf32>
    %82 = tpu.matmul %79, %81, %cst_37 {dimension_numbers = #tpu.dot_dimension_numbers<[1], [0], [0], [1], [0, 0, 1, 1], [], []>} : vector<8x128xbf16>, vector<128x128xbf16>, vector<8x128xf32> -> vector<8x128xf32>
    %c3_38 = arith.constant 3 : index
    %c0_39 = arith.constant 0 : index
    %83 = vector.load %arg3[%c3_38, %c0_39] : memref<4x128xf32, #tpu.memory_space<vmem>>, vector<1x128xf32>
    %84 = vector.broadcast %83 : vector<1x128xf32> to vector<8x128xf32>
    %85 = arith.addf %82, %84 : vector<8x128xf32>
    %86 = arith.negf %85 : vector<8x128xf32>
    %87 = math.exp %86 : vector<8x128xf32>
    %cst_40 = arith.constant 1.000000e+00 : f32
    %88 = vector.broadcast %cst_40 : f32 to vector<8x128xf32>
    %89 = arith.addf %88, %87 : vector<8x128xf32>
    %90 = arith.divf %88, %89 : vector<8x128xf32>
    %c0_41 = arith.constant 0 : index
    %c0_42 = arith.constant 0 : index
    %91 = vector.load %arg5[%c0_41, %c0_42] : memref<8x128xf32, #tpu.memory_space<vmem>>, vector<8x128xf32>
    tpu.vector_store %arg5[%c0_41, %c0_42], %90 {strides = array<i32>} : memref<8x128xf32, #tpu.memory_space<vmem>>, vector<8x128xf32>,
    return
  }
  func.func @transform_0(%arg0: i32) -> (i32, i32) {
    %c0_i32 = arith.constant 0 : i32
    %c0_i32_0 = arith.constant 0 : i32
    return %arg0, %c0_i32 : i32, i32
  }
  func.func @transform_1(%arg0: i32) -> (i32, i32, i32) {
    %c0_i32 = arith.constant 0 : i32
    %c0_i32_0 = arith.constant 0 : i32
    %c0_i32_1 = arith.constant 0 : i32
    %c0_i32_2 = arith.constant 0 : i32
    return %c0_i32, %c0_i32_0, %c0_i32_1 : i32, i32, i32
  }
  func.func @transform_2(%arg0: i32) -> (i32, i32) {
    %c0_i32 = arith.constant 0 : i32
    %c0_i32_0 = arith.constant 0 : i32
    %c0_i32_1 = arith.constant 0 : i32
    return %c0_i32, %c0_i32_0 : i32, i32
  }
  func.func @transform_3(%arg0: i32) -> (i32, i32) {
    %c0_i32 = arith.constant 0 : i32
    %c0_i32_0 = arith.constant 0 : i32
    %c0_i32_1 = arith.constant 0 : i32
    return %c0_i32, %c0_i32_0 : i32, i32
  }
  func.func @transform_4(%arg0: i32) -> (i32, i32) {
    %c0_i32 = arith.constant 0 : i32
    %c0_i32_0 = arith.constant 0 : i32
    return %arg0, %c0_i32 : i32, i32
  }
}

</mosaic_0001>

<bundles_post_ra>
// kernel: tpu_custom_call.1
= control target key start
LH: loop header
LB: loop body
LE: loop exit
PB: predicated region body
PF: predicated region fallthrough
CT: control target
= control target key end

     0   :  { %9 = vsyncpa [#allocation3], 0  ;;  %s13696_s0 = inlined_call_operand.hbm [shape: f32[8,128], index: 0, kind: input, shape index: {}]   ;;  %s13697_s1 = inlined_call_operand.hbm [shape: bf16[4,128,128], index: 1, kind: input, shape index: {}]   ;;  %s13698_s2 = inlined_call_operand.vmem [shape: f32[4,128], index: 2, kind: input, shape index: {}]   ;;  %s13699_s3 = inlined_call_operand.vmem [shape: f32[1,8], index: 3, kind: input, shape index: {}]   ;;  %s13700_s4 = inlined_call_operand.hbm [shape: f32[8,128], index: 4, kind: output, shape index: {}]  }
   0x1   :  { %10 = vsyncpa [#allocation7], 0 }
   0x2   :  { %11 = vsyncpa [#allocation5], 0 }
   0x3   :  { %12 = vsyncpa [#allocation4], 0  ;;  %s8950_s15 = smov [#allocation2]   ;;  %s8951_s17 = smov [#allocation6]  }
   0x4   :  { %s19_s16 = sshll.u32 %s8950_s15, 4  ;;  %s28_s18 = sshll.u32 %s8951_s17, 4  ;;  %s20_s16 = int_to_ptr.vmem [resolvable:$true] %s19_s16  ;;  %s8986_s18 = int_to_ptr.vmem [resolvable:$true] %s28_s18 }
   0x5   :  { %s8864_s21 = scalar_lea.hbm %s13696_s0, 128 }
   0x6   :  { %p8865_p0 = scmp.ne.s32.totalorder %s13696_s0, %s8864_s21  ;;  %p8868_p1 = scmp.lt.u32.totalorder %s8864_s21, %s13696_s0 }
   0x8   :  { %p8870_p2 = pnand %p8868_p1, %p8865_p0 }
   0xa   :  { %8873 = shalt.err (!%p8870_p2)
}
   0xb   :  { %s8874_s26 = scalar_lea.vmem %s20_s16, 128  ;;  %p8879_p4 = scmp.lt.s32.totalorder %s20_s16, %s20_s16 }
   0xc   :  { %p8875_p3 = scmp.ne.s32.totalorder %s20_s16, %s8874_s26  ;;  %p8880_p5 = scmp.lt.s32.totalorder %s8874_s26, %s8874_s26 }
   0xe   :  { %p8881_p6 = por %p8880_p5, %p8879_p4 }
  0x10   :  { %p8882_p7 = pnand %p8881_p6, %p8875_p3 }
  0x12   :  { %8885 = shalt.err (!%p8882_p7)
}
  0x13   :  { %22 = dma.hbm_to_vmem [thread:$0]  %s13696_s0, 128, %s20_s16, [#allocation3]  }
  0x14   :  { %s8886_s5 = scalar_lea.hbm %s13697_s1, 4096 }
  0x15   :  { %p8887_p8 = scmp.ne.s32.totalorder %s13697_s1, %s8886_s5  ;;  %p8890_p9 = scmp.lt.u32.totalorder %s8886_s5, %s13697_s1 }
  0x17   :  { %p8892_p10 = pnand %p8890_p9, %p8887_p8 }
  0x19   :  { %8895 = shalt.err (!%p8892_p10)
}
  0x1a   :  { %s8896_s10 = scalar_lea.vmem %s8986_s18, 4096  ;;  %p8901_p12 = scmp.lt.s32.totalorder %s8986_s18, %s8986_s18 }
  0x1b   :  { %p8897_p11 = scmp.ne.s32.totalorder %s8986_s18, %s8896_s10  ;;  %p8902_p13 = scmp.lt.s32.totalorder %s8896_s10, %s8896_s10 }
  0x1d   :  { %p8903_p0 = por %p8902_p13, %p8901_p12 }
  0x1f   :  { %p8904_p1 = pnand %p8903_p0, %p8897_p11 }
  0x21   :  { %8907 = shalt.err (!%p8904_p1)
}
  0x22   :  { %s8952_s0 = smov 64   ;;  %s8953_s11 = smov 4  }
  0x23   :  { %34 = dma.hbm_to_vmem [thread:$0]  %s13697_s1, 4096, %s8986_s18, [#allocation7], %s8952_s0, %s8952_s0, %s8953_s11  }
  0x24   :  { %s43_s16 = sshll.u32 %s13699_s3, 4  ;;  %s44_s16 = int_to_ptr.vmem [resolvable:$true] %s43_s16 }
  0x25   :  { %s8908_s17 = scalar_lea.vmem %s44_s16, 16  ;;  %p8913_p3 = scmp.lt.s32.totalorder %s44_s16, %s44_s16 }
  0x26   :  { %p8909_p2 = scmp.ne.s32.totalorder %s44_s16, %s8908_s17  ;;  %p8914_p4 = scmp.lt.s32.totalorder %s8908_s17, %s8908_s17 }
  0x28   :  { %p8915_p5 = por %p8914_p4, %p8913_p3 }
  0x2a   :  { %p8916_p6 = pnand %p8915_p5, %p8909_p2 }
  0x2c   :  { %8919 = shalt.err (!%p8916_p6)
}
  0x2d   :  { %s8954_s19 = smov [#allocation8]  }
  0x2e   :  { %46 = dma.vmem_to_smem %s44_s16, 16, %s8954_s19, [#allocation5]  }
  0x2f   :  { %8942 = dma.done.wait [#allocation3], 128  }
  0x30   :  { %8943 = vsyncadd [#allocation3], 4294967168 }
  0x31   :  { %8944 = dma.done.wait [#allocation7], 4096  }
  0x32   :  { %8945 = vsyncadd [#allocation7], 4294963200 }
  0x33   :  { %8946 = dma.done.wait [#allocation5], 16  }
  0x34   :  { %8947 = vsyncadd [#allocation5], 4294967280 }
  0x35   :  { %56 = sfence }
  0x36   :  { %v8316_v0 = vld [vmem:[#allocation6] sm:$0xff]   ;;  %v13701_v1 = vmov 0.0   ;;  %v8317_v2 = vld [vmem:[#allocation6 + $0x8] sm:$0xff]   ;;  %vm8956_vm0 = vmmov 0   ;;  %v8318_v3 = vld [vmem:[#allocation6 + $0x10] sm:$0xff]   ;;  %s58_s18 = sld [smem:[#allocation8]]  ;;  %v13703_v27 = vlaneseq }
  0x37   :  { %7519 = vmatprep.subr.bf16.mxu0 %v13701_v1  ;;  %7539 = vmatprep.subr.bf16.mxu1 %v13701_v1  ;;  %v8324_v4 = vld [vmem:[#allocation6 + $0x40] sm:$0xff]   ;;  %v8319_v5 = vld [vmem:[#allocation6 + $0x18] sm:$0xff]   ;;  %v8325_v6 = vld [vmem:[#allocation6 + $0x48] sm:$0xff]   ;;  %v8957_v28 = vmov 1966171168   ;;  %s7184_s20 = sld [smem:[#allocation8 + $0x1]] }
  0x38   :  { %7520 = vmatpush3.bf16.msra.mxu0 %v8316_v0  ;;  %7535 = vmatprep.mubr.msk.bf16.mxu0 %vm8956_vm0, %v13701_v1  ;;  %v8320_v7 = vld [vmem:[#allocation6 + $0x20] sm:$0xff]   ;;  %v8326_v8 = vld [vmem:[#allocation6 + $0x50] sm:$0xff]   ;;  %v8321_v9 = vld [vmem:[#allocation6 + $0x28] sm:$0xff]   ;;  %v1376_v29 = vunpack.c.l.s4 %v8957_v28  ;;  %s7187_s21 = sld [smem:[#allocation8 + $0x4]]  ;;  %s9043_s22 = sld [smem:[#allocation8 + $0x2]]  ;;  %v9048_v30 = vshrl.u32 %v13703_v27, 7 }
  0x39   :  { %7521 = vmatprep.subr.bf16.mxu0 %v13701_v1  ;;  %7555 = vmatprep.mubr.msk.bf16.mxu1 %vm8956_vm0, %v13701_v1  ;;  %v8327_v10 = vld [vmem:[#allocation6 + $0x58] sm:$0xff]   ;;  %v8322_v11 = vld [vmem:[#allocation6 + $0x30] sm:$0xff]   ;;  %v8328_v12 = vld [vmem:[#allocation6 + $0x60] sm:$0xff]   ;;  %s9045_s23 = sld [smem:[#allocation8 + $0x3]]  ;;  %s9053_s26 = sld [smem:[#allocation8 + $0x5]]  ;;  %vm6291_vm2 = vcmask 130112  }
  0x3a   :  { %7540 = vmatpush3.bf16.msra.mxu1 %v8324_v4  ;;  %v8323_v13 = vld [vmem:[#allocation6 + $0x38] sm:$0xff]   ;;  %v8329_v15 = vld [vmem:[#allocation6 + $0x68] sm:$0xff]   ;;  %v8330_v17 = vld [vmem:[#allocation6 + $0x70] sm:$0xff]   ;;  %13914 = vst [vmem:[#allocation14_spill] sm:$0xff] %v9048_v30  ;;  %v1377_v31 = vunpack.c.0.s8 %v1376_v29  ;;  %v9057_v38 = vsub.s32 0, %v9048_v30  ;;  %v9060_v39 = vsub.s32 1, %v9048_v30 }
  0x3b   :  { %7541 = vmatprep.subr.bf16.mxu1 %v13701_v1  ;;  %v65_v14 = vld [vmem:[#allocation2] sm:$0xff]  ;;  %v9063_v40 = vsub.s32 2, %v9048_v30  ;;  %v9069_v47 = vsub.s32 3, %v9048_v30  ;;  %v9072_v48 = vsub.s32 4, %v9048_v30  ;;  %v9107_v4 = vsub.s32 5, %v9048_v30  ;;  %s7189_s27 = sld [smem:[#allocation8 + $0x6]] }
  0x3c   :  { %7522 = vmatpush3.bf16.msra.mxu0 %v8317_v2  ;;  %v66_v16 = vpack.c.bf16 %v65_v14, %v65_v14  ;;  %v8331_v18 = vld [vmem:[#allocation6 + $0x78] sm:$0xff]   ;;  %v293_v35 = vstv %s58_s18  ;;  %v1380_v36 = vsub.s32 %v1377_v31, %v9048_v30  ;;  %vm6298_vm3 = vcmask 195712   ;;  %s8960_s6 = smov [#allocation9]  }
  0x3d   :  { %7523 = vmatprep.subr.bf16.mxu0 %v13701_v1  ;;  %v7190_v19 = vld [vmem:[%s13698_s2] ss:$0 sm:$0xff]  ;;  %v7199_v32 = vld [vmem:[%s13698_s2 + $0x1] ss:$0 sm:$0xff]  ;;  %v833_v41 = vstv %s7184_s20  ;;  %vm6305_vm4 = vcmask 261312   ;;  %vm6312_vm5 = vcmask 326912  }
  0x3e   :  { %7542 = vmatpush3.bf16.msra.mxu1 %v8325_v6  ;;  %v2487_v44 = vstv %s7187_s21  ;;  %v295_v46 = vstv %s9043_s22  ;;  %v9113_v6 = vsub.s32 7, %v9048_v30  ;;  %vm6319_vm6 = vcmask 392512   ;;  %s7173_s7 = sshll.u32 %s8960_s6, 4  ;;  %s7174_s7 = int_to_ptr.vmem [resolvable:$true] %s7173_s7 }
  0x3f   :  { %7543 = vmatprep.subr.bf16.mxu1 %v13701_v1  ;;  %v835_v49 = vstv %s9045_s23  ;;  %v2489_v61 = vstv %s9053_s26  ;;  %vm6326_vm7 = vcmask 458112   ;;  %vm6333_vm8 = vcmask 523712   ;;  %s8920_s8 = scalar_lea.vmem %s7174_s7, 128  ;;  %p8925_p8 = scmp.lt.s32.totalorder %s7174_s7, %s7174_s7 }
  0x40   :  { %7524 = vmatpush3.bf16.msra.mxu0 %v8318_v3  ;;  %vm6340_vm9 = vcmask 589312   ;;  %vm6347_vm10 = vcmask 654912   ;;  %vm6354_vm11 = vcmask 720512   ;;  %vm6361_vm12 = vcmask 786112   ;;  %p8921_p7 = scmp.ne.s32.totalorder %s7174_s7, %s8920_s8  ;;  %p8926_p9 = scmp.lt.s32.totalorder %s8920_s8, %s8920_s8 }
  0x41   :  { %7525 = vmatprep.subr.bf16.mxu0 %v13701_v1  ;;  %vm6368_vm13 = vcmask 851712   ;;  %vm6375_vm14 = vcmask 917312   ;;  %vm6382_vm15 = vcmask 982912  }
  0x42   :  { %7544 = vmatpush3.bf16.msra.mxu1 %v8326_v8  ;;  %p8927_p10 = por %p8926_p9, %p8925_p8 }
  0x43   :  { %7545 = vmatprep.subr.bf16.mxu1 %v13701_v1 }
  0x44   :  { %7526 = vmatpush3.bf16.msra.mxu0 %v8319_v5  ;;  %v9110_v5 = vsub.s32 6, %v9048_v30  ;;  %p8928_p11 = pnand %p8927_p10, %p8921_p7 }
  0x45   :  { %7527 = vmatprep.subr.bf16.mxu0 %v13701_v1 }
  0x46   :  { %7546 = vmatpush3.bf16.msra.mxu1 %v8327_v10 }
  0x47   :  { %7547 = vmatprep.subr.bf16.mxu1 %v13701_v1 }
  0x48   :  { %7528 = vmatpush3.bf16.msra.mxu0 %v8320_v7 }
  0x49   :  { %7529 = vmatprep.subr.bf16.mxu0 %v13701_v1 }
  0x4a   :  { %7548 = vmatpush3.bf16.msra.mxu1 %v8328_v12 }
  0x4b   :  { %7549 = vmatprep.subr.bf16.mxu1 %v13701_v1 }
  0x4c   :  { %7530 = vmatpush3.bf16.msra.mxu0 %v8321_v9 }
  0x4d   :  { %7531 = vmatprep.subr.bf16.mxu0 %v13701_v1 }
  0x4e   :  { %7550 = vmatpush3.bf16.msra.mxu1 %v8329_v15 }
  0x4f   :  { %7551 = vmatprep.subr.bf16.mxu1 %v13701_v1 }
  0x50   :  { %7532 = vmatpush3.bf16.msra.mxu0 %v8322_v11 }
  0x51   :  { %7533 = vmatprep.subr.bf16.mxu0 %v13701_v1 }
  0x52   :  { %7552 = vmatpush3.bf16.msra.mxu1 %v8330_v17 }
  0x53   :  { %7553 = vmatprep.subr.bf16.mxu1 %v13701_v1 }
  0x54   :  { %7534 = vmatpush3.bf16.msra.mxu0 %v8323_v13 }
  0x56   :  { %7554 = vmatpush3.bf16.msra.mxu1 %v8331_v18 }
  0x57   :  { %7536 = vmatmul.mubr.bf16.vlgmr.msra.gmra.mrb[0].mxu0 %v66_v16 }
 0x12a   :  { %v170_v20 = vpop.f32.mrb[0].mxu0 }
 0x12b   :  { %v171_v21 = vadd.f32 %v7190_v19, %v170_v20  ;;  %v7537_v22 = vpop.f32.mrb[1].mxu0 }
 0x12c   :  { %v173_v23 = vpop.f32.mrb[2].mxu0 }
 0x12d   :  { %v176_v24 = vmax.f32 %v171_v21, 0.0  ;;  %v7538_v25 = vpop.f32.mrb[3].mxu0 }
 0x12f   :  { %v177_v26 = vpack.c.bf16 %v176_v24, %v176_v24 }
 0x131   :  { %7556 = vmatmul.mubr.bf16.vlgmr.msra.gmra.mrb[0].mxu1 %v177_v26 }
 0x204   :  { %v282_v33 = vpop.f32.mrb[0].mxu1 }
 0x205   :  { %v283_v34 = vadd.f32 %v7199_v32, %v282_v33  ;;  %v7557_v37 = vpop.f32.mrb[1].mxu1 }
 0x206   :  { %v285_v42 = vpop.f32.mrb[2].mxu1 }
 0x207   :  { %v9065_v43 = vmax.f32 %v283_v34, 0.0  ;;  %v7558_v45 = vpop.f32.mrb[3].mxu1 }
 0x209   :  { %v294_v50 = vmul.f32 %v293_v35, %v9065_v43  ;;  %v834_v51 = vmul.f32 %v833_v41, %v9065_v43  ;;  %v1374_v52 = vcombine.high %v9065_v43, %v9065_v43  ;;  %v1381_v53 = vrot.slane %v9065_v43, %v1380_v36 }
 0x20a   :  { %v2488_v54 = vmul.f32 %v2487_v44, %v9065_v43  ;;  %v9083_v55 = vrot.slane %v9065_v43, %v9057_v38  ;;  %v9087_v56 = vrot.slane %v9065_v43, %v9060_v39  ;;  %v9091_v57 = vrot.slane %v9065_v43, %v9063_v40 }
 0x20b   :  { %v9093_v58 = vadd.f32 %v295_v46, %v294_v50  ;;  %v836_v59 = vadd.f32 %v835_v49, %v834_v51  ;;  %v1388_v60 = vrot.slane %v1374_v52, %v1380_v36  ;;  %v9098_v62 = vrot.slane %v9065_v43, %v9069_v47 }
 0x20c   :  { %13915 = vst [vmem:[#allocation15_spill] sm:$0xff] %v9083_v55  ;;  %13916 = vst [vmem:[#allocation16_spill] sm:$0xff] %v9087_v56  ;;  %v9102_v63 = vrot.slane %v9065_v43, %v9072_v48  ;;  %v1389_v2 = vcombine.high %v1381_v53, %v1381_v53  ;;  %v1397_v3 = vrot.slane %v1381_v53, %v1380_v36 }
 0x20d   :  { %13917 = vst [vmem:[#allocation17_spill] sm:$0xff] %v9091_v57  ;;  %13918 = vst [vmem:[#allocation18_spill] sm:$0xff] %v9098_v62  ;;  %v300_v0 = vrot.slane %v9093_v58, %v9057_v38  ;;  %v2490_v7 = vadd.f32 %v2489_v61, %v2488_v54  ;;  %v9116_v8 = vrot.slane %v836_v59, %v9057_v38 }
 0x20e   :  { %13919 = vst [vmem:[#allocation19_spill] sm:$0xff] %v9102_v63  ;;  %v9119_v9 = vrot.slane %v836_v59, %v9060_v39  ;;  %v9122_v10 = vrot.slane %v836_v59, %v9063_v40  ;;  %v9125_v11 = vrot.slane %v836_v59, %v9069_v47  ;;  %v9128_v12 = vrot.slane %v836_v59, %v9072_v48 }
 0x20f   :  { %310 = vbcast.lane.b32.xlu1 %v300_v0, 272  ;;  %v9131_v13 = vrot.slane %v836_v59, %v9107_v4  ;;  %v9134_v14 = vrot.slane %v836_v59, %v9110_v5  ;;  %v9137_v15 = vrot.slane %v836_v59, %v9113_v6  ;;  %302 = vbcast.lane.b32.xlu0 %v300_v0, 256 }
 0x210   :  { %v1390_v16 = vcombine.high %v1388_v60, %v1388_v60  ;;  %v1404_v17 = vrot.slane %v1388_v60, %v1380_v36  ;;  %v1411_v18 = vrot.slane %v1389_v2, %v1380_v36  ;;  %v1419_v19 = vcombine.high %v1397_v3, %v1397_v3 }
 0x211   :  { %v9140_v20 = vrot.slane %v1397_v3, %v9057_v38  ;;  %v9143_v21 = vrot.slane %v2490_v7, %v9057_v38  ;;  %v9146_v22 = vrot.slane %v2490_v7, %v9060_v39  ;;  %v9149_v23 = vrot.slane %v2490_v7, %v9063_v40 }
 0x212   :  { %v1418_v24 = vrot.slane %v1390_v16, %v1380_v36  ;;  %v1420_v25 = vcombine.high %v1404_v17, %v1404_v17  ;;  %v1421_v26 = vcombine.high %v1411_v18, %v1411_v18  ;;  %v9152_v28 = vrot.slane %v1411_v18, %v9057_v38 }
 0x213   :  { %13920 = vst [vmem:[#allocation20_spill] sm:$0xff] %v9143_v21  ;;  %13921 = vst [vmem:[#allocation21_spill] sm:$0xff] %v9146_v22  ;;  %314 = vbcast.lane.b32.xlu1 %v300_v0, 280  ;;  %v9155_v29 = vrot.slane %v1419_v19, %v9057_v38  ;;  %v9158_v31 = vrot.slane %v1404_v17, %v9057_v38  ;;  %v9161_v32 = vrot.slane %v2490_v7, %v9069_v47 }
 0x214   :  { %13922 = vst [vmem:[#allocation22_spill] sm:$0xff] %v9149_v23  ;;  %v9164_v33 = vrot.slane %v2490_v7, %v9072_v48  ;;  %306 = vbcast.lane.b32.xlu0 %v300_v0, 264  ;;  %v1422_v34 = vcombine.high %v1418_v24, %v1418_v24  ;;  %v9167_v35 = vrot.slane %v1421_v26, %v9057_v38 }
 0x215   :  { %13923 = vst [vmem:[#allocation23_spill] sm:$0xff] %v9155_v29  ;;  %13924 = vst [vmem:[#allocation24_spill] sm:$0xff] %v9158_v31  ;;  %v9170_v36 = vrot.slane %v1418_v24, %v9057_v38  ;;  %v9173_v37 = vrot.slane %v1420_v25, %v9057_v38  ;;  %v9176_v41 = vrot.slane %v2490_v7, %v9107_v4 }
 0x216   :  { %13925 = vst [vmem:[#allocation25_spill] sm:$0xff] %v9161_v32  ;;  %13926 = vst [vmem:[#allocation26_spill] sm:$0xff] %v9164_v33  ;;  %v9179_v42 = vrot.slane %v2490_v7, %v9110_v5  ;;  %v9182_v44 = vrot.slane %v2490_v7, %v9113_v6  ;;  %v9186_v45 = vrot.slane %v9065_v43, %v9107_v4 }
 0x217   :  { %13927 = vst [vmem:[#allocation27_spill] sm:$0xff] %v9167_v35  ;;  %13928 = vst [vmem:[#allocation28_spill] sm:$0xff] %v9170_v36  ;;  %v9189_v46 = vrot.slane %v1422_v34, %v9057_v38  ;;  %v9193_v49 = vrot.slane %v9065_v43, %v9110_v5  ;;  %v9197_v50 = vrot.slane %v9065_v43, %v9113_v6  ;;  %322 = vbcast.lane.b32.xlu1 %v300_v0, 296 }
 0x218   :  { %13929 = vst [vmem:[#allocation29_spill] sm:$0xff] %v9173_v37  ;;  %13930 = vst [vmem:[#allocation30_spill] sm:$0xff] %v9176_v41  ;;  %318 = vbcast.lane.b32.xlu0 %v300_v0, 288  ;;  %v367_v38 = vrot.slane %v9093_v58, %v9060_v39  ;;  %v434_v43 = vrot.slane %v9093_v58, %v9063_v40  ;;  %v501_v39 = vrot.slane %v9093_v58, %v9069_v47 }
 0x219   :  { %13931 = vst [vmem:[#allocation31_spill] sm:$0xff] %v9179_v42  ;;  %13932 = vst [vmem:[#allocation32_spill] sm:$0xff] %v9182_v44  ;;  %v568_v59 = vrot.slane %v9093_v58, %v9072_v48  ;;  %v702_v41 = vrot.slane %v9093_v58, %v9110_v5 }
 0x21a   :  { %13933 = vst [vmem:[#allocation33_spill] sm:$0xff] %v9186_v45  ;;  %13934 = vst [vmem:[#allocation34_spill] sm:$0xff] %v9189_v46 }
 0x21b   :  { %13935 = vst [vmem:[#allocation35_spill] sm:$0xff] %v9193_v49  ;;  %13936 = vst [vmem:[#allocation36_spill] sm:$0xff] %v9197_v50  ;;  %330 = vbcast.lane.b32.xlu1 %v300_v0, 312 }
 0x21c   :  { %326 = vbcast.lane.b32.xlu0 %v300_v0, 304 }
 0x21f   :  { %338 = vbcast.lane.b32.xlu1 %v300_v0, 328 }
 0x220   :  { %334 = vbcast.lane.b32.xlu0 %v300_v0, 320 }
 0x223   :  { %346 = vbcast.lane.b32.xlu1 %v300_v0, 344 }
 0x224   :  { %342 = vbcast.lane.b32.xlu0 %v300_v0, 336 }
 0x227   :  { %354 = vbcast.lane.b32.xlu1 %v300_v0, 360 }
 0x228   :  { %350 = vbcast.lane.b32.xlu0 %v300_v0, 352 }
 0x22b   :  { %362 = vbcast.lane.b32.xlu1 %v300_v0, 376 }
 0x22c   :  { %358 = vbcast.lane.b32.xlu0 %v300_v0, 368 }
 0x22f   :  { %373 = vbcast.lane.b32.xlu1 %v367_v38, 264 }
 0x230   :  { %369 = vbcast.lane.b32.xlu0 %v367_v38, 256 }
 0x233   :  { %381 = vbcast.lane.b32.xlu1 %v367_v38, 280 }
 0x234   :  { %377 = vbcast.lane.b32.xlu0 %v367_v38, 272 }
 0x237   :  { %389 = vbcast.lane.b32.xlu1 %v367_v38, 296 }
 0x238   :  { %385 = vbcast.lane.b32.xlu0 %v367_v38, 288 }
 0x23b   :  { %397 = vbcast.lane.b32.xlu1 %v367_v38, 312 }
 0x23c   :  { %393 = vbcast.lane.b32.xlu0 %v367_v38, 304 }
 0x23f   :  { %405 = vbcast.lane.b32.xlu1 %v367_v38, 328 }
 0x240   :  { %401 = vbcast.lane.b32.xlu0 %v367_v38, 320 }
 0x243   :  { %413 = vbcast.lane.b32.xlu1 %v367_v38, 344 }
 0x244   :  { %409 = vbcast.lane.b32.xlu0 %v367_v38, 336 }
 0x247   :  { %421 = vbcast.lane.b32.xlu1 %v367_v38, 360 }
 0x248   :  { %417 = vbcast.lane.b32.xlu0 %v367_v38, 352 }
 0x24b   :  { %429 = vbcast.lane.b32.xlu1 %v367_v38, 376 }
 0x24c   :  { %425 = vbcast.lane.b32.xlu0 %v367_v38, 368 }
 0x24f   :  { %440 = vbcast.lane.b32.xlu1 %v434_v43, 264 }
 0x250   :  { %436 = vbcast.lane.b32.xlu0 %v434_v43, 256 }
 0x253   :  { %448 = vbcast.lane.b32.xlu1 %v434_v43, 280 }
 0x254   :  { %444 = vbcast.lane.b32.xlu0 %v434_v43, 272 }
 0x257   :  { %456 = vbcast.lane.b32.xlu1 %v434_v43, 296 }
 0x258   :  { %452 = vbcast.lane.b32.xlu0 %v434_v43, 288 }
 0x25b   :  { %464 = vbcast.lane.b32.xlu1 %v434_v43, 312 }
 0x25c   :  { %460 = vbcast.lane.b32.xlu0 %v434_v43, 304 }
 0x25f   :  { %472 = vbcast.lane.b32.xlu1 %v434_v43, 328 }
 0x260   :  { %468 = vbcast.lane.b32.xlu0 %v434_v43, 320 }
 0x263   :  { %480 = vbcast.lane.b32.xlu1 %v434_v43, 344 }
 0x264   :  { %476 = vbcast.lane.b32.xlu0 %v434_v43, 336 }
 0x267   :  { %488 = vbcast.lane.b32.xlu1 %v434_v43, 360 }
 0x268   :  { %484 = vbcast.lane.b32.xlu0 %v434_v43, 352 }
 0x26b   :  { %496 = vbcast.lane.b32.xlu1 %v434_v43, 376 }
 0x26c   :  { %492 = vbcast.lane.b32.xlu0 %v434_v43, 368  ;;  %v635_v43 = vrot.slane %v9093_v58, %v9107_v4 }
 0x26f   :  { %507 = vbcast.lane.b32.xlu1 %v501_v39, 264 }
 0x270   :  { %503 = vbcast.lane.b32.xlu0 %v501_v39, 256 }
 0x273   :  { %515 = vbcast.lane.b32.xlu1 %v501_v39, 280 }
 0x274   :  { %511 = vbcast.lane.b32.xlu0 %v501_v39, 272 }
 0x277   :  { %523 = vbcast.lane.b32.xlu1 %v501_v39, 296 }
 0x278   :  { %519 = vbcast.lane.b32.xlu0 %v501_v39, 288 }
 0x27b   :  { %531 = vbcast.lane.b32.xlu1 %v501_v39, 312 }
 0x27c   :  { %527 = vbcast.lane.b32.xlu0 %v501_v39, 304 }
 0x27f   :  { %539 = vbcast.lane.b32.xlu1 %v501_v39, 328 }
 0x280   :  { %535 = vbcast.lane.b32.xlu0 %v501_v39, 320 }
 0x281   :  { %v9205_v40 = vpop.permute.xlu1 %310  ;;  %v9207_v51 = vpop.permute.xlu0 %302 }
 0x283   :  { %547 = vbcast.lane.b32.xlu1 %v501_v39, 344 }
 0x284   :  { %543 = vbcast.lane.b32.xlu0 %v501_v39, 336 }
 0x285   :  { %v9209_v52 = vpop.permute.xlu1 %314 }
 0x286   :  { %v9211_v53 = vpop.permute.xlu0 %306 }
 0x287   :  { %555 = vbcast.lane.b32.xlu1 %v501_v39, 360 }
 0x288   :  { %551 = vbcast.lane.b32.xlu0 %v501_v39, 352 }
 0x289   :  { %v9213_v47 = vpop.permute.xlu1 %322 }
 0x28a   :  { %v9215_v54 = vpop.permute.xlu0 %318 }
 0x28b   :  { %563 = vbcast.lane.b32.xlu1 %v501_v39, 376 }
 0x28c   :  { %559 = vbcast.lane.b32.xlu0 %v501_v39, 368 }
 0x28d   :  { %v9219_v60 = vpop.permute.xlu1 %330 }
 0x28e   :  { %v9221_v61 = vpop.permute.xlu0 %326 }
 0x28f   :  { %574 = vbcast.lane.b32.xlu1 %v568_v59, 264 }
 0x290   :  { %570 = vbcast.lane.b32.xlu0 %v568_v59, 256 }
 0x291   :  { %v9223_v0 = vpop.permute.xlu1 %338 }
 0x292   :  { %v9225_v2 = vpop.permute.xlu0 %334 }
 0x293   :  { %582 = vbcast.lane.b32.xlu1 %v568_v59, 280 }
 0x294   :  { %578 = vbcast.lane.b32.xlu0 %v568_v59, 272 }
 0x295   :  { %v9227_v3 = vpop.permute.xlu1 %346 }
 0x296   :  { %v9229_v7 = vpop.permute.xlu0 %342 }
 0x297   :  { %590 = vbcast.lane.b32.xlu1 %v568_v59, 296 }
 0x298   :  { %586 = vbcast.lane.b32.xlu0 %v568_v59, 288 }
 0x299   :  { %v9231_v16 = vpop.permute.xlu1 %354 }
 0x29a   :  { %v9233_v48 = vpop.permute.xlu0 %350 }
 0x29b   :  { %598 = vbcast.lane.b32.xlu1 %v568_v59, 312 }
 0x29c   :  { %594 = vbcast.lane.b32.xlu0 %v568_v59, 304 }
 0x29d   :  { %v9235_v17 = vpop.permute.xlu1 %362 }
 0x29e   :  { %v9237_v18 = vpop.permute.xlu0 %358 }
 0x29f   :  { %606 = vbcast.lane.b32.xlu1 %v568_v59, 328 }
 0x2a0   :  { %602 = vbcast.lane.b32.xlu0 %v568_v59, 320 }
 0x2a1   :  { %v9239_v19 = vpop.permute.xlu1 %373 }
 0x2a2   :  { %v9241_v24 = vpop.permute.xlu0 %369 }
 0x2a3   :  { %614 = vbcast.lane.b32.xlu1 %v568_v59, 344 }
 0x2a4   :  { %610 = vbcast.lane.b32.xlu0 %v568_v59, 336 }
 0x2a5   :  { %v9243_v25 = vpop.permute.xlu1 %381 }
 0x2a6   :  { %v9245_v26 = vpop.permute.xlu0 %377 }
 0x2a7   :  { %622 = vbcast.lane.b32.xlu1 %v568_v59, 360 }
 0x2a8   :  { %618 = vbcast.lane.b32.xlu0 %v568_v59, 352 }
 0x2a9   :  { %v9247_v34 = vpop.permute.xlu1 %389 }
 0x2aa   :  { %v9249_v38 = vpop.permute.xlu0 %385 }
 0x2ab   :  { %630 = vbcast.lane.b32.xlu1 %v568_v59, 376 }
 0x2ac   :  { %626 = vbcast.lane.b32.xlu0 %v568_v59, 368 }
 0x2ad   :  { %v9253_v39 = vpop.permute.xlu1 %397 }
 0x2ae   :  { %v9255_v1 = vpop.permute.xlu0 %393 }
 0x2af   :  { %641 = vbcast.lane.b32.xlu1 %v635_v43, 264 }
 0x2b0   :  { %637 = vbcast.lane.b32.xlu0 %v635_v43, 256 }
 0x2b1   :  { %v9257_v27 = vpop.permute.xlu1 %405 }
 0x2b2   :  { %v9259_v30 = vpop.permute.xlu0 %401 }
 0x2b3   :  { %649 = vbcast.lane.b32.xlu1 %v635_v43, 280 }
 0x2b4   :  { %645 = vbcast.lane.b32.xlu0 %v635_v43, 272 }
 0x2b5   :  { %v9261_v50 = vpop.permute.xlu1 %413 }
 0x2b6   :  { %13937 = vst [vmem:[#allocation37_spill] sm:$0xff] %v9261_v50  ;;  %v9263_v49 = vpop.permute.xlu0 %409 }
 0x2b7   :  { %13938 = vst [vmem:[#allocation38_spill] sm:$0xff] %v9263_v49  ;;  %657 = vbcast.lane.b32.xlu1 %v635_v43, 296 }
 0x2b8   :  { %653 = vbcast.lane.b32.xlu0 %v635_v43, 288 }
 0x2b9   :  { %v9265_v59 = vpop.permute.xlu1 %421 }
 0x2ba   :  { %13939 = vst [vmem:[#allocation39_spill] sm:$0xff] %v9265_v59  ;;  %v9267_v4 = vpop.permute.xlu0 %417 }
 0x2bb   :  { %13940 = vst [vmem:[#allocation40_spill] sm:$0xff] %v9267_v4  ;;  %665 = vbcast.lane.b32.xlu1 %v635_v43, 312 }
 0x2bc   :  { %661 = vbcast.lane.b32.xlu0 %v635_v43, 304 }
 0x2bd   :  { %v9269_v45 = vpop.permute.xlu1 %429 }
 0x2be   :  { %13941 = vst [vmem:[#allocation41_spill] sm:$0xff] %v9269_v45  ;;  %v9271_v63 = vpop.permute.xlu0 %425 }
 0x2bf   :  { %13942 = vst [vmem:[#allocation42_spill] sm:$0xff] %v9271_v63  ;;  %673 = vbcast.lane.b32.xlu1 %v635_v43, 328 }
 0x2c0   :  { %669 = vbcast.lane.b32.xlu0 %v635_v43, 320 }
 0x2c1   :  { %v9273_v62 = vpop.permute.xlu1 %440 }
 0x2c2   :  { %13943 = vst [vmem:[#allocation43_spill] sm:$0xff] %v9273_v62  ;;  %v9275_v57 = vpop.permute.xlu0 %436 }
 0x2c3   :  { %13944 = vst [vmem:[#allocation44_spill] sm:$0xff] %v9275_v57  ;;  %681 = vbcast.lane.b32.xlu1 %v635_v43, 344 }
 0x2c4   :  { %677 = vbcast.lane.b32.xlu0 %v635_v43, 336 }
 0x2c5   :  { %v9277_v56 = vpop.permute.xlu1 %448 }
 0x2c6   :  { %13945 = vst [vmem:[#allocation45_spill] sm:$0xff] %v9277_v56  ;;  %v9279_v55 = vpop.permute.xlu0 %444 }
 0x2c7   :  { %13946 = vst [vmem:[#allocation46_spill] sm:$0xff] %v9279_v55  ;;  %689 = vbcast.lane.b32.xlu1 %v635_v43, 360 }
 0x2c8   :  { %685 = vbcast.lane.b32.xlu0 %v635_v43, 352 }
 0x2c9   :  { %v9281_v44 = vpop.permute.xlu1 %456 }
 0x2ca   :  { %13947 = vst [vmem:[#allocation47_spill] sm:$0xff] %v9281_v44  ;;  %v9283_v42 = vpop.permute.xlu0 %452 }
 0x2cb   :  { %13948 = vst [vmem:[#allocation48_spill] sm:$0xff] %v9283_v42  ;;  %697 = vbcast.lane.b32.xlu1 %v635_v43, 376 }
 0x2cc   :  { %693 = vbcast.lane.b32.xlu0 %v635_v43, 368 }
 0x2cd   :  { %v9287_v33 = vpop.permute.xlu1 %464 }
 0x2ce   :  { %13949 = vst [vmem:[#allocation49_spill] sm:$0xff] %v9287_v33  ;;  %v9289_v32 = vpop.permute.xlu0 %460 }
 0x2cf   :  { %13950 = vst [vmem:[#allocation50_spill] sm:$0xff] %v9289_v32  ;;  %708 = vbcast.lane.b32.xlu1 %v702_v41, 264 }
 0x2d0   :  { %704 = vbcast.lane.b32.xlu0 %v702_v41, 256 }
 0x2d1   :  { %v9291_v23 = vpop.permute.xlu1 %472 }
 0x2d2   :  { %13951 = vst [vmem:[#allocation51_spill] sm:$0xff] %v9291_v23  ;;  %v9293_v22 = vpop.permute.xlu0 %468 }
 0x2d3   :  { %13952 = vst [vmem:[#allocation52_spill] sm:$0xff] %v9293_v22  ;;  %716 = vbcast.lane.b32.xlu1 %v702_v41, 280 }
 0x2d4   :  { %712 = vbcast.lane.b32.xlu0 %v702_v41, 272 }
 0x2d5   :  { %v9295_v21 = vpop.permute.xlu1 %480 }
 0x2d6   :  { %13953 = vst [vmem:[#allocation53_spill] sm:$0xff] %v9295_v21  ;;  %v9297_v46 = vpop.permute.xlu0 %476 }
 0x2d7   :  { %13954 = vst [vmem:[#allocation54_spill] sm:$0xff] %v9297_v46  ;;  %724 = vbcast.lane.b32.xlu1 %v702_v41, 296 }
 0x2d8   :  { %720 = vbcast.lane.b32.xlu0 %v702_v41, 288 }
 0x2d9   :  { %v9299_v43 = vpop.permute.xlu1 %488 }
 0x2da   :  { %13955 = vst [vmem:[#allocation55_spill] sm:$0xff] %v9299_v43  ;;  %v9301_v5 = vpop.permute.xlu0 %484 }
 0x2db   :  { %13956 = vst [vmem:[#allocation56_spill] sm:$0xff] %v9301_v5  ;;  %732 = vbcast.lane.b32.xlu1 %v702_v41, 312 }
 0x2dc   :  { %728 = vbcast.lane.b32.xlu0 %v702_v41, 304 }
 0x2dd   :  { %v9303_v37 = vpop.permute.xlu1 %496 }
 0x2de   :  { %13957 = vst [vmem:[#allocation57_spill] sm:$0xff] %v9303_v37  ;;  %v9305_v36 = vpop.permute.xlu0 %492  ;;  %v769_v37 = vrot.slane %v9093_v58, %v9113_v6 }
 0x2df   :  { %13958 = vst [vmem:[#allocation58_spill] sm:$0xff] %v9305_v36  ;;  %740 = vbcast.lane.b32.xlu1 %v702_v41, 328 }
 0x2e0   :  { %736 = vbcast.lane.b32.xlu0 %v702_v41, 320 }
 0x2e1   :  { %v9307_v31 = vpop.permute.xlu1 %507 }
 0x2e2   :  { %13959 = vst [vmem:[#allocation59_spill] sm:$0xff] %v9307_v31  ;;  %v9309_v35 = vpop.permute.xlu0 %503 }
 0x2e3   :  { %13960 = vst [vmem:[#allocation60_spill] sm:$0xff] %v9309_v35  ;;  %748 = vbcast.lane.b32.xlu1 %v702_v41, 344 }
 0x2e4   :  { %744 = vbcast.lane.b32.xlu0 %v702_v41, 336 }
 0x2e5   :  { %v9311_v21 = vpop.permute.xlu1 %515 }
 0x2e6   :  { %13961 = vst [vmem:[#allocation61_spill] sm:$0xff] %v9311_v21  ;;  %v9313_v46 = vpop.permute.xlu0 %511 }
 0x2e7   :  { %13962 = vst [vmem:[#allocation62_spill] sm:$0xff] %v9313_v46  ;;  %756 = vbcast.lane.b32.xlu1 %v702_v41, 360 }
 0x2e8   :  { %752 = vbcast.lane.b32.xlu0 %v702_v41, 352 }
 0x2e9   :  { %v9315_v43 = vpop.permute.xlu1 %523 }
 0x2ea   :  { %13963 = vst [vmem:[#allocation63_spill] sm:$0xff] %v9315_v43  ;;  %v9317_v5 = vpop.permute.xlu0 %519 }
 0x2eb   :  { %13964 = vst [vmem:[#allocation64_spill] sm:$0xff] %v9317_v5  ;;  %764 = vbcast.lane.b32.xlu1 %v702_v41, 376 }
 0x2ec   :  { %760 = vbcast.lane.b32.xlu0 %v702_v41, 368 }
 0x2ed   :  { %v9321_v31 = vpop.permute.xlu1 %531 }
 0x2ee   :  { %13965 = vst [vmem:[#allocation65_spill] sm:$0xff] %v9321_v31  ;;  %v9323_v35 = vpop.permute.xlu0 %527 }
 0x2ef   :  { %13966 = vst [vmem:[#allocation66_spill] sm:$0xff] %v9323_v35  ;;  %775 = vbcast.lane.b32.xlu1 %v769_v37, 264 }
 0x2f0   :  { %771 = vbcast.lane.b32.xlu0 %v769_v37, 256 }
 0x2f1   :  { %v9325_v21 = vpop.permute.xlu1 %539 }
 0x2f2   :  { %13967 = vst [vmem:[#allocation67_spill] sm:$0xff] %v9325_v21  ;;  %v9327_v46 = vpop.permute.xlu0 %535 }
 0x2f3   :  { %13968 = vst [vmem:[#allocation68_spill] sm:$0xff] %v9327_v46  ;;  %783 = vbcast.lane.b32.xlu1 %v769_v37, 280 }
 0x2f4   :  { %779 = vbcast.lane.b32.xlu0 %v769_v37, 272 }
 0x2f5   :  { %v9329_v43 = vpop.permute.xlu1 %547 }
 0x2f6   :  { %13969 = vst [vmem:[#allocation69_spill] sm:$0xff] %v9329_v43  ;;  %v9331_v5 = vpop.permute.xlu0 %543 }
 0x2f7   :  { %13970 = vst [vmem:[#allocation70_spill] sm:$0xff] %v9331_v5  ;;  %791 = vbcast.lane.b32.xlu1 %v769_v37, 296 }
 0x2f8   :  { %787 = vbcast.lane.b32.xlu0 %v769_v37, 288 }
 0x2f9   :  { %v9333_v41 = vpop.permute.xlu1 %555 }
 0x2fa   :  { %13971 = vst [vmem:[#allocation71_spill] sm:$0xff] %v9333_v41  ;;  %v9335_v58 = vpop.permute.xlu0 %551 }
 0x2fb   :  { %13972 = vst [vmem:[#allocation72_spill] sm:$0xff] %v9335_v58  ;;  %799 = vbcast.lane.b32.xlu1 %v769_v37, 312 }
 0x2fc   :  { %795 = vbcast.lane.b32.xlu0 %v769_v37, 304 }
 0x2fd   :  { %v9337_v6 = vpop.permute.xlu1 %563 }
 0x2fe   :  { %13973 = vst [vmem:[#allocation73_spill] sm:$0xff] %v9337_v6  ;;  %v9339_v31 = vpop.permute.xlu0 %559 }
 0x2ff   :  { %13974 = vst [vmem:[#allocation74_spill] sm:$0xff] %v9339_v31  ;;  %807 = vbcast.lane.b32.xlu1 %v769_v37, 328 }
 0x300   :  { %803 = vbcast.lane.b32.xlu0 %v769_v37, 320 }
 0x301   :  { %v9341_v21 = vpop.permute.xlu1 %574 }
 0x302   :  { %13975 = vst [vmem:[#allocation75_spill] sm:$0xff] %v9341_v21  ;;  %v9343_v46 = vpop.permute.xlu0 %570 }
 0x303   :  { %13976 = vst [vmem:[#allocation76_spill] sm:$0xff] %v9343_v46  ;;  %815 = vbcast.lane.b32.xlu1 %v769_v37, 344 }
 0x304   :  { %811 = vbcast.lane.b32.xlu0 %v769_v37, 336 }
 0x305   :  { %v9345_v43 = vpop.permute.xlu1 %582 }
 0x306   :  { %13977 = vst [vmem:[#allocation77_spill] sm:$0xff] %v9345_v43  ;;  %v9347_v5 = vpop.permute.xlu0 %578 }
 0x307   :  { %13978 = vst [vmem:[#allocation78_spill] sm:$0xff] %v9347_v5  ;;  %823 = vbcast.lane.b32.xlu1 %v769_v37, 360 }
 0x308   :  { %819 = vbcast.lane.b32.xlu0 %v769_v37, 352 }
 0x309   :  { %v9349_v41 = vpop.permute.xlu1 %590 }
 0x30a   :  { %13979 = vst [vmem:[#allocation79_spill] sm:$0xff] %v9349_v41  ;;  %v9351_v58 = vpop.permute.xlu0 %586 }
 0x30b   :  { %13980 = vst [vmem:[#allocation80_spill] sm:$0xff] %v9351_v58  ;;  %831 = vbcast.lane.b32.xlu1 %v769_v37, 376 }
 0x30c   :  { %827 = vbcast.lane.b32.xlu0 %v769_v37, 368 }
 0x30d   :  { %v9353_v6 = vpop.permute.xlu1 %598 }
 0x30e   :  { %13981 = vst [vmem:[#allocation81_spill] sm:$0xff] %v9353_v6  ;;  %v9355_v31 = vpop.permute.xlu0 %594 }
 0x30f   :  { %13982 = vst [vmem:[#allocation82_spill] sm:$0xff] %v9355_v31  ;;  %846 = vbcast.lane.b32.xlu1 %v9116_v8, 264 }
 0x310   :  { %842 = vbcast.lane.b32.xlu0 %v9116_v8, 256 }
 0x311   :  { %v9359_v21 = vpop.permute.xlu1 %606 }
 0x312   :  { %13983 = vst [vmem:[#allocation83_spill] sm:$0xff] %v9359_v21  ;;  %v9361_v43 = vpop.permute.xlu0 %602 }
 0x313   :  { %13984 = vst [vmem:[#allocation84_spill] sm:$0xff] %v9361_v43  ;;  %854 = vbcast.lane.b32.xlu1 %v9116_v8, 280 }
 0x314   :  { %850 = vbcast.lane.b32.xlu0 %v9116_v8, 272 }
 0x315   :  { %v9365_v41 = vpop.permute.xlu1 %614 }
 0x316   :  { %13985 = vst [vmem:[#allocation85_spill] sm:$0xff] %v9365_v41  ;;  %v9367_v58 = vpop.permute.xlu0 %610 }
 0x317   :  { %13986 = vst [vmem:[#allocation86_spill] sm:$0xff] %v9367_v58  ;;  %862 = vbcast.lane.b32.xlu1 %v9116_v8, 296 }
 0x318   :  { %858 = vbcast.lane.b32.xlu0 %v9116_v8, 288 }
 0x319   :  { %v9371_v37 = vpop.permute.xlu1 %622 }
 0x31a   :  { %13987 = vst [vmem:[#allocation87_spill] sm:$0xff] %v9371_v37  ;;  %v9373_v6 = vpop.permute.xlu0 %618 }
 0x31b   :  { %13988 = vst [vmem:[#allocation88_spill] sm:$0xff] %v9373_v6  ;;  %870 = vbcast.lane.b32.xlu1 %v9116_v8, 312 }
 0x31c   :  { %866 = vbcast.lane.b32.xlu0 %v9116_v8, 304 }
 0x31d   :  { %v9377_v21 = vpop.permute.xlu1 %630 }
 0x31e   :  { %13989 = vst [vmem:[#allocation89_spill] sm:$0xff] %v9377_v21  ;;  %v9379_v43 = vpop.permute.xlu0 %626 }
 0x31f   :  { %13990 = vst [vmem:[#allocation90_spill] sm:$0xff] %v9379_v43  ;;  %878 = vbcast.lane.b32.xlu1 %v9116_v8, 328 }
 0x320   :  { %874 = vbcast.lane.b32.xlu0 %v9116_v8, 320 }
 0x321   :  { %v9383_v41 = vpop.permute.xlu1 %641 }
 0x322   :  { %13991 = vst [vmem:[#allocation91_spill] sm:$0xff] %v9383_v41  ;;  %v9385_v58 = vpop.permute.xlu0 %637 }
 0x323   :  { %13992 = vst [vmem:[#allocation92_spill] sm:$0xff] %v9385_v58  ;;  %886 = vbcast.lane.b32.xlu1 %v9116_v8, 344 }
 0x324   :  { %882 = vbcast.lane.b32.xlu0 %v9116_v8, 336 }
 0x325   :  { %v9389_v37 = vpop.permute.xlu1 %649 }
 0x326   :  { %13993 = vst [vmem:[#allocation93_spill] sm:$0xff] %v9389_v37  ;;  %v9391_v6 = vpop.permute.xlu0 %645 }
 0x327   :  { %13994 = vst [vmem:[#allocation94_spill] sm:$0xff] %v9391_v6  ;;  %894 = vbcast.lane.b32.xlu1 %v9116_v8, 360 }
 0x328   :  { %890 = vbcast.lane.b32.xlu0 %v9116_v8, 352 }
 0x329   :  { %v9395_v21 = vpop.permute.xlu1 %657 }
 0x32a   :  { %13995 = vst [vmem:[#allocation95_spill] sm:$0xff] %v9395_v21  ;;  %v9397_v43 = vpop.permute.xlu0 %653 }
 0x32b   :  { %13996 = vst [vmem:[#allocation96_spill] sm:$0xff] %v9397_v43  ;;  %902 = vbcast.lane.b32.xlu1 %v9116_v8, 376 }
 0x32c   :  { %898 = vbcast.lane.b32.xlu0 %v9116_v8, 368 }
 0x32d   :  { %v9401_v41 = vpop.permute.xlu1 %665 }
 0x32e   :  { %13997 = vst [vmem:[#allocation97_spill] sm:$0xff] %v9401_v41  ;;  %v9403_v58 = vpop.permute.xlu0 %661 }
 0x32f   :  { %13998 = vst [vmem:[#allocation98_spill] sm:$0xff] %v9403_v58  ;;  %913 = vbcast.lane.b32.xlu1 %v9119_v9, 264 }
 0x330   :  { %909 = vbcast.lane.b32.xlu0 %v9119_v9, 256 }
 0x331   :  { %v9407_v37 = vpop.permute.xlu1 %673 }
 0x332   :  { %13999 = vst [vmem:[#allocation99_spill] sm:$0xff] %v9407_v37  ;;  %v9409_v6 = vpop.permute.xlu0 %669 }
 0x333   :  { %14000 = vst [vmem:[#allocation100_spill] sm:$0xff] %v9409_v6  ;;  %921 = vbcast.lane.b32.xlu1 %v9119_v9, 280 }
 0x334   :  { %917 = vbcast.lane.b32.xlu0 %v9119_v9, 272 }
 0x335   :  { %v9413_v21 = vpop.permute.xlu1 %681 }
 0x336   :  { %14001 = vst [vmem:[#allocation101_spill] sm:$0xff] %v9413_v21  ;;  %v9415_v43 = vpop.permute.xlu0 %677 }
 0x337   :  { %14002 = vst [vmem:[#allocation102_spill] sm:$0xff] %v9415_v43  ;;  %929 = vbcast.lane.b32.xlu1 %v9119_v9, 296 }
 0x338   :  { %925 = vbcast.lane.b32.xlu0 %v9119_v9, 288 }
 0x339   :  { %v9419_v8 = vpop.permute.xlu1 %689 }
 0x33a   :  { %14003 = vst [vmem:[#allocation103_spill] sm:$0xff] %v9419_v8  ;;  %v9421_v41 = vpop.permute.xlu0 %685 }
 0x33b   :  { %14004 = vst [vmem:[#allocation104_spill] sm:$0xff] %v9421_v41  ;;  %937 = vbcast.lane.b32.xlu1 %v9119_v9, 312 }
 0x33c   :  { %933 = vbcast.lane.b32.xlu0 %v9119_v9, 304 }
 0x33d   :  { %v9425_v37 = vpop.permute.xlu1 %697 }
 0x33e   :  { %14005 = vst [vmem:[#allocation105_spill] sm:$0xff] %v9425_v37  ;;  %v9427_v6 = vpop.permute.xlu0 %693 }
 0x33f   :  { %14006 = vst [vmem:[#allocation106_spill] sm:$0xff] %v9427_v6  ;;  %945 = vbcast.lane.b32.xlu1 %v9119_v9, 328 }
 0x340   :  { %941 = vbcast.lane.b32.xlu0 %v9119_v9, 320 }
 0x341   :  { %v9431_v21 = vpop.permute.xlu1 %708 }
 0x342   :  { %14007 = vst [vmem:[#allocation107_spill] sm:$0xff] %v9431_v21  ;;  %v9433_v43 = vpop.permute.xlu0 %704 }
 0x343   :  { %14008 = vst [vmem:[#allocation108_spill] sm:$0xff] %v9433_v43  ;;  %953 = vbcast.lane.b32.xlu1 %v9119_v9, 344 }
 0x344   :  { %949 = vbcast.lane.b32.xlu0 %v9119_v9, 336 }
 0x345   :  { %v9437_v8 = vpop.permute.xlu1 %716 }
 0x346   :  { %14009 = vst [vmem:[#allocation109_spill] sm:$0xff] %v9437_v8  ;;  %v9439_v41 = vpop.permute.xlu0 %712 }
 0x347   :  { %14010 = vst [vmem:[#allocation110_spill] sm:$0xff] %v9439_v41  ;;  %961 = vbcast.lane.b32.xlu1 %v9119_v9, 360 }
 0x348   :  { %957 = vbcast.lane.b32.xlu0 %v9119_v9, 352 }
 0x349   :  { %v9443_v37 = vpop.permute.xlu1 %724 }
 0x34a   :  { %14011 = vst [vmem:[#allocation111_spill] sm:$0xff] %v9443_v37  ;;  %v9445_v6 = vpop.permute.xlu0 %720 }
 0x34b   :  { %14012 = vst [vmem:[#allocation112_spill] sm:$0xff] %v9445_v6  ;;  %969 = vbcast.lane.b32.xlu1 %v9119_v9, 376 }
 0x34c   :  { %965 = vbcast.lane.b32.xlu0 %v9119_v9, 368 }
 0x34d   :  { %v9449_v21 = vpop.permute.xlu1 %732 }
 0x34e   :  { %14013 = vst [vmem:[#allocation113_spill] sm:$0xff] %v9449_v21  ;;  %v9451_v43 = vpop.permute.xlu0 %728 }
 0x34f   :  { %14014 = vst [vmem:[#allocation114_spill] sm:$0xff] %v9451_v43  ;;  %980 = vbcast.lane.b32.xlu1 %v9122_v10, 264 }
 0x350   :  { %976 = vbcast.lane.b32.xlu0 %v9122_v10, 256 }
 0x351   :  { %v9455_v8 = vpop.permute.xlu1 %740 }
 0x352   :  { %14015 = vst [vmem:[#allocation115_spill] sm:$0xff] %v9455_v8  ;;  %v9457_v41 = vpop.permute.xlu0 %736 }
 0x353   :  { %14016 = vst [vmem:[#allocation116_spill] sm:$0xff] %v9457_v41  ;;  %988 = vbcast.lane.b32.xlu1 %v9122_v10, 280 }
 0x354   :  { %984 = vbcast.lane.b32.xlu0 %v9122_v10, 272 }
 0x355   :  { %v9461_v37 = vpop.permute.xlu1 %748 }
 0x356   :  { %14017 = vst [vmem:[#allocation117_spill] sm:$0xff] %v9461_v37  ;;  %v9463_v6 = vpop.permute.xlu0 %744 }
 0x357   :  { %14018 = vst [vmem:[#allocation118_spill] sm:$0xff] %v9463_v6  ;;  %996 = vbcast.lane.b32.xlu1 %v9122_v10, 296 }
 0x358   :  { %992 = vbcast.lane.b32.xlu0 %v9122_v10, 288 }
 0x359   :  { %v9467_v9 = vpop.permute.xlu1 %756 }
 0x35a   :  { %14019 = vst [vmem:[#allocation119_spill] sm:$0xff] %v9467_v9  ;;  %v9469_v21 = vpop.permute.xlu0 %752 }
 0x35b   :  { %14020 = vst [vmem:[#allocation120_spill] sm:$0xff] %v9469_v21  ;;  %1004 = vbcast.lane.b32.xlu1 %v9122_v10, 312 }
 0x35c   :  { %1000 = vbcast.lane.b32.xlu0 %v9122_v10, 304 }
 0x35d   :  { %v9473_v8 = vpop.permute.xlu1 %764 }
 0x35e   :  { %14021 = vst [vmem:[#allocation121_spill] sm:$0xff] %v9473_v8  ;;  %v9475_v41 = vpop.permute.xlu0 %760 }
 0x35f   :  { %14022 = vst [vmem:[#allocation122_spill] sm:$0xff] %v9475_v41  ;;  %1012 = vbcast.lane.b32.xlu1 %v9122_v10, 328 }
 0x360   :  { %1008 = vbcast.lane.b32.xlu0 %v9122_v10, 320 }
 0x361   :  { %v9479_v37 = vpop.permute.xlu1 %775 }
 0x362   :  { %14023 = vst [vmem:[#allocation123_spill] sm:$0xff] %v9479_v37  ;;  %v9481_v6 = vpop.permute.xlu0 %771 }
 0x363   :  { %14024 = vst [vmem:[#allocation124_spill] sm:$0xff] %v9481_v6  ;;  %1020 = vbcast.lane.b32.xlu1 %v9122_v10, 344 }
 0x364   :  { %1016 = vbcast.lane.b32.xlu0 %v9122_v10, 336 }
 0x365   :  { %v9485_v9 = vpop.permute.xlu1 %783 }
 0x366   :  { %14025 = vst [vmem:[#allocation125_spill] sm:$0xff] %v9485_v9  ;;  %v9487_v21 = vpop.permute.xlu0 %779 }
 0x367   :  { %14026 = vst [vmem:[#allocation126_spill] sm:$0xff] %v9487_v21  ;;  %1028 = vbcast.lane.b32.xlu1 %v9122_v10, 360 }
 0x368   :  { %1024 = vbcast.lane.b32.xlu0 %v9122_v10, 352 }
 0x369   :  { %v9491_v8 = vpop.permute.xlu1 %791 }
 0x36a   :  { %14027 = vst [vmem:[#allocation127_spill] sm:$0xff] %v9491_v8  ;;  %v9493_v41 = vpop.permute.xlu0 %787 }
 0x36b   :  { %14028 = vst [vmem:[#allocation128_spill] sm:$0xff] %v9493_v41  ;;  %1036 = vbcast.lane.b32.xlu1 %v9122_v10, 376 }
 0x36c   :  { %1032 = vbcast.lane.b32.xlu0 %v9122_v10, 368 }
 0x36d   :  { %v9497_v37 = vpop.permute.xlu1 %799 }
 0x36e   :  { %14029 = vst [vmem:[#allocation129_spill] sm:$0xff] %v9497_v37  ;;  %v9499_v6 = vpop.permute.xlu0 %795 }
 0x36f   :  { %14030 = vst [vmem:[#allocation130_spill] sm:$0xff] %v9499_v6  ;;  %1047 = vbcast.lane.b32.xlu1 %v9125_v11, 264 }
 0x370   :  { %1043 = vbcast.lane.b32.xlu0 %v9125_v11, 256 }
 0x371   :  { %v9503_v9 = vpop.permute.xlu1 %807 }
 0x372   :  { %14031 = vst [vmem:[#allocation131_spill] sm:$0xff] %v9503_v9  ;;  %v9505_v21 = vpop.permute.xlu0 %803 }
 0x373   :  { %14032 = vst [vmem:[#allocation132_spill] sm:$0xff] %v9505_v21  ;;  %1055 = vbcast.lane.b32.xlu1 %v9125_v11, 280 }
 0x374   :  { %1051 = vbcast.lane.b32.xlu0 %v9125_v11, 272 }
 0x375   :  { %v9509_v8 = vpop.permute.xlu1 %815 }
 0x376   :  { %14033 = vst [vmem:[#allocation133_spill] sm:$0xff] %v9509_v8  ;;  %v9511_v41 = vpop.permute.xlu0 %811 }
 0x377   :  { %14034 = vst [vmem:[#allocation134_spill] sm:$0xff] %v9511_v41  ;;  %1063 = vbcast.lane.b32.xlu1 %v9125_v11, 296 }
 0x378   :  { %1059 = vbcast.lane.b32.xlu0 %v9125_v11, 288 }
 0x379   :  { %v9515_v10 = vpop.permute.xlu1 %823 }
 0x37a   :  { %14035 = vst [vmem:[#allocation135_spill] sm:$0xff] %v9515_v10  ;;  %v9517_v37 = vpop.permute.xlu0 %819 }
 0x37b   :  { %14036 = vst [vmem:[#allocation136_spill] sm:$0xff] %v9517_v37  ;;  %1071 = vbcast.lane.b32.xlu1 %v9125_v11, 312 }
 0x37c   :  { %1067 = vbcast.lane.b32.xlu0 %v9125_v11, 304 }
 0x37d   :  { %v9521_v9 = vpop.permute.xlu1 %831 }
 0x37e   :  { %14037 = vst [vmem:[#allocation137_spill] sm:$0xff] %v9521_v9  ;;  %v9523_v21 = vpop.permute.xlu0 %827 }
 0x37f   :  { %14038 = vst [vmem:[#allocation138_spill] sm:$0xff] %v9523_v21  ;;  %1079 = vbcast.lane.b32.xlu1 %v9125_v11, 328 }
 0x380   :  { %1075 = vbcast.lane.b32.xlu0 %v9125_v11, 320 }
 0x381   :  { %v9527_v8 = vpop.permute.xlu1 %846 }
 0x382   :  { %v9529_v41 = vpop.permute.xlu0 %842 }
 0x383   :  { %1087 = vbcast.lane.b32.xlu1 %v9125_v11, 344 }
 0x384   :  { %1083 = vbcast.lane.b32.xlu0 %v9125_v11, 336 }
 0x385   :  { %v9533_v10 = vpop.permute.xlu1 %854 }
 0x386   :  { %v9535_v37 = vpop.permute.xlu0 %850 }
 0x387   :  { %1095 = vbcast.lane.b32.xlu1 %v9125_v11, 360 }
 0x388   :  { %1091 = vbcast.lane.b32.xlu0 %v9125_v11, 352 }
 0x389   :  { %v9539_v9 = vpop.permute.xlu1 %862 }
 0x38a   :  { %v9541_v21 = vpop.permute.xlu0 %858 }
 0x38b   :  { %1103 = vbcast.lane.b32.xlu1 %v9125_v11, 376 }
 0x38c   :  { %1099 = vbcast.lane.b32.xlu0 %v9125_v11, 368 }
 0x38d   :  { %v9545_v6 = vpop.permute.xlu1 %870 }
 0x38e   :  { %v9547_v43 = vpop.permute.xlu0 %866 }
 0x38f   :  { %1114 = vbcast.lane.b32.xlu1 %v9128_v12, 264 }
 0x390   :  { %1110 = vbcast.lane.b32.xlu0 %v9128_v12, 256 }
 0x391   :  { %v9551_v58 = vpop.permute.xlu1 %878 }
 0x392   :  { %v9553_v31 = vpop.permute.xlu0 %874 }
 0x393   :  { %1122 = vbcast.lane.b32.xlu1 %v9128_v12, 280 }
 0x394   :  { %1118 = vbcast.lane.b32.xlu0 %v9128_v12, 272 }
 0x395   :  { %v9557_v5 = vpop.permute.xlu1 %886 }
 0x396   :  { %v9559_v46 = vpop.permute.xlu0 %882 }
 0x397   :  { %1130 = vbcast.lane.b32.xlu1 %v9128_v12, 296 }
 0x398   :  { %1126 = vbcast.lane.b32.xlu0 %v9128_v12, 288 }
 0x399   :  { %v9563_v11 = vpop.permute.xlu1 %894 }
 0x39a   :  { %v9565_v35 = vpop.permute.xlu0 %890 }
 0x39b   :  { %1138 = vbcast.lane.b32.xlu1 %v9128_v12, 312 }
 0x39c   :  { %1134 = vbcast.lane.b32.xlu0 %v9128_v12, 304 }
 0x39d   :  { %v9569_v36 = vpop.permute.xlu1 %902 }
 0x39e   :  { %v9571_v23 = vpop.permute.xlu0 %898 }
 0x39f   :  { %1146 = vbcast.lane.b32.xlu1 %v9128_v12, 328 }
 0x3a0   :  { %1142 = vbcast.lane.b32.xlu0 %v9128_v12, 320 }
 0x3a1   :  { %v9575_v22 = vpop.permute.xlu1 %913 }
 0x3a2   :  { %v9577_v33 = vpop.permute.xlu0 %909 }
 0x3a3   :  { %1154 = vbcast.lane.b32.xlu1 %v9128_v12, 344 }
 0x3a4   :  { %1150 = vbcast.lane.b32.xlu0 %v9128_v12, 336 }
 0x3a5   :  { %v9581_v32 = vpop.permute.xlu1 %921 }
 0x3a6   :  { %v9583_v44 = vpop.permute.xlu0 %917 }
 0x3a7   :  { %1162 = vbcast.lane.b32.xlu1 %v9128_v12, 360 }
 0x3a8   :  { %1158 = vbcast.lane.b32.xlu0 %v9128_v12, 352 }
 0x3a9   :  { %v9587_v42 = vpop.permute.xlu1 %929 }
 0x3aa   :  { %v9589_v56 = vpop.permute.xlu0 %925 }
 0x3ab   :  { %1170 = vbcast.lane.b32.xlu1 %v9128_v12, 376 }
 0x3ac   :  { %1166 = vbcast.lane.b32.xlu0 %v9128_v12, 368 }
 0x3ad   :  { %v9593_v55 = vpop.permute.xlu1 %937 }
 0x3ae   :  { %v9595_v62 = vpop.permute.xlu0 %933 }
 0x3af   :  { %1181 = vbcast.lane.b32.xlu1 %v9131_v13, 264 }
 0x3b0   :  { %1177 = vbcast.lane.b32.xlu0 %v9131_v13, 256 }
 0x3b1   :  { %v9599_v29 = vpop.permute.xlu1 %945 }
 0x3b2   :  { %14039 = vst [vmem:[#allocation139_spill] sm:$0xff] %v9599_v29  ;;  %v9601_v57 = vpop.permute.xlu0 %941 }
 0x3b3   :  { %1189 = vbcast.lane.b32.xlu1 %v9131_v13, 280 }
 0x3b4   :  { %1185 = vbcast.lane.b32.xlu0 %v9131_v13, 272 }
 0x3b5   :  { %v9605_v45 = vpop.permute.xlu1 %953 }
 0x3b6   :  { %14040 = vst [vmem:[#allocation140_spill] sm:$0xff] %v9605_v45  ;;  %v9607_v63 = vpop.permute.xlu0 %949 }
 0x3b7   :  { %14041 = vst [vmem:[#allocation141_spill] sm:$0xff] %v9607_v63  ;;  %1197 = vbcast.lane.b32.xlu1 %v9131_v13, 296 }
 0x3b8   :  { %1193 = vbcast.lane.b32.xlu0 %v9131_v13, 288 }
 0x3b9   :  { %v9611_v12 = vpop.permute.xlu1 %961 }
 0x3ba   :  { %14042 = vst [vmem:[#allocation142_spill] sm:$0xff] %v9611_v12  ;;  %v9613_v59 = vpop.permute.xlu0 %957 }
 0x3bb   :  { %14043 = vst [vmem:[#allocation143_spill] sm:$0xff] %v9613_v59  ;;  %1205 = vbcast.lane.b32.xlu1 %v9131_v13, 312 }
 0x3bc   :  { %1201 = vbcast.lane.b32.xlu0 %v9131_v13, 304 }
 0x3bd   :  { %v9617_v4 = vpop.permute.xlu1 %969 }
 0x3be   :  { %14044 = vst [vmem:[#allocation144_spill] sm:$0xff] %v9617_v4  ;;  %v9619_v50 = vpop.permute.xlu0 %965 }
 0x3bf   :  { %14045 = vst [vmem:[#allocation145_spill] sm:$0xff] %v9619_v50  ;;  %1213 = vbcast.lane.b32.xlu1 %v9131_v13, 328 }
 0x3c0   :  { %1209 = vbcast.lane.b32.xlu0 %v9131_v13, 320 }
 0x3c1   :  { %v9623_v45 = vpop.permute.xlu1 %980 }
 0x3c2   :  { %14046 = vst [vmem:[#allocation146_spill] sm:$0xff] %v9623_v45  ;;  %v9625_v63 = vpop.permute.xlu0 %976 }
 0x3c3   :  { %14047 = vst [vmem:[#allocation147_spill] sm:$0xff] %v9625_v63  ;;  %1221 = vbcast.lane.b32.xlu1 %v9131_v13, 344 }
 0x3c4   :  { %1217 = vbcast.lane.b32.xlu0 %v9131_v13, 336 }
 0x3c5   :  { %v9629_v12 = vpop.permute.xlu1 %988 }
 0x3c6   :  { %14048 = vst [vmem:[#allocation148_spill] sm:$0xff] %v9629_v12  ;;  %v9631_v59 = vpop.permute.xlu0 %984 }
 0x3c7   :  { %14049 = vst [vmem:[#allocation149_spill] sm:$0xff] %v9631_v59  ;;  %1229 = vbcast.lane.b32.xlu1 %v9131_v13, 360 }
 0x3c8   :  { %1225 = vbcast.lane.b32.xlu0 %v9131_v13, 352 }
 0x3c9   :  { %v9635_v4 = vpop.permute.xlu1 %996 }
 0x3ca   :  { %14050 = vst [vmem:[#allocation150_spill] sm:$0xff] %v9635_v4  ;;  %v9637_v50 = vpop.permute.xlu0 %992 }
 0x3cb   :  { %14051 = vst [vmem:[#allocation151_spill] sm:$0xff] %v9637_v50  ;;  %1237 = vbcast.lane.b32.xlu1 %v9131_v13, 376 }
 0x3cc   :  { %1233 = vbcast.lane.b32.xlu0 %v9131_v13, 368 }
 0x3cd   :  { %v9641_v45 = vpop.permute.xlu1 %1004 }
 0x3ce   :  { %14052 = vst [vmem:[#allocation152_spill] sm:$0xff] %v9641_v45  ;;  %v9643_v63 = vpop.permute.xlu0 %1000 }
 0x3cf   :  { %14053 = vst [vmem:[#allocation153_spill] sm:$0xff] %v9643_v63  ;;  %1248 = vbcast.lane.b32.xlu1 %v9134_v14, 264 }
 0x3d0   :  { %1244 = vbcast.lane.b32.xlu0 %v9134_v14, 256 }
 0x3d1   :  { %v9647_v12 = vpop.permute.xlu1 %1012 }
 0x3d2   :  { %14054 = vst [vmem:[#allocation154_spill] sm:$0xff] %v9647_v12  ;;  %v9649_v59 = vpop.permute.xlu0 %1008 }
 0x3d3   :  { %14055 = vst [vmem:[#allocation155_spill] sm:$0xff] %v9649_v59  ;;  %1256 = vbcast.lane.b32.xlu1 %v9134_v14, 280 }
 0x3d4   :  { %1252 = vbcast.lane.b32.xlu0 %v9134_v14, 272 }
 0x3d5   :  { %v9653_v4 = vpop.permute.xlu1 %1020 }
 0x3d6   :  { %14056 = vst [vmem:[#allocation156_spill] sm:$0xff] %v9653_v4  ;;  %v9655_v50 = vpop.permute.xlu0 %1016 }
 0x3d7   :  { %14057 = vst [vmem:[#allocation157_spill] sm:$0xff] %v9655_v50  ;;  %1264 = vbcast.lane.b32.xlu1 %v9134_v14, 296 }
 0x3d8   :  { %1260 = vbcast.lane.b32.xlu0 %v9134_v14, 288 }
 0x3d9   :  { %v9659_v13 = vpop.permute.xlu1 %1028 }
 0x3da   :  { %14058 = vst [vmem:[#allocation158_spill] sm:$0xff] %v9659_v13  ;;  %v9661_v45 = vpop.permute.xlu0 %1024 }
 0x3db   :  { %14059 = vst [vmem:[#allocation159_spill] sm:$0xff] %v9661_v45  ;;  %1272 = vbcast.lane.b32.xlu1 %v9134_v14, 312 }
 0x3dc   :  { %1268 = vbcast.lane.b32.xlu0 %v9134_v14, 304 }
 0x3dd   :  { %v9665_v12 = vpop.permute.xlu1 %1036 }
 0x3de   :  { %14060 = vst [vmem:[#allocation160_spill] sm:$0xff] %v9665_v12  ;;  %v9667_v59 = vpop.permute.xlu0 %1032 }
 0x3df   :  { %14061 = vst [vmem:[#allocation161_spill] sm:$0xff] %v9667_v59  ;;  %1280 = vbcast.lane.b32.xlu1 %v9134_v14, 328 }
 0x3e0   :  { %1276 = vbcast.lane.b32.xlu0 %v9134_v14, 320 }
 0x3e1   :  { %v9671_v4 = vpop.permute.xlu1 %1047 }
 0x3e2   :  { %14062 = vst [vmem:[#allocation162_spill] sm:$0xff] %v9671_v4  ;;  %v9673_v50 = vpop.permute.xlu0 %1043 }
 0x3e3   :  { %14063 = vst [vmem:[#allocation163_spill] sm:$0xff] %v9673_v50  ;;  %1288 = vbcast.lane.b32.xlu1 %v9134_v14, 344 }
 0x3e4   :  { %1284 = vbcast.lane.b32.xlu0 %v9134_v14, 336 }
 0x3e5   :  { %v9677_v13 = vpop.permute.xlu1 %1055 }
 0x3e6   :  { %14064 = vst [vmem:[#allocation164_spill] sm:$0xff] %v9677_v13  ;;  %v9679_v45 = vpop.permute.xlu0 %1051 }
 0x3e7   :  { %14065 = vst [vmem:[#allocation165_spill] sm:$0xff] %v9679_v45  ;;  %1296 = vbcast.lane.b32.xlu1 %v9134_v14, 360 }
 0x3e8   :  { %1292 = vbcast.lane.b32.xlu0 %v9134_v14, 352 }
 0x3e9   :  { %v9683_v12 = vpop.permute.xlu1 %1063 }
 0x3ea   :  { %14066 = vst [vmem:[#allocation166_spill] sm:$0xff] %v9683_v12  ;;  %v9685_v59 = vpop.permute.xlu0 %1059 }
 0x3eb   :  { %14067 = vst [vmem:[#allocation167_spill] sm:$0xff] %v9685_v59  ;;  %1304 = vbcast.lane.b32.xlu1 %v9134_v14, 376 }
 0x3ec   :  { %1300 = vbcast.lane.b32.xlu0 %v9134_v14, 368 }
 0x3ed   :  { %v9689_v4 = vpop.permute.xlu1 %1071 }
 0x3ee   :  { %14068 = vst [vmem:[#allocation168_spill] sm:$0xff] %v9689_v4  ;;  %v9691_v50 = vpop.permute.xlu0 %1067 }
 0x3ef   :  { %14069 = vst [vmem:[#allocation169_spill] sm:$0xff] %v9691_v50  ;;  %1315 = vbcast.lane.b32.xlu1 %v9137_v15, 264 }
 0x3f0   :  { %1311 = vbcast.lane.b32.xlu0 %v9137_v15, 256 }
 0x3f1   :  { %v9695_v13 = vpop.permute.xlu1 %1079 }
 0x3f2   :  { %14070 = vst [vmem:[#allocation170_spill] sm:$0xff] %v9695_v13  ;;  %v9697_v45 = vpop.permute.xlu0 %1075 }
 0x3f3   :  { %14071 = vst [vmem:[#allocation171_spill] sm:$0xff] %v9697_v45  ;;  %1323 = vbcast.lane.b32.xlu1 %v9137_v15, 280 }
 0x3f4   :  { %1319 = vbcast.lane.b32.xlu0 %v9137_v15, 272 }
 0x3f5   :  { %v9701_v12 = vpop.permute.xlu1 %1087 }
 0x3f6   :  { %14072 = vst [vmem:[#allocation172_spill] sm:$0xff] %v9701_v12  ;;  %v9703_v59 = vpop.permute.xlu0 %1083 }
 0x3f7   :  { %14073 = vst [vmem:[#allocation173_spill] sm:$0xff] %v9703_v59  ;;  %1331 = vbcast.lane.b32.xlu1 %v9137_v15, 296 }
 0x3f8   :  { %1327 = vbcast.lane.b32.xlu0 %v9137_v15, 288 }
 0x3f9   :  { %v9707_v14 = vpop.permute.xlu1 %1095 }
 0x3fa   :  { %14074 = vst [vmem:[#allocation174_spill] sm:$0xff] %v9707_v14  ;;  %v9709_v4 = vpop.permute.xlu0 %1091 }
 0x3fb   :  { %14075 = vst [vmem:[#allocation175_spill] sm:$0xff] %v9709_v4  ;;  %1339 = vbcast.lane.b32.xlu1 %v9137_v15, 312 }
 0x3fc   :  { %1335 = vbcast.lane.b32.xlu0 %v9137_v15, 304 }
 0x3fd   :  { %v9713_v13 = vpop.permute.xlu1 %1103 }
 0x3fe   :  { %14076 = vst [vmem:[#allocation176_spill] sm:$0xff] %v9713_v13  ;;  %v9715_v45 = vpop.permute.xlu0 %1099 }
 0x3ff   :  { %14077 = vst [vmem:[#allocation177_spill] sm:$0xff] %v9715_v45  ;;  %1347 = vbcast.lane.b32.xlu1 %v9137_v15, 328 }
 0x400   :  { %1343 = vbcast.lane.b32.xlu0 %v9137_v15, 320 }
 0x401   :  { %v9719_v12 = vpop.permute.xlu1 %1114 }
 0x402   :  { %14078 = vst [vmem:[#allocation178_spill] sm:$0xff] %v9719_v12  ;;  %v9721_v59 = vpop.permute.xlu0 %1110 }
 0x403   :  { %14079 = vst [vmem:[#allocation179_spill] sm:$0xff] %v9721_v59  ;;  %1355 = vbcast.lane.b32.xlu1 %v9137_v15, 344 }
 0x404   :  { %1351 = vbcast.lane.b32.xlu0 %v9137_v15, 336 }
 0x405   :  { %v9725_v14 = vpop.permute.xlu1 %1122 }
 0x406   :  { %14080 = vst [vmem:[#allocation180_spill] sm:$0xff] %v9725_v14  ;;  %v9727_v4 = vpop.permute.xlu0 %1118 }
 0x407   :  { %14081 = vst [vmem:[#allocation181_spill] sm:$0xff] %v9727_v4  ;;  %1363 = vbcast.lane.b32.xlu1 %v9137_v15, 360 }
 0x408   :  { %1359 = vbcast.lane.b32.xlu0 %v9137_v15, 352 }
 0x409   :  { %v9731_v13 = vpop.permute.xlu1 %1130 }
 0x40a   :  { %14082 = vst [vmem:[#allocation182_spill] sm:$0xff] %v9731_v13  ;;  %v9733_v45 = vpop.permute.xlu0 %1126  ;;  %v14090_v13 = vlaneseq }
 0x40b   :  { %14083 = vst [vmem:[#allocation183_spill] sm:$0xff] %v9733_v45  ;;  %1371 = vbcast.lane.b32.xlu1 %v9137_v15, 376 }
 0x40c   :  { %1367 = vbcast.lane.b32.xlu0 %v9137_v15, 368  ;;  %v9752_v45 = vand.u32 127, %v14090_v13  ;;  %v1463_v15 = vmul.f32 %v9140_v20, %v9207_v51  ;;  %v1464_v13 = vmul.f32 %v9140_v20, %v9211_v53 }
 0x40d   :  { %v9739_v59 = vpop.permute.xlu1 %1138 }
 0x40e   :  { %v9737_v12 = vpop.permute.xlu0 %1134  ;;  %14084 = vst [vmem:[#allocation184_spill] sm:$0xff] %v9739_v59  ;;  %14091 = vst [vmem:[#allocation190_spill] sm:$0xff] %v9752_v45  ;;  %vm291_vm1 = vcmp.lt.s32.totalorder %v9752_v45, 64 }
 0x411   :  { %v9743_v14 = vpop.permute.xlu1 %1146 }
 0x412   :  { %v9741_v50 = vpop.permute.xlu0 %1142  ;;  %14086 = vst [vmem:[#allocation186_spill] sm:$0xff] %v9743_v14  ;;  %v1591_v14 = vadd.f32 %v1463_v15, %v9529_v41 }
 0x413   :  { %14085 = vst [vmem:[#allocation185_spill] sm:$0xff] %v9741_v50  ;;  %v8958_v50 = vmov -1e+30  }
 0x415   :  { %v9747_v63 = vpop.permute.xlu1 %1154 }
 0x416   :  { %v9745_v4 = vpop.permute.xlu0 %1150  ;;  %14088 = vst [vmem:[#allocation188_spill] sm:$0xff] %v9747_v63 }
 0x417   :  { %14087 = vst [vmem:[#allocation187_spill] sm:$0xff] %v9745_v4  ;;  %v9762_v4 = vsel %vm291_vm1, 0.0, %v8958_v50  ;;  %v1466_v50 = vmul.f32 %v9140_v20, %v9209_v52  ;;  %v1468_v52 = vmul.f32 %v9140_v20, %v9213_v47  ;;  %v1470_v47 = vmul.f32 %v9140_v20, %v9219_v60 }
 0x418   :  { %v9772_v51 = vadd.f32 %v1591_v14, %v9762_v4  ;;  %vm6944_vm1 = vcmask 1041409  }
 0x419   :  { %v9754_v49 = vpop.permute.xlu1 %1162  ;;  %v1594_v41 = vadd.f32 %v1466_v50, %v9533_v10 }
 0x41a   :  { %v9749_v29 = vpop.permute.xlu0 %1158  ;;  %14092 = vst [vmem:[#allocation191_spill] sm:$0xff] %v9754_v49  ;;  %v1592_v49 = vadd.f32 %v1464_v13, %v9527_v8 }
 0x41b   :  { %14089 = vst [vmem:[#allocation189_spill] sm:$0xff] %v9749_v29  ;;  %v1465_v29 = vmul.f32 %v9140_v20, %v9205_v40  ;;  %v1467_v40 = vmul.f32 %v9140_v20, %v9215_v54  ;;  %v1469_v54 = vmul.f32 %v9140_v20, %v9221_v61  ;;  %v9801_v10 = vadd.f32 %v1594_v41, %v9762_v4 }
 0x41c   :  { %v9783_v53 = vadd.f32 %v1592_v49, %v9762_v4  ;;  %v1471_v61 = vmul.f32 %v9140_v20, %v9225_v2  ;;  %v1472_v2 = vmul.f32 %v9140_v20, %v9223_v0  ;;  %v1474_v0 = vmul.f32 %v9140_v20, %v9227_v3 }
 0x41d   :  { %v9768_v63 = vpop.permute.xlu1 %1170  ;;  %v1593_v45 = vadd.f32 %v1465_v29, %v9535_v37  ;;  %v1595_v29 = vadd.f32 %v1467_v40, %v9541_v21  ;;  %14096 = vst [vmem:[#allocation195_spill] sm:$0xff] %v9801_v10  ;;  %v1597_v14 = vadd.f32 %v1469_v54, %v9547_v43  ;;  %v1473_v40 = vmul.f32 %v9140_v20, %v9229_v7 }
 0x41e   :  { %v9759_v59 = vpop.permute.xlu0 %1166  ;;  %14094 = vst [vmem:[#allocation193_spill] sm:$0xff] %v9783_v53  ;;  %v1599_v43 = vadd.f32 %v1471_v61, %v9553_v31  ;;  %v1475_v7 = vmul.f32 %v9140_v20, %v9233_v48  ;;  %v1476_v3 = vmul.f32 %v9140_v20, %v9231_v16  ;;  %v1477_v48 = vmul.f32 %v9140_v20, %v9237_v18 }
 0x41f   :  { %14093 = vst [vmem:[#allocation192_spill] sm:$0xff] %v9759_v59  ;;  %v9787_v8 = vadd.f32 %v1593_v45, %v9762_v4  ;;  %v1596_v45 = vadd.f32 %v1468_v52, %v9539_v9  ;;  %v9805_v21 = vadd.f32 %v1595_v29, %v9762_v4  ;;  %v1598_v9 = vadd.f32 %v1470_v47, %v9545_v6 }
 0x420   :  { %v9821_v50 = vadd.f32 %v1597_v14, %v9762_v4  ;;  %v1600_v6 = vadd.f32 %v1472_v2, %v9551_v58  ;;  %v9837_v29 = vadd.f32 %v1599_v43, %v9762_v4  ;;  %v1601_v31 = vadd.f32 %v1473_v40, %v9559_v46 }
 0x421   :  { %14095 = vst [vmem:[#allocation194_spill] sm:$0xff] %v9787_v8  ;;  %v9790_v37 = vpop.permute.xlu1 %1181  ;;  %14097 = vst [vmem:[#allocation196_spill] sm:$0xff] %v9805_v21  ;;  %v9817_v13 = vadd.f32 %v1596_v45, %v9762_v4  ;;  %v9833_v41 = vadd.f32 %v1598_v9, %v9762_v4  ;;  %v1602_v45 = vadd.f32 %v1474_v0, %v9557_v5 }
 0x422   :  { %v9775_v59 = vpop.permute.xlu0 %1177  ;;  %14099 = vst [vmem:[#allocation198_spill] sm:$0xff] %v9821_v50  ;;  %14101 = vst [vmem:[#allocation200_spill] sm:$0xff] %v9837_v29  ;;  %v9851_v58 = vadd.f32 %v1600_v6, %v9762_v4  ;;  %v9855_v46 = vadd.f32 %v1601_v31, %v9762_v4  ;;  %v1603_v14 = vadd.f32 %v1475_v7, %v9565_v35 }
 0x423   :  { %14098 = vst [vmem:[#allocation197_spill] sm:$0xff] %v9817_v13  ;;  %14100 = vst [vmem:[#allocation199_spill] sm:$0xff] %v9833_v41  ;;  %v9867_v61 = vadd.f32 %v1602_v45, %v9762_v4  ;;  %v1604_v5 = vadd.f32 %v1476_v3, %v9563_v11  ;;  %v1605_v35 = vadd.f32 %v1477_v48, %v9571_v23 }
 0x424   :  { %14102 = vst [vmem:[#allocation201_spill] sm:$0xff] %v9851_v58  ;;  %14103 = vst [vmem:[#allocation202_spill] sm:$0xff] %v9855_v46  ;;  %v9871_v9 = vadd.f32 %v1603_v14, %v9762_v4  ;;  %v1478_v18 = vmul.f32 %v9140_v20, %v9235_v17  ;;  %v1479_v43 = vmul.f32 %v9152_v28, %v9241_v24 }
 0x425   :  { %v9814_v15 = vpop.permute.xlu1 %1189  ;;  %14104 = vst [vmem:[#allocation203_spill] sm:$0xff] %v9867_v61  ;;  %v9883_v2 = vadd.f32 %v1604_v5, %v9762_v4  ;;  %v9887_v40 = vadd.f32 %v1605_v35, %v9762_v4  ;;  %v1480_v20 = vmul.f32 %v9152_v28, %v9239_v19  ;;  %v1481_v17 = vmul.f32 %v9152_v28, %v9245_v26 }
 0x426   :  { %v9798_v49 = vpop.permute.xlu0 %1185  ;;  %14105 = vst [vmem:[#allocation204_spill] sm:$0xff] %v9871_v9  ;;  %v1606_v11 = vadd.f32 %v1478_v18, %v9569_v36  ;;  %v1607_v23 = vadd.f32 %v1479_v43, %v9577_v33  ;;  %v1482_v19 = vmul.f32 %v9152_v28, %v9243_v25  ;;  %v1483_v26 = vmul.f32 %v9152_v28, %v9249_v38 }
 0x427   :  { %14106 = vst [vmem:[#allocation205_spill] sm:$0xff] %v9883_v2  ;;  %14107 = vst [vmem:[#allocation206_spill] sm:$0xff] %v9887_v40  ;;  %v1608_v31 = vadd.f32 %v1480_v20, %v9575_v22  ;;  %v1609_v0 = vadd.f32 %v1481_v17, %v9583_v44  ;;  %v1484_v38 = vmul.f32 %v9152_v28, %v9247_v34 }
 0x428   :  { %v9901_v36 = vadd.f32 %v1606_v11, %v9762_v4  ;;  %v9905_v33 = vadd.f32 %v1607_v23, %v9762_v4  ;;  %v1610_v22 = vadd.f32 %v1482_v19, %v9581_v32  ;;  %v1611_v44 = vadd.f32 %v1483_v26, %v9589_v56  ;;  %v14120_v26 = vld [vmem:[#allocation37_spill] sm:$0xff] }
 0x429   :  { %v9840_v52 = vpop.permute.xlu1 %1197  ;;  %v9917_v45 = vadd.f32 %v1608_v31, %v9762_v4  ;;  %v9921_v14 = vadd.f32 %v1609_v0, %v9762_v4  ;;  %v1485_v3 = vmul.f32 %v9152_v28, %v9255_v1  ;;  %v1612_v32 = vadd.f32 %v1484_v38, %v9587_v42 }
 0x42a   :  { %v9824_v60 = vpop.permute.xlu0 %1193  ;;  %14108 = vst [vmem:[#allocation207_spill] sm:$0xff] %v9901_v36  ;;  %v9933_v48 = vadd.f32 %v1610_v22, %v9762_v4  ;;  %v9937_v5 = vadd.f32 %v1611_v44, %v9762_v4  ;;  %v1486_v34 = vmul.f32 %v9152_v28, %v9253_v39  ;;  %v1487_v1 = vmul.f32 %v9152_v28, %v9259_v30  ;;  %v14115_v30 = vld [vmem:[#allocation38_spill] sm:$0xff]  ;;  %v14121_v44 = vld [vmem:[#allocation40_spill] sm:$0xff] }
 0x42b   :  { %1847 = vmax.xlane.f32.xlu0 %v9772_v51  ;;  %14109 = vst [vmem:[#allocation208_spill] sm:$0xff] %v9917_v45  ;;  %14110 = vst [vmem:[#allocation209_spill] sm:$0xff] %v9921_v14  ;;  %v1613_v56 = vadd.f32 %v1485_v3, %v9595_v62  ;;  %v9951_v42 = vadd.f32 %v1612_v32, %v9762_v4  ;;  %v1488_v39 = vmul.f32 %v9152_v28, %v9257_v27  ;;  %v14123_v32 = vld [vmem:[#allocation140_spill] sm:$0xff] }
 0x42c   :  { %14111 = vst [vmem:[#allocation210_spill] sm:$0xff] %v9933_v48  ;;  %14112 = vst [vmem:[#allocation211_spill] sm:$0xff] %v9937_v5  ;;  %v1614_v43 = vadd.f32 %v1486_v34, %v9593_v55  ;;  %v1615_v11 = vadd.f32 %v1487_v1, %v9601_v57  ;;  %v1489_v23 = vmul.f32 %v9152_v28, %v14115_v30  ;;  %v14117_v55 = vld [vmem:[#allocation139_spill] sm:$0xff]  ;;  %v14119_v57 = vld [vmem:[#allocation141_spill] sm:$0xff] }
 0x42d   :  { %v9864_v47 = vpop.permute.xlu1 %1205  ;;  %14113 = vst [vmem:[#allocation212_spill] sm:$0xff] %v9951_v42  ;;  %v9955_v62 = vadd.f32 %v1613_v56, %v9762_v4  ;;  %v1616_v31 = vadd.f32 %v1488_v39, %v14117_v55  ;;  %v1490_v22 = vmul.f32 %v9152_v28, %v14120_v26  ;;  %v1491_v38 = vmul.f32 %v9152_v28, %v14121_v44  ;;  %v14125_v1 = vld [vmem:[#allocation143_spill] sm:$0xff]  ;;  %v14131_v44 = vld [vmem:[#allocation145_spill] sm:$0xff] }
 0x42e   :  { %v9848_v54 = vpop.permute.xlu0 %1201  ;;  %v9967_v17 = vadd.f32 %v1614_v43, %v9762_v4  ;;  %v9971_v0 = vadd.f32 %v1615_v11, %v9762_v4  ;;  %v1617_v19 = vadd.f32 %v1489_v23, %v14119_v57  ;;  %v14126_v39 = vld [vmem:[#allocation39_spill] sm:$0xff]  ;;  %v14127_v23 = vld [vmem:[#allocation42_spill] sm:$0xff] }
 0x42f   :  { %1851 = vmax.xlane.f32.xlu0 %v9787_v8  ;;  %1849 = vmax.xlane.f32.xlu1 %v9783_v53  ;;  %14114 = vst [vmem:[#allocation213_spill] sm:$0xff] %v9955_v62  ;;  %v9983_v3 = vadd.f32 %v1616_v31, %v9762_v4  ;;  %v1618_v56 = vadd.f32 %v1490_v22, %v14123_v32  ;;  %v14132_v32 = vld [vmem:[#allocation41_spill] sm:$0xff] }
 0x430   :  { %14116 = vst [vmem:[#allocation38_spill] sm:$0xff] %v9967_v17  ;;  %14118 = vst [vmem:[#allocation139_spill] sm:$0xff] %v9971_v0  ;;  %v9987_v34 = vadd.f32 %v1617_v19, %v9762_v4  ;;  %v1619_v43 = vadd.f32 %v1491_v38, %v14125_v1  ;;  %v1492_v30 = vmul.f32 %v9152_v28, %v14126_v39  ;;  %v14129_v19 = vld [vmem:[#allocation142_spill] sm:$0xff]  ;;  %v14133_v39 = vld [vmem:[#allocation44_spill] sm:$0xff] }
 0x431   :  { %v9890_v6 = vpop.permute.xlu1 %1213  ;;  %14122 = vst [vmem:[#allocation141_spill] sm:$0xff] %v9983_v3  ;;  %v1493_v55 = vmul.f32 %v9152_v28, %v14127_v23  ;;  %v10001_v57 = vadd.f32 %v1618_v56, %v9762_v4  ;;  %v1494_v1 = vmul.f32 %v9152_v28, %v14132_v32  ;;  %v14134_v23 = vld [vmem:[#allocation23_spill] sm:$0xff] }
 0x432   :  { %v9874_v16 = vpop.permute.xlu0 %1209  ;;  %14124 = vst [vmem:[#allocation37_spill] sm:$0xff] %v9987_v34  ;;  %v1620_v26 = vadd.f32 %v1492_v30, %v14129_v19  ;;  %v10005_v22 = vadd.f32 %v1619_v43, %v9762_v4  ;;  %v14136_v30 = vld [vmem:[#allocation144_spill] sm:$0xff]  ;;  %v14139_v32 = vld [vmem:[#allocation43_spill] sm:$0xff] }
 0x433   :  { %1853 = vmax.xlane.f32.xlu0 %v9801_v10  ;;  %1855 = vmax.xlane.f32.xlu1 %v9805_v21  ;;  %14128 = vst [vmem:[#allocation40_spill] sm:$0xff] %v10001_v57  ;;  %v1621_v38 = vadd.f32 %v1493_v55, %v14131_v44  ;;  %v1622_v43 = vadd.f32 %v1494_v1, %v14136_v30  ;;  %v14138_v55 = vld [vmem:[#allocation147_spill] sm:$0xff]  ;;  %v14142_v1 = vld [vmem:[#allocation146_spill] sm:$0xff]  ;;  %v14230_v21 = vld [vmem:[#allocation73_spill] sm:$0xff] }
 0x434   :  { %14130 = vst [vmem:[#allocation140_spill] sm:$0xff] %v10005_v22  ;;  %v10017_v56 = vadd.f32 %v1620_v26, %v9762_v4  ;;  %v14232_v10 = vld [vmem:[#allocation24_spill] sm:$0xff] }
 0x435   :  { %v9914_v7 = vpop.permute.xlu1 %1221  ;;  %v10021_v19 = vadd.f32 %v1621_v38, %v9762_v4  ;;  %v10033_v26 = vadd.f32 %v1622_v43, %v9762_v4 }
 0x436   :  { %v9898_v24 = vpop.permute.xlu0 %1217  ;;  %14135 = vst [vmem:[#allocation143_spill] sm:$0xff] %v10017_v56 }
 0x437   :  { %1857 = vmax.xlane.f32.xlu0 %v9817_v13  ;;  %1859 = vmax.xlane.f32.xlu1 %v9821_v50  ;;  %14137 = vst [vmem:[#allocation39_spill] sm:$0xff] %v10021_v19  ;;  %14141 = vst [vmem:[#allocation42_spill] sm:$0xff] %v10033_v26 }
 0x439   :  { %v9940_v35 = vpop.permute.xlu1 %1229 }
 0x43a   :  { %v9924_v25 = vpop.permute.xlu0 %1225 }
 0x43b   :  { %1861 = vmax.xlane.f32.xlu0 %v9833_v41  ;;  %1863 = vmax.xlane.f32.xlu1 %v9837_v29  ;;  %v14212_v29 = vld [vmem:[#allocation67_spill] sm:$0xff] }
 0x43d   :  { %v9964_v20 = vpop.permute.xlu1 %1237 }
 0x43e   :  { %v9948_v18 = vpop.permute.xlu0 %1233 }
 0x43f   :  { %1865 = vmax.xlane.f32.xlu0 %v9851_v58  ;;  %1867 = vmax.xlane.f32.xlu1 %v9855_v46 }
 0x441   :  { %v9990_v11 = vpop.permute.xlu1 %1248 }
 0x442   :  { %v9974_v27 = vpop.permute.xlu0 %1244 }
 0x443   :  { %1869 = vmax.xlane.f32.xlu0 %v9867_v61  ;;  %1871 = vmax.xlane.f32.xlu1 %v9871_v9  ;;  %v14194_v9 = vld [vmem:[#allocation61_spill] sm:$0xff] }
 0x446   :  { %v9998_v31 = vpop.permute.xlu0 %1252 }
 0x447   :  { %1873 = vmax.xlane.f32.xlu0 %v9883_v2  ;;  %1875 = vmax.xlane.f32.xlu1 %v9887_v40  ;;  %v14183_v2 = vld [vmem:[#allocation27_spill] sm:$0xff] }
 0x44a   :  { %v10024_v28 = vpop.permute.xlu0 %1260 }
 0x44b   :  { %1877 = vmax.xlane.f32.xlu0 %v9901_v36  ;;  %1879 = vmax.xlane.f32.xlu1 %v9905_v33 }
 0x44e   :  { %v10048_v43 = vpop.permute.xlu0 %1268 }
 0x44f   :  { %1881 = vmax.xlane.f32.xlu0 %v9917_v45  ;;  %1883 = vmax.xlane.f32.xlu1 %v9921_v14 }
 0x453   :  { %1885 = vmax.xlane.f32.xlu0 %v9933_v48  ;;  %1887 = vmax.xlane.f32.xlu1 %v9937_v5  ;;  %v14157_v5 = vld [vmem:[#allocation49_spill] sm:$0xff] }
 0x457   :  { %1889 = vmax.xlane.f32.xlu0 %v9951_v42  ;;  %1891 = vmax.xlane.f32.xlu1 %v9955_v62 }
 0x45b   :  { %1893 = vmax.xlane.f32.xlu0 %v9967_v17  ;;  %1895 = vmax.xlane.f32.xlu1 %v9971_v0 }
 0x45f   :  { %1897 = vmax.xlane.f32.xlu0 %v9983_v3  ;;  %1899 = vmax.xlane.f32.xlu1 %v9987_v34  ;;  %v1495_v3 = vmul.f32 %v14134_v23, %v14133_v39  ;;  %v10014_v34 = vpop.permute.xlu1 %1256  ;;  %v1496_v39 = vmul.f32 %v14134_v23, %v14139_v32  ;;  %v14145_v32 = vld [vmem:[#allocation45_spill] sm:$0xff] }
 0x460   :  { %v1498_v17 = vmul.f32 %v14134_v23, %v14145_v32  ;;  %v14151_v32 = vld [vmem:[#allocation47_spill] sm:$0xff] }
 0x461   :  { %v1623_v44 = vadd.f32 %v1495_v3, %v14138_v55  ;;  %v1624_v38 = vadd.f32 %v1496_v39, %v14142_v1  ;;  %v14144_v3 = vld [vmem:[#allocation149_spill] sm:$0xff]  ;;  %v1500_v62 = vmul.f32 %v14134_v23, %v14151_v32  ;;  %v10074_v32 = vpop.permute.xlu0 %1276 }
 0x463   :  { %1901 = vmax.xlane.f32.xlu0 %v10001_v57  ;;  %1903 = vmax.xlane.f32.xlu1 %v10005_v22  ;;  %v14140_v57 = vld [vmem:[#allocation46_spill] sm:$0xff]  ;;  %v10037_v30 = vadd.f32 %v1623_v44, %v9762_v4  ;;  %v10040_v0 = vpop.permute.xlu1 %1264  ;;  %v10051_v39 = vadd.f32 %v1624_v38, %v9762_v4  ;;  %v14148_v44 = vld [vmem:[#allocation148_spill] sm:$0xff] }
 0x464   :  { %v1497_v22 = vmul.f32 %v14134_v23, %v14140_v57  ;;  %v14146_v57 = vld [vmem:[#allocation48_spill] sm:$0xff]  ;;  %v1626_v1 = vadd.f32 %v1498_v17, %v14148_v44  ;;  %v14154_v17 = vld [vmem:[#allocation150_spill] sm:$0xff] }
 0x465   :  { %14143 = vst [vmem:[#allocation142_spill] sm:$0xff] %v10037_v30  ;;  %14147 = vst [vmem:[#allocation145_spill] sm:$0xff] %v10051_v39 }
 0x466   :  { %v1625_v55 = vadd.f32 %v1497_v22, %v14144_v3  ;;  %v14150_v3 = vld [vmem:[#allocation151_spill] sm:$0xff]  ;;  %v10067_v38 = vadd.f32 %v1626_v1, %v9762_v4 }
 0x467   :  { %1905 = vmax.xlane.f32.xlu0 %v10017_v56  ;;  %1907 = vmax.xlane.f32.xlu1 %v10021_v19  ;;  %v1499_v56 = vmul.f32 %v14134_v23, %v14146_v57  ;;  %v14152_v57 = vld [vmem:[#allocation50_spill] sm:$0xff]  ;;  %v10064_v42 = vpop.permute.xlu1 %1272 }
 0x468   :  { %v10055_v22 = vadd.f32 %v1625_v55, %v9762_v4  ;;  %14153 = vst [vmem:[#allocation44_spill] sm:$0xff] %v10067_v38  ;;  %v1628_v55 = vadd.f32 %v1500_v62, %v14154_v17  ;;  %v14160_v62 = vld [vmem:[#allocation152_spill] sm:$0xff] }
 0x469   :  { %v1627_v19 = vadd.f32 %v1499_v56, %v14150_v3  ;;  %v14156_v56 = vld [vmem:[#allocation153_spill] sm:$0xff] }
 0x46a   :  { %14149 = vst [vmem:[#allocation41_spill] sm:$0xff] %v10055_v22  ;;  %v10083_v1 = vadd.f32 %v1628_v55, %v9762_v4  ;;  %v10098_v55 = vpop.permute.xlu0 %1284 }
 0x46b   :  { %1909 = vmax.xlane.f32.xlu0 %v10033_v26  ;;  %1911 = vmax.xlane.f32.xlu1 %v10037_v30  ;;  %v1501_v26 = vmul.f32 %v14134_v23, %v14152_v57  ;;  %v10071_v44 = vadd.f32 %v1627_v19, %v9762_v4  ;;  %v1502_v57 = vmul.f32 %v14134_v23, %v14157_v5  ;;  %v10090_v48 = vpop.permute.xlu1 %1280  ;;  %v14163_v5 = vld [vmem:[#allocation51_spill] sm:$0xff] }
 0x46c   :  { %14159 = vst [vmem:[#allocation144_spill] sm:$0xff] %v10083_v1  ;;  %v1504_v14 = vmul.f32 %v14134_v23, %v14163_v5  ;;  %v14169_v5 = vld [vmem:[#allocation53_spill] sm:$0xff]  ;;  %v14175_v30 = vld [vmem:[#allocation55_spill] sm:$0xff] }
 0x46d   :  { %14155 = vst [vmem:[#allocation23_spill] sm:$0xff] %v10071_v44  ;;  %v1629_v3 = vadd.f32 %v1501_v26, %v14156_v56  ;;  %v1630_v19 = vadd.f32 %v1502_v57, %v14160_v62  ;;  %v14162_v26 = vld [vmem:[#allocation155_spill] sm:$0xff]  ;;  %v1506_v45 = vmul.f32 %v14134_v23, %v14169_v5 }
 0x46e   :  { %v10124_v5 = vpop.permute.xlu0 %1292 }
 0x46f   :  { %1913 = vmax.xlane.f32.xlu0 %v10051_v39  ;;  %1915 = vmax.xlane.f32.xlu1 %v10055_v22  ;;  %v14158_v39 = vld [vmem:[#allocation52_spill] sm:$0xff]  ;;  %v10087_v17 = vadd.f32 %v1629_v3, %v9762_v4  ;;  %v10101_v57 = vadd.f32 %v1630_v19, %v9762_v4  ;;  %v14166_v3 = vld [vmem:[#allocation154_spill] sm:$0xff] }
 0x470   :  { %v1503_v22 = vmul.f32 %v14134_v23, %v14158_v39  ;;  %v14164_v39 = vld [vmem:[#allocation54_spill] sm:$0xff]  ;;  %v1632_v62 = vadd.f32 %v1504_v14, %v14166_v3  ;;  %v14172_v14 = vld [vmem:[#allocation156_spill] sm:$0xff] }
 0x471   :  { %14161 = vst [vmem:[#allocation147_spill] sm:$0xff] %v10087_v17  ;;  %14165 = vst [vmem:[#allocation43_spill] sm:$0xff] %v10101_v57 }
 0x472   :  { %v1631_v56 = vadd.f32 %v1503_v22, %v14162_v26  ;;  %v14168_v26 = vld [vmem:[#allocation157_spill] sm:$0xff]  ;;  %v10117_v19 = vadd.f32 %v1632_v62, %v9762_v4 }
 0x473   :  { %1917 = vmax.xlane.f32.xlu0 %v10067_v38  ;;  %1919 = vmax.xlane.f32.xlu1 %v10071_v44  ;;  %v1505_v38 = vmul.f32 %v14134_v23, %v14164_v39  ;;  %v14170_v39 = vld [vmem:[#allocation56_spill] sm:$0xff] }
 0x474   :  { %v10105_v22 = vadd.f32 %v1631_v56, %v9762_v4  ;;  %14171 = vst [vmem:[#allocation146_spill] sm:$0xff] %v10117_v19  ;;  %v1634_v56 = vadd.f32 %v1506_v45, %v14172_v14  ;;  %v14178_v45 = vld [vmem:[#allocation158_spill] sm:$0xff] }
 0x475   :  { %v1633_v44 = vadd.f32 %v1505_v38, %v14168_v26  ;;  %v14174_v38 = vld [vmem:[#allocation159_spill] sm:$0xff] }
 0x476   :  { %14167 = vst [vmem:[#allocation46_spill] sm:$0xff] %v10105_v22  ;;  %v10133_v62 = vadd.f32 %v1634_v56, %v9762_v4  ;;  %v10148_v56 = vpop.permute.xlu0 %1300 }
 0x477   :  { %1921 = vmax.xlane.f32.xlu0 %v10083_v1  ;;  %1923 = vmax.xlane.f32.xlu1 %v10087_v17  ;;  %v1507_v1 = vmul.f32 %v14134_v23, %v14170_v39  ;;  %v10114_v17 = vpop.permute.xlu1 %1288  ;;  %v10121_v3 = vadd.f32 %v1633_v44, %v9762_v4  ;;  %v1508_v39 = vmul.f32 %v14134_v23, %v14175_v30  ;;  %v14181_v30 = vld [vmem:[#allocation57_spill] sm:$0xff] }
 0x478   :  { %14177 = vst [vmem:[#allocation45_spill] sm:$0xff] %v10133_v62  ;;  %v1510_v40 = vmul.f32 %v14134_v23, %v14181_v30 }
 0x479   :  { %14173 = vst [vmem:[#allocation149_spill] sm:$0xff] %v10121_v3  ;;  %v1635_v26 = vadd.f32 %v1507_v1, %v14174_v38  ;;  %v1636_v44 = vadd.f32 %v1508_v39, %v14178_v45  ;;  %v14180_v1 = vld [vmem:[#allocation161_spill] sm:$0xff] }
 0x47b   :  { %1925 = vmax.xlane.f32.xlu0 %v10101_v57  ;;  %1927 = vmax.xlane.f32.xlu1 %v10105_v22  ;;  %v14176_v57 = vld [vmem:[#allocation58_spill] sm:$0xff]  ;;  %v10137_v14 = vadd.f32 %v1635_v26, %v9762_v4  ;;  %v10140_v36 = vpop.permute.xlu1 %1296  ;;  %v10151_v39 = vadd.f32 %v1636_v44, %v9762_v4  ;;  %v14185_v26 = vld [vmem:[#allocation160_spill] sm:$0xff] }
 0x47c   :  { %v1509_v22 = vmul.f32 %v14134_v23, %v14176_v57  ;;  %v14182_v57 = vld [vmem:[#allocation60_spill] sm:$0xff]  ;;  %v1638_v45 = vadd.f32 %v1510_v40, %v14185_v26  ;;  %v14188_v23 = vld [vmem:[#allocation59_spill] sm:$0xff]  ;;  %v14191_v40 = vld [vmem:[#allocation162_spill] sm:$0xff] }
 0x47d   :  { %14179 = vst [vmem:[#allocation48_spill] sm:$0xff] %v10137_v14  ;;  %14184 = vst [vmem:[#allocation148_spill] sm:$0xff] %v10151_v39  ;;  %v1512_v30 = vmul.f32 %v14183_v2, %v14188_v23  ;;  %v10174_v23 = vpop.permute.xlu0 %1311 }
 0x47e   :  { %v1637_v38 = vadd.f32 %v1509_v22, %v14180_v1  ;;  %v14187_v1 = vld [vmem:[#allocation163_spill] sm:$0xff]  ;;  %v10167_v44 = vadd.f32 %v1638_v45, %v9762_v4 }
 0x47f   :  { %1929 = vmax.xlane.f32.xlu0 %v10117_v19  ;;  %1931 = vmax.xlane.f32.xlu1 %v10121_v3  ;;  %v1511_v19 = vmul.f32 %v14183_v2, %v14182_v57  ;;  %v14189_v57 = vld [vmem:[#allocation62_spill] sm:$0xff] }
 0x480   :  { %v10155_v22 = vadd.f32 %v1637_v38, %v9762_v4  ;;  %14190 = vst [vmem:[#allocation47_spill] sm:$0xff] %v10167_v44  ;;  %v1640_v38 = vadd.f32 %v1512_v30, %v14191_v40  ;;  %v14197_v30 = vld [vmem:[#allocation164_spill] sm:$0xff] }
 0x481   :  { %v1639_v3 = vadd.f32 %v1511_v19, %v14187_v1  ;;  %v14193_v19 = vld [vmem:[#allocation165_spill] sm:$0xff] }
 0x482   :  { %14186 = vst [vmem:[#allocation151_spill] sm:$0xff] %v10155_v22  ;;  %v10183_v45 = vadd.f32 %v1640_v38, %v9762_v4  ;;  %v10198_v38 = vpop.permute.xlu0 %1319 }
 0x483   :  { %1933 = vmax.xlane.f32.xlu0 %v10133_v62  ;;  %1935 = vmax.xlane.f32.xlu1 %v10137_v14  ;;  %v1513_v62 = vmul.f32 %v14183_v2, %v14189_v57  ;;  %v10164_v14 = vpop.permute.xlu1 %1304  ;;  %v10171_v26 = vadd.f32 %v1639_v3, %v9762_v4  ;;  %v1514_v57 = vmul.f32 %v14183_v2, %v14194_v9  ;;  %v14200_v9 = vld [vmem:[#allocation63_spill] sm:$0xff] }
 0x484   :  { %14196 = vst [vmem:[#allocation150_spill] sm:$0xff] %v10183_v45  ;;  %v1516_v46 = vmul.f32 %v14183_v2, %v14200_v9  ;;  %v14206_v9 = vld [vmem:[#allocation65_spill] sm:$0xff] }
 0x485   :  { %14192 = vst [vmem:[#allocation50_spill] sm:$0xff] %v10171_v26  ;;  %v1641_v1 = vadd.f32 %v1513_v62, %v14193_v19  ;;  %v1642_v3 = vadd.f32 %v1514_v57, %v14197_v30  ;;  %v14199_v62 = vld [vmem:[#allocation167_spill] sm:$0xff]  ;;  %v1518_v58 = vmul.f32 %v14183_v2, %v14206_v9 }
 0x486   :  { %v10224_v9 = vpop.permute.xlu0 %1327 }
 0x487   :  { %1937 = vmax.xlane.f32.xlu0 %v10151_v39  ;;  %1939 = vmax.xlane.f32.xlu1 %v10155_v22  ;;  %v14195_v39 = vld [vmem:[#allocation64_spill] sm:$0xff]  ;;  %v10187_v40 = vadd.f32 %v1641_v1, %v9762_v4  ;;  %v10190_v61 = vpop.permute.xlu1 %1315  ;;  %v10201_v57 = vadd.f32 %v1642_v3, %v9762_v4  ;;  %v14203_v1 = vld [vmem:[#allocation166_spill] sm:$0xff] }
 0x488   :  { %v1515_v22 = vmul.f32 %v14183_v2, %v14195_v39  ;;  %v14201_v39 = vld [vmem:[#allocation66_spill] sm:$0xff]  ;;  %v1644_v30 = vadd.f32 %v1516_v46, %v14203_v1  ;;  %v14209_v46 = vld [vmem:[#allocation168_spill] sm:$0xff] }
 0x489   :  { %14198 = vst [vmem:[#allocation153_spill] sm:$0xff] %v10187_v40  ;;  %14202 = vst [vmem:[#allocation49_spill] sm:$0xff] %v10201_v57 }
 0x48a   :  { %v1643_v19 = vadd.f32 %v1515_v22, %v14199_v62  ;;  %v14205_v62 = vld [vmem:[#allocation169_spill] sm:$0xff]  ;;  %v10217_v3 = vadd.f32 %v1644_v30, %v9762_v4 }
 0x48b   :  { %1941 = vmax.xlane.f32.xlu0 %v10167_v44  ;;  %1943 = vmax.xlane.f32.xlu1 %v10171_v26  ;;  %v1517_v44 = vmul.f32 %v14183_v2, %v14201_v39  ;;  %v14207_v39 = vld [vmem:[#allocation68_spill] sm:$0xff] }
 0x48c   :  { %v10205_v22 = vadd.f32 %v1643_v19, %v9762_v4  ;;  %14208 = vst [vmem:[#allocation152_spill] sm:$0xff] %v10217_v3  ;;  %v1646_v19 = vadd.f32 %v1518_v58, %v14209_v46  ;;  %v14215_v58 = vld [vmem:[#allocation170_spill] sm:$0xff] }
 0x48d   :  { %v1645_v26 = vadd.f32 %v1517_v44, %v14205_v62  ;;  %v14211_v44 = vld [vmem:[#allocation171_spill] sm:$0xff] }
 0x48e   :  { %14204 = vst [vmem:[#allocation52_spill] sm:$0xff] %v10205_v22  ;;  %v10233_v30 = vadd.f32 %v1646_v19, %v9762_v4  ;;  %v10248_v19 = vpop.permute.xlu0 %1335 }
 0x48f   :  { %1945 = vmax.xlane.f32.xlu0 %v10183_v45  ;;  %1947 = vmax.xlane.f32.xlu1 %v10187_v40  ;;  %v1519_v45 = vmul.f32 %v14183_v2, %v14207_v39  ;;  %v10214_v40 = vpop.permute.xlu1 %1323  ;;  %v10221_v1 = vadd.f32 %v1645_v26, %v9762_v4  ;;  %v1520_v39 = vmul.f32 %v14183_v2, %v14212_v29  ;;  %v14218_v29 = vld [vmem:[#allocation69_spill] sm:$0xff] }
 0x490   :  { %14214 = vst [vmem:[#allocation51_spill] sm:$0xff] %v10233_v30  ;;  %v1522_v50 = vmul.f32 %v14183_v2, %v14218_v29  ;;  %v14224_v29 = vld [vmem:[#allocation71_spill] sm:$0xff] }
 0x491   :  { %14210 = vst [vmem:[#allocation155_spill] sm:$0xff] %v10221_v1  ;;  %v1647_v62 = vadd.f32 %v1519_v45, %v14211_v44  ;;  %v1648_v26 = vadd.f32 %v1520_v39, %v14215_v58  ;;  %v14217_v45 = vld [vmem:[#allocation173_spill] sm:$0xff]  ;;  %v1524_v13 = vmul.f32 %v14183_v2, %v14224_v29 }
 0x492   :  { %v10274_v29 = vpop.permute.xlu0 %1343 }
 0x493   :  { %1949 = vmax.xlane.f32.xlu0 %v10201_v57  ;;  %1951 = vmax.xlane.f32.xlu1 %v10205_v22  ;;  %v14213_v57 = vld [vmem:[#allocation70_spill] sm:$0xff]  ;;  %v10237_v46 = vadd.f32 %v1647_v62, %v9762_v4  ;;  %v10240_v41 = vpop.permute.xlu1 %1331  ;;  %v10251_v39 = vadd.f32 %v1648_v26, %v9762_v4  ;;  %v14221_v62 = vld [vmem:[#allocation172_spill] sm:$0xff] }
 0x494   :  { %v1521_v22 = vmul.f32 %v14183_v2, %v14213_v57  ;;  %v14219_v57 = vld [vmem:[#allocation72_spill] sm:$0xff]  ;;  %v1650_v58 = vadd.f32 %v1522_v50, %v14221_v62  ;;  %v14227_v50 = vld [vmem:[#allocation174_spill] sm:$0xff] }
 0x495   :  { %14216 = vst [vmem:[#allocation54_spill] sm:$0xff] %v10237_v46  ;;  %14220 = vst [vmem:[#allocation154_spill] sm:$0xff] %v10251_v39 }
 0x496   :  { %v1649_v44 = vadd.f32 %v1521_v22, %v14217_v45  ;;  %v14223_v45 = vld [vmem:[#allocation175_spill] sm:$0xff]  ;;  %v10267_v26 = vadd.f32 %v1650_v58, %v9762_v4 }
 0x497   :  { %1953 = vmax.xlane.f32.xlu0 %v10217_v3  ;;  %1955 = vmax.xlane.f32.xlu1 %v10221_v1  ;;  %v1523_v3 = vmul.f32 %v14183_v2, %v14219_v57  ;;  %v14225_v57 = vld [vmem:[#allocation74_spill] sm:$0xff] }
 0x498   :  { %v10255_v22 = vadd.f32 %v1649_v44, %v9762_v4  ;;  %14226 = vst [vmem:[#allocation53_spill] sm:$0xff] %v10267_v26  ;;  %v1652_v44 = vadd.f32 %v1524_v13, %v14227_v50  ;;  %v14234_v13 = vld [vmem:[#allocation176_spill] sm:$0xff] }
 0x499   :  { %v1651_v1 = vadd.f32 %v1523_v3, %v14223_v45  ;;  %v14229_v3 = vld [vmem:[#allocation177_spill] sm:$0xff] }
 0x49a   :  { %14222 = vst [vmem:[#allocation157_spill] sm:$0xff] %v10255_v22  ;;  %v10283_v58 = vadd.f32 %v1652_v44, %v9762_v4  ;;  %v10298_v44 = vpop.permute.xlu0 %1351 }
 0x49b   :  { %1957 = vmax.xlane.f32.xlu0 %v10233_v30  ;;  %1959 = vmax.xlane.f32.xlu1 %v10237_v46  ;;  %v1525_v30 = vmul.f32 %v14183_v2, %v14225_v57  ;;  %v10264_v46 = vpop.permute.xlu1 %1339  ;;  %v10271_v62 = vadd.f32 %v1651_v1, %v9762_v4  ;;  %v1526_v57 = vmul.f32 %v14183_v2, %v14230_v21  ;;  %v14237_v21 = vld [vmem:[#allocation75_spill] sm:$0xff] }
 0x49c   :  { %14233 = vst [vmem:[#allocation156_spill] sm:$0xff] %v10283_v58  ;;  %v1528_v2 = vmul.f32 %v14232_v10, %v14237_v21  ;;  %14239 = vst [vmem:[#allocation55_spill] sm:$0xff] %v10298_v44  ;;  %v14244_v21 = vld [vmem:[#allocation77_spill] sm:$0xff]  ;;  %v14252_v44 = vld [vmem:[#allocation79_spill] sm:$0xff] }
 0x49d   :  { %14228 = vst [vmem:[#allocation56_spill] sm:$0xff] %v10271_v62  ;;  %v1653_v45 = vadd.f32 %v1525_v30, %v14229_v3  ;;  %v1654_v1 = vadd.f32 %v1526_v57, %v14234_v13  ;;  %v14236_v30 = vld [vmem:[#allocation179_spill] sm:$0xff]  ;;  %v1530_v53 = vmul.f32 %v14232_v10, %v14244_v21 }
 0x49e   :  { %v10324_v21 = vpop.permute.xlu0 %1359 }
 0x49f   :  { %1961 = vmax.xlane.f32.xlu0 %v10251_v39  ;;  %1963 = vmax.xlane.f32.xlu1 %v10255_v22  ;;  %v14231_v39 = vld [vmem:[#allocation76_spill] sm:$0xff]  ;;  %v10287_v50 = vadd.f32 %v1653_v45, %v9762_v4  ;;  %v10290_v8 = vpop.permute.xlu1 %1347  ;;  %v10301_v57 = vadd.f32 %v1654_v1, %v9762_v4  ;;  %v14241_v45 = vld [vmem:[#allocation178_spill] sm:$0xff]  ;;  %14251 = vst [vmem:[#allocation27_spill] sm:$0xff] %v10324_v21 }
 0x4a0   :  { %v1527_v22 = vmul.f32 %v14232_v10, %v14231_v39  ;;  %v14238_v39 = vld [vmem:[#allocation78_spill] sm:$0xff]  ;;  %v1656_v13 = vadd.f32 %v1528_v2, %v14241_v45  ;;  %v14248_v2 = vld [vmem:[#allocation180_spill] sm:$0xff] }
 0x4a1   :  { %14235 = vst [vmem:[#allocation159_spill] sm:$0xff] %v10287_v50  ;;  %14240 = vst [vmem:[#allocation58_spill] sm:$0xff] %v10301_v57 }
 0x4a2   :  { %v1655_v3 = vadd.f32 %v1527_v22, %v14236_v30  ;;  %v14243_v30 = vld [vmem:[#allocation181_spill] sm:$0xff]  ;;  %v10317_v1 = vadd.f32 %v1656_v13, %v9762_v4 }
 0x4a3   :  { %1965 = vmax.xlane.f32.xlu0 %v10267_v26  ;;  %1967 = vmax.xlane.f32.xlu1 %v10271_v62  ;;  %v1529_v26 = vmul.f32 %v14232_v10, %v14238_v39  ;;  %v14245_v39 = vld [vmem:[#allocation80_spill] sm:$0xff] }
 0x4a4   :  { %v10305_v22 = vadd.f32 %v1655_v3, %v9762_v4  ;;  %14247 = vst [vmem:[#allocation57_spill] sm:$0xff] %v10317_v1  ;;  %v1658_v3 = vadd.f32 %v1530_v53, %v14248_v2  ;;  %v14255_v53 = vld [vmem:[#allocation182_spill] sm:$0xff] }
 0x4a5   :  { %v1657_v62 = vadd.f32 %v1529_v26, %v14243_v30  ;;  %v14250_v26 = vld [vmem:[#allocation183_spill] sm:$0xff] }
 0x4a6   :  { %14242 = vst [vmem:[#allocation158_spill] sm:$0xff] %v10305_v22  ;;  %v10333_v13 = vadd.f32 %v1658_v3, %v9762_v4  ;;  %v10348_v3 = vpop.permute.xlu0 %1367 }
 0x4a7   :  { %1969 = vmax.xlane.f32.xlu0 %v10283_v58  ;;  %1971 = vmax.xlane.f32.xlu1 %v10287_v50  ;;  %v1531_v58 = vmul.f32 %v14232_v10, %v14245_v39  ;;  %v10314_v50 = vpop.permute.xlu1 %1355  ;;  %v10321_v45 = vadd.f32 %v1657_v62, %v9762_v4  ;;  %v1532_v39 = vmul.f32 %v14232_v10, %v14252_v44  ;;  %v14258_v44 = vld [vmem:[#allocation81_spill] sm:$0xff] }
 0x4a8   :  { %14246 = vst [vmem:[#allocation161_spill] sm:$0xff] %v10314_v50  ;;  %14254 = vst [vmem:[#allocation160_spill] sm:$0xff] %v10333_v13  ;;  %v1534_v21 = vmul.f32 %v14232_v10, %v14258_v44  ;;  %v14265_v44 = vld [vmem:[#allocation83_spill] sm:$0xff]  ;;  %v14272_v50 = vld [vmem:[#allocation88_spill] sm:$0xff] }
 0x4a9   :  { %14249 = vst [vmem:[#allocation60_spill] sm:$0xff] %v10321_v45  ;;  %v1659_v30 = vadd.f32 %v1531_v58, %v14250_v26  ;;  %v1660_v62 = vadd.f32 %v1532_v39, %v14255_v53  ;;  %14260 = vst [vmem:[#allocation62_spill] sm:$0xff] %v10348_v3 }
 0x4ab   :  { %1973 = vmax.xlane.f32.xlu0 %v10301_v57  ;;  %1975 = vmax.xlane.f32.xlu1 %v10305_v22  ;;  %v14253_v57 = vld [vmem:[#allocation82_spill] sm:$0xff]  ;;  %v10337_v2 = vadd.f32 %v1659_v30, %v9762_v4  ;;  %v10340_v26 = vpop.permute.xlu1 %1363  ;;  %v10351_v39 = vadd.f32 %v1660_v62, %v9762_v4  ;;  %v14262_v30 = vld [vmem:[#allocation184_spill] sm:$0xff] }
 0x4ac   :  { %v1533_v22 = vmul.f32 %v14232_v10, %v14253_v57  ;;  %14257 = vst [vmem:[#allocation59_spill] sm:$0xff] %v10340_v26  ;;  %v14259_v57 = vld [vmem:[#allocation84_spill] sm:$0xff]  ;;  %v1662_v53 = vadd.f32 %v1534_v21, %v14262_v30  ;;  %v1536_v26 = vmul.f32 %v14232_v10, %v14265_v44  ;;  %v14270_v30 = vld [vmem:[#allocation187_spill] sm:$0xff] }
 0x4ad   :  { %14256 = vst [vmem:[#allocation163_spill] sm:$0xff] %v10337_v2  ;;  %14261 = vst [vmem:[#allocation162_spill] sm:$0xff] %v10351_v39 }
 0x4ae   :  { %v1661_v58 = vadd.f32 %v1533_v22, %v9737_v12  ;;  %v14264_v22 = vld [vmem:[#allocation185_spill] sm:$0xff] }
 0x4af   :  { %1977 = vmax.xlane.f32.xlu0 %v10317_v1  ;;  %1979 = vmax.xlane.f32.xlu1 %v10321_v45  ;;  %v1535_v1 = vmul.f32 %v14232_v10, %v14259_v57  ;;  %v14266_v57 = vld [vmem:[#allocation86_spill] sm:$0xff]  ;;  %v10365_v3 = vpop.permute.xlu1 %1371 }
 0x4b0   :  { %v10355_v12 = vadd.f32 %v1661_v58, %v9762_v4  ;;  %v10368_v58 = vadd.f32 %v1662_v53, %v9762_v4 }
 0x4b1   :  { %v1663_v45 = vadd.f32 %v1535_v1, %v14264_v22 }
 0x4b2   :  { %14263 = vst [vmem:[#allocation165_spill] sm:$0xff] %v10355_v12  ;;  %14268 = vst [vmem:[#allocation61_spill] sm:$0xff] %v10368_v58 }
 0x4b3   :  { %1981 = vmax.xlane.f32.xlu0 %v10333_v13  ;;  %1983 = vmax.xlane.f32.xlu1 %v10337_v2  ;;  %v1537_v13 = vmul.f32 %v14232_v10, %v14266_v57  ;;  %v14267_v2 = vld [vmem:[#allocation186_spill] sm:$0xff]  ;;  %v10371_v1 = vadd.f32 %v1663_v45, %v9762_v4  ;;  %v14271_v57 = vld [vmem:[#allocation85_spill] sm:$0xff] }
 0x4b4   :  { %v1664_v62 = vadd.f32 %v1536_v26, %v14267_v2 }
 0x4b5   :  { %14269 = vst [vmem:[#allocation64_spill] sm:$0xff] %v10371_v1  ;;  %v1665_v22 = vadd.f32 %v1537_v13, %v14270_v30  ;;  %v14276_v13 = vld [vmem:[#allocation188_spill] sm:$0xff]  ;;  %v14278_v30 = vld [vmem:[#allocation189_spill] sm:$0xff] }
 0x4b6   :  { %v10382_v26 = vadd.f32 %v1664_v62, %v9762_v4 }
 0x4b7   :  { %1985 = vmax.xlane.f32.xlu0 %v10351_v39  ;;  %1987 = vmax.xlane.f32.xlu1 %v10355_v12  ;;  %v1538_v39 = vmul.f32 %v14232_v10, %v14271_v57  ;;  %v1539_v12 = vmul.f32 %v14232_v10, %v14272_v50  ;;  %v14279_v50 = vld [vmem:[#allocation87_spill] sm:$0xff] }
 0x4b8   :  { %v1848_v21 = vpop.xlane.xlu0 %1847  ;;  %14273 = vst [vmem:[#allocation164_spill] sm:$0xff] %v10382_v26 }
 0x4b9   :  { %v2103_v44 = vsub.f32 %v9772_v51, %v1848_v21  ;;  %v1666_v51 = vadd.f32 %v1538_v39, %v14276_v13  ;;  %v10390_v21 = vadd.f32 %v1665_v22, %v9762_v4  ;;  %v1667_v57 = vadd.f32 %v1539_v12, %v14278_v30  ;;  %v14283_v22 = vld [vmem:[#allocation191_spill] sm:$0xff]  ;;  %v14285_v13 = vld [vmem:[#allocation192_spill] sm:$0xff] }
 0x4bb   :  { %v2231_v2 = vmul.f32 1.442695, %v2103_v44  ;;  %1989 = vmax.xlane.f32.xlu0 %v10368_v58  ;;  %1991 = vmax.xlane.f32.xlu1 %v10371_v1  ;;  %14277 = vst [vmem:[#allocation66_spill] sm:$0xff] %v10390_v21  ;;  %v1540_v44 = vmul.f32 %v14232_v10, %v14279_v50  ;;  %v14280_v58 = vld [vmem:[#allocation90_spill] sm:$0xff]  ;;  %v10404_v39 = vadd.f32 %v1666_v51, %v9762_v4  ;;  %v14286_v50 = vld [vmem:[#allocation89_spill] sm:$0xff] }
 0x4bc   :  { %v10384_v45 = vpop.xlane.xlu0 %1851  ;;  %v10386_v53 = vpop.xlane.xlu1 %1849  ;;  %v1541_v1 = vmul.f32 %v14232_v10, %v14280_v58  ;;  %v1542_v58 = vmul.f32 %v14232_v10, %v14286_v50  ;;  %v14293_v50 = vld [vmem:[#allocation94_spill] sm:$0xff] }
 0x4bd   :  { %14274 = vst [vmem:[#allocation167_spill] sm:$0xff] %v10384_v45  ;;  %14275 = vst [vmem:[#allocation63_spill] sm:$0xff] %v10386_v53  ;;  %8348 = vpow2.f32 %v2231_v2  ;;  %v1668_v12 = vadd.f32 %v1540_v44, %v14283_v22  ;;  %v10408_v2 = vadd.f32 %v1667_v57, %v9762_v4  ;;  %v14288_v53 = vld [vmem:[#allocation28_spill] sm:$0xff] }
 0x4be   :  { %14282 = vst [vmem:[#allocation169_spill] sm:$0xff] %v10404_v39  ;;  %v1669_v30 = vadd.f32 %v1541_v1, %v14285_v13  ;;  %v1670_v57 = vadd.f32 %v1542_v58, %v9768_v63 }
 0x4bf   :  { %1993 = vmax.xlane.f32.xlu0 %v10382_v26  ;;  %1995 = vmax.xlane.f32.xlu1 %v10390_v21  ;;  %14284 = vst [vmem:[#allocation65_spill] sm:$0xff] %v10408_v2  ;;  %v14287_v26 = vld [vmem:[#allocation92_spill] sm:$0xff]  ;;  %v10422_v44 = vadd.f32 %v1668_v12, %v9762_v4 }
 0x4c0   :  { %v10399_v62 = vpop.xlane.xlu0 %1853  ;;  %v10401_v45 = vpop.xlane.xlu1 %1855  ;;  %v1543_v21 = vmul.f32 %v14288_v53, %v14287_v26  ;;  %v10426_v1 = vadd.f32 %v1669_v30, %v9762_v4  ;;  %v14292_v26 = vld [vmem:[#allocation91_spill] sm:$0xff] }
 0x4c1   :  { %14281 = vst [vmem:[#allocation166_spill] sm:$0xff] %v10401_v45  ;;  %14289 = vst [vmem:[#allocation68_spill] sm:$0xff] %v10422_v44  ;;  %v1544_v13 = vmul.f32 %v14288_v53, %v14292_v26  ;;  %v14296_v26 = vld [vmem:[#allocation93_spill] sm:$0xff] }
 0x4c2   :  { %14290 = vst [vmem:[#allocation168_spill] sm:$0xff] %v10426_v1  ;;  %v1671_v10 = vadd.f32 %v1543_v21, %v9775_v59  ;;  %v10443_v59 = vadd.f32 %v1670_v57, %v9762_v4 }
 0x4c3   :  { %1997 = vmax.xlane.f32.xlu0 %v10404_v39  ;;  %1999 = vmax.xlane.f32.xlu1 %v10408_v2  ;;  %v1545_v2 = vmul.f32 %v14288_v53, %v14293_v50  ;;  %v1672_v21 = vadd.f32 %v1544_v13, %v9790_v37  ;;  %v1546_v50 = vmul.f32 %v14288_v53, %v14296_v26  ;;  %v14300_v13 = vld [vmem:[#allocation95_spill] sm:$0xff]  ;;  %v14301_v26 = vld [vmem:[#allocation98_spill] sm:$0xff] }
 0x4c4   :  { %v10417_v45 = vpop.xlane.xlu0 %1857  ;;  %v10419_v51 = vpop.xlane.xlu1 %1859  ;;  %14294 = vst [vmem:[#allocation67_spill] sm:$0xff] %v10443_v59  ;;  %v10447_v30 = vadd.f32 %v1671_v10, %v9762_v4 }
 0x4c5   :  { %v1673_v58 = vadd.f32 %v1545_v2, %v9798_v49  ;;  %v10461_v37 = vadd.f32 %v1672_v21, %v9762_v4  ;;  %v1674_v10 = vadd.f32 %v1546_v50, %v9814_v15  ;;  %v14304_v50 = vld [vmem:[#allocation97_spill] sm:$0xff] }
 0x4c6   :  { %14295 = vst [vmem:[#allocation70_spill] sm:$0xff] %v10447_v30 }
 0x4c7   :  { %v10429_v22 = vpop.eup %8348  ;;  %2001 = vmax.xlane.f32.xlu0 %v10422_v44  ;;  %2003 = vmax.xlane.f32.xlu1 %v10426_v1  ;;  %v14297_v1 = vld [vmem:[#allocation96_spill] sm:$0xff]  ;;  %14298 = vst [vmem:[#allocation170_spill] sm:$0xff] %v10461_v37  ;;  %v10465_v49 = vadd.f32 %v1673_v58, %v9762_v4  ;;  %v10479_v15 = vadd.f32 %v1674_v10, %v9762_v4 }
 0x4c8   :  { %14291 = vst [vmem:[#allocation171_spill] sm:$0xff] %v10429_v22  ;;  %7591 = vmatprep.mubr.f32.mxu0 %v10429_v22  ;;  %v10438_v63 = vpop.xlane.xlu0 %1861  ;;  %v10440_v12 = vpop.xlane.xlu1 %1863  ;;  %v1547_v44 = vmul.f32 %v14288_v53, %v14297_v1  ;;  %v1548_v1 = vmul.f32 %v14288_v53, %v14300_v13  ;;  %v1550_v13 = vmul.f32 %v14288_v53, %v14304_v50 }
 0x4c9   :  { %14299 = vst [vmem:[#allocation173_spill] sm:$0xff] %v10465_v49  ;;  %14302 = vst [vmem:[#allocation69_spill] sm:$0xff] %v10479_v15 }
 0x4ca   :  { %v1675_v2 = vadd.f32 %v1547_v44, %v9824_v60  ;;  %v1676_v58 = vadd.f32 %v1548_v1, %v9840_v52  ;;  %v1678_v10 = vadd.f32 %v1550_v13, %v9864_v47  ;;  %v14308_v1 = vld [vmem:[#allocation99_spill] sm:$0xff] }
 0x4cb   :  { %2005 = vmax.xlane.f32.xlu0 %v10443_v59  ;;  %2007 = vmax.xlane.f32.xlu1 %v10447_v30  ;;  %v1549_v59 = vmul.f32 %v14288_v53, %v14301_v26  ;;  %v14305_v26 = vld [vmem:[#allocation100_spill] sm:$0xff]  ;;  %v1552_v50 = vmul.f32 %v14288_v53, %v14308_v1 }
 0x4cc   :  { %v10456_v39 = vpop.xlane.xlu0 %1865  ;;  %v10458_v57 = vpop.xlane.xlu1 %1867  ;;  %v10483_v60 = vadd.f32 %v1675_v2, %v9762_v4  ;;  %v10498_v2 = vadd.f32 %v1676_v58, %v9762_v4  ;;  %v10511_v47 = vadd.f32 %v1678_v10, %v9762_v4 }
 0x4cd   :  { %v1677_v44 = vadd.f32 %v1549_v59, %v9848_v54 }
 0x4ce   :  { %14303 = vst [vmem:[#allocation72_spill] sm:$0xff] %v10483_v60  ;;  %14306 = vst [vmem:[#allocation172_spill] sm:$0xff] %v10498_v2 }
 0x4cf   :  { %2009 = vmax.xlane.f32.xlu0 %v10461_v37  ;;  %2011 = vmax.xlane.f32.xlu1 %v10465_v49  ;;  %v1551_v49 = vmul.f32 %v14288_v53, %v14305_v26  ;;  %v10501_v54 = vadd.f32 %v1677_v44, %v9762_v4  ;;  %v14309_v26 = vld [vmem:[#allocation102_spill] sm:$0xff]  ;;  %14310 = vst [vmem:[#allocation71_spill] sm:$0xff] %v10511_v47 }
 0x4d0   :  { %v10474_v22 = vpop.xlane.xlu0 %1869  ;;  %v10476_v21 = vpop.xlane.xlu1 %1871  ;;  %v1680_v44 = vadd.f32 %v1552_v50, %v9890_v6 }
 0x4d1   :  { %14307 = vst [vmem:[#allocation175_spill] sm:$0xff] %v10501_v54  ;;  %v1679_v59 = vadd.f32 %v1551_v49, %v9874_v16 }
 0x4d3   :  { %2013 = vmax.xlane.f32.xlu0 %v10479_v15  ;;  %2015 = vmax.xlane.f32.xlu1 %v10483_v60  ;;  %v1553_v60 = vmul.f32 %v14288_v53, %v14309_v26  ;;  %v10517_v16 = vadd.f32 %v1679_v59, %v9762_v4  ;;  %v14312_v26 = vld [vmem:[#allocation101_spill] sm:$0xff]  ;;  %v14313_v15 = vld [vmem:[#allocation104_spill] sm:$0xff]  ;;  %v10532_v59 = vadd.f32 %v1680_v44, %v9762_v4 }
 0x4d4   :  { %v10493_v37 = vpop.xlane.xlu0 %1873  ;;  %v10495_v52 = vpop.xlane.xlu1 %1875 }
 0x4d5   :  { %14311 = vst [vmem:[#allocation74_spill] sm:$0xff] %v10517_v16  ;;  %v1681_v49 = vadd.f32 %v1553_v60, %v9898_v24  ;;  %14314 = vst [vmem:[#allocation174_spill] sm:$0xff] %v10532_v59 }
 0x4d7   :  { %2017 = vmax.xlane.f32.xlu0 %v10498_v2  ;;  %2019 = vmax.xlane.f32.xlu1 %v10501_v54  ;;  %v1554_v2 = vmul.f32 %v14288_v53, %v14312_v26  ;;  %v1555_v54 = vmul.f32 %v14288_v53, %v14313_v15  ;;  %v14316_v15 = vld [vmem:[#allocation103_spill] sm:$0xff] }
 0x4d8   :  { %v10513_v58 = vpop.xlane.xlu0 %1877  ;;  %v1880_v13 = vpop.xlane.xlu1 %1879  ;;  %v1556_v50 = vmul.f32 %v14288_v53, %v14316_v15  ;;  %v14321_v15 = vld [vmem:[#allocation108_spill] sm:$0xff] }
 0x4d9   :  { %v2119_v1 = vsub.f32 %v9905_v33, %v1880_v13  ;;  %v1682_v24 = vadd.f32 %v1554_v2, %v9914_v7  ;;  %v10536_v33 = vadd.f32 %v1681_v49, %v9762_v4  ;;  %v1683_v60 = vadd.f32 %v1555_v54, %v9924_v25  ;;  %v14317_v13 = vld [vmem:[#allocation106_spill] sm:$0xff]  ;;  %v14320_v49 = vld [vmem:[#allocation105_spill] sm:$0xff] }
 0x4da   :  { %v1684_v25 = vadd.f32 %v1556_v50, %v9940_v35  ;;  %v14325_v50 = vld [vmem:[#allocation107_spill] sm:$0xff] }
 0x4db   :  { %v2263_v10 = vmul.f32 1.442695, %v2119_v1  ;;  %2021 = vmax.xlane.f32.xlu0 %v10511_v47  ;;  %2023 = vmax.xlane.f32.xlu1 %v10517_v16  ;;  %14315 = vst [vmem:[#allocation177_spill] sm:$0xff] %v10536_v33  ;;  %v1557_v1 = vmul.f32 %v14288_v53, %v14317_v13  ;;  %v10550_v7 = vadd.f32 %v1682_v24, %v9762_v4  ;;  %v14322_v13 = vld [vmem:[#allocation29_spill] sm:$0xff] }
 0x4dc   :  { %v10527_v30 = vpop.xlane.xlu0 %1881  ;;  %v10529_v6 = vpop.xlane.xlu1 %1883  ;;  %v10554_v2 = vadd.f32 %v1683_v60, %v9762_v4  ;;  %v10568_v35 = vadd.f32 %v1684_v25, %v9762_v4 }
 0x4dd   :  { %8350 = vpow2.f32 %v2263_v10  ;;  %14318 = vst [vmem:[#allocation73_spill] sm:$0xff] %v10550_v7  ;;  %v1685_v54 = vadd.f32 %v1557_v1, %v9948_v18  ;;  %v1558_v10 = vmul.f32 %v14288_v53, %v14320_v49  ;;  %v1560_v1 = vmul.f32 %v14322_v13, %v14325_v50  ;;  %v14326_v49 = vld [vmem:[#allocation110_spill] sm:$0xff]  ;;  %v14330_v50 = vld [vmem:[#allocation109_spill] sm:$0xff] }
 0x4de   :  { %14319 = vst [vmem:[#allocation76_spill] sm:$0xff] %v10554_v2  ;;  %14323 = vst [vmem:[#allocation24_spill] sm:$0xff] %v10568_v35 }
 0x4df   :  { %2025 = vmax.xlane.f32.xlu0 %v10532_v59  ;;  %2027 = vmax.xlane.f32.xlu1 %v10536_v33  ;;  %v1559_v33 = vmul.f32 %v14322_v13, %v14321_v15  ;;  %v1686_v60 = vadd.f32 %v1558_v10, %v9964_v20  ;;  %v10572_v18 = vadd.f32 %v1685_v54, %v9762_v4 }
 0x4e0   :  { %v10545_v44 = vpop.xlane.xlu0 %1885  ;;  %v10547_v26 = vpop.xlane.xlu1 %1887  ;;  %v1561_v15 = vmul.f32 %v14322_v13, %v14326_v49  ;;  %v1562_v49 = vmul.f32 %v14322_v13, %v14330_v50  ;;  %v14334_v50 = vld [vmem:[#allocation111_spill] sm:$0xff] }
 0x4e1   :  { %14324 = vst [vmem:[#allocation176_spill] sm:$0xff] %v10572_v18  ;;  %v1687_v53 = vadd.f32 %v1559_v33, %v9974_v27  ;;  %v10588_v54 = vadd.f32 %v1686_v60, %v9762_v4  ;;  %v1688_v27 = vadd.f32 %v1560_v1, %v9990_v11 }
 0x4e2   :  { %v1689_v10 = vadd.f32 %v1561_v15, %v9998_v31  ;;  %v1690_v31 = vadd.f32 %v1562_v49, %v10014_v34  ;;  %v14338_v49 = vld [vmem:[#allocation113_spill] sm:$0xff] }
 0x4e3   :  { %2029 = vmax.xlane.f32.xlu0 %v10550_v7  ;;  %2031 = vmax.xlane.f32.xlu1 %v10554_v2  ;;  %14328 = vst [vmem:[#allocation75_spill] sm:$0xff] %v10588_v54  ;;  %v10592_v33 = vadd.f32 %v1687_v53, %v9762_v4  ;;  %v10607_v53 = vadd.f32 %v1688_v27, %v9762_v4 }
 0x4e4   :  { %v10563_v59 = vpop.xlane.xlu0 %1889  ;;  %v10565_v24 = vpop.xlane.xlu1 %1891  ;;  %v10611_v1 = vadd.f32 %v1689_v10, %v9762_v4  ;;  %v10625_v34 = vadd.f32 %v1690_v31, %v9762_v4 }
 0x4e5   :  { %14329 = vst [vmem:[#allocation78_spill] sm:$0xff] %v10592_v33  ;;  %14332 = vst [vmem:[#allocation178_spill] sm:$0xff] %v10607_v53 }
 0x4e6   :  { %14333 = vst [vmem:[#allocation181_spill] sm:$0xff] %v10611_v1  ;;  %14336 = vst [vmem:[#allocation77_spill] sm:$0xff] %v10625_v34 }
 0x4e7   :  { %2033 = vmax.xlane.f32.xlu0 %v10568_v35  ;;  %2035 = vmax.xlane.f32.xlu1 %v10572_v18  ;;  %v10581_v2 = vpop.eup %8350  ;;  %v14331_v18 = vld [vmem:[#allocation112_spill] sm:$0xff] }
 0x4e8   :  { %14327 = vst [vmem:[#allocation179_spill] sm:$0xff] %v10581_v2  ;;  %v10583_v25 = vpop.xlane.xlu0 %1893  ;;  %v10585_v20 = vpop.xlane.xlu1 %1895  ;;  %7647 = vmatprep.mubr.f32.mxu1 %v10581_v2  ;;  %v1563_v35 = vmul.f32 %v14322_v13, %v14331_v18  ;;  %v1564_v18 = vmul.f32 %v14322_v13, %v14334_v50  ;;  %v14339_v50 = vld [vmem:[#allocation116_spill] sm:$0xff]  ;;  %v14388_v2 = vld [vmem:[#allocation135_spill] sm:$0xff] }
 0x4ea   :  { %v1691_v15 = vadd.f32 %v1563_v35, %v10024_v28  ;;  %v1692_v10 = vadd.f32 %v1564_v18, %v10040_v0  ;;  %v14342_v18 = vld [vmem:[#allocation115_spill] sm:$0xff] }
 0x4eb   :  { %2037 = vmax.xlane.f32.xlu0 %v10588_v54  ;;  %2039 = vmax.xlane.f32.xlu1 %v10592_v33  ;;  %v14335_v54 = vld [vmem:[#allocation114_spill] sm:$0xff] }
 0x4ec   :  { %v10602_v60 = vpop.xlane.xlu0 %1897  ;;  %v10604_v11 = vpop.xlane.xlu1 %1899  ;;  %v1565_v7 = vmul.f32 %v14322_v13, %v14335_v54  ;;  %v10629_v28 = vadd.f32 %v1691_v15, %v9762_v4  ;;  %v1566_v54 = vmul.f32 %v14322_v13, %v14338_v49  ;;  %v10643_v0 = vadd.f32 %v1692_v10, %v9762_v4 }
 0x4ed   :  { %v1568_v49 = vmul.f32 %v14322_v13, %v14342_v18 }
 0x4ee   :  { %14337 = vst [vmem:[#allocation80_spill] sm:$0xff] %v10629_v28  ;;  %v1693_v35 = vadd.f32 %v1565_v7, %v10048_v43  ;;  %14340 = vst [vmem:[#allocation180_spill] sm:$0xff] %v10643_v0  ;;  %v1694_v15 = vadd.f32 %v1566_v54, %v10064_v42  ;;  %v14346_v54 = vld [vmem:[#allocation117_spill] sm:$0xff] }
 0x4ef   :  { %2041 = vmax.xlane.f32.xlu0 %v10607_v53  ;;  %2043 = vmax.xlane.f32.xlu1 %v10611_v1  ;;  %v1567_v1 = vmul.f32 %v14322_v13, %v14339_v50  ;;  %v14343_v50 = vld [vmem:[#allocation118_spill] sm:$0xff]  ;;  %v1570_v18 = vmul.f32 %v14322_v13, %v14346_v54 }
 0x4f0   :  { %v10620_v16 = vpop.xlane.xlu0 %1901  ;;  %v10622_v27 = vpop.xlane.xlu1 %1903  ;;  %v10647_v43 = vadd.f32 %v1693_v35, %v9762_v4  ;;  %v10661_v42 = vadd.f32 %v1694_v15, %v9762_v4  ;;  %v1696_v35 = vadd.f32 %v1568_v49, %v10090_v48  ;;  %v14350_v49 = vld [vmem:[#allocation119_spill] sm:$0xff] }
 0x4f1   :  { %v1695_v7 = vadd.f32 %v1567_v1, %v10074_v32  ;;  %v1572_v54 = vmul.f32 %v14322_v13, %v14350_v49 }
 0x4f2   :  { %14341 = vst [vmem:[#allocation183_spill] sm:$0xff] %v10647_v43  ;;  %14344 = vst [vmem:[#allocation79_spill] sm:$0xff] %v10661_v42  ;;  %v10679_v48 = vadd.f32 %v1696_v35, %v9762_v4 }
 0x4f3   :  { %2045 = vmax.xlane.f32.xlu0 %v10625_v34  ;;  %2047 = vmax.xlane.f32.xlu1 %v10629_v28  ;;  %v1569_v28 = vmul.f32 %v14322_v13, %v14343_v50  ;;  %v10665_v32 = vadd.f32 %v1695_v7, %v9762_v4  ;;  %v14347_v50 = vld [vmem:[#allocation120_spill] sm:$0xff]  ;;  %v1698_v7 = vadd.f32 %v1570_v18, %v10114_v17  ;;  %v14354_v18 = vld [vmem:[#allocation121_spill] sm:$0xff] }
 0x4f4   :  { %v10638_v53 = vpop.xlane.xlu0 %1905  ;;  %v10640_v31 = vpop.xlane.xlu1 %1907  ;;  %14348 = vst [vmem:[#allocation182_spill] sm:$0xff] %v10679_v48  ;;  %v1574_v49 = vmul.f32 %v14322_v13, %v14354_v18  ;;  %v14360_v18 = vld [vmem:[#allocation126_spill] sm:$0xff] }
 0x4f5   :  { %14345 = vst [vmem:[#allocation82_spill] sm:$0xff] %v10665_v32  ;;  %v1697_v1 = vadd.f32 %v1569_v28, %v10098_v55  ;;  %v10697_v17 = vadd.f32 %v1698_v7, %v9762_v4 }
 0x4f7   :  { %2049 = vmax.xlane.f32.xlu0 %v10643_v0  ;;  %2051 = vmax.xlane.f32.xlu1 %v10647_v43  ;;  %v1571_v43 = vmul.f32 %v14322_v13, %v14347_v50  ;;  %v10683_v55 = vadd.f32 %v1697_v1, %v9762_v4  ;;  %v14351_v50 = vld [vmem:[#allocation122_spill] sm:$0xff]  ;;  %14352 = vst [vmem:[#allocation84_spill] sm:$0xff] %v10697_v17 }
 0x4f8   :  { %v10656_v34 = vpop.xlane.xlu0 %1909  ;;  %v10658_v10 = vpop.xlane.xlu1 %1911  ;;  %v1700_v1 = vadd.f32 %v1572_v54, %v10140_v36 }
 0x4f9   :  { %14349 = vst [vmem:[#allocation81_spill] sm:$0xff] %v10683_v55  ;;  %v1699_v28 = vadd.f32 %v1571_v43, %v10124_v5 }
 0x4fa   :  { %v10715_v36 = vadd.f32 %v1700_v1, %v9762_v4 }
 0x4fb   :  { %2053 = vmax.xlane.f32.xlu0 %v10661_v42  ;;  %2055 = vmax.xlane.f32.xlu1 %v10665_v32  ;;  %v1573_v32 = vmul.f32 %v14322_v13, %v14351_v50  ;;  %v10701_v5 = vadd.f32 %v1699_v28, %v9762_v4  ;;  %v14355_v50 = vld [vmem:[#allocation124_spill] sm:$0xff]  ;;  %v1702_v28 = vadd.f32 %v1574_v49, %v10164_v14  ;;  %v14363_v49 = vld [vmem:[#allocation125_spill] sm:$0xff] }
 0x4fc   :  { %v10674_v0 = vpop.xlane.xlu0 %1913  ;;  %v10676_v15 = vpop.xlane.xlu1 %1915  ;;  %14357 = vst [vmem:[#allocation185_spill] sm:$0xff] %v10715_v36 }
 0x4fd   :  { %14353 = vst [vmem:[#allocation184_spill] sm:$0xff] %v10701_v5  ;;  %v1701_v43 = vadd.f32 %v1573_v32, %v10148_v56  ;;  %v14359_v32 = vld [vmem:[#allocation123_spill] sm:$0xff]  ;;  %v10733_v14 = vadd.f32 %v1702_v28, %v9762_v4 }
 0x4ff   :  { %2057 = vmax.xlane.f32.xlu0 %v10679_v48  ;;  %2059 = vmax.xlane.f32.xlu1 %v10683_v55  ;;  %v14356_v48 = vld [vmem:[#allocation34_spill] sm:$0xff]  ;;  %v10719_v56 = vadd.f32 %v1701_v43, %v9762_v4  ;;  %14361 = vst [vmem:[#allocation86_spill] sm:$0xff] %v10733_v14 }
 0x500   :  { %v10692_v42 = vpop.xlane.xlu0 %1917  ;;  %v10694_v35 = vpop.xlane.xlu1 %1919  ;;  %v1575_v55 = vmul.f32 %v14356_v48, %v14355_v50  ;;  %v1576_v54 = vmul.f32 %v14356_v48, %v14359_v32  ;;  %v1577_v50 = vmul.f32 %v14356_v48, %v14360_v18  ;;  %v1578_v32 = vmul.f32 %v14356_v48, %v14363_v49  ;;  %v14364_v18 = vld [vmem:[#allocation128_spill] sm:$0xff] }
 0x501   :  { %14358 = vst [vmem:[#allocation83_spill] sm:$0xff] %v10719_v56 }
 0x502   :  { %v1703_v13 = vadd.f32 %v1575_v55, %v10174_v23  ;;  %v1704_v43 = vadd.f32 %v1576_v54, %v10190_v61  ;;  %v1705_v55 = vadd.f32 %v1577_v50, %v10198_v38  ;;  %v14367_v50 = vld [vmem:[#allocation127_spill] sm:$0xff] }
 0x503   :  { %2061 = vmax.xlane.f32.xlu0 %v10697_v17  ;;  %2063 = vmax.xlane.f32.xlu1 %v10701_v5  ;;  %v1580_v49 = vmul.f32 %v14356_v48, %v14367_v50 }
 0x504   :  { %v10710_v47 = vpop.xlane.xlu0 %1921  ;;  %v10712_v7 = vpop.xlane.xlu1 %1923  ;;  %v10737_v23 = vadd.f32 %v1703_v13, %v9762_v4  ;;  %v10751_v61 = vadd.f32 %v1704_v43, %v9762_v4  ;;  %v1706_v13 = vadd.f32 %v1578_v32, %v10214_v40  ;;  %v10755_v38 = vadd.f32 %v1705_v55, %v9762_v4  ;;  %v14371_v32 = vld [vmem:[#allocation129_spill] sm:$0xff] }
 0x505   :  { %v1708_v55 = vadd.f32 %v1580_v49, %v10240_v41  ;;  %v1582_v50 = vmul.f32 %v14356_v48, %v14371_v32  ;;  %v14375_v49 = vld [vmem:[#allocation131_spill] sm:$0xff] }
 0x506   :  { %14362 = vst [vmem:[#allocation186_spill] sm:$0xff] %v10737_v23  ;;  %14365 = vst [vmem:[#allocation187_spill] sm:$0xff] %v10751_v61  ;;  %v10769_v40 = vadd.f32 %v1706_v13, %v9762_v4  ;;  %v1584_v32 = vmul.f32 %v14356_v48, %v14375_v49  ;;  %v14380_v49 = vld [vmem:[#allocation133_spill] sm:$0xff] }
 0x507   :  { %2065 = vmax.xlane.f32.xlu0 %v10715_v36  ;;  %2067 = vmax.xlane.f32.xlu1 %v10719_v56  ;;  %v1579_v56 = vmul.f32 %v14356_v48, %v14364_v18  ;;  %14366 = vst [vmem:[#allocation85_spill] sm:$0xff] %v10755_v38  ;;  %v14368_v18 = vld [vmem:[#allocation130_spill] sm:$0xff]  ;;  %v10787_v41 = vadd.f32 %v1708_v55, %v9762_v4 }
 0x508   :  { %v10728_v5 = vpop.xlane.xlu0 %1925  ;;  %v10730_v1 = vpop.xlane.xlu1 %1927  ;;  %14369 = vst [vmem:[#allocation88_spill] sm:$0xff] %v10769_v40 }
 0x509   :  { %v1707_v54 = vadd.f32 %v1579_v56, %v10224_v9  ;;  %14373 = vst [vmem:[#allocation189_spill] sm:$0xff] %v10787_v41 }
 0x50b   :  { %2069 = vmax.xlane.f32.xlu0 %v10733_v14  ;;  %2071 = vmax.xlane.f32.xlu1 %v10737_v23  ;;  %v1581_v14 = vmul.f32 %v14356_v48, %v14368_v18  ;;  %v10773_v9 = vadd.f32 %v1707_v54, %v9762_v4  ;;  %v14372_v18 = vld [vmem:[#allocation132_spill] sm:$0xff]  ;;  %v1710_v54 = vadd.f32 %v1582_v50, %v10264_v46 }
 0x50c   :  { %v10746_v36 = vpop.xlane.xlu0 %1929  ;;  %v10748_v28 = vpop.xlane.xlu1 %1931 }
 0x50d   :  { %14370 = vst [vmem:[#allocation188_spill] sm:$0xff] %v10773_v9  ;;  %v1709_v56 = vadd.f32 %v1581_v14, %v10248_v19  ;;  %v10805_v46 = vadd.f32 %v1710_v54, %v9762_v4 }
 0x50f   :  { %2073 = vmax.xlane.f32.xlu0 %v10751_v61  ;;  %2075 = vmax.xlane.f32.xlu1 %v10755_v38  ;;  %v1583_v38 = vmul.f32 %v14356_v48, %v14372_v18  ;;  %v10791_v19 = vadd.f32 %v1709_v56, %v9762_v4  ;;  %v14376_v18 = vld [vmem:[#allocation134_spill] sm:$0xff]  ;;  %14377 = vst [vmem:[#allocation90_spill] sm:$0xff] %v10805_v46 }
 0x510   :  { %v10764_v17 = vpop.xlane.xlu0 %1933  ;;  %v10766_v43 = vpop.xlane.xlu1 %1935  ;;  %v1712_v56 = vadd.f32 %v1584_v32, %v10290_v8 }
 0x511   :  { %14374 = vst [vmem:[#allocation87_spill] sm:$0xff] %v10791_v19  ;;  %v1711_v14 = vadd.f32 %v1583_v38, %v10274_v29  ;;  %v14379_v38 = vld [vmem:[#allocation55_spill] sm:$0xff] }
 0x512   :  { %v10823_v8 = vadd.f32 %v1712_v56, %v9762_v4 }
 0x513   :  { %2077 = vmax.xlane.f32.xlu0 %v10769_v40  ;;  %2079 = vmax.xlane.f32.xlu1 %v10773_v9  ;;  %v1585_v9 = vmul.f32 %v14356_v48, %v14376_v18  ;;  %v10809_v29 = vadd.f32 %v1711_v14, %v9762_v4  ;;  %v1586_v18 = vmul.f32 %v14356_v48, %v14380_v49  ;;  %v14385_v14 = vld [vmem:[#allocation161_spill] sm:$0xff] }
 0x514   :  { %v10782_v61 = vpop.xlane.xlu0 %1937  ;;  %v10784_v13 = vpop.xlane.xlu1 %1939  ;;  %14384 = vst [vmem:[#allocation92_spill] sm:$0xff] %v10823_v8 }
 0x515   :  { %14378 = vst [vmem:[#allocation191_spill] sm:$0xff] %v10809_v29  ;;  %v1713_v50 = vadd.f32 %v1585_v9, %v14379_v38  ;;  %v1714_v32 = vadd.f32 %v1586_v18, %v14385_v14  ;;  %v14387_v38 = vld [vmem:[#allocation27_spill] sm:$0xff] }
 0x517   :  { %2081 = vmax.xlane.f32.xlu0 %v10787_v41  ;;  %2083 = vmax.xlane.f32.xlu1 %v10791_v19  ;;  %v14381_v41 = vld [vmem:[#allocation136_spill] sm:$0xff]  ;;  %v10827_v9 = vadd.f32 %v1713_v50, %v9762_v4  ;;  %v10841_v18 = vadd.f32 %v1714_v32, %v9762_v4  ;;  %v14393_v50 = vld [vmem:[#allocation59_spill] sm:$0xff] }
 0x518   :  { %v10800_v40 = vpop.xlane.xlu0 %1941  ;;  %v10802_v55 = vpop.xlane.xlu1 %1943  ;;  %v1587_v19 = vmul.f32 %v14356_v48, %v14381_v41  ;;  %v1588_v41 = vmul.f32 %v14356_v48, %v14388_v2  ;;  %v14395_v2 = vld [vmem:[#allocation62_spill] sm:$0xff] }
 0x519   :  { %14386 = vst [vmem:[#allocation28_spill] sm:$0xff] %v10827_v9  ;;  %14392 = vst [vmem:[#allocation93_spill] sm:$0xff] %v10841_v18 }
 0x51a   :  { %v1715_v49 = vadd.f32 %v1587_v19, %v14387_v38  ;;  %v1716_v14 = vadd.f32 %v1588_v41, %v14393_v50 }
 0x51b   :  { %2085 = vmax.xlane.f32.xlu0 %v10805_v46  ;;  %2087 = vmax.xlane.f32.xlu1 %v10809_v29  ;;  %v14389_v46 = vld [vmem:[#allocation138_spill] sm:$0xff] }
 0x51c   :  { %v10818_v23 = vpop.xlane.xlu0 %1945  ;;  %v10820_v54 = vpop.xlane.xlu1 %1947  ;;  %v1589_v29 = vmul.f32 %v14356_v48, %v14389_v46  ;;  %v10845_v19 = vadd.f32 %v1715_v49, %v9762_v4  ;;  %v10857_v32 = vadd.f32 %v1716_v14, %v9762_v4 }
 0x51d   :  { %14382 = vst [vmem:[#allocation192_spill] sm:$0xff] %v10818_v23  ;;  %14383 = vst [vmem:[#allocation89_spill] sm:$0xff] %v10820_v54  ;;  %v14396_v54 = vld [vmem:[#allocation137_spill] sm:$0xff] }
 0x51e   :  { %14394 = vst [vmem:[#allocation96_spill] sm:$0xff] %v10845_v19  ;;  %v1717_v38 = vadd.f32 %v1589_v29, %v14395_v2  ;;  %v1590_v46 = vmul.f32 %v14356_v48, %v14396_v54  ;;  %14399 = vst [vmem:[#allocation97_spill] sm:$0xff] %v10857_v32 }
 0x51f   :  { %2089 = vmax.xlane.f32.xlu0 %v10823_v8  ;;  %2091 = vmax.xlane.f32.xlu1 %v10827_v9 }
 0x520   :  { %v10836_v33 = vpop.xlane.xlu0 %1949  ;;  %v10838_v56 = vpop.xlane.xlu1 %1951  ;;  %v1718_v41 = vadd.f32 %v1590_v46, %v10365_v3  ;;  %v10861_v49 = vadd.f32 %v1717_v38, %v9762_v4 }
 0x521   :  { %14390 = vst [vmem:[#allocation91_spill] sm:$0xff] %v10836_v33  ;;  %14391 = vst [vmem:[#allocation94_spill] sm:$0xff] %v10838_v56  ;;  %v14484_v56 = vld [vmem:[#allocation166_spill] sm:$0xff]  ;;  %v14485_v33 = vld [vmem:[#allocation196_spill] sm:$0xff] }
 0x522   :  { %14400 = vst [vmem:[#allocation100_spill] sm:$0xff] %v10861_v49  ;;  %v10870_v54 = vadd.f32 %v1718_v41, %v9762_v4  ;;  %v14411_v4 = vld [vmem:[#allocation20_spill] sm:$0xff] }
 0x523   :  { %2093 = vmax.xlane.f32.xlu0 %v10841_v18  ;;  %2095 = vmax.xlane.f32.xlu1 %v10845_v19 }
 0x524   :  { %v10852_v9 = vpop.xlane.xlu0 %1953  ;;  %v10854_v8 = vpop.xlane.xlu1 %1955  ;;  %14403 = vst [vmem:[#allocation101_spill] sm:$0xff] %v10870_v54 }
 0x525   :  { %14397 = vst [vmem:[#allocation95_spill] sm:$0xff] %v10852_v9  ;;  %14398 = vst [vmem:[#allocation98_spill] sm:$0xff] %v10854_v8 }
 0x527   :  { %2097 = vmax.xlane.f32.xlu0 %v10857_v32  ;;  %2099 = vmax.xlane.f32.xlu1 %v10861_v49 }
 0x528   :  { %v10865_v48 = vpop.xlane.xlu0 %1957  ;;  %v10867_v29 = vpop.xlane.xlu1 %1959 }
 0x529   :  { %14401 = vst [vmem:[#allocation99_spill] sm:$0xff] %v10865_v48  ;;  %14402 = vst [vmem:[#allocation102_spill] sm:$0xff] %v10867_v29 }
 0x52b   :  { %2101 = vmax.xlane.f32.xlu0 %v10870_v54 }
 0x52c   :  { %v10873_v50 = vpop.xlane.xlu0 %1961  ;;  %v10875_v14 = vpop.xlane.xlu1 %1963 }
 0x52d   :  { %14404 = vst [vmem:[#allocation104_spill] sm:$0xff] %v10873_v50  ;;  %14405 = vst [vmem:[#allocation103_spill] sm:$0xff] %v10875_v14 }
 0x530   :  { %v10877_v3 = vpop.xlane.xlu0 %1965  ;;  %v10879_v2 = vpop.xlane.xlu1 %1967 }
 0x531   :  { %14406 = vst [vmem:[#allocation106_spill] sm:$0xff] %v10877_v3  ;;  %14407 = vst [vmem:[#allocation105_spill] sm:$0xff] %v10879_v2 }
 0x534   :  { %v10881_v38 = vpop.xlane.xlu0 %1969  ;;  %v10883_v46 = vpop.xlane.xlu1 %1971 }
 0x535   :  { %14408 = vst [vmem:[#allocation108_spill] sm:$0xff] %v10881_v38  ;;  %14409 = vst [vmem:[#allocation29_spill] sm:$0xff] %v10883_v46  ;;  %v14430_v38 = vld [vmem:[#allocation21_spill] sm:$0xff] }
 0x538   :  { %v10885_v49 = vpop.xlane.xlu0 %1973  ;;  %v10887_v32 = vpop.xlane.xlu1 %1975  ;;  %2496 = vbcast.lane.b32.xlu1 %v14411_v4, 256 }
 0x539   :  { %14410 = vst [vmem:[#allocation107_spill] sm:$0xff] %v10885_v49 }
 0x53c   :  { %v10890_v41 = vpop.xlane.xlu0 %1977  ;;  %v10892_v54 = vpop.xlane.xlu1 %1979  ;;  %2504 = vbcast.lane.b32.xlu1 %v14411_v4, 272 }
 0x53d   :  { %14412 = vst [vmem:[#allocation110_spill] sm:$0xff] %v10890_v41  ;;  %14413 = vst [vmem:[#allocation109_spill] sm:$0xff] %v10892_v54 }
 0x540   :  { %v10895_v19 = vpop.xlane.xlu0 %1981  ;;  %v10897_v18 = vpop.xlane.xlu1 %1983  ;;  %2508 = vbcast.lane.b32.xlu1 %v14411_v4, 280 }
 0x541   :  { %14414 = vst [vmem:[#allocation112_spill] sm:$0xff] %v10895_v19  ;;  %14415 = vst [vmem:[#allocation111_spill] sm:$0xff] %v10897_v18  ;;  %2500 = vbcast.lane.b32.xlu0 %v14411_v4, 264 }
 0x544   :  { %v10901_v46 = vpop.xlane.xlu0 %1985  ;;  %v10903_v49 = vpop.xlane.xlu1 %1987  ;;  %2516 = vbcast.lane.b32.xlu1 %v14411_v4, 296 }
 0x545   :  { %14416 = vst [vmem:[#allocation114_spill] sm:$0xff] %v10901_v46  ;;  %14417 = vst [vmem:[#allocation113_spill] sm:$0xff] %v10903_v49  ;;  %2512 = vbcast.lane.b32.xlu0 %v14411_v4, 288 }
 0x548   :  { %v10907_v41 = vpop.xlane.xlu0 %1989  ;;  %v10909_v54 = vpop.xlane.xlu1 %1991  ;;  %2524 = vbcast.lane.b32.xlu1 %v14411_v4, 312 }
 0x549   :  { %14418 = vst [vmem:[#allocation116_spill] sm:$0xff] %v10907_v41  ;;  %14419 = vst [vmem:[#allocation115_spill] sm:$0xff] %v10909_v54  ;;  %2520 = vbcast.lane.b32.xlu0 %v14411_v4, 304 }
 0x54c   :  { %v10913_v18 = vpop.xlane.xlu0 %1993  ;;  %v10915_v19 = vpop.xlane.xlu1 %1995  ;;  %2532 = vbcast.lane.b32.xlu1 %v14411_v4, 328 }
 0x54d   :  { %14420 = vst [vmem:[#allocation118_spill] sm:$0xff] %v10913_v18  ;;  %14421 = vst [vmem:[#allocation117_spill] sm:$0xff] %v10915_v19  ;;  %2528 = vbcast.lane.b32.xlu0 %v14411_v4, 320 }
 0x550   :  { %v10919_v49 = vpop.xlane.xlu0 %1997  ;;  %v10921_v46 = vpop.xlane.xlu1 %1999  ;;  %2540 = vbcast.lane.b32.xlu1 %v14411_v4, 344 }
 0x551   :  { %14422 = vst [vmem:[#allocation120_spill] sm:$0xff] %v10919_v49  ;;  %14423 = vst [vmem:[#allocation119_spill] sm:$0xff] %v10921_v46  ;;  %2536 = vbcast.lane.b32.xlu0 %v14411_v4, 336 }
 0x554   :  { %v10925_v54 = vpop.xlane.xlu0 %2001  ;;  %v10927_v41 = vpop.xlane.xlu1 %2003  ;;  %2548 = vbcast.lane.b32.xlu1 %v14411_v4, 360 }
 0x555   :  { %14424 = vst [vmem:[#allocation122_spill] sm:$0xff] %v10925_v54  ;;  %14425 = vst [vmem:[#allocation121_spill] sm:$0xff] %v10927_v41  ;;  %2544 = vbcast.lane.b32.xlu0 %v14411_v4, 352 }
 0x558   :  { %v10931_v19 = vpop.xlane.xlu0 %2005  ;;  %v10933_v18 = vpop.xlane.xlu1 %2007  ;;  %2556 = vbcast.lane.b32.xlu1 %v14411_v4, 376 }
 0x559   :  { %14426 = vst [vmem:[#allocation124_spill] sm:$0xff] %v10931_v19  ;;  %14427 = vst [vmem:[#allocation34_spill] sm:$0xff] %v10933_v18  ;;  %2552 = vbcast.lane.b32.xlu0 %v14411_v4, 368 }
 0x55c   :  { %v10937_v46 = vpop.xlane.xlu0 %2009  ;;  %v10939_v49 = vpop.xlane.xlu1 %2011  ;;  %2567 = vbcast.lane.b32.xlu1 %v14430_v38, 264 }
 0x55d   :  { %14428 = vst [vmem:[#allocation123_spill] sm:$0xff] %v10937_v46  ;;  %14429 = vst [vmem:[#allocation126_spill] sm:$0xff] %v10939_v49  ;;  %2563 = vbcast.lane.b32.xlu0 %v14430_v38, 256  ;;  %v14447_v46 = vld [vmem:[#allocation22_spill] sm:$0xff] }
 0x560   :  { %v10943_v41 = vpop.xlane.xlu0 %2013  ;;  %v10945_v54 = vpop.xlane.xlu1 %2015  ;;  %2575 = vbcast.lane.b32.xlu1 %v14430_v38, 280 }
 0x561   :  { %14431 = vst [vmem:[#allocation125_spill] sm:$0xff] %v10943_v41  ;;  %14432 = vst [vmem:[#allocation128_spill] sm:$0xff] %v10945_v54  ;;  %2571 = vbcast.lane.b32.xlu0 %v14430_v38, 272 }
 0x564   :  { %v10949_v19 = vpop.xlane.xlu0 %2017  ;;  %v10951_v18 = vpop.xlane.xlu1 %2019  ;;  %2583 = vbcast.lane.b32.xlu1 %v14430_v38, 296 }
 0x565   :  { %14433 = vst [vmem:[#allocation127_spill] sm:$0xff] %v10949_v19  ;;  %14434 = vst [vmem:[#allocation130_spill] sm:$0xff] %v10951_v18  ;;  %2579 = vbcast.lane.b32.xlu0 %v14430_v38, 288 }
 0x568   :  { %v10955_v4 = vpop.xlane.xlu0 %2021  ;;  %v10957_v49 = vpop.xlane.xlu1 %2023  ;;  %2591 = vbcast.lane.b32.xlu1 %v14430_v38, 312 }
 0x569   :  { %14435 = vst [vmem:[#allocation129_spill] sm:$0xff] %v10955_v4  ;;  %14436 = vst [vmem:[#allocation132_spill] sm:$0xff] %v10957_v49  ;;  %2587 = vbcast.lane.b32.xlu0 %v14430_v38, 304 }
 0x56c   :  { %v10961_v54 = vpop.xlane.xlu0 %2025  ;;  %v10963_v41 = vpop.xlane.xlu1 %2027  ;;  %2599 = vbcast.lane.b32.xlu1 %v14430_v38, 328 }
 0x56d   :  { %14437 = vst [vmem:[#allocation131_spill] sm:$0xff] %v10961_v54  ;;  %14438 = vst [vmem:[#allocation134_spill] sm:$0xff] %v10963_v41  ;;  %2595 = vbcast.lane.b32.xlu0 %v14430_v38, 320 }
 0x570   :  { %v10967_v18 = vpop.xlane.xlu0 %2029  ;;  %v10969_v19 = vpop.xlane.xlu1 %2031  ;;  %2607 = vbcast.lane.b32.xlu1 %v14430_v38, 344 }
 0x571   :  { %14439 = vst [vmem:[#allocation55_spill] sm:$0xff] %v10967_v18  ;;  %14440 = vst [vmem:[#allocation133_spill] sm:$0xff] %v10969_v19  ;;  %2603 = vbcast.lane.b32.xlu0 %v14430_v38, 336 }
 0x574   :  { %v10973_v49 = vpop.xlane.xlu0 %2033  ;;  %v10975_v4 = vpop.xlane.xlu1 %2035  ;;  %2615 = vbcast.lane.b32.xlu1 %v14430_v38, 360 }
 0x575   :  { %14441 = vst [vmem:[#allocation136_spill] sm:$0xff] %v10973_v49  ;;  %14442 = vst [vmem:[#allocation161_spill] sm:$0xff] %v10975_v4  ;;  %2611 = vbcast.lane.b32.xlu0 %v14430_v38, 352 }
 0x578   :  { %v10979_v41 = vpop.xlane.xlu0 %2037  ;;  %v10981_v54 = vpop.xlane.xlu1 %2039  ;;  %2623 = vbcast.lane.b32.xlu1 %v14430_v38, 376 }
 0x579   :  { %14443 = vst [vmem:[#allocation27_spill] sm:$0xff] %v10979_v41  ;;  %14444 = vst [vmem:[#allocation135_spill] sm:$0xff] %v10981_v54  ;;  %2619 = vbcast.lane.b32.xlu0 %v14430_v38, 368 }
 0x57c   :  { %v10985_v19 = vpop.xlane.xlu0 %2041  ;;  %v10987_v18 = vpop.xlane.xlu1 %2043  ;;  %2634 = vbcast.lane.b32.xlu1 %v14447_v46, 264 }
 0x57d   :  { %14445 = vst [vmem:[#allocation138_spill] sm:$0xff] %v10985_v19  ;;  %14446 = vst [vmem:[#allocation59_spill] sm:$0xff] %v10987_v18  ;;  %2630 = vbcast.lane.b32.xlu0 %v14447_v46, 256  ;;  %v14464_v19 = vld [vmem:[#allocation25_spill] sm:$0xff] }
 0x580   :  { %v10991_v4 = vpop.xlane.xlu0 %2045  ;;  %v10993_v49 = vpop.xlane.xlu1 %2047  ;;  %2642 = vbcast.lane.b32.xlu1 %v14447_v46, 280 }
 0x581   :  { %14448 = vst [vmem:[#allocation62_spill] sm:$0xff] %v10991_v4  ;;  %14449 = vst [vmem:[#allocation137_spill] sm:$0xff] %v10993_v49  ;;  %2638 = vbcast.lane.b32.xlu0 %v14447_v46, 272 }
 0x584   :  { %v10997_v41 = vpop.xlane.xlu0 %2049  ;;  %v10999_v54 = vpop.xlane.xlu1 %2051  ;;  %2650 = vbcast.lane.b32.xlu1 %v14447_v46, 296 }
 0x585   :  { %14450 = vst [vmem:[#allocation20_spill] sm:$0xff] %v10997_v41  ;;  %14451 = vst [vmem:[#allocation21_spill] sm:$0xff] %v10999_v54  ;;  %2646 = vbcast.lane.b32.xlu0 %v14447_v46, 288 }
 0x588   :  { %v11003_v38 = vpop.xlane.xlu0 %2053  ;;  %v11005_v18 = vpop.xlane.xlu1 %2055  ;;  %2658 = vbcast.lane.b32.xlu1 %v14447_v46, 312 }
 0x589   :  { %14452 = vst [vmem:[#allocation22_spill] sm:$0xff] %v11003_v38  ;;  %14453 = vst [vmem:[#allocation214_spill] sm:$0xff] %v11005_v18  ;;  %2654 = vbcast.lane.b32.xlu0 %v14447_v46, 304 }
 0x58c   :  { %v11009_v49 = vpop.xlane.xlu0 %2057  ;;  %v11011_v4 = vpop.xlane.xlu1 %2059  ;;  %2666 = vbcast.lane.b32.xlu1 %v14447_v46, 328 }
 0x58d   :  { %14454 = vst [vmem:[#allocation215_spill] sm:$0xff] %v11009_v49  ;;  %14455 = vst [vmem:[#allocation216_spill] sm:$0xff] %v11011_v4  ;;  %2662 = vbcast.lane.b32.xlu0 %v14447_v46, 320 }
 0x590   :  { %v11015_v54 = vpop.xlane.xlu0 %2061  ;;  %v11017_v41 = vpop.xlane.xlu1 %2063  ;;  %2674 = vbcast.lane.b32.xlu1 %v14447_v46, 344 }
 0x591   :  { %14456 = vst [vmem:[#allocation217_spill] sm:$0xff] %v11015_v54  ;;  %14457 = vst [vmem:[#allocation218_spill] sm:$0xff] %v11017_v41  ;;  %2670 = vbcast.lane.b32.xlu0 %v14447_v46, 336 }
 0x594   :  { %v11021_v18 = vpop.xlane.xlu0 %2065  ;;  %v11023_v38 = vpop.xlane.xlu1 %2067  ;;  %2682 = vbcast.lane.b32.xlu1 %v14447_v46, 360 }
 0x595   :  { %14458 = vst [vmem:[#allocation219_spill] sm:$0xff] %v11021_v18  ;;  %14459 = vst [vmem:[#allocation220_spill] sm:$0xff] %v11023_v38  ;;  %2678 = vbcast.lane.b32.xlu0 %v14447_v46, 352 }
 0x598   :  { %v11027_v4 = vpop.xlane.xlu0 %2069  ;;  %v11029_v49 = vpop.xlane.xlu1 %2071  ;;  %2690 = vbcast.lane.b32.xlu1 %v14447_v46, 376 }
 0x599   :  { %14460 = vst [vmem:[#allocation221_spill] sm:$0xff] %v11027_v4  ;;  %14461 = vst [vmem:[#allocation222_spill] sm:$0xff] %v11029_v49  ;;  %2686 = vbcast.lane.b32.xlu0 %v14447_v46, 368 }
 0x59c   :  { %v11033_v41 = vpop.xlane.xlu0 %2073  ;;  %v11035_v54 = vpop.xlane.xlu1 %2075  ;;  %2701 = vbcast.lane.b32.xlu1 %v14464_v19, 264 }
 0x59d   :  { %14462 = vst [vmem:[#allocation223_spill] sm:$0xff] %v11033_v41  ;;  %14463 = vst [vmem:[#allocation224_spill] sm:$0xff] %v11035_v54  ;;  %2697 = vbcast.lane.b32.xlu0 %v14464_v19, 256 }
 0x5a0   :  { %v11039_v38 = vpop.xlane.xlu0 %2077  ;;  %v11041_v18 = vpop.xlane.xlu1 %2079  ;;  %2709 = vbcast.lane.b32.xlu1 %v14464_v19, 280 }
 0x5a1   :  { %14465 = vst [vmem:[#allocation25_spill] sm:$0xff] %v11039_v38  ;;  %14466 = vst [vmem:[#allocation225_spill] sm:$0xff] %v11041_v18  ;;  %2705 = vbcast.lane.b32.xlu0 %v14464_v19, 272 }
 0x5a4   :  { %v11045_v4 = vpop.xlane.xlu0 %2081  ;;  %v11047_v49 = vpop.xlane.xlu1 %2083  ;;  %2717 = vbcast.lane.b32.xlu1 %v14464_v19, 296 }
 0x5a5   :  { %14467 = vst [vmem:[#allocation226_spill] sm:$0xff] %v11045_v4  ;;  %14468 = vst [vmem:[#allocation227_spill] sm:$0xff] %v11047_v49  ;;  %2713 = vbcast.lane.b32.xlu0 %v14464_v19, 288 }
 0x5a8   :  { %v11051_v46 = vpop.xlane.xlu0 %2085  ;;  %v11053_v54 = vpop.xlane.xlu1 %2087  ;;  %2725 = vbcast.lane.b32.xlu1 %v14464_v19, 312 }
 0x5a9   :  { %14469 = vst [vmem:[#allocation228_spill] sm:$0xff] %v11051_v46  ;;  %14470 = vst [vmem:[#allocation229_spill] sm:$0xff] %v11053_v54  ;;  %2721 = vbcast.lane.b32.xlu0 %v14464_v19, 304 }
 0x5ac   :  { %v11057_v18 = vpop.xlane.xlu0 %2089  ;;  %v11059_v38 = vpop.xlane.xlu1 %2091  ;;  %2733 = vbcast.lane.b32.xlu1 %v14464_v19, 328 }
 0x5ad   :  { %14471 = vst [vmem:[#allocation230_spill] sm:$0xff] %v11057_v18  ;;  %14472 = vst [vmem:[#allocation231_spill] sm:$0xff] %v11059_v38  ;;  %2729 = vbcast.lane.b32.xlu0 %v14464_v19, 320 }
 0x5b0   :  { %v11063_v49 = vpop.xlane.xlu0 %2093  ;;  %v11065_v4 = vpop.xlane.xlu1 %2095  ;;  %2741 = vbcast.lane.b32.xlu1 %v14464_v19, 344 }
 0x5b1   :  { %14473 = vst [vmem:[#allocation232_spill] sm:$0xff] %v11063_v49  ;;  %14474 = vst [vmem:[#allocation233_spill] sm:$0xff] %v11065_v4  ;;  %2737 = vbcast.lane.b32.xlu0 %v14464_v19, 336  ;;  %v14478_v49 = vld [vmem:[#allocation26_spill] sm:$0xff] }
 0x5b4   :  { %v11069_v54 = vpop.xlane.xlu0 %2097  ;;  %2749 = vbcast.lane.b32.xlu1 %v14464_v19, 360  ;;  %v11072_v46 = vpop.xlane.xlu1 %2099 }
 0x5b5   :  { %14475 = vst [vmem:[#allocation234_spill] sm:$0xff] %v11069_v54  ;;  %14476 = vst [vmem:[#allocation235_spill] sm:$0xff] %v11072_v46  ;;  %2745 = vbcast.lane.b32.xlu0 %v14464_v19, 352 }
 0x5b8   :  { %v11075_v38 = vpop.xlane.xlu0 %2101  ;;  %2757 = vbcast.lane.b32.xlu1 %v14464_v19, 376  ;;  %v2497_v18 = vpop.permute.xlu1 %2496 }
 0x5b9   :  { %14477 = vst [vmem:[#allocation236_spill] sm:$0xff] %v11075_v38  ;;  %2753 = vbcast.lane.b32.xlu0 %v14464_v19, 368 }
 0x5bc   :  { %v2501_v4 = vpop.permute.xlu0 %2500  ;;  %2768 = vbcast.lane.b32.xlu1 %v14478_v49, 264  ;;  %v2505_v41 = vpop.permute.xlu1 %2504 }
 0x5bd   :  { %v8047_v2 = vpack.c.bf16 %v2501_v4, %v2497_v18  ;;  %2764 = vbcast.lane.b32.xlu0 %v14478_v49, 256 }
 0x5bf   :  { %8048 = vmatprep.subr.bf16.mxu0 %v8047_v2 }
 0x5c0   :  { %8050 = vmatpush3.bf16.msra.mxu0 %v8047_v2  ;;  %v2513_v54 = vpop.permute.xlu0 %2512  ;;  %2776 = vbcast.lane.b32.xlu1 %v14478_v49, 280  ;;  %v2509_v46 = vpop.permute.xlu1 %2508 }
 0x5c1   :  { %v8051_v3 = vpack.c.bf16 %v2509_v46, %v2505_v41  ;;  %2772 = vbcast.lane.b32.xlu0 %v14478_v49, 272  ;;  %v14479_v41 = vld [vmem:[#allocation63_spill] sm:$0xff]  ;;  %v14480_v46 = vld [vmem:[#allocation193_spill] sm:$0xff] }
 0x5c2   :  { %v2104_v50 = vsub.f32 %v14480_v46, %v14479_v41 }
 0x5c3   :  { %8052 = vmatprep.subr.bf16.mxu0 %v8051_v3 }
 0x5c4   :  { %v2521_v38 = vpop.permute.xlu0 %2520  ;;  %2784 = vbcast.lane.b32.xlu1 %v14478_v49, 296  ;;  %v2517_v19 = vpop.permute.xlu1 %2516  ;;  %8054 = vmatpush3.bf16.msra.mxu0 %v8051_v3 }
 0x5c5   :  { %v8055_v14 = vpack.c.bf16 %v2517_v19, %v2513_v54  ;;  %2780 = vbcast.lane.b32.xlu0 %v14478_v49, 288  ;;  %v14481_v54 = vld [vmem:[#allocation167_spill] sm:$0xff]  ;;  %v14482_v19 = vld [vmem:[#allocation194_spill] sm:$0xff] }
 0x5c6   :  { %v2105_v48 = vsub.f32 %v14482_v19, %v14481_v54 }
 0x5c7   :  { %8056 = vmatprep.subr.bf16.mxu0 %v8055_v14 }
 0x5c8   :  { %v2529_v18 = vpop.permute.xlu0 %2528  ;;  %2792 = vbcast.lane.b32.xlu1 %v14478_v49, 312  ;;  %v2525_v2 = vpop.permute.xlu1 %2524  ;;  %8058 = vmatpush3.bf16.msra.mxu0 %v8055_v14  ;;  %v2233_v14 = vmul.f32 1.442695, %v2104_v50  ;;  %v2235_v46 = vmul.f32 1.442695, %v2105_v48  ;;  %v14486_v50 = vld [vmem:[#allocation197_spill] sm:$0xff] }
 0x5c9   :  { %v8059_v4 = vpack.c.bf16 %v2525_v2, %v2521_v38  ;;  %2788 = vbcast.lane.b32.xlu0 %v14478_v49, 304  ;;  %v14483_v38 = vld [vmem:[#allocation195_spill] sm:$0xff]  ;;  %v14487_v48 = vld [vmem:[#allocation198_spill] sm:$0xff] }
 0x5ca   :  { %v2106_v2 = vsub.f32 %v14483_v38, %v10399_v62  ;;  %8352 = vpow2.f32 %v2233_v14  ;;  %v2109_v19 = vsub.f32 %v14487_v48, %v10419_v51  ;;  %v14493_v48 = vld [vmem:[#allocation203_spill] sm:$0xff] }
 0x5cb   :  { %8060 = vmatprep.subr.bf16.mxu0 %v8059_v4  ;;  %8354 = vpow2.f32 %v2235_v46  ;;  %v14490_v46 = vld [vmem:[#allocation201_spill] sm:$0xff] }
 0x5cc   :  { %v2537_v29 = vpop.permute.xlu0 %2536  ;;  %2800 = vbcast.lane.b32.xlu1 %v14478_v49, 328  ;;  %v2533_v3 = vpop.permute.xlu1 %2532  ;;  %8062 = vmatpush3.bf16.msra.mxu0 %v8059_v4  ;;  %v2107_v4 = vsub.f32 %v14485_v33, %v14484_v56 }
 0x5cd   :  { %v8063_v8 = vpack.c.bf16 %v2533_v3, %v2529_v18  ;;  %2796 = vbcast.lane.b32.xlu0 %v14478_v49, 320  ;;  %v2237_v18 = vmul.f32 1.442695, %v2106_v2  ;;  %v2108_v3 = vsub.f32 %v14486_v50, %v10417_v45  ;;  %v14489_v2 = vld [vmem:[#allocation200_spill] sm:$0xff] }
 0x5cf   :  { %8064 = vmatprep.subr.bf16.mxu0 %v8063_v8  ;;  %8356 = vpow2.f32 %v2237_v18  ;;  %v2241_v56 = vmul.f32 1.442695, %v2108_v3  ;;  %v14491_v18 = vld [vmem:[#allocation30_spill] sm:$0xff] }
 0x5d0   :  { %v2545_v9 = vpop.permute.xlu0 %2544  ;;  %2808 = vbcast.lane.b32.xlu1 %v14478_v49, 344  ;;  %v2541_v41 = vpop.permute.xlu1 %2540  ;;  %8066 = vmatpush3.bf16.msra.mxu0 %v8063_v8  ;;  %v2239_v8 = vmul.f32 1.442695, %v2107_v4  ;;  %v2112_v4 = vsub.f32 %v14490_v46, %v10456_v39  ;;  %v14496_v46 = vld [vmem:[#allocation206_spill] sm:$0xff] }
 0x5d1   :  { %v8067_v23 = vpack.c.bf16 %v2541_v41, %v2537_v29  ;;  %2804 = vbcast.lane.b32.xlu0 %v14478_v49, 336  ;;  %v14488_v29 = vld [vmem:[#allocation199_spill] sm:$0xff]  ;;  %v2111_v41 = vsub.f32 %v14489_v2, %v10440_v12  ;;  %v14495_v2 = vld [vmem:[#allocation205_spill] sm:$0xff] }
 0x5d2   :  { %v2110_v14 = vsub.f32 %v14488_v29, %v10438_v63  ;;  %8358 = vpow2.f32 %v2239_v8  ;;  %v2249_v39 = vmul.f32 1.442695, %v2112_v4  ;;  %v14494_v29 = vld [vmem:[#allocation204_spill] sm:$0xff]  ;;  %v2117_v4 = vsub.f32 %v14496_v46, %v10495_v52 }
 0x5d3   :  { %8068 = vmatprep.subr.bf16.mxu0 %v8067_v23  ;;  %8360 = vpow2.f32 %v2241_v56  ;;  %v2247_v3 = vmul.f32 1.442695, %v2111_v41  ;;  %v2116_v41 = vsub.f32 %v14495_v2, %v10493_v37 }
 0x5d4   :  { %v2553_v54 = vpop.permute.xlu0 %2552  ;;  %2816 = vbcast.lane.b32.xlu1 %v14478_v49, 360  ;;  %v2549_v62 = vpop.permute.xlu1 %2548  ;;  %8070 = vmatpush3.bf16.msra.mxu0 %v8067_v23  ;;  %v2243_v23 = vmul.f32 1.442695, %v2109_v19  ;;  %v2114_v19 = vsub.f32 %v14493_v48, %v10474_v22  ;;  %v14498_v48 = vld [vmem:[#allocation142_spill] sm:$0xff] }
 0x5d5   :  { %v8071_v33 = vpack.c.bf16 %v2549_v62, %v2545_v9  ;;  %2812 = vbcast.lane.b32.xlu0 %v14478_v49, 352  ;;  %v2245_v9 = vmul.f32 1.442695, %v2110_v14  ;;  %v14492_v62 = vld [vmem:[#allocation202_spill] sm:$0xff]  ;;  %v2115_v14 = vsub.f32 %v14494_v29, %v10476_v21  ;;  %v2257_v37 = vmul.f32 1.442695, %v2116_v41 }
 0x5d6   :  { %8362 = vpow2.f32 %v2243_v23  ;;  %v2113_v8 = vsub.f32 %v14492_v62, %v10458_v57  ;;  %v2253_v22 = vmul.f32 1.442695, %v2114_v19  ;;  %v14497_v62 = vld [vmem:[#allocation207_spill] sm:$0xff]  ;;  %v2135_v19 = vsub.f32 %v14498_v48, %v10658_v10  ;;  %v14499_v10 = vld [vmem:[#allocation208_spill] sm:$0xff] }
 0x5d7   :  { %8072 = vmatprep.subr.bf16.mxu0 %v8071_v33  ;;  %8364 = vpow2.f32 %v2245_v9  ;;  %v2255_v9 = vmul.f32 1.442695, %v2115_v14 }
 0x5d8   :  { %v2564_v45 = vpop.permute.xlu0 %2563  ;;  %2824 = vbcast.lane.b32.xlu1 %v14478_v49, 376  ;;  %v2557_v38 = vpop.permute.xlu1 %2556  ;;  %8074 = vmatpush3.bf16.msra.mxu0 %v8071_v33  ;;  %8366 = vpow2.f32 %v2247_v3  ;;  %v2251_v57 = vmul.f32 1.442695, %v2113_v8  ;;  %v2118_v8 = vsub.f32 %v14497_v62, %v10513_v58 }
 0x5d9   :  { %v8075_v51 = vpack.c.bf16 %v2557_v38, %v2553_v54  ;;  %2820 = vbcast.lane.b32.xlu0 %v14478_v49, 368  ;;  %v11117_v49 = vpop.eup %8352  ;;  %8368 = vpow2.f32 %v2249_v39  ;;  %v2259_v39 = vmul.f32 1.442695, %v2117_v4 }
 0x5da   :  { %v11119_v54 = vpop.eup %8354  ;;  %8370 = vpow2.f32 %v2251_v57  ;;  %v2261_v58 = vmul.f32 1.442695, %v2118_v8 }
 0x5db   :  { %8076 = vmatprep.subr.bf16.mxu0 %v8075_v51  ;;  %v11129_v38 = vpop.eup %8356  ;;  %8372 = vpow2.f32 %v2253_v22  ;;  %v2295_v22 = vmul.f32 1.442695, %v2135_v19 }
 0x5dc   :  { %v2572_v63 = vpop.permute.xlu0 %2571  ;;  %2835 = vbcast.lane.b32.xlu1 %v14491_v18, 264  ;;  %v2568_v50 = vpop.permute.xlu1 %2567  ;;  %8078 = vmatpush3.bf16.msra.mxu0 %v8075_v51  ;;  %8374 = vpow2.f32 %v2255_v9 }
 0x5dd   :  { %v8079_v12 = vpack.c.bf16 %v2568_v50, %v2564_v45  ;;  %2831 = vbcast.lane.b32.xlu0 %v14491_v18, 256  ;;  %v11131_v23 = vpop.eup %8358  ;;  %8376 = vpow2.f32 %v2257_v37 }
 0x5de   :  { %v11141_v50 = vpop.eup %8360  ;;  %8378 = vpow2.f32 %v2259_v39 }
 0x5df   :  { %7592 = vmatmul.mubr.f32.vlgmr.msra.gmra.mrb[4].mxu0 %v11117_v49  ;;  %8080 = vmatprep.subr.bf16.mxu1 %v8079_v12  ;;  %8380 = vpow2.f32 %v2261_v58 }
 0x5e0   :  { %v2580_v33 = vpop.permute.xlu0 %2579  ;;  %2843 = vbcast.lane.b32.xlu1 %v14491_v18, 280  ;;  %v2576_v56 = vpop.permute.xlu1 %2575  ;;  %7594 = vmatprep.mubr.f32.mxu0 %v11119_v54  ;;  %8382 = vpow2.f32 %v2295_v22 }
 0x5e1   :  { %v8083_v45 = vpack.c.bf16 %v2576_v56, %v2572_v63  ;;  %2839 = vbcast.lane.b32.xlu0 %v14491_v18, 272  ;;  %8082 = vmatpush3.bf16.msra.mxu1 %v8079_v12  ;;  %v11143_v3 = vpop.eup %8362 }
 0x5e2   :  { %v11153_v56 = vpop.eup %8364 }
 0x5e3   :  { %7595 = vmatmul.mubr.f32.gmra.mrb[6].mxu0 %v11129_v38  ;;  %8084 = vmatprep.subr.bf16.mxu1 %v8083_v45  ;;  %v11155_v57 = vpop.eup %8366 }
 0x5e4   :  { %v2588_v51 = vpop.permute.xlu0 %2587  ;;  %2851 = vbcast.lane.b32.xlu1 %v14491_v18, 296  ;;  %v2584_v21 = vpop.permute.xlu1 %2583  ;;  %7597 = vmatprep.mubr.f32.mxu0 %v11131_v23 }
 0x5e5   :  { %v8087_v63 = vpack.c.bf16 %v2584_v21, %v2580_v33  ;;  %2847 = vbcast.lane.b32.xlu0 %v14491_v18, 288  ;;  %8086 = vmatpush3.bf16.msra.mxu1 %v8083_v45  ;;  %v2120_v45 = vsub.f32 %v14499_v10, %v10527_v30  ;;  %v11163_v41 = vpop.eup %8368  ;;  %v14504_v10 = vld [vmem:[#allocation213_spill] sm:$0xff] }
 0x5e6   :  { %v11167_v9 = vpop.eup %8370 }
 0x5e7   :  { %7598 = vmatmul.mubr.f32.gmra.mrb[8].mxu0 %v11141_v50  ;;  %8088 = vmatprep.subr.bf16.mxu1 %v8087_v63  ;;  %v2265_v4 = vmul.f32 1.442695, %v2120_v45  ;;  %v2125_v45 = vsub.f32 %v14504_v10, %v10565_v24 }
 0x5e8   :  { %v2596_v12 = vpop.permute.xlu0 %2595  ;;  %2859 = vbcast.lane.b32.xlu1 %v14491_v18, 312  ;;  %v2592_v52 = vpop.permute.xlu1 %2591  ;;  %7600 = vmatprep.mubr.f32.mxu0 %v11143_v3 }
 0x5e9   :  { %v8091_v33 = vpack.c.bf16 %v2592_v52, %v2588_v51  ;;  %2855 = vbcast.lane.b32.xlu0 %v14491_v18, 304  ;;  %8090 = vmatpush3.bf16.msra.mxu1 %v8087_v63  ;;  %v14500_v51 = vld [vmem:[#allocation209_spill] sm:$0xff]  ;;  %v14501_v63 = vld [vmem:[#allocation210_spill] sm:$0xff]  ;;  %8384 = vpow2.f32 %v2265_v4  ;;  %v2275_v4 = vmul.f32 1.442695, %v2125_v45  ;;  %v14510_v45 = vld [vmem:[#allocation40_spill] sm:$0xff] }
 0x5ea   :  { %v2121_v21 = vsub.f32 %v14500_v51, %v10529_v6  ;;  %v2122_v37 = vsub.f32 %v14501_v63, %v10545_v44  ;;  %v11175_v6 = vpop.eup %8372  ;;  %v14506_v63 = vld [vmem:[#allocation139_spill] sm:$0xff] }
 0x5eb   :  { %7601 = vmatmul.mubr.f32.gmra.mrb[10].mxu0 %v11153_v56  ;;  %8092 = vmatprep.subr.bf16.mxu1 %v8091_v33  ;;  %v11179_v39 = vpop.eup %8374 }
 0x5ec   :  { %v2604_v29 = vpop.permute.xlu0 %2603  ;;  %2867 = vbcast.lane.b32.xlu1 %v14491_v18, 328  ;;  %v2600_v14 = vpop.permute.xlu1 %2599  ;;  %7603 = vmatprep.mubr.f32.mxu0 %v11155_v57  ;;  %v2267_v8 = vmul.f32 1.442695, %v2121_v21  ;;  %v2269_v19 = vmul.f32 1.442695, %v2122_v37  ;;  %v14505_v21 = vld [vmem:[#allocation38_spill] sm:$0xff]  ;;  %v2127_v37 = vsub.f32 %v14506_v63, %v10585_v20 }
 0x5ed   :  { %v8095_v2 = vpack.c.bf16 %v2600_v14, %v2596_v12  ;;  %2863 = vbcast.lane.b32.xlu0 %v14491_v18, 320  ;;  %8094 = vmatpush3.bf16.msra.mxu1 %v8091_v33  ;;  %v14502_v12 = vld [vmem:[#allocation211_spill] sm:$0xff]  ;;  %v14503_v33 = vld [vmem:[#allocation212_spill] sm:$0xff] }
 0x5ee   :  { %v2123_v52 = vsub.f32 %v14502_v12, %v10547_v26  ;;  %v2124_v58 = vsub.f32 %v14503_v33, %v10563_v59  ;;  %v11187_v26 = vpop.eup %8376  ;;  %8386 = vpow2.f32 %v2267_v8  ;;  %v14507_v12 = vld [vmem:[#allocation31_spill] sm:$0xff]  ;;  %v2279_v20 = vmul.f32 1.442695, %v2127_v37 }
 0x5ef   :  { %7604 = vmatmul.mubr.f32.gmra.mrb[12].mxu0 %v11163_v41  ;;  %8096 = vmatprep.subr.bf16.mxu1 %v8095_v2  ;;  %v11191_v22 = vpop.eup %8378  ;;  %8388 = vpow2.f32 %v2269_v19  ;;  %v14509_v19 = vld [vmem:[#allocation37_spill] sm:$0xff]  ;;  %v14512_v37 = vld [vmem:[#allocation143_spill] sm:$0xff] }
 0x5f0   :  { %v2612_v46 = vpop.permute.xlu0 %2611  ;;  %2875 = vbcast.lane.b32.xlu1 %v14491_v18, 344  ;;  %v2608_v30 = vpop.permute.xlu1 %2607  ;;  %7606 = vmatprep.mubr.f32.mxu0 %v11167_v9  ;;  %v2271_v14 = vmul.f32 1.442695, %v2123_v52  ;;  %v2273_v51 = vmul.f32 1.442695, %v2124_v58  ;;  %v14508_v52 = vld [vmem:[#allocation141_spill] sm:$0xff]  ;;  %v2129_v33 = vsub.f32 %v14509_v19, %v10604_v11 }
 0x5f1   :  { %v8099_v62 = vpack.c.bf16 %v2608_v30, %v2604_v29  ;;  %2871 = vbcast.lane.b32.xlu0 %v14491_v18, 336  ;;  %8098 = vmatpush3.bf16.msra.mxu1 %v8095_v2  ;;  %v11199_v24 = vpop.eup %8380 }
 0x5f2   :  { %8390 = vpow2.f32 %v2271_v14  ;;  %v2283_v11 = vmul.f32 1.442695, %v2129_v33  ;;  %v14514_v33 = vld [vmem:[#allocation42_spill] sm:$0xff] }
 0x5f3   :  { %7607 = vmatmul.mubr.f32.gmra.mrb[14].mxu0 %v11175_v6  ;;  %8100 = vmatprep.subr.bf16.mxu1 %v8099_v62  ;;  %8392 = vpow2.f32 %v2273_v51  ;;  %v14511_v51 = vld [vmem:[#allocation140_spill] sm:$0xff] }
 0x5f4   :  { %v2620_v48 = vpop.permute.xlu0 %2619  ;;  %2883 = vbcast.lane.b32.xlu1 %v14491_v18, 360  ;;  %v2616_v44 = vpop.permute.xlu1 %2615  ;;  %7609 = vmatprep.mubr.f32.mxu0 %v11179_v39  ;;  %8394 = vpow2.f32 %v2275_v4 }
 0x5f5   :  { %v8103_v29 = vpack.c.bf16 %v2616_v44, %v2612_v46  ;;  %2879 = vbcast.lane.b32.xlu0 %v14491_v18, 352  ;;  %8102 = vmatpush3.bf16.msra.mxu1 %v8099_v62  ;;  %v2126_v46 = vsub.f32 %v14505_v21, %v10583_v25  ;;  %v11203_v62 = vpop.eup %8382  ;;  %v2131_v21 = vsub.f32 %v14511_v51, %v10622_v27 }
 0x5f6   :  { %v11213_v58 = vpop.eup %8384 }
 0x5f7   :  { %7610 = vmatmul.mubr.f32.gmra.mrb[16].mxu0 %v11187_v26  ;;  %8104 = vmatprep.subr.bf16.mxu1 %v8103_v29  ;;  %v2287_v27 = vmul.f32 1.442695, %v2131_v21 }
 0x5f8   :  { %v2631_v2 = vpop.permute.xlu0 %2630  ;;  %2891 = vbcast.lane.b32.xlu1 %v14491_v18, 376  ;;  %v2624_v59 = vpop.permute.xlu1 %2623  ;;  %7612 = vmatprep.mubr.f32.mxu0 %v11191_v22 }
 0x5f9   :  { %v8107_v30 = vpack.c.bf16 %v2624_v59, %v2620_v48  ;;  %2887 = vbcast.lane.b32.xlu0 %v14491_v18, 368  ;;  %8106 = vmatpush3.bf16.msra.mxu1 %v8103_v29  ;;  %v2277_v18 = vmul.f32 1.442695, %v2126_v46  ;;  %v2128_v48 = vsub.f32 %v14508_v52, %v10602_v60  ;;  %v11215_v29 = vpop.eup %8386 }
 0x5fa   :  { %v11225_v46 = vpop.eup %8388 }
 0x5fb   :  { %7613 = vmatmul.mubr.f32.gmra.mrb[18].mxu0 %v11199_v24  ;;  %8108 = vmatprep.subr.bf16.mxu1 %v8107_v30  ;;  %8396 = vpow2.f32 %v2277_v18  ;;  %v2281_v10 = vmul.f32 1.442695, %v2128_v48  ;;  %v14513_v18 = vld [vmem:[#allocation39_spill] sm:$0xff] }
 0x5fc   :  { %v2639_v8 = vpop.permute.xlu0 %2638  ;;  %2902 = vbcast.lane.b32.xlu1 %v14507_v12, 264  ;;  %v2635_v25 = vpop.permute.xlu1 %2634  ;;  %7703 = vmatprep.mubr.f32.mxu0 %v11203_v62  ;;  %8398 = vpow2.f32 %v2279_v20  ;;  %v2133_v52 = vsub.f32 %v14513_v18, %v10640_v31 }
 0x5fd   :  { %v8111_v44 = vpack.c.bf16 %v2635_v25, %v2631_v2  ;;  %2898 = vbcast.lane.b32.xlu0 %v14507_v12, 256  ;;  %8110 = vmatpush3.bf16.msra.mxu1 %v8107_v30  ;;  %v2130_v2 = vsub.f32 %v14510_v45, %v10620_v16  ;;  %v11227_v30 = vpop.eup %8390  ;;  %8400 = vpow2.f32 %v2281_v10  ;;  %v14515_v10 = vld [vmem:[#allocation50_spill] sm:$0xff] }
 0x5fe   :  { %8402 = vpow2.f32 %v2283_v11  ;;  %v11237_v48 = vpop.eup %8392  ;;  %v2291_v31 = vmul.f32 1.442695, %v2133_v52  ;;  %v2151_v45 = vsub.f32 %v14515_v10, %v10802_v55  ;;  %v14516_v55 = vld [vmem:[#allocation145_spill] sm:$0xff] }
 0x5ff   :  { %8112 = vmatprep.subr.bf16.mxu0 %v8111_v44  ;;  %v2285_v63 = vmul.f32 1.442695, %v2130_v2 }
 0x600   :  { %7648 = vmatmul.mubr.f32.vlgmr.msra.gmra.mrb[4].mxu1 %v11213_v58  ;;  %v2647_v14 = vpop.permute.xlu0 %2646  ;;  %2910 = vbcast.lane.b32.xlu1 %v14507_v12, 280  ;;  %v2643_v60 = vpop.permute.xlu1 %2642 }
 0x601   :  { %v8115_v59 = vpack.c.bf16 %v2643_v60, %v2639_v8  ;;  %2906 = vbcast.lane.b32.xlu0 %v14507_v12, 272  ;;  %7650 = vmatprep.mubr.f32.mxu1 %v11215_v29  ;;  %v2132_v8 = vsub.f32 %v14512_v37, %v10638_v53  ;;  %8404 = vpow2.f32 %v2285_v63  ;;  %v14517_v37 = vld [vmem:[#allocation41_spill] sm:$0xff] }
 0x602   :  { %8114 = vmatpush3.bf16.msra.mxu0 %v8111_v44  ;;  %v11239_v44 = vpop.eup %8394  ;;  %8406 = vpow2.f32 %v2287_v27 }
 0x603   :  { %8116 = vmatprep.subr.bf16.mxu0 %v8115_v59  ;;  %v2289_v19 = vmul.f32 1.442695, %v2132_v8  ;;  %v2137_v8 = vsub.f32 %v14517_v37, %v10676_v15 }
 0x604   :  { %7651 = vmatmul.mubr.f32.gmra.mrb[6].mxu1 %v11225_v46  ;;  %v2655_v4 = vpop.permute.xlu0 %2654  ;;  %2918 = vbcast.lane.b32.xlu1 %v14507_v12, 296  ;;  %v2651_v16 = vpop.permute.xlu1 %2650 }
 0x605   :  { %v8119_v25 = vpack.c.bf16 %v2651_v16, %v2647_v14  ;;  %2914 = vbcast.lane.b32.xlu0 %v14507_v12, 288  ;;  %7653 = vmatprep.mubr.f32.mxu1 %v11227_v30  ;;  %v2134_v14 = vsub.f32 %v14514_v33, %v10656_v34  ;;  %v11249_v2 = vpop.eup %8396  ;;  %8408 = vpow2.f32 %v2289_v19  ;;  %v2327_v16 = vmul.f32 1.442695, %v2151_v45  ;;  %v14519_v33 = vld [vmem:[#allocation23_spill] sm:$0xff] }
 0x606   :  { %8118 = vmatpush3.bf16.msra.mxu0 %v8115_v59  ;;  %v11251_v59 = vpop.eup %8398  ;;  %8410 = vpow2.f32 %v2291_v31  ;;  %v2299_v19 = vmul.f32 1.442695, %v2137_v8 }
 0x607   :  { %8120 = vmatprep.subr.bf16.mxu0 %v8119_v25  ;;  %v2293_v51 = vmul.f32 1.442695, %v2134_v14  ;;  %v11259_v63 = vpop.eup %8400  ;;  %v2139_v14 = vsub.f32 %v14519_v33, %v10694_v35 }
 0x608   :  { %7654 = vmatmul.mubr.f32.gmra.mrb[8].mxu1 %v11237_v48  ;;  %v2663_v20 = vpop.permute.xlu0 %2662  ;;  %2926 = vbcast.lane.b32.xlu1 %v14507_v12, 312  ;;  %v2659_v53 = vpop.permute.xlu1 %2658 }
 0x609   :  { %v8123_v60 = vpack.c.bf16 %v2659_v53, %v2655_v4  ;;  %2922 = vbcast.lane.b32.xlu0 %v14507_v12, 304  ;;  %7656 = vmatprep.mubr.f32.mxu1 %v11239_v44  ;;  %v2136_v4 = vsub.f32 %v14516_v55, %v10674_v0  ;;  %8412 = vpow2.f32 %v2293_v51  ;;  %v2303_v51 = vmul.f32 1.442695, %v2139_v14 }
 0x60a   :  { %8122 = vmatpush3.bf16.msra.mxu0 %v8119_v25  ;;  %v11263_v25 = vpop.eup %8402  ;;  %8414 = vpow2.f32 %v2327_v16 }
 0x60b   :  { %8124 = vmatprep.subr.bf16.mxu0 %v8123_v60  ;;  %v2297_v0 = vmul.f32 1.442695, %v2136_v4  ;;  %v11271_v15 = vpop.eup %8404 }
 0x60c   :  { %7657 = vmatmul.mubr.f32.gmra.mrb[10].mxu1 %v11249_v2  ;;  %v2671_v11 = vpop.permute.xlu0 %2670  ;;  %2934 = vbcast.lane.b32.xlu1 %v14507_v12, 328  ;;  %v2667_v34 = vpop.permute.xlu1 %2666 }
 0x60d   :  { %v8127_v21 = vpack.c.bf16 %v2667_v34, %v2663_v20  ;;  %2930 = vbcast.lane.b32.xlu0 %v14507_v12, 320  ;;  %7659 = vmatprep.mubr.f32.mxu1 %v11251_v59  ;;  %v14518_v20 = vld [vmem:[#allocation44_spill] sm:$0xff]  ;;  %8416 = vpow2.f32 %v2297_v0  ;;  %v14523_v0 = vld [vmem:[#allocation46_spill] sm:$0xff] }
 0x60e   :  { %8126 = vmatpush3.bf16.msra.mxu0 %v8123_v60  ;;  %v2138_v53 = vsub.f32 %v14518_v20, %v10692_v42  ;;  %v11275_v60 = vpop.eup %8406  ;;  %8418 = vpow2.f32 %v2299_v19  ;;  %v2143_v20 = vsub.f32 %v14523_v0, %v10730_v1  ;;  %v14525_v19 = vld [vmem:[#allocation32_spill] sm:$0xff] }
 0x60f   :  { %8128 = vmatprep.subr.bf16.mxu0 %v8127_v21  ;;  %v11283_v35 = vpop.eup %8408 }
 0x610   :  { %7660 = vmatmul.mubr.f32.gmra.mrb[12].mxu1 %v11259_v63  ;;  %v2679_v27 = vpop.permute.xlu0 %2678  ;;  %2942 = vbcast.lane.b32.xlu1 %v14507_v12, 344  ;;  %v2675_v18 = vpop.permute.xlu1 %2674  ;;  %v2301_v42 = vmul.f32 1.442695, %v2138_v53  ;;  %v2311_v1 = vmul.f32 1.442695, %v2143_v20 }
 0x611   :  { %v8131_v52 = vpack.c.bf16 %v2675_v18, %v2671_v11  ;;  %2938 = vbcast.lane.b32.xlu0 %v14507_v12, 336  ;;  %7662 = vmatprep.mubr.f32.mxu1 %v11263_v25  ;;  %v14520_v11 = vld [vmem:[#allocation144_spill] sm:$0xff]  ;;  %v11287_v4 = vpop.eup %8410 }
 0x612   :  { %8130 = vmatpush3.bf16.msra.mxu0 %v8127_v21  ;;  %v2140_v34 = vsub.f32 %v14520_v11, %v10710_v47  ;;  %v14521_v21 = vld [vmem:[#allocation147_spill] sm:$0xff]  ;;  %8420 = vpow2.f32 %v2301_v42 }
 0x613   :  { %8132 = vmatprep.subr.bf16.mxu0 %v8131_v52  ;;  %v2141_v55 = vsub.f32 %v14521_v21, %v10712_v7  ;;  %v11295_v7 = vpop.eup %8412  ;;  %8422 = vpow2.f32 %v2303_v51 }
 0x614   :  { %7663 = vmatmul.mubr.f32.gmra.mrb[14].mxu1 %v11271_v15  ;;  %v2687_v31 = vpop.permute.xlu0 %2686  ;;  %2950 = vbcast.lane.b32.xlu1 %v14507_v12, 360  ;;  %v2683_v10 = vpop.permute.xlu1 %2682  ;;  %v2305_v47 = vmul.f32 1.442695, %v2140_v34 }
 0x615   :  { %v8135_v45 = vpack.c.bf16 %v2683_v10, %v2679_v27  ;;  %2946 = vbcast.lane.b32.xlu0 %v14507_v12, 352  ;;  %7665 = vmatprep.mubr.f32.mxu1 %v11275_v60  ;;  %v14522_v27 = vld [vmem:[#allocation43_spill] sm:$0xff]  ;;  %v11299_v53 = vpop.eup %8414 }
 0x616   :  { %8134 = vmatpush3.bf16.msra.mxu0 %v8131_v52  ;;  %v2142_v18 = vsub.f32 %v14522_v27, %v10728_v5  ;;  %v2307_v52 = vmul.f32 1.442695, %v2141_v55  ;;  %14524 = vst [vmem:[#allocation26_spill] sm:$0xff] %v11299_v53  ;;  %8424 = vpow2.f32 %v2305_v47 }
 0x617   :  { %8136 = vmatprep.subr.bf16.mxu0 %v8135_v45  ;;  %v11309_v11 = vpop.eup %8416 }
 0x618   :  { %7666 = vmatmul.mubr.f32.gmra.mrb[16].mxu1 %v11283_v35  ;;  %v2698_v16 = vpop.permute.xlu0 %2697  ;;  %2958 = vbcast.lane.b32.xlu1 %v14507_v12, 376  ;;  %v2691_v37 = vpop.permute.xlu1 %2690  ;;  %v2309_v5 = vmul.f32 1.442695, %v2142_v18  ;;  %8426 = vpow2.f32 %v2307_v52 }
 0x619   :  { %v8139_v8 = vpack.c.bf16 %v2691_v37, %v2687_v31  ;;  %2954 = vbcast.lane.b32.xlu0 %v14507_v12, 368  ;;  %7668 = vmatprep.mubr.f32.mxu1 %v11287_v4  ;;  %v14526_v31 = vld [vmem:[#allocation146_spill] sm:$0xff]  ;;  %v11312_v21 = vpop.eup %8418 }
 0x61a   :  { %8138 = vmatpush3.bf16.msra.mxu0 %v8135_v45  ;;  %v2144_v10 = vsub.f32 %v14526_v31, %v10746_v36  ;;  %v14527_v45 = vld [vmem:[#allocation149_spill] sm:$0xff]  ;;  %8428 = vpow2.f32 %v2309_v5 }
 0x61b   :  { %8140 = vmatprep.subr.bf16.mxu0 %v8139_v8  ;;  %v2145_v42 = vsub.f32 %v14527_v45, %v10748_v28  ;;  %8430 = vpow2.f32 %v2311_v1 }
 0x61c   :  { %7669 = vmatmul.mubr.f32.gmra.mrb[18].mxu1 %v11295_v7  ;;  %v2706_v12 = vpop.permute.xlu0 %2705  ;;  %2969 = vbcast.lane.b32.xlu1 %v14525_v19, 264  ;;  %v2702_v33 = vpop.permute.xlu1 %2701  ;;  %v2313_v36 = vmul.f32 1.442695, %v2144_v10 }
 0x61d   :  { %v8143_v14 = vpack.c.bf16 %v2702_v33, %v2698_v16  ;;  %2965 = vbcast.lane.b32.xlu0 %v14525_v19, 256  ;;  %7759 = vmatprep.mubr.f32.mxu1 %v11299_v53  ;;  %v14528_v16 = vld [vmem:[#allocation45_spill] sm:$0xff]  ;;  %v2315_v37 = vmul.f32 1.442695, %v2145_v42  ;;  %v11321_v27 = vpop.eup %8420 }
 0x61e   :  { %8142 = vmatpush3.bf16.msra.mxu0 %v8139_v8  ;;  %v2146_v28 = vsub.f32 %v14528_v16, %v10764_v17  ;;  %v14529_v8 = vld [vmem:[#allocation48_spill] sm:$0xff]  ;;  %v11324_v0 = vpop.eup %8422  ;;  %8432 = vpow2.f32 %v2313_v36 }
 0x61f   :  { %8144 = vmatprep.subr.bf16.mxu1 %v8143_v14  ;;  %v2147_v47 = vsub.f32 %v14529_v8, %v10766_v43  ;;  %8434 = vpow2.f32 %v2315_v37  ;;  %v14535_v37 = vld [vmem:[#allocation150_spill] sm:$0xff] }
 0x620   :  { %v2714_v34 = vpop.permute.xlu0 %2713  ;;  %2977 = vbcast.lane.b32.xlu1 %v14525_v19, 280  ;;  %v2710_v51 = vpop.permute.xlu1 %2709  ;;  %8146 = vmatpush3.bf16.msra.mxu1 %v8143_v14  ;;  %v2317_v20 = vmul.f32 1.442695, %v2146_v28  ;;  %v14531_v14 = vld [vmem:[#allocation151_spill] sm:$0xff]  ;;  %v14534_v28 = vld [vmem:[#allocation192_spill] sm:$0xff] }
 0x621   :  { %7704 = vmatmul.mubr.f32.vlgmr.msra.gmra.mrb[20].mxu0 %v11309_v11  ;;  %v8147_v55 = vpack.c.bf16 %v2710_v51, %v2706_v12  ;;  %2973 = vbcast.lane.b32.xlu0 %v14525_v19, 272  ;;  %v14530_v12 = vld [vmem:[#allocation148_spill] sm:$0xff]  ;;  %v2319_v33 = vmul.f32 1.442695, %v2147_v47  ;;  %v2149_v5 = vsub.f32 %v14531_v14, %v10784_v13  ;;  %v11333_v31 = vpop.eup %8424  ;;  %v2152_v8 = vsub.f32 %v14535_v37, %v14534_v28 }
 0x622   :  { %7706 = vmatprep.mubr.f32.mxu0 %v11312_v21  ;;  %v2148_v43 = vsub.f32 %v14530_v12, %v10782_v61  ;;  %v11336_v45 = vpop.eup %8426  ;;  %8436 = vpow2.f32 %v2317_v20  ;;  %v14541_v28 = vld [vmem:[#allocation52_spill] sm:$0xff] }
 0x623   :  { %8148 = vmatprep.subr.bf16.mxu1 %v8147_v55  ;;  %8438 = vpow2.f32 %v2319_v33  ;;  %v2323_v51 = vmul.f32 1.442695, %v2149_v5  ;;  %v2329_v14 = vmul.f32 1.442695, %v2152_v8  ;;  %v14538_v5 = vld [vmem:[#allocation91_spill] sm:$0xff] }
 0x624   :  { %v2722_v18 = vpop.permute.xlu0 %2721  ;;  %2985 = vbcast.lane.b32.xlu1 %v14525_v19, 296  ;;  %v2718_v52 = vpop.permute.xlu1 %2717  ;;  %8150 = vmatpush3.bf16.msra.mxu1 %v8147_v55  ;;  %v2321_v42 = vmul.f32 1.442695, %v2148_v43  ;;  %v14533_v55 = vld [vmem:[#allocation158_spill] sm:$0xff] }
 0x625   :  { %7707 = vmatmul.mubr.f32.gmra.mrb[22].mxu0 %v11321_v27  ;;  %v8151_v17 = vpack.c.bf16 %v2718_v52, %v2714_v34  ;;  %2981 = vbcast.lane.b32.xlu0 %v14525_v19, 288  ;;  %v14532_v34 = vld [vmem:[#allocation47_spill] sm:$0xff]  ;;  %v2167_v36 = vsub.f32 %v14533_v55, %v10887_v32  ;;  %v11345_v16 = vpop.eup %8428 }
 0x626   :  { %7709 = vmatprep.mubr.f32.mxu0 %v11324_v0  ;;  %v2150_v13 = vsub.f32 %v14532_v34, %v10800_v40  ;;  %v11350_v52 = vpop.eup %8430  ;;  %v14536_v40 = vld [vmem:[#allocation89_spill] sm:$0xff]  ;;  %8440 = vpow2.f32 %v2321_v42 }
 0x627   :  { %8152 = vmatprep.subr.bf16.mxu1 %v8151_v17  ;;  %8442 = vpow2.f32 %v2323_v51  ;;  %v2359_v43 = vmul.f32 1.442695, %v2167_v36 }
 0x628   :  { %v2730_v10 = vpop.permute.xlu0 %2729  ;;  %2993 = vbcast.lane.b32.xlu1 %v14525_v19, 312  ;;  %v2726_v1 = vpop.permute.xlu1 %2725  ;;  %8154 = vmatpush3.bf16.msra.mxu1 %v8151_v17  ;;  %v14537_v17 = vld [vmem:[#allocation153_spill] sm:$0xff]  ;;  %v2325_v32 = vmul.f32 1.442695, %v2150_v13  ;;  %v14540_v13 = vld [vmem:[#allocation94_spill] sm:$0xff] }
 0x629   :  { %7710 = vmatmul.mubr.f32.gmra.mrb[24].mxu0 %v11333_v31  ;;  %v8155_v61 = vpack.c.bf16 %v2726_v1, %v2722_v18  ;;  %2989 = vbcast.lane.b32.xlu0 %v14525_v19, 304  ;;  %v2153_v20 = vsub.f32 %v14537_v17, %v14536_v40  ;;  %v11357_v33 = vpop.eup %8432  ;;  %v14539_v1 = vld [vmem:[#allocation49_spill] sm:$0xff]  ;;  %v2155_v37 = vsub.f32 %v14541_v28, %v14540_v13  ;;  %v14543_v40 = vld [vmem:[#allocation152_spill] sm:$0xff]  ;;  %v14546_v13 = vld [vmem:[#allocation99_spill] sm:$0xff] }
 0x62a   :  { %7712 = vmatprep.mubr.f32.mxu0 %v11336_v45  ;;  %8444 = vpow2.f32 %v2325_v32  ;;  %v14547_v28 = vld [vmem:[#allocation51_spill] sm:$0xff] }
 0x62b   :  { %8156 = vmatprep.subr.bf16.mxu1 %v8155_v61  ;;  %v2331_v42 = vmul.f32 1.442695, %v2153_v20  ;;  %8446 = vpow2.f32 %v2359_v43  ;;  %v2335_v32 = vmul.f32 1.442695, %v2155_v37 }
 0x62c   :  { %v2738_v47 = vpop.permute.xlu0 %2737  ;;  %3001 = vbcast.lane.b32.xlu1 %v14525_v19, 328  ;;  %v2734_v18 = vpop.permute.xlu1 %2733  ;;  %8158 = vmatpush3.bf16.msra.mxu1 %v8155_v61  ;;  %v2154_v61 = vsub.f32 %v14539_v1, %v14538_v5  ;;  %8448 = vpow2.f32 %v2329_v14  ;;  %v14544_v5 = vld [vmem:[#allocation98_spill] sm:$0xff]  ;;  %v14545_v1 = vld [vmem:[#allocation155_spill] sm:$0xff] }
 0x62d   :  { %7713 = vmatmul.mubr.f32.gmra.mrb[26].mxu0 %v11345_v16  ;;  %v8159_v12 = vpack.c.bf16 %v2734_v18, %v2730_v10  ;;  %2997 = vbcast.lane.b32.xlu0 %v14525_v19, 320  ;;  %v11362_v10 = vpop.eup %8434  ;;  %v14542_v18 = vld [vmem:[#allocation95_spill] sm:$0xff]  ;;  %8450 = vpow2.f32 %v2331_v42  ;;  %v2157_v43 = vsub.f32 %v14545_v1, %v14544_v5 }
 0x62e   :  { %7715 = vmatprep.mubr.f32.mxu0 %v11350_v52  ;;  %v11369_v36 = vpop.eup %8436  ;;  %v2333_v8 = vmul.f32 1.442695, %v2154_v61  ;;  %v2156_v17 = vsub.f32 %v14543_v40, %v14542_v18  ;;  %v14549_v40 = vld [vmem:[#allocation102_spill] sm:$0xff] }
 0x62f   :  { %8160 = vmatprep.subr.bf16.mxu1 %v8159_v12 }
 0x630   :  { %v2746_v34 = vpop.permute.xlu0 %2745  ;;  %3009 = vbcast.lane.b32.xlu1 %v14525_v19, 344  ;;  %v2742_v55 = vpop.permute.xlu1 %2741  ;;  %8162 = vmatpush3.bf16.msra.mxu1 %v8159_v12  ;;  %8452 = vpow2.f32 %v2333_v8  ;;  %v2337_v61 = vmul.f32 1.442695, %v2156_v17 }
 0x631   :  { %7716 = vmatmul.mubr.f32.gmra.mrb[28].mxu0 %v11357_v33  ;;  %v8163_v51 = vpack.c.bf16 %v2742_v55, %v2738_v47  ;;  %3005 = vbcast.lane.b32.xlu0 %v14525_v19, 336  ;;  %v11374_v47 = vpop.eup %8438  ;;  %8454 = vpow2.f32 %v2335_v32 }
 0x632   :  { %7718 = vmatprep.mubr.f32.mxu0 %v11362_v10  ;;  %v11381_v14 = vpop.eup %8440  ;;  %8456 = vpow2.f32 %v2337_v61 }
 0x633   :  { %8164 = vmatprep.subr.bf16.mxu1 %v8163_v51  ;;  %v11386_v18 = vpop.eup %8442 }
 0x634   :  { %v2754_v20 = vpop.permute.xlu0 %2753  ;;  %3017 = vbcast.lane.b32.xlu1 %v14525_v19, 360  ;;  %v2750_v12 = vpop.permute.xlu1 %2749  ;;  %8166 = vmatpush3.bf16.msra.mxu1 %v8163_v51  ;;  %v2158_v51 = vsub.f32 %v14547_v28, %v14546_v13  ;;  %14548 = vst [vmem:[#allocation63_spill] sm:$0xff] %v11386_v18  ;;  %v14553_v13 = vld [vmem:[#allocation154_spill] sm:$0xff] }
 0x635   :  { %7719 = vmatmul.mubr.f32.gmra.mrb[30].mxu0 %v11369_v36  ;;  %v8167_v55 = vpack.c.bf16 %v2750_v12, %v2746_v34  ;;  %3013 = vbcast.lane.b32.xlu0 %v14525_v19, 352  ;;  %v2339_v34 = vmul.f32 1.442695, %v2157_v43  ;;  %v14550_v12 = vld [vmem:[#allocation54_spill] sm:$0xff]  ;;  %v11393_v8 = vpop.eup %8444 }
 0x636   :  { %7721 = vmatprep.mubr.f32.mxu0 %v11374_v47  ;;  %v2159_v5 = vsub.f32 %v14550_v12, %v14549_v40  ;;  %14551 = vst [vmem:[#allocation193_spill] sm:$0xff] %v11393_v8  ;;  %v2341_v17 = vmul.f32 1.442695, %v2158_v51  ;;  %v11397_v53 = vpop.eup %8446 }
 0x637   :  { %8168 = vmatprep.subr.bf16.mxu1 %v8167_v55  ;;  %14554 = vst [vmem:[#allocation167_spill] sm:$0xff] %v11397_v53  ;;  %8458 = vpow2.f32 %v2339_v34  ;;  %v14560_v34 = vld [vmem:[#allocation53_spill] sm:$0xff] }
 0x638   :  { %v2765_v42 = vpop.permute.xlu0 %2764  ;;  %3025 = vbcast.lane.b32.xlu1 %v14525_v19, 376  ;;  %v2758_v37 = vpop.permute.xlu1 %2757  ;;  %8170 = vmatpush3.bf16.msra.mxu1 %v8167_v55  ;;  %v14552_v55 = vld [vmem:[#allocation104_spill] sm:$0xff]  ;;  %v2343_v40 = vmul.f32 1.442695, %v2159_v5  ;;  %8460 = vpow2.f32 %v2341_v17 }
 0x639   :  { %7722 = vmatmul.mubr.f32.gmra.mrb[32].mxu0 %v11381_v14  ;;  %v8171_v1 = vpack.c.bf16 %v2758_v37, %v2754_v20  ;;  %3021 = vbcast.lane.b32.xlu0 %v14525_v19, 368  ;;  %v2160_v28 = vsub.f32 %v14553_v13, %v14552_v55  ;;  %v14555_v20 = vld [vmem:[#allocation103_spill] sm:$0xff]  ;;  %v14556_v37 = vld [vmem:[#allocation157_spill] sm:$0xff] }
 0x63a   :  { %7724 = vmatprep.mubr.f32.mxu0 %v11386_v18  ;;  %v2161_v19 = vsub.f32 %v14556_v37, %v14555_v20  ;;  %v11402_v18 = vpop.eup %8448  ;;  %8462 = vpow2.f32 %v2343_v40  ;;  %v14562_v20 = vld [vmem:[#allocation56_spill] sm:$0xff] }
 0x63b   :  { %8172 = vmatprep.subr.bf16.mxu1 %v8171_v1  ;;  %14557 = vst [vmem:[#allocation194_spill] sm:$0xff] %v11402_v18  ;;  %v11405_v61 = vpop.eup %8450  ;;  %v2345_v51 = vmul.f32 1.442695, %v2160_v28  ;;  %v14565_v28 = vld [vmem:[#allocation108_spill] sm:$0xff] }
 0x63c   :  { %v2773_v32 = vpop.permute.xlu0 %2772  ;;  %v2769_v43 = vpop.permute.xlu1 %2768  ;;  %8174 = vmatpush3.bf16.msra.mxu1 %v8171_v1  ;;  %14558 = vst [vmem:[#allocation195_spill] sm:$0xff] %v11405_v61  ;;  %v14559_v1 = vld [vmem:[#allocation106_spill] sm:$0xff] }
 0x63d   :  { %7725 = vmatmul.mubr.f32.gmra.mrb[34].mxu0 %v11393_v8  ;;  %v8175_v12 = vpack.c.bf16 %v2769_v43, %v2765_v42  ;;  %v2162_v5 = vsub.f32 %v14560_v34, %v14559_v1  ;;  %v2347_v42 = vmul.f32 1.442695, %v2161_v19  ;;  %v14561_v43 = vld [vmem:[#allocation105_spill] sm:$0xff]  ;;  %v11413_v8 = vpop.eup %8452  ;;  %8464 = vpow2.f32 %v2345_v51  ;;  %v14566_v1 = vld [vmem:[#allocation156_spill] sm:$0xff]  ;;  %v14568_v19 = vld [vmem:[#allocation159_spill] sm:$0xff] }
 0x63e   :  { %7815 = vmatprep.mubr.f32.mxu0 %v11397_v53  ;;  %v2163_v37 = vsub.f32 %v14562_v20, %v14561_v43  ;;  %14563 = vst [vmem:[#allocation166_spill] sm:$0xff] %v11413_v8  ;;  %v2164_v34 = vsub.f32 %v14566_v1, %v14565_v28  ;;  %v14572_v28 = vld [vmem:[#allocation58_spill] sm:$0xff] }
 0x63f   :  { %7760 = vmatmul.mubr.f32.vlgmr.msra.gmra.mrb[20].mxu1 %v11402_v18  ;;  %8176 = vmatprep.subr.bf16.mxu0 %v8175_v12  ;;  %v11415_v18 = vpop.eup %8454  ;;  %v2349_v17 = vmul.f32 1.442695, %v2162_v5  ;;  %8466 = vpow2.f32 %v2347_v42  ;;  %v14571_v5 = vld [vmem:[#allocation107_spill] sm:$0xff] }
 0x640   :  { %v2781_v55 = vpop.permute.xlu0 %2780  ;;  %v2777_v13 = vpop.permute.xlu1 %2776  ;;  %7762 = vmatprep.mubr.f32.mxu1 %v11405_v61  ;;  %8178 = vmatpush3.bf16.msra.mxu0 %v8175_v12  ;;  %14564 = vst [vmem:[#allocation196_spill] sm:$0xff] %v11415_v18  ;;  %v2351_v40 = vmul.f32 1.442695, %v2163_v37  ;;  %v2353_v51 = vmul.f32 1.442695, %v2164_v34  ;;  %v2166_v1 = vsub.f32 %v14572_v28, %v14571_v5 }
 0x641   :  { %v8179_v53 = vpack.c.bf16 %v2777_v13, %v2773_v32  ;;  %v14567_v32 = vld [vmem:[#allocation29_spill] sm:$0xff]  ;;  %v11423_v20 = vpop.eup %8456  ;;  %8468 = vpow2.f32 %v2349_v17 }
 0x642   :  { %v2165_v13 = vsub.f32 %v14568_v19, %v14567_v32  ;;  %14569 = vst [vmem:[#allocation197_spill] sm:$0xff] %v11423_v20  ;;  %8470 = vpow2.f32 %v2351_v40  ;;  %v14575_v32 = vld [vmem:[#allocation70_spill] sm:$0xff]  ;;  %v2357_v17 = vmul.f32 1.442695, %v2166_v1 }
 0x643   :  { %7763 = vmatmul.mubr.f32.gmra.mrb[22].mxu1 %v11413_v8  ;;  %8180 = vmatprep.subr.bf16.mxu0 %v8179_v53  ;;  %v11425_v8 = vpop.eup %8458  ;;  %8472 = vpow2.f32 %v2353_v51  ;;  %v14577_v40 = vld [vmem:[#allocation110_spill] sm:$0xff] }
 0x644   :  { %v2789_v61 = vpop.permute.xlu0 %2788  ;;  %v2785_v12 = vpop.permute.xlu1 %2784  ;;  %7765 = vmatprep.mubr.f32.mxu1 %v11415_v18  ;;  %8182 = vmatpush3.bf16.msra.mxu0 %v8179_v53  ;;  %14570 = vst [vmem:[#allocation198_spill] sm:$0xff] %v11425_v8  ;;  %v2355_v42 = vmul.f32 1.442695, %v2165_v13 }
 0x645   :  { %v8183_v43 = vpack.c.bf16 %v2785_v12, %v2781_v55  ;;  %v11431_v37 = vpop.eup %8460  ;;  %v14574_v12 = vld [vmem:[#allocation34_spill] sm:$0xff] }
 0x646   :  { %14573 = vst [vmem:[#allocation199_spill] sm:$0xff] %v11431_v37  ;;  %v2183_v19 = vsub.f32 %v14575_v32, %v14574_v12  ;;  %8474 = vpow2.f32 %v2355_v42  ;;  %v14581_v12 = vld [vmem:[#allocation60_spill] sm:$0xff] }
 0x647   :  { %7766 = vmatmul.mubr.f32.gmra.mrb[24].mxu1 %v11423_v20  ;;  %8184 = vmatprep.subr.bf16.mxu0 %v8183_v43  ;;  %v11435_v20 = vpop.eup %8462  ;;  %8476 = vpow2.f32 %v2357_v17 }
 0x648   :  { %v2797_v18 = vpop.permute.xlu0 %2796  ;;  %v2793_v53 = vpop.permute.xlu1 %2792  ;;  %7768 = vmatprep.mubr.f32.mxu1 %v11425_v8  ;;  %8186 = vmatpush3.bf16.msra.mxu0 %v8183_v43  ;;  %14576 = vst [vmem:[#allocation200_spill] sm:$0xff] %v11435_v20  ;;  %v2391_v8 = vmul.f32 1.442695, %v2183_v19  ;;  %v14586_v19 = vld [vmem:[#allocation111_spill] sm:$0xff] }
 0x649   :  { %v8187_v55 = vpack.c.bf16 %v2793_v53, %v2789_v61  ;;  %v14578_v61 = vld [vmem:[#allocation57_spill] sm:$0xff]  ;;  %v11441_v28 = vpop.eup %8464 }
 0x64a   :  { %v2168_v13 = vsub.f32 %v14578_v61, %v14577_v40  ;;  %14579 = vst [vmem:[#allocation201_spill] sm:$0xff] %v11441_v28  ;;  %v14580_v53 = vld [vmem:[#allocation109_spill] sm:$0xff]  ;;  %8478 = vpow2.f32 %v2391_v8 }
 0x64b   :  { %7769 = vmatmul.mubr.f32.gmra.mrb[26].mxu1 %v11431_v37  ;;  %8188 = vmatprep.subr.bf16.mxu0 %v8187_v55  ;;  %v2169_v32 = vsub.f32 %v14581_v12, %v14580_v53  ;;  %v11445_v37 = vpop.eup %8466  ;;  %v14587_v12 = vld [vmem:[#allocation163_spill] sm:$0xff] }
 0x64c   :  { %v2805_v34 = vpop.permute.xlu0 %2804  ;;  %v2801_v5 = vpop.permute.xlu1 %2800  ;;  %7771 = vmatprep.mubr.f32.mxu1 %v11435_v20  ;;  %8190 = vmatpush3.bf16.msra.mxu0 %v8187_v55  ;;  %14582 = vst [vmem:[#allocation30_spill] sm:$0xff] %v11445_v37  ;;  %v2361_v42 = vmul.f32 1.442695, %v2168_v13  ;;  %v14583_v55 = vld [vmem:[#allocation112_spill] sm:$0xff]  ;;  %v2171_v20 = vsub.f32 %v14587_v12, %v14586_v19  ;;  %v14593_v19 = vld [vmem:[#allocation165_spill] sm:$0xff] }
 0x64d   :  { %v8191_v43 = vpack.c.bf16 %v2801_v5, %v2797_v18  ;;  %v14584_v18 = vld [vmem:[#allocation160_spill] sm:$0xff]  ;;  %v11451_v61 = vpop.eup %8468  ;;  %v2363_v53 = vmul.f32 1.442695, %v2169_v32 }
 0x64e   :  { %v2170_v5 = vsub.f32 %v14584_v18, %v14583_v55  ;;  %14585 = vst [vmem:[#allocation202_spill] sm:$0xff] %v11451_v61  ;;  %8480 = vpow2.f32 %v2361_v42  ;;  %v2367_v8 = vmul.f32 1.442695, %v2171_v20  ;;  %v14592_v18 = vld [vmem:[#allocation113_spill] sm:$0xff] }
 0x64f   :  { %7772 = vmatmul.mubr.f32.gmra.mrb[28].mxu1 %v11441_v28  ;;  %8192 = vmatprep.subr.bf16.mxu0 %v8191_v43  ;;  %v11455_v28 = vpop.eup %8470  ;;  %8482 = vpow2.f32 %v2363_v53  ;;  %v2173_v12 = vsub.f32 %v14593_v19, %v14592_v18  ;;  %v14598_v18 = vld [vmem:[#allocation115_spill] sm:$0xff]  ;;  %v14599_v19 = vld [vmem:[#allocation64_spill] sm:$0xff] }
 0x650   :  { %v2813_v51 = vpop.permute.xlu0 %2812  ;;  %v2809_v1 = vpop.permute.xlu1 %2808  ;;  %7774 = vmatprep.mubr.f32.mxu1 %v11445_v37  ;;  %8194 = vmatpush3.bf16.msra.mxu0 %v8191_v43  ;;  %14588 = vst [vmem:[#allocation203_spill] sm:$0xff] %v11455_v28  ;;  %v2365_v13 = vmul.f32 1.442695, %v2170_v5  ;;  %v14590_v43 = vld [vmem:[#allocation162_spill] sm:$0xff] }
 0x651   :  { %v8195_v40 = vpack.c.bf16 %v2809_v1, %v2805_v34  ;;  %v14589_v34 = vld [vmem:[#allocation114_spill] sm:$0xff]  ;;  %v11461_v55 = vpop.eup %8472 }
 0x652   :  { %v2172_v1 = vsub.f32 %v14590_v43, %v14589_v34  ;;  %14591 = vst [vmem:[#allocation204_spill] sm:$0xff] %v11461_v55  ;;  %8484 = vpow2.f32 %v2365_v13  ;;  %v2371_v43 = vmul.f32 1.442695, %v2173_v12 }
 0x653   :  { %7775 = vmatmul.mubr.f32.gmra.mrb[30].mxu1 %v11451_v61  ;;  %8196 = vmatprep.subr.bf16.mxu0 %v8195_v40  ;;  %v11465_v61 = vpop.eup %8474  ;;  %8486 = vpow2.f32 %v2367_v8 }
 0x654   :  { %v2821_v17 = vpop.permute.xlu0 %2820  ;;  %v2817_v37 = vpop.permute.xlu1 %2816  ;;  %7777 = vmatprep.mubr.f32.mxu1 %v11455_v28  ;;  %8198 = vmatpush3.bf16.msra.mxu0 %v8195_v40  ;;  %v14594_v28 = vld [vmem:[#allocation171_spill] sm:$0xff]  ;;  %v14596_v40 = vld [vmem:[#allocation61_spill] sm:$0xff] }
 0x655   :  { %v8199_v32 = vpack.c.bf16 %v2817_v37, %v2813_v51  ;;  %v2369_v37 = vmul.f32 1.442695, %v2172_v1  ;;  %v14595_v51 = vld [vmem:[#allocation116_spill] sm:$0xff]  ;;  %v11472_v34 = vpop.eup %8476 }
 0x656   :  { %v2174_v53 = vsub.f32 %v14596_v40, %v14595_v51  ;;  %14597 = vst [vmem:[#allocation205_spill] sm:$0xff] %v11472_v34  ;;  %v14603_v40 = vld [vmem:[#allocation117_spill] sm:$0xff] }
 0x657   :  { %7778 = vmatmul.mubr.f32.gmra.mrb[32].mxu1 %v11461_v55  ;;  %8200 = vmatprep.subr.bf16.mxu0 %v8199_v32  ;;  %v2175_v55 = vsub.f32 %v14599_v19, %v14598_v18  ;;  %8488 = vpow2.f32 %v2369_v37  ;;  %v14604_v18 = vld [vmem:[#allocation66_spill] sm:$0xff] }
 0x658   :  { %4187 = vadd.xlane.f32.xlu0 %v14594_v28  ;;  %v2832_v42 = vpop.permute.xlu0 %2831  ;;  %v2825_v5 = vpop.permute.xlu1 %2824  ;;  %7780 = vmatprep.mubr.f32.mxu1 %v11465_v61  ;;  %8490 = vpow2.f32 %v2371_v43  ;;  %v2177_v19 = vsub.f32 %v14604_v18, %v14603_v40 }
 0x659   :  { %v8203_v20 = vpack.c.bf16 %v2825_v5, %v2821_v17  ;;  %8202 = vmatpush3.bf16.msra.mxu0 %v8199_v32  ;;  %v11477_v28 = vpop.eup %8478  ;;  %v2373_v17 = vmul.f32 1.442695, %v2174_v53  ;;  %v14601_v32 = vld [vmem:[#allocation118_spill] sm:$0xff]  ;;  %v14602_v5 = vld [vmem:[#allocation164_spill] sm:$0xff]  ;;  %v2375_v51 = vmul.f32 1.442695, %v2175_v55 }
 0x65a   :  { %14600 = vst [vmem:[#allocation206_spill] sm:$0xff] %v11477_v28  ;;  %v2176_v8 = vsub.f32 %v14602_v5, %v14601_v32  ;;  %v14605_v53 = vld [vmem:[#allocation120_spill] sm:$0xff]  ;;  %v14607_v32 = vld [vmem:[#allocation119_spill] sm:$0xff]  ;;  %v14608_v5 = vld [vmem:[#allocation65_spill] sm:$0xff] }
 0x65b   :  { %7781 = vmatmul.mubr.f32.gmra.mrb[34].mxu1 %v11472_v34  ;;  %8204 = vmatprep.subr.bf16.mxu0 %v8203_v20  ;;  %v11486_v34 = vpop.eup %8480  ;;  %8492 = vpow2.f32 %v2373_v17  ;;  %v2179_v40 = vsub.f32 %v14608_v5, %v14607_v32 }
 0x65c   :  { %4191 = vadd.xlane.f32.xlu0 %v11119_v54  ;;  %v2840_v13 = vpop.permute.xlu0 %2839  ;;  %4189 = vadd.xlane.f32.xlu1 %v11117_v49  ;;  %v2836_v1 = vpop.permute.xlu1 %2835  ;;  %8494 = vpow2.f32 %v2375_v51  ;;  %v14610_v51 = vld [vmem:[#allocation68_spill] sm:$0xff] }
 0x65d   :  { %v8207_v12 = vpack.c.bf16 %v2836_v1, %v2832_v42  ;;  %8206 = vmatpush3.bf16.msra.mxu0 %v8203_v20  ;;  %7871 = vmatprep.mubr.f32.mxu1 %v11477_v28  ;;  %v11488_v54 = vpop.eup %8482  ;;  %v2377_v42 = vmul.f32 1.442695, %v2176_v8  ;;  %v14606_v20 = vld [vmem:[#allocation169_spill] sm:$0xff]  ;;  %v2379_v1 = vmul.f32 1.442695, %v2177_v19  ;;  %v14609_v8 = vld [vmem:[#allocation122_spill] sm:$0xff] }
 0x65e   :  { %v2178_v43 = vsub.f32 %v14606_v20, %v14605_v53  ;;  %v2180_v19 = vsub.f32 %v14610_v51, %v14609_v8  ;;  %v14611_v53 = vld [vmem:[#allocation121_spill] sm:$0xff]  ;;  %v14612_v20 = vld [vmem:[#allocation168_spill] sm:$0xff]  ;;  %v14615_v8 = vld [vmem:[#allocation135_spill] sm:$0xff] }
 0x65f   :  { %8208 = vmatprep.subr.bf16.mxu1 %v8207_v12  ;;  %8496 = vpow2.f32 %v2377_v42  ;;  %v2181_v32 = vsub.f32 %v14612_v20, %v14611_v53  ;;  %v14616_v51 = vld [vmem:[#allocation78_spill] sm:$0xff] }
 0x660   :  { %4193 = vadd.xlane.f32.xlu0 %v11129_v38  ;;  %7816 = vmatmul.mubr.f32.vlgmr.msra.gmra.mrb[36].mxu0 %v11486_v34  ;;  %v2848_v49 = vpop.permute.xlu0 %2847  ;;  %v2844_v37 = vpop.permute.xlu1 %2843  ;;  %8498 = vpow2.f32 %v2379_v1  ;;  %v14614_v1 = vld [vmem:[#allocation67_spill] sm:$0xff]  ;;  %v2199_v53 = vsub.f32 %v14616_v51, %v14615_v8 }
 0x661   :  { %4195 = vadd.xlane.f32.xlu1 %v11131_v23  ;;  %v8211_v55 = vpack.c.bf16 %v2844_v37, %v2840_v13  ;;  %7818 = vmatprep.mubr.f32.mxu0 %v11488_v54  ;;  %v11498_v38 = vpop.eup %8484  ;;  %v2381_v13 = vmul.f32 1.442695, %v2178_v43  ;;  %v14613_v43 = vld [vmem:[#allocation124_spill] sm:$0xff] }
 0x662   :  { %8210 = vmatpush3.bf16.msra.mxu1 %v8207_v12  ;;  %v11500_v18 = vpop.eup %8486  ;;  %v2383_v12 = vmul.f32 1.442695, %v2179_v40  ;;  %v2182_v40 = vsub.f32 %v14614_v1, %v14613_v43  ;;  %v14620_v1 = vld [vmem:[#allocation173_spill] sm:$0xff] }
 0x663   :  { %8212 = vmatprep.subr.bf16.mxu1 %v8211_v55  ;;  %8500 = vpow2.f32 %v2381_v13 }
 0x664   :  { %4197 = vadd.xlane.f32.xlu0 %v11141_v50  ;;  %7819 = vmatmul.mubr.f32.gmra.mrb[38].mxu0 %v11498_v38  ;;  %v2856_v17 = vpop.permute.xlu0 %2855  ;;  %v2852_v23 = vpop.permute.xlu1 %2851  ;;  %8502 = vpow2.f32 %v2383_v12  ;;  %v14618_v12 = vld [vmem:[#allocation170_spill] sm:$0xff] }
 0x665   :  { %4199 = vadd.xlane.f32.xlu1 %v11143_v3  ;;  %v8215_v37 = vpack.c.bf16 %v2852_v23, %v2848_v49  ;;  %7821 = vmatprep.mubr.f32.mxu0 %v11500_v18  ;;  %v11510_v50 = vpop.eup %8488  ;;  %v2385_v49 = vmul.f32 1.442695, %v2180_v19 }
 0x666   :  { %8214 = vmatpush3.bf16.msra.mxu1 %v8211_v55  ;;  %v11512_v5 = vpop.eup %8490  ;;  %v2387_v55 = vmul.f32 1.442695, %v2181_v32 }
 0x667   :  { %8216 = vmatprep.subr.bf16.mxu1 %v8215_v37  ;;  %8504 = vpow2.f32 %v2385_v49 }
 0x668   :  { %4201 = vadd.xlane.f32.xlu0 %v11153_v56  ;;  %7822 = vmatmul.mubr.f32.gmra.mrb[40].mxu0 %v11510_v50  ;;  %v2864_v42 = vpop.permute.xlu0 %2863  ;;  %v2860_v3 = vpop.permute.xlu1 %2859  ;;  %8506 = vpow2.f32 %v2387_v55  ;;  %v14622_v55 = vld [vmem:[#allocation69_spill] sm:$0xff] }
 0x669   :  { %4203 = vadd.xlane.f32.xlu1 %v11155_v57  ;;  %v8219_v23 = vpack.c.bf16 %v2860_v3, %v2856_v17  ;;  %7824 = vmatprep.mubr.f32.mxu0 %v11512_v5  ;;  %v11522_v56 = vpop.eup %8492  ;;  %v2389_v17 = vmul.f32 1.442695, %v2182_v40  ;;  %v2423_v3 = vmul.f32 1.442695, %v2199_v53 }
 0x66a   :  { %8218 = vmatpush3.bf16.msra.mxu1 %v8215_v37  ;;  %v11524_v20 = vpop.eup %8494  ;;  %v14617_v37 = vld [vmem:[#allocation123_spill] sm:$0xff] }
 0x66b   :  { %8220 = vmatprep.subr.bf16.mxu1 %v8219_v23  ;;  %v2184_v32 = vsub.f32 %v14618_v12, %v14617_v37  ;;  %v11532_v43 = vpop.eup %8496  ;;  %8508 = vpow2.f32 %v2389_v17  ;;  %v14624_v12 = vld [vmem:[#allocation72_spill] sm:$0xff] }
 0x66c   :  { %4205 = vadd.xlane.f32.xlu0 %v11163_v41  ;;  %7825 = vmatmul.mubr.f32.gmra.mrb[42].mxu0 %v11522_v56  ;;  %v2872_v13 = vpop.permute.xlu0 %2871  ;;  %v2868_v57 = vpop.permute.xlu1 %2867  ;;  %v14619_v41 = vld [vmem:[#allocation126_spill] sm:$0xff]  ;;  %8510 = vpow2.f32 %v2423_v3  ;;  %v14626_v3 = vld [vmem:[#allocation172_spill] sm:$0xff] }
 0x66d   :  { %4207 = vadd.xlane.f32.xlu1 %v11167_v9  ;;  %v8223_v19 = vpack.c.bf16 %v2868_v57, %v2864_v42  ;;  %7827 = vmatprep.mubr.f32.mxu0 %v11524_v20  ;;  %v2185_v8 = vsub.f32 %v14620_v1, %v14619_v41  ;;  %v11536_v51 = vpop.eup %8498  ;;  %v2393_v40 = vmul.f32 1.442695, %v2184_v32  ;;  %v14625_v32 = vld [vmem:[#allocation127_spill] sm:$0xff] }
 0x66e   :  { %8222 = vmatpush3.bf16.msra.mxu1 %v8219_v23  ;;  %v14621_v23 = vld [vmem:[#allocation125_spill] sm:$0xff]  ;;  %v11544_v57 = vpop.eup %8500 }
 0x66f   :  { %8224 = vmatprep.subr.bf16.mxu1 %v8223_v19  ;;  %v2186_v53 = vsub.f32 %v14622_v55, %v14621_v23  ;;  %v2395_v37 = vmul.f32 1.442695, %v2185_v8  ;;  %v11548_v1 = vpop.eup %8502  ;;  %8512 = vpow2.f32 %v2393_v40  ;;  %v2188_v8 = vsub.f32 %v14626_v3, %v14625_v32  ;;  %v14628_v55 = vld [vmem:[#allocation175_spill] sm:$0xff] }
 0x670   :  { %4209 = vadd.xlane.f32.xlu0 %v11175_v6  ;;  %7828 = vmatmul.mubr.f32.gmra.mrb[44].mxu0 %v11532_v43  ;;  %v2880_v9 = vpop.permute.xlu0 %2879  ;;  %v2876_v42 = vpop.permute.xlu1 %2875  ;;  %v14623_v6 = vld [vmem:[#allocation128_spill] sm:$0xff]  ;;  %v14629_v40 = vld [vmem:[#allocation179_spill] sm:$0xff] }
 0x671   :  { %4211 = vadd.xlane.f32.xlu1 %v11179_v39  ;;  %v8227_v49 = vpack.c.bf16 %v2876_v42, %v2872_v13  ;;  %7830 = vmatprep.mubr.f32.mxu0 %v11536_v51  ;;  %v2187_v41 = vsub.f32 %v14624_v12, %v14623_v6  ;;  %v11556_v42 = vpop.eup %8504  ;;  %8514 = vpow2.f32 %v2395_v37  ;;  %v14630_v37 = vld [vmem:[#allocation129_spill] sm:$0xff] }
 0x672   :  { %8226 = vmatpush3.bf16.msra.mxu1 %v8223_v19  ;;  %v2397_v19 = vmul.f32 1.442695, %v2186_v53  ;;  %v11560_v12 = vpop.eup %8506 }
 0x673   :  { %8228 = vmatprep.subr.bf16.mxu1 %v8227_v49  ;;  %v2399_v23 = vmul.f32 1.442695, %v2187_v41  ;;  %v14631_v41 = vld [vmem:[#allocation71_spill] sm:$0xff] }
 0x674   :  { %4213 = vadd.xlane.f32.xlu0 %v11187_v26  ;;  %7831 = vmatmul.mubr.f32.gmra.mrb[46].mxu0 %v11544_v57  ;;  %v2888_v39 = vpop.permute.xlu0 %2887  ;;  %v2884_v13 = vpop.permute.xlu1 %2883  ;;  %v14627_v26 = vld [vmem:[#allocation130_spill] sm:$0xff]  ;;  %8516 = vpow2.f32 %v2397_v19 }
 0x675   :  { %4215 = vadd.xlane.f32.xlu1 %v11191_v22  ;;  %v8231_v17 = vpack.c.bf16 %v2884_v13, %v2880_v9  ;;  %7833 = vmatprep.mubr.f32.mxu0 %v11548_v1  ;;  %v2189_v6 = vsub.f32 %v14628_v55, %v14627_v26  ;;  %v2190_v13 = vsub.f32 %v14631_v41, %v14630_v37  ;;  %v11568_v32 = vpop.eup %8508  ;;  %8518 = vpow2.f32 %v2399_v23  ;;  %v14633_v26 = vld [vmem:[#allocation74_spill] sm:$0xff]  ;;  %v14635_v23 = vld [vmem:[#allocation131_spill] sm:$0xff]  ;;  %v14638_v41 = vld [vmem:[#allocation177_spill] sm:$0xff] }
 0x676   :  { %8230 = vmatpush3.bf16.msra.mxu1 %v8227_v49  ;;  %v2401_v49 = vmul.f32 1.442695, %v2188_v8  ;;  %v11572_v28 = vpop.eup %8510  ;;  %v14637_v37 = vld [vmem:[#allocation134_spill] sm:$0xff] }
 0x677   :  { %8232 = vmatprep.subr.bf16.mxu1 %v8231_v17  ;;  %v2403_v3 = vmul.f32 1.442695, %v2189_v6  ;;  %14634 = vst [vmem:[#allocation207_spill] sm:$0xff] %v11572_v28  ;;  %v14636_v6 = vld [vmem:[#allocation174_spill] sm:$0xff] }
 0x678   :  { %4217 = vadd.xlane.f32.xlu0 %v11199_v24  ;;  %7834 = vmatmul.mubr.f32.gmra.mrb[48].mxu0 %v11556_v42  ;;  %v2899_v22 = vpop.permute.xlu0 %2898  ;;  %v2892_v9 = vpop.permute.xlu1 %2891  ;;  %v14632_v24 = vld [vmem:[#allocation132_spill] sm:$0xff]  ;;  %8520 = vpow2.f32 %v2401_v49 }
 0x679   :  { %4219 = vadd.xlane.f32.xlu1 %v14629_v40  ;;  %v8235_v53 = vpack.c.bf16 %v2892_v9, %v2888_v39  ;;  %7836 = vmatprep.mubr.f32.mxu0 %v11560_v12  ;;  %v2191_v55 = vsub.f32 %v14633_v26, %v14632_v24  ;;  %v2192_v9 = vsub.f32 %v14636_v6, %v14635_v23  ;;  %8522 = vpow2.f32 %v2403_v3  ;;  %v11582_v24 = vpop.eup %8512  ;;  %v14640_v3 = vld [vmem:[#allocation73_spill] sm:$0xff]  ;;  %v14642_v23 = vld [vmem:[#allocation76_spill] sm:$0xff] }
 0x67a   :  { %8234 = vmatpush3.bf16.msra.mxu1 %v8231_v17  ;;  %v2405_v17 = vmul.f32 1.442695, %v2190_v13  ;;  %v14639_v13 = vld [vmem:[#allocation55_spill] sm:$0xff] }
 0x67b   :  { %8236 = vmatprep.subr.bf16.mxu1 %v8235_v53  ;;  %v2407_v40 = vmul.f32 1.442695, %v2191_v55  ;;  %v11585_v26 = vpop.eup %8514  ;;  %v2409_v49 = vmul.f32 1.442695, %v2192_v9  ;;  %v2194_v55 = vsub.f32 %v14640_v3, %v14639_v13  ;;  %v14646_v13 = vld [vmem:[#allocation176_spill] sm:$0xff] }
 0x67c   :  { %4221 = vadd.xlane.f32.xlu0 %v11213_v58  ;;  %7837 = vmatmul.mubr.f32.gmra.mrb[50].mxu0 %v11568_v32  ;;  %v2907_v39 = vpop.permute.xlu0 %2906  ;;  %v2903_v19 = vpop.permute.xlu1 %2902  ;;  %v2193_v58 = vsub.f32 %v14638_v41, %v14637_v37  ;;  %8524 = vpow2.f32 %v2405_v17  ;;  %v14644_v41 = vld [vmem:[#allocation24_spill] sm:$0xff] }
 0x67d   :  { %4223 = vadd.xlane.f32.xlu1 %v11215_v29  ;;  %v8239_v8 = vpack.c.bf16 %v2903_v19, %v2899_v22  ;;  %7927 = vmatprep.mubr.f32.mxu0 %v11572_v28  ;;  %8526 = vpow2.f32 %v2407_v40  ;;  %v2413_v9 = vmul.f32 1.442695, %v2194_v55  ;;  %v14643_v40 = vld [vmem:[#allocation136_spill] sm:$0xff] }
 0x67e   :  { %8238 = vmatpush3.bf16.msra.mxu1 %v8235_v53  ;;  %v2411_v19 = vmul.f32 1.442695, %v2193_v58  ;;  %8528 = vpow2.f32 %v2409_v49  ;;  %v2196_v58 = vsub.f32 %v14644_v41, %v14643_v40  ;;  %v14650_v40 = vld [vmem:[#allocation186_spill] sm:$0xff] }
 0x67f   :  { %8240 = vmatprep.subr.bf16.mxu0 %v8239_v8 }
 0x680   :  { %4225 = vadd.xlane.f32.xlu0 %v11225_v46  ;;  %v2915_v29 = vpop.permute.xlu0 %2914  ;;  %v2911_v22 = vpop.permute.xlu1 %2910  ;;  %8242 = vmatpush3.bf16.msra.mxu0 %v8239_v8  ;;  %v14641_v46 = vld [vmem:[#allocation133_spill] sm:$0xff]  ;;  %8530 = vpow2.f32 %v2411_v19  ;;  %v2417_v55 = vmul.f32 1.442695, %v2196_v58  ;;  %v14647_v19 = vld [vmem:[#allocation27_spill] sm:$0xff] }
 0x681   :  { %7872 = vmatmul.mubr.f32.vlgmr.msra.gmra.mrb[36].mxu1 %v11582_v24  ;;  %4227 = vadd.xlane.f32.xlu1 %v11227_v30  ;;  %v8243_v53 = vpack.c.bf16 %v2911_v22, %v2907_v39  ;;  %v2195_v6 = vsub.f32 %v14642_v23, %v14641_v46  ;;  %v11594_v8 = vpop.eup %8516  ;;  %8532 = vpow2.f32 %v2413_v9  ;;  %v14648_v23 = vld [vmem:[#allocation75_spill] sm:$0xff] }
 0x682   :  { %7874 = vmatprep.mubr.f32.mxu1 %v11585_v26  ;;  %v11597_v39 = vpop.eup %8518  ;;  %v14653_v58 = vld [vmem:[#allocation59_spill] sm:$0xff] }
 0x683   :  { %8244 = vmatprep.subr.bf16.mxu0 %v8243_v53  ;;  %v2415_v22 = vmul.f32 1.442695, %v2195_v6  ;;  %v2198_v6 = vsub.f32 %v14648_v23, %v14647_v19 }
 0x684   :  { %4229 = vadd.xlane.f32.xlu0 %v11237_v48  ;;  %v2923_v37 = vpop.permute.xlu0 %2922  ;;  %v2919_v30 = vpop.permute.xlu1 %2918  ;;  %8246 = vmatpush3.bf16.msra.mxu0 %v8243_v53  ;;  %v14645_v48 = vld [vmem:[#allocation161_spill] sm:$0xff] }
 0x685   :  { %7875 = vmatmul.mubr.f32.gmra.mrb[38].mxu1 %v11594_v8  ;;  %4231 = vadd.xlane.f32.xlu1 %v11239_v44  ;;  %v8247_v17 = vpack.c.bf16 %v2919_v30, %v2915_v29  ;;  %v2197_v3 = vsub.f32 %v14646_v13, %v14645_v48  ;;  %v11606_v53 = vpop.eup %8520  ;;  %8534 = vpow2.f32 %v2415_v22  ;;  %v14651_v48 = vld [vmem:[#allocation138_spill] sm:$0xff]  ;;  %v2421_v19 = vmul.f32 1.442695, %v2198_v6  ;;  %v14658_v6 = vld [vmem:[#allocation80_spill] sm:$0xff] }
 0x686   :  { %7877 = vmatprep.mubr.f32.mxu1 %v11597_v39  ;;  %v11609_v29 = vpop.eup %8522  ;;  %v14652_v13 = vld [vmem:[#allocation178_spill] sm:$0xff]  ;;  %8536 = vpow2.f32 %v2417_v55  ;;  %v14657_v55 = vld [vmem:[#allocation137_spill] sm:$0xff] }
 0x687   :  { %8248 = vmatprep.subr.bf16.mxu0 %v8247_v17  ;;  %v2419_v30 = vmul.f32 1.442695, %v2197_v3  ;;  %v2200_v28 = vsub.f32 %v14652_v13, %v14651_v48 }
 0x688   :  { %4233 = vadd.xlane.f32.xlu0 %v11249_v2  ;;  %v2931_v46 = vpop.permute.xlu0 %2930  ;;  %v2927_v44 = vpop.permute.xlu1 %2926  ;;  %8250 = vmatpush3.bf16.msra.mxu0 %v8247_v17  ;;  %v14649_v2 = vld [vmem:[#allocation222_spill] sm:$0xff] }
 0x689   :  { %7878 = vmatmul.mubr.f32.gmra.mrb[40].mxu1 %v11606_v53  ;;  %4235 = vadd.xlane.f32.xlu1 %v11251_v59  ;;  %v8251_v49 = vpack.c.bf16 %v2927_v44, %v2923_v37  ;;  %v2215_v41 = vsub.f32 %v14650_v40, %v14649_v2  ;;  %v11618_v17 = vpop.eup %8524  ;;  %v14654_v44 = vld [vmem:[#allocation181_spill] sm:$0xff]  ;;  %8538 = vpow2.f32 %v2419_v30  ;;  %v14655_v2 = vld [vmem:[#allocation62_spill] sm:$0xff] }
 0x68a   :  { %7880 = vmatprep.mubr.f32.mxu1 %v11609_v29  ;;  %v11623_v9 = vpop.eup %8526  ;;  %v2201_v22 = vsub.f32 %v14654_v44, %v14653_v58  ;;  %v14656_v40 = vld [vmem:[#allocation77_spill] sm:$0xff]  ;;  %8540 = vpow2.f32 %v2421_v19  ;;  %v14660_v44 = vld [vmem:[#allocation180_spill] sm:$0xff]  ;;  %v14662_v19 = vld [vmem:[#allocation183_spill] sm:$0xff] }
 0x68b   :  { %8252 = vmatprep.subr.bf16.mxu0 %v8251_v49  ;;  %v2455_v23 = vmul.f32 1.442695, %v2215_v41  ;;  %v2202_v48 = vsub.f32 %v14656_v40, %v14655_v2  ;;  %v14659_v41 = vld [vmem:[#allocation20_spill] sm:$0xff] }
 0x68c   :  { %4237 = vadd.xlane.f32.xlu0 %v11259_v63  ;;  %v2939_v59 = vpop.permute.xlu0 %2938  ;;  %v2935_v37 = vpop.permute.xlu1 %2934  ;;  %8254 = vmatpush3.bf16.msra.mxu0 %v8251_v49  ;;  %v2425_v49 = vmul.f32 1.442695, %v2200_v28 }
 0x68d   :  { %7881 = vmatmul.mubr.f32.gmra.mrb[42].mxu1 %v11618_v17  ;;  %4239 = vadd.xlane.f32.xlu1 %v11263_v25  ;;  %v8255_v3 = vpack.c.bf16 %v2935_v37, %v2931_v46  ;;  %v11630_v63 = vpop.eup %8528  ;;  %v2427_v46 = vmul.f32 1.442695, %v2201_v22  ;;  %v2203_v37 = vsub.f32 %v14658_v6, %v14657_v55  ;;  %8542 = vpow2.f32 %v2455_v23  ;;  %v14664_v55 = vld [vmem:[#allocation79_spill] sm:$0xff] }
 0x68e   :  { %7883 = vmatprep.mubr.f32.mxu1 %v11623_v9  ;;  %v11635_v25 = vpop.eup %8530  ;;  %8544 = vpow2.f32 %v2425_v49  ;;  %v2429_v28 = vmul.f32 1.442695, %v2202_v48  ;;  %v2204_v22 = vsub.f32 %v14660_v44, %v14659_v41  ;;  %v14666_v41 = vld [vmem:[#allocation82_spill] sm:$0xff] }
 0x68f   :  { %8256 = vmatprep.subr.bf16.mxu0 %v8255_v3  ;;  %8546 = vpow2.f32 %v2427_v46 }
 0x690   :  { %4241 = vadd.xlane.f32.xlu0 %v11271_v15  ;;  %v2947_v13 = vpop.permute.xlu0 %2946  ;;  %v2943_v58 = vpop.permute.xlu1 %2942  ;;  %8258 = vmatpush3.bf16.msra.mxu0 %v8255_v3  ;;  %8548 = vpow2.f32 %v2429_v28 }
 0x691   :  { %7884 = vmatmul.mubr.f32.gmra.mrb[44].mxu1 %v11630_v63  ;;  %4243 = vadd.xlane.f32.xlu1 %v11275_v60  ;;  %v8259_v30 = vpack.c.bf16 %v2943_v58, %v2939_v59  ;;  %v11642_v15 = vpop.eup %8532  ;;  %v2431_v60 = vmul.f32 1.442695, %v2203_v37  ;;  %v14661_v59 = vld [vmem:[#allocation21_spill] sm:$0xff]  ;;  %v14663_v58 = vld [vmem:[#allocation22_spill] sm:$0xff] }
 0x692   :  { %7886 = vmatprep.mubr.f32.mxu1 %v11635_v25  ;;  %v11647_v40 = vpop.eup %8534  ;;  %v2205_v23 = vsub.f32 %v14662_v19, %v14661_v59  ;;  %v2206_v6 = vsub.f32 %v14664_v55, %v14663_v58  ;;  %v14668_v59 = vld [vmem:[#allocation182_spill] sm:$0xff]  ;;  %v14671_v58 = vld [vmem:[#allocation81_spill] sm:$0xff] }
 0x693   :  { %8260 = vmatprep.subr.bf16.mxu0 %v8259_v30  ;;  %v11654_v48 = vpop.eup %8536  ;;  %8550 = vpow2.f32 %v2431_v60 }
 0x694   :  { %4245 = vadd.xlane.f32.xlu0 %v11283_v35  ;;  %v2955_v3 = vpop.permute.xlu0 %2954  ;;  %v2951_v2 = vpop.permute.xlu1 %2950  ;;  %8262 = vmatpush3.bf16.msra.mxu0 %v8259_v30  ;;  %v2433_v35 = vmul.f32 1.442695, %v2204_v22 }
 0x695   :  { %7887 = vmatmul.mubr.f32.gmra.mrb[46].mxu1 %v11642_v15  ;;  %4247 = vadd.xlane.f32.xlu1 %v11287_v4  ;;  %v8263_v49 = vpack.c.bf16 %v2951_v2, %v2947_v13  ;;  %v11659_v30 = vpop.eup %8538  ;;  %v2435_v4 = vmul.f32 1.442695, %v2205_v23  ;;  %v14665_v13 = vld [vmem:[#allocation214_spill] sm:$0xff]  ;;  %v14667_v2 = vld [vmem:[#allocation215_spill] sm:$0xff] }
 0x696   :  { %7889 = vmatprep.mubr.f32.mxu1 %v11647_v40  ;;  %v2207_v44 = vsub.f32 %v14666_v41, %v14665_v13  ;;  %v11666_v22 = vpop.eup %8540  ;;  %8552 = vpow2.f32 %v2433_v35  ;;  %v2208_v19 = vsub.f32 %v14668_v59, %v14667_v2  ;;  %v14673_v13 = vld [vmem:[#allocation217_spill] sm:$0xff]  ;;  %v14674_v41 = vld [vmem:[#allocation84_spill] sm:$0xff]  ;;  %v14675_v2 = vld [vmem:[#allocation218_spill] sm:$0xff] }
 0x697   :  { %8264 = vmatprep.subr.bf16.mxu0 %v8263_v49  ;;  %8554 = vpow2.f32 %v2435_v4  ;;  %v14676_v59 = vld [vmem:[#allocation184_spill] sm:$0xff] }
 0x698   :  { %4249 = vadd.xlane.f32.xlu0 %v11295_v7  ;;  %v2966_v46 = vpop.permute.xlu0 %2965  ;;  %v2959_v37 = vpop.permute.xlu1 %2958  ;;  %8266 = vmatpush3.bf16.msra.mxu0 %v8263_v49  ;;  %v2437_v7 = vmul.f32 1.442695, %v2206_v6  ;;  %v2441_v4 = vmul.f32 1.442695, %v2208_v19 }
 0x699   :  { %7890 = vmatmul.mubr.f32.gmra.mrb[48].mxu1 %v11654_v48  ;;  %4251 = vadd.xlane.f32.xlu1 %v11203_v62  ;;  %v8267_v28 = vpack.c.bf16 %v2959_v37, %v2955_v3  ;;  %v11671_v49 = vpop.eup %8542  ;;  %v2439_v62 = vmul.f32 1.442695, %v2207_v44  ;;  %v14670_v3 = vld [vmem:[#allocation216_spill] sm:$0xff]  ;;  %v2210_v44 = vsub.f32 %v14674_v41, %v14673_v13  ;;  %v14678_v13 = vld [vmem:[#allocation185_spill] sm:$0xff] }
 0x69a   :  { %7892 = vmatprep.mubr.f32.mxu1 %v11659_v30  ;;  %14669 = vst [vmem:[#allocation142_spill] sm:$0xff] %v11671_v49  ;;  %v2209_v55 = vsub.f32 %v14671_v58, %v14670_v3  ;;  %v11677_v6 = vpop.eup %8544  ;;  %8556 = vpow2.f32 %v2437_v7  ;;  %v14677_v58 = vld [vmem:[#allocation219_spill] sm:$0xff] }
 0x69b   :  { %8268 = vmatprep.subr.bf16.mxu0 %v8267_v28  ;;  %v11681_v37 = vpop.eup %8546  ;;  %8558 = vpow2.f32 %v2439_v62  ;;  %v2212_v62 = vsub.f32 %v14678_v13, %v14677_v58  ;;  %v14684_v58 = vld [vmem:[#allocation86_spill] sm:$0xff] }
 0x69c   :  { %4253 = vadd.xlane.f32.xlu0 %v11309_v11  ;;  %v2974_v60 = vpop.permute.xlu0 %2973  ;;  %v2970_v23 = vpop.permute.xlu1 %2969  ;;  %8270 = vmatpush3.bf16.msra.mxu0 %v8267_v28  ;;  %v14672_v11 = vmov 0.0   ;;  %v2443_v28 = vmul.f32 1.442695, %v2209_v55  ;;  %8560 = vpow2.f32 %v2441_v4 }
 0x69d   :  { %7893 = vmatmul.mubr.f32.gmra.mrb[50].mxu1 %v11666_v22  ;;  %4255 = vadd.xlane.f32.xlu1 %v11312_v21  ;;  %v8271_v35 = vpack.c.bf16 %v2970_v23, %v2966_v46  ;;  %v2211_v23 = vsub.f32 %v14676_v59, %v14675_v2  ;;  %v11691_v7 = vpop.eup %8548  ;;  %v14683_v59 = vld [vmem:[#allocation221_spill] sm:$0xff] }
 0x69e   :  { %7983 = vmatprep.mubr.f32.mxu1 %v11671_v49  ;;  %8007 = vmatprep.subr.bf16.mxu0 %v14672_v11  ;;  %v11693_v19 = vpop.eup %8550  ;;  %8562 = vpow2.f32 %v2443_v28  ;;  %v2214_v28 = vsub.f32 %v14684_v58, %v14683_v59  ;;  %v14704_v49 = vld [vmem:[#allocation87_spill] sm:$0xff] }
 0x69f   :  { %7928 = vmatmul.mubr.f32.vlgmr.msra.gmra.mrb[52].mxu0 %v11677_v6  ;;  %8272 = vmatprep.subr.bf16.mxu1 %v8271_v35 }
 0x6a0   :  { %4257 = vadd.xlane.f32.xlu0 %v11321_v27  ;;  %v2982_v21 = vpop.permute.xlu0 %2981  ;;  %v2978_v46 = vpop.permute.xlu1 %2977  ;;  %7930 = vmatprep.mubr.f32.mxu0 %v11681_v37  ;;  %v2445_v27 = vmul.f32 1.442695, %v2210_v44 }
 0x6a1   :  { %4259 = vadd.xlane.f32.xlu1 %v11324_v0  ;;  %v8275_v3 = vpack.c.bf16 %v2978_v46, %v2974_v60  ;;  %8274 = vmatpush3.bf16.msra.mxu1 %v8271_v35  ;;  %v2447_v0 = vmul.f32 1.442695, %v2211_v23  ;;  %v14679_v60 = vld [vmem:[#allocation220_spill] sm:$0xff]  ;;  %v14680_v35 = vld [vmem:[#allocation83_spill] sm:$0xff]  ;;  %v11703_v4 = vpop.eup %8552 }
 0x6a2   :  { %v2213_v46 = vsub.f32 %v14680_v35, %v14679_v60  ;;  %14681 = vst [vmem:[#allocation208_spill] sm:$0xff] %v11703_v4  ;;  %v11705_v44 = vpop.eup %8554  ;;  %8564 = vpow2.f32 %v2445_v27  ;;  %v2453_v27 = vmul.f32 1.442695, %v2214_v28  ;;  %v14694_v28 = vld [vmem:[#allocation88_spill] sm:$0xff] }
 0x6a3   :  { %7931 = vmatmul.mubr.f32.gmra.mrb[54].mxu0 %v11691_v7  ;;  %8276 = vmatprep.subr.bf16.mxu1 %v8275_v3  ;;  %14682 = vst [vmem:[#allocation209_spill] sm:$0xff] %v11705_v44  ;;  %8566 = vpow2.f32 %v2447_v0  ;;  %v14687_v0 = vld [vmem:[#allocation223_spill] sm:$0xff] }
 0x6a4   :  { %4261 = vadd.xlane.f32.xlu0 %v11333_v31  ;;  %v2990_v55 = vpop.permute.xlu0 %2989  ;;  %v2986_v41 = vpop.permute.xlu1 %2985  ;;  %7933 = vmatprep.mubr.f32.mxu0 %v11693_v19  ;;  %v2449_v31 = vmul.f32 1.442695, %v2212_v62 }
 0x6a5   :  { %4263 = vadd.xlane.f32.xlu1 %v11336_v45  ;;  %v8279_v2 = vpack.c.bf16 %v2986_v41, %v2982_v21  ;;  %8278 = vmatpush3.bf16.msra.mxu1 %v8275_v3  ;;  %v2451_v45 = vmul.f32 1.442695, %v2213_v46  ;;  %v11713_v3 = vpop.eup %8556  ;;  %v14690_v46 = vld [vmem:[#allocation224_spill] sm:$0xff] }
 0x6a6   :  { %14685 = vst [vmem:[#allocation210_spill] sm:$0xff] %v11713_v3  ;;  %v11715_v41 = vpop.eup %8558  ;;  %8568 = vpow2.f32 %v2449_v31 }
 0x6a7   :  { %7934 = vmatmul.mubr.f32.gmra.mrb[56].mxu0 %v11703_v4  ;;  %8280 = vmatprep.subr.bf16.mxu1 %v8279_v2  ;;  %14686 = vst [vmem:[#allocation211_spill] sm:$0xff] %v11715_v41  ;;  %8570 = vpow2.f32 %v2451_v45  ;;  %v11723_v35 = vpop.eup %8560 }
 0x6a8   :  { %4265 = vadd.xlane.f32.xlu0 %v11345_v16  ;;  %v2998_v23 = vpop.permute.xlu0 %2997  ;;  %v2994_v13 = vpop.permute.xlu1 %2993  ;;  %7936 = vmatprep.mubr.f32.mxu0 %v11705_v44  ;;  %14689 = vst [vmem:[#allocation212_spill] sm:$0xff] %v11723_v35  ;;  %8572 = vpow2.f32 %v2453_v27 }
 0x6a9   :  { %4267 = vadd.xlane.f32.xlu1 %v11350_v52  ;;  %v8283_v21 = vpack.c.bf16 %v2994_v13, %v2990_v55  ;;  %8282 = vmatpush3.bf16.msra.mxu1 %v8279_v2  ;;  %v14688_v52 = vld [vmem:[#allocation187_spill] sm:$0xff]  ;;  %v14691_v2 = vld [vmem:[#allocation85_spill] sm:$0xff]  ;;  %v11727_v59 = vpop.eup %8562 }
 0x6aa   :  { %v2216_v55 = vsub.f32 %v14688_v52, %v14687_v0  ;;  %v2217_v31 = vsub.f32 %v14691_v2, %v14690_v46  ;;  %14692 = vst [vmem:[#allocation213_spill] sm:$0xff] %v11727_v59  ;;  %v14697_v0 = vld [vmem:[#allocation188_spill] sm:$0xff] }
 0x6ab   :  { %7937 = vmatmul.mubr.f32.gmra.mrb[58].mxu0 %v11713_v3  ;;  %8284 = vmatprep.subr.bf16.mxu1 %v8283_v21 }
 0x6ac   :  { %4269 = vadd.xlane.f32.xlu0 %v11357_v33  ;;  %v3006_v16 = vpop.permute.xlu0 %3005  ;;  %v3002_v62 = vpop.permute.xlu1 %3001  ;;  %7939 = vmatprep.mubr.f32.mxu0 %v11715_v41  ;;  %v2457_v58 = vmul.f32 1.442695, %v2216_v55  ;;  %v14699_v55 = vld [vmem:[#allocation226_spill] sm:$0xff] }
 0x6ad   :  { %4271 = vadd.xlane.f32.xlu1 %v11362_v10  ;;  %v8287_v60 = vpack.c.bf16 %v3002_v62, %v2998_v23  ;;  %8286 = vmatpush3.bf16.msra.mxu1 %v8283_v21  ;;  %v14693_v10 = vld [vmem:[#allocation25_spill] sm:$0xff]  ;;  %v11735_v45 = vpop.eup %8564  ;;  %v2459_v21 = vmul.f32 1.442695, %v2217_v31 }
 0x6ae   :  { %v2218_v23 = vsub.f32 %v14694_v28, %v14693_v10  ;;  %14695 = vst [vmem:[#allocation38_spill] sm:$0xff] %v11735_v45  ;;  %v14696_v62 = vld [vmem:[#allocation225_spill] sm:$0xff]  ;;  %8574 = vpow2.f32 %v2457_v58 }
 0x6af   :  { %7940 = vmatmul.mubr.f32.gmra.mrb[60].mxu0 %v11723_v35  ;;  %8288 = vmatprep.subr.bf16.mxu1 %v8287_v60  ;;  %v2219_v52 = vsub.f32 %v14697_v0, %v14696_v62  ;;  %8576 = vpow2.f32 %v2459_v21  ;;  %v14703_v0 = vld [vmem:[#allocation227_spill] sm:$0xff] }
 0x6b0   :  { %4273 = vadd.xlane.f32.xlu0 %v11369_v36  ;;  %v3010_v33 = vpop.permute.xlu1 %3009  ;;  %7942 = vmatprep.mubr.f32.mxu0 %v11727_v59  ;;  %v3014_v27 = vpop.permute.xlu0 %3013 }
 0x6b1   :  { %4275 = vadd.xlane.f32.xlu1 %v11374_v47  ;;  %v8291_v13 = vpack.c.bf16 %v3010_v33, %v3006_v16  ;;  %8290 = vmatpush3.bf16.msra.mxu1 %v8287_v60  ;;  %v11741_v36 = vpop.eup %8566  ;;  %v2461_v16 = vmul.f32 1.442695, %v2218_v23  ;;  %v14700_v60 = vld [vmem:[#allocation189_spill] sm:$0xff]  ;;  %v14701_v33 = vld [vmem:[#allocation63_spill] sm:$0xff]  ;;  %v2463_v62 = vmul.f32 1.442695, %v2219_v52 }
 0x6b2   :  { %v11739_v46 = vpop.f32.mrb[4].mxu0  ;;  %14698 = vst [vmem:[#allocation139_spill] sm:$0xff] %v11741_v36  ;;  %v2220_v31 = vsub.f32 %v14700_v60, %v14699_v55  ;;  %v11751_v28 = vpop.eup %8568  ;;  %v14706_v55 = vld [vmem:[#allocation193_spill] sm:$0xff]  ;;  %v14707_v52 = vld [vmem:[#allocation228_spill] sm:$0xff] }
 0x6b3   :  { %v11743_v2 = vpop.f32.mrb[5].mxu0  ;;  %7943 = vmatmul.mubr.f32.gmra.mrb[62].mxu0 %v11735_v45  ;;  %8292 = vmatprep.subr.bf16.mxu1 %v8291_v13  ;;  %14702 = vst [vmem:[#allocation31_spill] sm:$0xff] %v11751_v28  ;;  %v2221_v45 = vsub.f32 %v14704_v49, %v14703_v0  ;;  %v11757_v59 = vpop.eup %8570  ;;  %8578 = vpow2.f32 %v2461_v16  ;;  %v14713_v16 = vld [vmem:[#allocation194_spill] sm:$0xff] }
 0x6b4   :  { %4277 = vadd.xlane.f32.xlu0 %v11381_v14  ;;  %v3018_v47 = vpop.permute.xlu1 %3017  ;;  %7945 = vmatprep.mubr.f32.mxu0 %v11741_v36  ;;  %14705 = vst [vmem:[#allocation141_spill] sm:$0xff] %v11757_v59  ;;  %v3022_v23 = vpop.permute.xlu0 %3021  ;;  %v2465_v21 = vmul.f32 1.442695, %v2220_v31  ;;  %8580 = vpow2.f32 %v2463_v62  ;;  %v14712_v36 = vld [vmem:[#allocation191_spill] sm:$0xff]  ;;  %v14715_v62 = vld [vmem:[#allocation92_spill] sm:$0xff] }
 0x6b5   :  { %4279 = vadd.xlane.f32.xlu1 %v14701_v33  ;;  %v8295_v10 = vpack.c.bf16 %v3018_v47, %v3014_v27  ;;  %8294 = vmatpush3.bf16.msra.mxu1 %v8291_v13  ;;  %v14708_v27 = vld [vmem:[#allocation90_spill] sm:$0xff]  ;;  %v11767_v33 = vpop.eup %8572  ;;  %v2467_v0 = vmul.f32 1.442695, %v2221_v45 }
 0x6b6   :  { %v11755_v14 = vpop.f32.mrb[6].mxu0  ;;  %v2222_v49 = vsub.f32 %v14708_v27, %v14707_v52  ;;  %v14709_v47 = vld [vmem:[#allocation26_spill] sm:$0xff]  ;;  %14710 = vst [vmem:[#allocation37_spill] sm:$0xff] %v11767_v33  ;;  %8582 = vpow2.f32 %v2465_v21 }
 0x6b7   :  { %v11759_v58 = vpop.f32.mrb[7].mxu0  ;;  %7946 = vmatmul.mubr.f32.gmra.mrb[64].mxu0 %v11751_v28  ;;  %8296 = vmatprep.subr.bf16.mxu1 %v8295_v10  ;;  %v14711_v28 = vld [vmem:[#allocation229_spill] sm:$0xff]  ;;  %8584 = vpow2.f32 %v2467_v0 }
 0x6b8   :  { %4281 = vadd.xlane.f32.xlu0 %v14706_v55  ;;  %v3026_v13 = vpop.permute.xlu1 %3025  ;;  %7948 = vmatprep.mubr.f32.mxu0 %v11757_v59  ;;  %v2223_v35 = vsub.f32 %v14712_v36, %v14711_v28  ;;  %v2469_v31 = vmul.f32 1.442695, %v2222_v49  ;;  %v14717_v28 = vld [vmem:[#allocation231_spill] sm:$0xff]  ;;  %v14721_v49 = vld [vmem:[#allocation166_spill] sm:$0xff]  ;;  %v14723_v0 = vld [vmem:[#allocation93_spill] sm:$0xff] }
 0x6b9   :  { %4283 = vadd.xlane.f32.xlu1 %v14709_v47  ;;  %v8299_v60 = vpack.c.bf16 %v3026_v13, %v3022_v23  ;;  %8298 = vmatpush3.bf16.msra.mxu1 %v8295_v10  ;;  %v14714_v10 = vld [vmem:[#allocation230_spill] sm:$0xff]  ;;  %v14716_v23 = vld [vmem:[#allocation195_spill] sm:$0xff]  ;;  %v14718_v13 = vld [vmem:[#allocation28_spill] sm:$0xff]  ;;  %v11787_v47 = vpop.eup %8574 }
 0x6ba   :  { %v11771_v55 = vpop.f32.mrb[8].mxu0  ;;  %v2224_v45 = vsub.f32 %v14715_v62, %v14714_v10  ;;  %v2471_v36 = vmul.f32 1.442695, %v2223_v35  ;;  %v2225_v52 = vsub.f32 %v14718_v13, %v14717_v28  ;;  %14719 = vst [vmem:[#allocation40_spill] sm:$0xff] %v11787_v47  ;;  %v11791_v21 = vpop.eup %8576  ;;  %8586 = vpow2.f32 %v2469_v31  ;;  %v14722_v35 = vld [vmem:[#allocation232_spill] sm:$0xff]  ;;  %v14725_v28 = vld [vmem:[#allocation233_spill] sm:$0xff] }
 0x6bb   :  { %v11773_v41 = vpop.f32.mrb[9].mxu0  ;;  %7949 = vmatmul.mubr.f32.gmra.mrb[66].mxu0 %v11767_v33  ;;  %8300 = vmatprep.subr.bf16.mxu1 %v8299_v60  ;;  %14720 = vst [vmem:[#allocation140_spill] sm:$0xff] %v11791_v21  ;;  %v2226_v10 = vsub.f32 %v14723_v0, %v14722_v35  ;;  %v14724_v62 = vld [vmem:[#allocation196_spill] sm:$0xff]  ;;  %v14730_v0 = vld [vmem:[#allocation234_spill] sm:$0xff] }
 0x6bc   :  { %4285 = vadd.xlane.f32.xlu0 %v14713_v16  ;;  %8023 = vmatprep.mubr.msk.bf16.mxu0 %vm8956_vm0, %v14672_v11  ;;  %8588 = vpow2.f32 %v2471_v36  ;;  %v14726_v13 = vld [vmem:[#allocation96_spill] sm:$0xff]  ;;  %v14731_v36 = vld [vmem:[#allocation97_spill] sm:$0xff] }
 0x6bd   :  { %4287 = vadd.xlane.f32.xlu1 %v14716_v23  ;;  %8302 = vmatpush3.bf16.msra.mxu1 %v8299_v60  ;;  %v2473_v60 = vmul.f32 1.442695, %v2224_v45  ;;  %v2475_v23 = vmul.f32 1.442695, %v2225_v52  ;;  %v2227_v33 = vsub.f32 %v14726_v13, %v14725_v28  ;;  %v11803_v3 = vpop.eup %8578  ;;  %v14729_v45 = vld [vmem:[#allocation197_spill] sm:$0xff]  ;;  %v2228_v52 = vsub.f32 %v14731_v36, %v14730_v0  ;;  %v14733_v13 = vld [vmem:[#allocation235_spill] sm:$0xff] }
 0x6be   :  { %v11784_v27 = vpop.f32.mrb[10].mxu0  ;;  %8027 = vmatprep.subr.bf16.mxu1 %v14672_v11  ;;  %14727 = vst [vmem:[#allocation143_spill] sm:$0xff] %v11803_v3  ;;  %v11807_v31 = vpop.eup %8580  ;;  %v2477_v35 = vmul.f32 1.442695, %v2226_v10  ;;  %v14736_v10 = vld [vmem:[#allocation199_spill] sm:$0xff]  ;;  %v14737_v36 = vld [vmem:[#allocation236_spill] sm:$0xff] }
 0x6bf   :  { %v11789_v16 = vpop.f32.mrb[11].mxu0  ;;  %14728 = vst [vmem:[#allocation39_spill] sm:$0xff] %v11807_v31  ;;  %8590 = vpow2.f32 %v2473_v60  ;;  %v2479_v28 = vmul.f32 1.442695, %v2227_v33  ;;  %v2481_v0 = vmul.f32 1.442695, %v2228_v52 }
 0x6c0   :  { %4289 = vadd.xlane.f32.xlu0 %v14721_v49  ;;  %7984 = vmatmul.mubr.f32.vlgmr.msra.gmra.mrb[52].mxu1 %v11787_v47  ;;  %8592 = vpow2.f32 %v2475_v23  ;;  %v11819_v4 = vpop.eup %8582  ;;  %v14738_v23 = vld [vmem:[#allocation101_spill] sm:$0xff]  ;;  %v14743_v52 = vld [vmem:[#allocation30_spill] sm:$0xff] }
 0x6c1   :  { %4291 = vadd.xlane.f32.xlu1 %v14724_v62  ;;  %7986 = vmatprep.mubr.f32.mxu1 %v11791_v21  ;;  %v14732_v62 = vld [vmem:[#allocation198_spill] sm:$0xff]  ;;  %v14734_v21 = vld [vmem:[#allocation100_spill] sm:$0xff]  ;;  %14735 = vst [vmem:[#allocation42_spill] sm:$0xff] %v11819_v4  ;;  %v11823_v60 = vpop.eup %8584  ;;  %8594 = vpow2.f32 %v2477_v35  ;;  %v2230_v33 = vsub.f32 %v14738_v23, %v14737_v36 }
 0x6c2   :  { %v11801_v59 = vpop.f32.mrb[12].mxu0  ;;  %v2229_v47 = vsub.f32 %v14734_v21, %v14733_v13  ;;  %8596 = vpow2.f32 %v2479_v28 }
 0x6c3   :  { %v11805_v49 = vpop.f32.mrb[13].mxu0  ;;  %8598 = vpow2.f32 %v2481_v0  ;;  %v2485_v35 = vmul.f32 1.442695, %v2230_v33 }
 0x6c4   :  { %4293 = vadd.xlane.f32.xlu0 %v14729_v45  ;;  %7987 = vmatmul.mubr.f32.gmra.mrb[54].mxu1 %v11803_v3  ;;  %v2483_v21 = vmul.f32 1.442695, %v2229_v47 }
 0x6c5   :  { %4295 = vadd.xlane.f32.xlu1 %v14732_v62  ;;  %7989 = vmatprep.mubr.f32.mxu1 %v11807_v31  ;;  %v14739_v62 = vld [vmem:[#allocation200_spill] sm:$0xff]  ;;  %v11833_v31 = vpop.eup %8586 }
 0x6c6   :  { %v11817_v44 = vpop.f32.mrb[14].mxu0  ;;  %14740 = vst [vmem:[#allocation50_spill] sm:$0xff] %v11833_v31  ;;  %8600 = vpow2.f32 %v2483_v21 }
 0x6c7   :  { %v11821_v45 = vpop.f32.mrb[15].mxu0  ;;  %8602 = vpow2.f32 %v2485_v35 }
 0x6c8   :  { %4297 = vadd.xlane.f32.xlu0 %v14736_v10  ;;  %7990 = vmatmul.mubr.f32.gmra.mrb[56].mxu1 %v11819_v4  ;;  %v11837_v10 = vpop.eup %8588  ;;  %v14742_v4 = vld [vmem:[#allocation201_spill] sm:$0xff] }
 0x6c9   :  { %4299 = vadd.xlane.f32.xlu1 %v14739_v62  ;;  %7992 = vmatprep.mubr.f32.mxu1 %v11823_v60  ;;  %14741 = vst [vmem:[#allocation145_spill] sm:$0xff] %v11837_v10  ;;  %v11845_v28 = vpop.eup %8590  ;;  %v14746_v62 = vld [vmem:[#allocation202_spill] sm:$0xff] }
 0x6ca   :  { %v11831_v13 = vpop.f32.mrb[16].mxu0  ;;  %14744 = vst [vmem:[#allocation41_spill] sm:$0xff] %v11845_v28  ;;  %v11849_v23 = vpop.eup %8592 }
 0x6cb   :  { %v11835_v3 = vpop.f32.mrb[17].mxu0  ;;  %14745 = vst [vmem:[#allocation44_spill] sm:$0xff] %v11849_v23  ;;  %v11855_v0 = vpop.eup %8594 }
 0x6cc   :  { %4301 = vadd.xlane.f32.xlu0 %v14742_v4  ;;  %7993 = vmatmul.mubr.f32.gmra.mrb[58].mxu1 %v11833_v31  ;;  %v14747_v4 = vld [vmem:[#allocation203_spill] sm:$0xff]  ;;  %14748 = vst [vmem:[#allocation23_spill] sm:$0xff] %v11855_v0  ;;  %v11859_v21 = vpop.eup %8596 }
 0x6cd   :  { %4303 = vadd.xlane.f32.xlu1 %v14743_v52  ;;  %7995 = vmatprep.mubr.f32.mxu1 %v11837_v10  ;;  %14749 = vst [vmem:[#allocation144_spill] sm:$0xff] %v11859_v21  ;;  %v14750_v10 = vld [vmem:[#allocation204_spill] sm:$0xff]  ;;  %v11867_v35 = vpop.eup %8598  ;;  %v14754_v31 = vld [vmem:[#allocation167_spill] sm:$0xff] }
 0x6ce   :  { %v11843_v47 = vpop.f32.mrb[18].mxu0  ;;  %14751 = vst [vmem:[#allocation147_spill] sm:$0xff] %v11867_v35 }
 0x6cf   :  { %v11847_v36 = vpop.f32.mrb[19].mxu0 }
 0x6d0   :  { %4305 = vadd.xlane.f32.xlu0 %v14746_v62  ;;  %7996 = vmatmul.mubr.f32.gmra.mrb[60].mxu1 %v11845_v28  ;;  %v14753_v28 = vld [vmem:[#allocation205_spill] sm:$0xff] }
 0x6d1   :  { %4307 = vadd.xlane.f32.xlu1 %v14747_v4  ;;  %7998 = vmatprep.mubr.f32.mxu1 %v11849_v23  ;;  %v11871_v4 = vpop.eup %8600 }
 0x6d2   :  { %14752 = vst [vmem:[#allocation43_spill] sm:$0xff] %v11871_v4 }
 0x6d3   :  { %v11857_v33 = vpop.f32.mrb[4].mxu1 }
 0x6d4   :  { %v11861_v52 = vpop.f32.mrb[5].mxu1  ;;  %4309 = vadd.xlane.f32.xlu0 %v14750_v10  ;;  %7999 = vmatmul.mubr.f32.gmra.mrb[62].mxu1 %v11855_v0  ;;  %v11879_v10 = vpop.eup %8602 }
 0x6d5   :  { %4311 = vadd.xlane.f32.xlu1 %v11465_v61  ;;  %8001 = vmatprep.mubr.f32.mxu1 %v11859_v21  ;;  %14755 = vst [vmem:[#allocation46_spill] sm:$0xff] %v11879_v10 }
 0x6d7   :  { %v11869_v62 = vpop.f32.mrb[6].mxu1 }
 0x6d8   :  { %v11873_v23 = vpop.f32.mrb[7].mxu1  ;;  %4313 = vadd.xlane.f32.xlu0 %v14753_v28  ;;  %8002 = vmatmul.mubr.f32.gmra.mrb[64].mxu1 %v11867_v35 }
 0x6d9   :  { %4315 = vadd.xlane.f32.xlu1 %v14754_v31  ;;  %8004 = vmatprep.mubr.f32.mxu1 %v11871_v4 }
 0x6db   :  { %v11881_v61 = vpop.f32.mrb[8].mxu1 }
 0x6dc   :  { %v11883_v21 = vpop.f32.mrb[9].mxu1  ;;  %4317 = vadd.xlane.f32.xlu0 %v11486_v34  ;;  %8005 = vmatmul.mubr.f32.gmra.mrb[66].mxu1 %v11879_v10 }
 0x6dd   :  { %4319 = vadd.xlane.f32.xlu1 %v11488_v54  ;;  %8043 = vmatprep.mubr.msk.bf16.mxu1 %vm8956_vm0, %v14672_v11  ;;  %vm6389_vm0 = vcmask 1048512  }
 0x6df   :  { %v11890_v28 = vpop.f32.mrb[10].mxu1 }
 0x6e0   :  { %v11892_v31 = vpop.f32.mrb[11].mxu1  ;;  %4321 = vadd.xlane.f32.xlu0 %v11498_v38 }
 0x6e1   :  { %4323 = vadd.xlane.f32.xlu1 %v11500_v18 }
 0x6e3   :  { %v11896_v4 = vpop.f32.mrb[12].mxu1 }
 0x6e4   :  { %v11898_v35 = vpop.f32.mrb[13].mxu1  ;;  %4325 = vadd.xlane.f32.xlu0 %v11510_v50 }
 0x6e5   :  { %4327 = vadd.xlane.f32.xlu1 %v11512_v5  ;;  %v4188_v34 = vpop.xlane.xlu0 %4187 }
 0x6e6   :  { %8604 = vrcp.f32 %v4188_v34 }
 0x6e7   :  { %v11902_v54 = vpop.f32.mrb[14].mxu1 }
 0x6e8   :  { %v11904_v11 = vpop.f32.mrb[15].mxu1  ;;  %4329 = vadd.xlane.f32.xlu0 %v11522_v56 }
 0x6e9   :  { %4331 = vadd.xlane.f32.xlu1 %v11524_v20  ;;  %v4192_v38 = vpop.xlane.xlu0 %4191  ;;  %v4190_v18 = vpop.xlane.xlu1 %4189 }
 0x6ea   :  { %8606 = vrcp.f32 %v4192_v38 }
 0x6eb   :  { %8608 = vrcp.f32 %v4190_v18  ;;  %v11908_v10 = vpop.f32.mrb[16].mxu1 }
 0x6ec   :  { %v11910_v0 = vpop.f32.mrb[17].mxu1  ;;  %4333 = vadd.xlane.f32.xlu0 %v11532_v43 }
 0x6ed   :  { %4335 = vadd.xlane.f32.xlu1 %v11536_v51  ;;  %v4194_v50 = vpop.xlane.xlu0 %4193 }
 0x6ee   :  { %8610 = vrcp.f32 %v4194_v50  ;;  %v4196_v5 = vpop.xlane.xlu1 %4195 }
 0x6ef   :  { %8612 = vrcp.f32 %v4196_v5  ;;  %v11914_v34 = vpop.f32.mrb[18].mxu1 }
 0x6f0   :  { %14756 = vst [vmem:[#allocation32_spill] sm:$0xff] %v11914_v34  ;;  %v8605_v56 = vpop.eup %8604  ;;  %v11916_v20 = vpop.f32.mrb[19].mxu1  ;;  %4337 = vadd.xlane.f32.xlu0 %v11544_v57 }
 0x6f1   :  { %4339 = vadd.xlane.f32.xlu1 %v11548_v1  ;;  %v4198_v38 = vpop.xlane.xlu0 %4197  ;;  %v11921_v18 = vmul.f32 %v8605_v56, %v11743_v2 }
 0x6f2   :  { %8614 = vrcp.f32 %v4198_v38  ;;  %v4200_v43 = vpop.xlane.xlu1 %4199 }
 0x6f3   :  { %8616 = vrcp.f32 %v4200_v43 }
 0x6f4   :  { %v8607_v51 = vpop.eup %8606  ;;  %v11923_v50 = vpop.f32.mrb[20].mxu0  ;;  %4341 = vadd.xlane.f32.xlu0 %v11556_v42 }
 0x6f5   :  { %14757 = vst [vmem:[#allocation146_spill] sm:$0xff] %v11923_v50  ;;  %v8609_v5 = vpop.eup %8608  ;;  %v11926_v34 = vpop.f32.mrb[21].mxu0  ;;  %4343 = vadd.xlane.f32.xlu1 %v11560_v12  ;;  %v11930_v1 = vmul.f32 %v8607_v51, %v11759_v58 }
 0x6f6   :  { %14758 = vst [vmem:[#allocation149_spill] sm:$0xff] %v11926_v34  ;;  %v4202_v57 = vpop.xlane.xlu0 %4201  ;;  %v4204_v2 = vpop.xlane.xlu1 %4203  ;;  %v11933_v56 = vmul.f32 %v8609_v5, %v11739_v46  ;;  %v14759_v34 = vld [vmem:[#allocation206_spill] sm:$0xff] }
 0x6f7   :  { %8618 = vrcp.f32 %v4202_v57 }
 0x6f8   :  { %8620 = vrcp.f32 %v4204_v2  ;;  %v8611_v38 = vpop.eup %8610  ;;  %v11935_v43 = vpop.f32.mrb[22].mxu0  ;;  %4345 = vadd.xlane.f32.xlu0 %v11568_v32 }
 0x6f9   :  { %v8613_v42 = vpop.eup %8612  ;;  %v11938_v50 = vpop.f32.mrb[23].mxu0  ;;  %4347 = vadd.xlane.f32.xlu1 %v14759_v34  ;;  %v11942_v58 = vmul.f32 %v8611_v38, %v11755_v14 }
 0x6fa   :  { %v4206_v12 = vpop.xlane.xlu0 %4205  ;;  %v4208_v51 = vpop.xlane.xlu1 %4207  ;;  %v11945_v46 = vmul.f32 %v8613_v42, %v11773_v41 }
 0x6fb   :  { %8622 = vrcp.f32 %v4206_v12 }
 0x6fc   :  { %8624 = vrcp.f32 %v4208_v51  ;;  %v8615_v5 = vpop.eup %8614  ;;  %v11947_v57 = vpop.f32.mrb[24].mxu0  ;;  %4349 = vadd.xlane.f32.xlu0 %v11582_v24 }
 0x6fd   :  { %v8617_v32 = vpop.eup %8616  ;;  %v11950_v2 = vpop.f32.mrb[25].mxu0  ;;  %4351 = vadd.xlane.f32.xlu1 %v11585_v26  ;;  %v11954_v14 = vmul.f32 %v8615_v5, %v11771_v55 }
 0x6fe   :  { %v4210_v34 = vpop.xlane.xlu0 %4209  ;;  %v4212_v38 = vpop.xlane.xlu1 %4211  ;;  %v11957_v41 = vmul.f32 %v8617_v32, %v11789_v16 }
 0x6ff   :  { %8626 = vrcp.f32 %v4210_v34 }
 0x700   :  { %8628 = vrcp.f32 %v4212_v38  ;;  %v11959_v12 = vpop.f32.mrb[26].mxu0  ;;  %4353 = vadd.xlane.f32.xlu0 %v11594_v8 }
 0x701   :  { %v8619_v42 = vpop.eup %8618  ;;  %14760 = vst [vmem:[#allocation45_spill] sm:$0xff] %v11959_v12  ;;  %v11962_v51 = vpop.f32.mrb[27].mxu0  ;;  %4355 = vadd.xlane.f32.xlu1 %v11597_v39  ;;  %v8959_v12 = vmov 0  }
 0x702   :  { %v8621_v24 = vpop.eup %8620  ;;  %v4214_v26 = vpop.xlane.xlu0 %4213  ;;  %v11966_v55 = vmul.f32 %v8619_v42, %v11784_v27  ;;  %8315 = vset.pattern.permute.xlu1 %v8959_v12  ;;  %8314 = vset.pattern.permute.xlu0 %v8959_v12 }
 0x703   :  { %8630 = vrcp.f32 %v4214_v26  ;;  %v4216_v5 = vpop.xlane.xlu1 %4215  ;;  %v11969_v16 = vmul.f32 %v8621_v24, %v11805_v49 }
 0x704   :  { %8632 = vrcp.f32 %v4216_v5  ;;  %v11971_v34 = vpop.f32.mrb[28].mxu0  ;;  %4357 = vadd.xlane.f32.xlu0 %v11606_v53 }
 0x705   :  { %v8623_v32 = vpop.eup %8622  ;;  %14761 = vst [vmem:[#allocation48_spill] sm:$0xff] %v11971_v34  ;;  %v11974_v38 = vpop.f32.mrb[29].mxu0  ;;  %4359 = vadd.xlane.f32.xlu1 %v11609_v29 }
 0x706   :  { %v8625_v8 = vpop.eup %8624  ;;  %14762 = vst [vmem:[#allocation148_spill] sm:$0xff] %v11974_v38  ;;  %v4218_v39 = vpop.xlane.xlu0 %4217  ;;  %v11978_v27 = vmul.f32 %v8623_v32, %v11801_v59  ;;  %v14819_v38 = vld [vmem:[#allocation145_spill] sm:$0xff] }
 0x707   :  { %8634 = vrcp.f32 %v4218_v39  ;;  %v4220_v42 = vpop.xlane.xlu1 %4219  ;;  %v11981_v49 = vmul.f32 %v8625_v8, %v11821_v45 }
 0x708   :  { %8636 = vrcp.f32 %v4220_v42  ;;  %v11983_v26 = vpop.f32.mrb[30].mxu0  ;;  %4361 = vadd.xlane.f32.xlu0 %v11618_v17 }
 0x709   :  { %v8627_v24 = vpop.eup %8626  ;;  %14763 = vst [vmem:[#allocation151_spill] sm:$0xff] %v11983_v26  ;;  %v11986_v5 = vpop.f32.mrb[31].mxu0  ;;  %4363 = vadd.xlane.f32.xlu1 %v11623_v9  ;;  %v14809_v26 = vld [vmem:[#allocation39_spill] sm:$0xff] }
 0x70a   :  { %v8629_v53 = vpop.eup %8628  ;;  %14764 = vst [vmem:[#allocation47_spill] sm:$0xff] %v11986_v5  ;;  %v4222_v29 = vpop.xlane.xlu0 %4221  ;;  %v11990_v59 = vmul.f32 %v8627_v24, %v11817_v44 }
 0x70b   :  { %8638 = vrcp.f32 %v4222_v29  ;;  %v4224_v32 = vpop.xlane.xlu1 %4223  ;;  %v11993_v45 = vmul.f32 %v8629_v53, %v11835_v3 }
 0x70c   :  { %8640 = vrcp.f32 %v4224_v32  ;;  %v11995_v39 = vpop.f32.mrb[32].mxu0  ;;  %4365 = vadd.xlane.f32.xlu0 %v11630_v63 }
 0x70d   :  { %v8631_v8 = vpop.eup %8630  ;;  %14765 = vst [vmem:[#allocation158_spill] sm:$0xff] %v11995_v39  ;;  %v11998_v42 = vpop.f32.mrb[33].mxu0  ;;  %4367 = vadd.xlane.f32.xlu1 %v11635_v25  ;;  %v14805_v39 = vld [vmem:[#allocation140_spill] sm:$0xff] }
 0x70e   :  { %v8633_v17 = vpop.eup %8632  ;;  %14766 = vst [vmem:[#allocation192_spill] sm:$0xff] %v11998_v42  ;;  %v4226_v9 = vpop.xlane.xlu0 %4225  ;;  %v12002_v44 = vmul.f32 %v8631_v8, %v11831_v13 }
 0x70f   :  { %8642 = vrcp.f32 %v4226_v9  ;;  %v4228_v24 = vpop.xlane.xlu1 %4227  ;;  %v12005_v3 = vmul.f32 %v8633_v17, %v11847_v36 }
 0x710   :  { %8644 = vrcp.f32 %v4228_v24  ;;  %v12007_v29 = vpop.f32.mrb[34].mxu0  ;;  %4369 = vadd.xlane.f32.xlu0 %v11642_v15 }
 0x711   :  { %v8635_v53 = vpop.eup %8634  ;;  %14767 = vst [vmem:[#allocation150_spill] sm:$0xff] %v12007_v29  ;;  %v12010_v32 = vpop.f32.mrb[35].mxu0  ;;  %4371 = vadd.xlane.f32.xlu1 %v11647_v40  ;;  %v14801_v29 = vld [vmem:[#allocation142_spill] sm:$0xff] }
 0x712   :  { %v8637_v63 = vpop.eup %8636  ;;  %14768 = vst [vmem:[#allocation89_spill] sm:$0xff] %v12010_v32  ;;  %v4230_v25 = vpop.xlane.xlu0 %4229  ;;  %v12014_v13 = vmul.f32 %v8635_v53, %v11843_v47 }
 0x713   :  { %8646 = vrcp.f32 %v4230_v25  ;;  %v4232_v8 = vpop.xlane.xlu1 %4231  ;;  %v12016_v9 = vpop.f32.mrb[20].mxu1  ;;  %v12019_v36 = vmul.f32 %v8637_v63, %v11861_v52 }
 0x714   :  { %14769 = vst [vmem:[#allocation153_spill] sm:$0xff] %v12016_v9  ;;  %8648 = vrcp.f32 %v4232_v8  ;;  %v12021_v17 = vpop.f32.mrb[21].mxu1  ;;  %4373 = vadd.xlane.f32.xlu0 %v11654_v48  ;;  %v14773_v9 = vld [vmem:[#allocation207_spill] sm:$0xff] }
 0x715   :  { %14770 = vst [vmem:[#allocation91_spill] sm:$0xff] %v12021_v17  ;;  %v8639_v15 = vpop.eup %8638  ;;  %4375 = vadd.xlane.f32.xlu1 %v11659_v30 }
 0x716   :  { %v8641_v24 = vpop.eup %8640  ;;  %v4234_v40 = vpop.xlane.xlu0 %4233  ;;  %v12026_v47 = vmul.f32 %v8639_v15, %v11857_v33 }
 0x717   :  { %8650 = vrcp.f32 %v4234_v40  ;;  %v4236_v53 = vpop.xlane.xlu1 %4235  ;;  %v12028_v25 = vpop.f32.mrb[22].mxu1  ;;  %v12031_v52 = vmul.f32 %v8641_v24, %v11873_v23 }
 0x718   :  { %14771 = vst [vmem:[#allocation49_spill] sm:$0xff] %v12028_v25  ;;  %8652 = vrcp.f32 %v4236_v53  ;;  %v12033_v63 = vpop.f32.mrb[23].mxu1  ;;  %4377 = vadd.xlane.f32.xlu0 %v11666_v22 }
 0x719   :  { %14772 = vst [vmem:[#allocation94_spill] sm:$0xff] %v12033_v63  ;;  %v8643_v8 = vpop.eup %8642  ;;  %4379 = vadd.xlane.f32.xlu1 %v14773_v9 }
 0x71a   :  { %v8645_v48 = vpop.eup %8644  ;;  %v4238_v30 = vpop.xlane.xlu0 %4237  ;;  %v12038_v33 = vmul.f32 %v8643_v8, %v11869_v62 }
 0x71b   :  { %8654 = vrcp.f32 %v4238_v30  ;;  %v4240_v15 = vpop.xlane.xlu1 %4239  ;;  %v12040_v40 = vpop.f32.mrb[24].mxu1  ;;  %v12043_v23 = vmul.f32 %v8645_v48, %v11883_v21 }
 0x71c   :  { %14774 = vst [vmem:[#allocation52_spill] sm:$0xff] %v12040_v40  ;;  %8656 = vrcp.f32 %v4240_v15  ;;  %v12045_v24 = vpop.f32.mrb[25].mxu1  ;;  %4381 = vadd.xlane.f32.xlu0 %v11677_v6  ;;  %v14785_v40 = vld [vmem:[#allocation211_spill] sm:$0xff] }
 0x71d   :  { %14775 = vst [vmem:[#allocation95_spill] sm:$0xff] %v12045_v24  ;;  %v8647_v53 = vpop.eup %8646  ;;  %4383 = vadd.xlane.f32.xlu1 %v11681_v37 }
 0x71e   :  { %v8649_v22 = vpop.eup %8648  ;;  %v4242_v9 = vpop.xlane.xlu0 %4241  ;;  %v12050_v62 = vmul.f32 %v8647_v53, %v11881_v61 }
 0x71f   :  { %8658 = vrcp.f32 %v4242_v9  ;;  %v4244_v8 = vpop.xlane.xlu1 %4243  ;;  %v12052_v30 = vpop.f32.mrb[26].mxu1  ;;  %v12055_v21 = vmul.f32 %v8649_v22, %v11892_v31 }
 0x720   :  { %14776 = vst [vmem:[#allocation152_spill] sm:$0xff] %v12052_v30  ;;  %8660 = vrcp.f32 %v4244_v8  ;;  %v12057_v48 = vpop.f32.mrb[27].mxu1  ;;  %4385 = vadd.xlane.f32.xlu0 %v11691_v7  ;;  %v14780_v30 = vld [vmem:[#allocation208_spill] sm:$0xff] }
 0x721   :  { %14777 = vst [vmem:[#allocation98_spill] sm:$0xff] %v12057_v48  ;;  %v8651_v15 = vpop.eup %8650  ;;  %4387 = vadd.xlane.f32.xlu1 %v11693_v19  ;;  %v14781_v48 = vld [vmem:[#allocation209_spill] sm:$0xff] }
 0x722   :  { %v8653_v6 = vpop.eup %8652  ;;  %v4246_v37 = vpop.xlane.xlu0 %4245  ;;  %v12062_v61 = vmul.f32 %v8651_v15, %v11890_v28 }
 0x723   :  { %8662 = vrcp.f32 %v4246_v37  ;;  %v12064_v53 = vpop.xlane.xlu1 %4247  ;;  %v12066_v9 = vpop.f32.mrb[28].mxu1  ;;  %v12069_v31 = vmul.f32 %v8653_v6, %v11898_v35 }
 0x724   :  { %14778 = vst [vmem:[#allocation155_spill] sm:$0xff] %v12066_v9  ;;  %v12071_v22 = vpop.f32.mrb[29].mxu1  ;;  %4389 = vadd.xlane.f32.xlu0 %v14780_v30  ;;  %8664 = vrcp.f32 %v12064_v53 }
 0x725   :  { %14779 = vst [vmem:[#allocation99_spill] sm:$0xff] %v12071_v22  ;;  %v8655_v8 = vpop.eup %8654  ;;  %4391 = vadd.xlane.f32.xlu1 %v14781_v48  ;;  %v14784_v22 = vld [vmem:[#allocation210_spill] sm:$0xff] }
 0x726   :  { %v8657_v7 = vpop.eup %8656  ;;  %v12075_v19 = vpop.xlane.xlu0 %4249  ;;  %v12078_v28 = vmul.f32 %v8655_v8, %v11896_v4 }
 0x727   :  { %v12080_v15 = vpop.xlane.xlu1 %4251  ;;  %v12082_v37 = vpop.f32.mrb[30].mxu1  ;;  %v12085_v35 = vmul.f32 %v8657_v7, %v11904_v11  ;;  %8666 = vrcp.f32 %v12075_v19 }
 0x728   :  { %14782 = vst [vmem:[#allocation51_spill] sm:$0xff] %v12082_v37  ;;  %v12087_v6 = vpop.f32.mrb[31].mxu1  ;;  %4393 = vadd.xlane.f32.xlu0 %v14784_v22  ;;  %v14789_v22 = vld [vmem:[#allocation213_spill] sm:$0xff]  ;;  %8668 = vrcp.f32 %v12080_v15 }
 0x729   :  { %14783 = vst [vmem:[#allocation102_spill] sm:$0xff] %v12087_v6  ;;  %v8659_v9 = vpop.eup %8658  ;;  %4395 = vadd.xlane.f32.xlu1 %v14785_v40  ;;  %v14788_v6 = vld [vmem:[#allocation212_spill] sm:$0xff] }
 0x72a   :  { %v8661_v30 = vpop.eup %8660  ;;  %v12091_v48 = vpop.xlane.xlu0 %4253  ;;  %v12094_v4 = vmul.f32 %v8659_v9, %v11902_v54 }
 0x72b   :  { %v12096_v8 = vpop.xlane.xlu1 %4255  ;;  %v12098_v24 = vpop.f32.mrb[32].mxu1  ;;  %v12101_v11 = vmul.f32 %v8661_v30, %v11910_v0  ;;  %v14792_v0 = vld [vmem:[#allocation38_spill] sm:$0xff]  ;;  %v14793_v30 = vld [vmem:[#allocation139_spill] sm:$0xff]  ;;  %8670 = vrcp.f32 %v12091_v48 }
 0x72c   :  { %14786 = vst [vmem:[#allocation54_spill] sm:$0xff] %v12098_v24  ;;  %v12103_v7 = vpop.f32.mrb[33].mxu1  ;;  %4397 = vadd.xlane.f32.xlu0 %v14788_v6  ;;  %8672 = vrcp.f32 %v12096_v8 }
 0x72d   :  { %14787 = vst [vmem:[#allocation104_spill] sm:$0xff] %v12103_v7  ;;  %v8663_v37 = vpop.eup %8662  ;;  %4399 = vadd.xlane.f32.xlu1 %v14789_v22 }
 0x72e   :  { %v12107_v40 = vpop.xlane.xlu0 %4257  ;;  %v12110_v25 = vmul.f32 %v8663_v37, %v11908_v10  ;;  %v12114_v9 = vpop.f32.mrb[34].mxu1  ;;  %v14796_v10 = vld [vmem:[#allocation31_spill] sm:$0xff]  ;;  %v14797_v37 = vld [vmem:[#allocation141_spill] sm:$0xff] }
 0x72f   :  { %v12112_v54 = vpop.xlane.xlu1 %4259  ;;  %14790 = vst [vmem:[#allocation154_spill] sm:$0xff] %v12114_v9  ;;  %v12116_v24 = vpop.f32.mrb[35].mxu1  ;;  %8674 = vrcp.f32 %v12107_v40 }
 0x730   :  { %14791 = vst [vmem:[#allocation103_spill] sm:$0xff] %v12116_v24  ;;  %4401 = vadd.xlane.f32.xlu0 %v14792_v0  ;;  %v8665_v48 = vpop.eup %8664  ;;  %8676 = vrcp.f32 %v12112_v54 }
 0x731   :  { %4403 = vadd.xlane.f32.xlu1 %v14793_v30  ;;  %v14800_v30 = vld [vmem:[#allocation37_spill] sm:$0xff] }
 0x732   :  { %v12120_v7 = vpop.xlane.xlu0 %4261 }
 0x733   :  { %v12122_v6 = vpop.xlane.xlu1 %4263  ;;  %v12124_v22 = vpop.f32.mrb[36].mxu0  ;;  %8678 = vrcp.f32 %v12120_v7 }
 0x734   :  { %14794 = vst [vmem:[#allocation157_spill] sm:$0xff] %v12124_v22  ;;  %v12126_v63 = vpop.f32.mrb[37].mxu0  ;;  %4405 = vadd.xlane.f32.xlu0 %v14796_v10  ;;  %8680 = vrcp.f32 %v12122_v6 }
 0x735   :  { %14795 = vst [vmem:[#allocation106_spill] sm:$0xff] %v12126_v63  ;;  %4407 = vadd.xlane.f32.xlu1 %v14797_v37  ;;  %v14804_v37 = vld [vmem:[#allocation40_spill] sm:$0xff] }
 0x736   :  { %v12130_v17 = vpop.xlane.xlu0 %4265 }
 0x737   :  { %v12132_v9 = vpop.xlane.xlu1 %4267  ;;  %v12134_v24 = vpop.f32.mrb[38].mxu0  ;;  %8682 = vrcp.f32 %v12130_v17 }
 0x738   :  { %14798 = vst [vmem:[#allocation53_spill] sm:$0xff] %v12134_v24  ;;  %v12136_v0 = vpop.f32.mrb[39].mxu0  ;;  %4409 = vadd.xlane.f32.xlu0 %v14800_v30  ;;  %8684 = vrcp.f32 %v12132_v9 }
 0x739   :  { %14799 = vst [vmem:[#allocation105_spill] sm:$0xff] %v12136_v0  ;;  %4411 = vadd.xlane.f32.xlu1 %v14801_v29  ;;  %v14808_v29 = vld [vmem:[#allocation143_spill] sm:$0xff] }
 0x73a   :  { %v12140_v32 = vpop.xlane.xlu0 %4269 }
 0x73b   :  { %v12142_v22 = vpop.xlane.xlu1 %4271  ;;  %v12144_v63 = vpop.f32.mrb[40].mxu0  ;;  %8686 = vrcp.f32 %v12140_v32 }
 0x73c   :  { %14802 = vst [vmem:[#allocation56_spill] sm:$0xff] %v12144_v63  ;;  %v12146_v10 = vpop.f32.mrb[41].mxu0  ;;  %4413 = vadd.xlane.f32.xlu0 %v14804_v37  ;;  %8688 = vrcp.f32 %v12142_v22 }
 0x73d   :  { %14803 = vst [vmem:[#allocation108_spill] sm:$0xff] %v12146_v10  ;;  %4415 = vadd.xlane.f32.xlu1 %v14805_v39  ;;  %v14813_v39 = vld [vmem:[#allocation42_spill] sm:$0xff] }
 0x73e   :  { %v12150_v42 = vpop.xlane.xlu0 %4273 }
 0x73f   :  { %v12152_v24 = vpop.xlane.xlu1 %4275  ;;  %v12154_v0 = vpop.f32.mrb[42].mxu0  ;;  %8690 = vrcp.f32 %v12150_v42 }
 0x740   :  { %14806 = vst [vmem:[#allocation156_spill] sm:$0xff] %v12154_v0  ;;  %v12156_v30 = vpop.f32.mrb[43].mxu0  ;;  %4417 = vadd.xlane.f32.xlu0 %v14808_v29  ;;  %8692 = vrcp.f32 %v12152_v24 }
 0x741   :  { %14807 = vst [vmem:[#allocation29_spill] sm:$0xff] %v12156_v30  ;;  %4419 = vadd.xlane.f32.xlu1 %v14809_v26  ;;  %v14818_v26 = vld [vmem:[#allocation50_spill] sm:$0xff] }
 0x742   :  { %v12160_v5 = vpop.xlane.xlu0 %4277 }
 0x743   :  { %v12162_v63 = vpop.xlane.xlu1 %4279  ;;  %v12164_v10 = vpop.f32.mrb[44].mxu0  ;;  %8694 = vrcp.f32 %v12160_v5 }
 0x744   :  { %14810 = vst [vmem:[#allocation159_spill] sm:$0xff] %v12162_v63  ;;  %14811 = vst [vmem:[#allocation107_spill] sm:$0xff] %v12164_v10  ;;  %v12166_v37 = vpop.f32.mrb[45].mxu0  ;;  %4421 = vadd.xlane.f32.xlu0 %v14813_v39 }
 0x745   :  { %14812 = vst [vmem:[#allocation58_spill] sm:$0xff] %v12166_v37  ;;  %4423 = vadd.xlane.f32.xlu1 %v11823_v60  ;;  %v14824_v60 = vld [vmem:[#allocation41_spill] sm:$0xff] }
 0x746   :  { %v12170_v34 = vpop.xlane.xlu0 %4281 }
 0x747   :  { %14814 = vst [vmem:[#allocation34_spill] sm:$0xff] %v12170_v34  ;;  %v12172_v0 = vpop.xlane.xlu1 %4283  ;;  %v12174_v30 = vpop.f32.mrb[46].mxu0  ;;  %v14825_v34 = vld [vmem:[#allocation44_spill] sm:$0xff] }
 0x748   :  { %14815 = vst [vmem:[#allocation70_spill] sm:$0xff] %v12172_v0  ;;  %14816 = vst [vmem:[#allocation110_spill] sm:$0xff] %v12174_v30  ;;  %v12176_v29 = vpop.f32.mrb[47].mxu0  ;;  %4425 = vadd.xlane.f32.xlu0 %v14818_v26 }
 0x749   :  { %14817 = vst [vmem:[#allocation57_spill] sm:$0xff] %v12176_v29  ;;  %4427 = vadd.xlane.f32.xlu1 %v14819_v38  ;;  %v14830_v38 = vld [vmem:[#allocation23_spill] sm:$0xff] }
 0x74a   :  { %v12180_v63 = vpop.xlane.xlu0 %4285 }
 0x74b   :  { %14820 = vst [vmem:[#allocation109_spill] sm:$0xff] %v12180_v63  ;;  %v12182_v10 = vpop.xlane.xlu1 %4287  ;;  %v12184_v37 = vpop.f32.mrb[48].mxu0  ;;  %v14831_v63 = vld [vmem:[#allocation144_spill] sm:$0xff] }
 0x74c   :  { %14821 = vst [vmem:[#allocation60_spill] sm:$0xff] %v12182_v10  ;;  %14822 = vst [vmem:[#allocation112_spill] sm:$0xff] %v12184_v37  ;;  %v12186_v39 = vpop.f32.mrb[49].mxu0  ;;  %4429 = vadd.xlane.f32.xlu0 %v14824_v60  ;;  %v14835_v60 = vld [vmem:[#allocation147_spill] sm:$0xff] }
 0x74d   :  { %14823 = vst [vmem:[#allocation160_spill] sm:$0xff] %v12186_v39  ;;  %4431 = vadd.xlane.f32.xlu1 %v14825_v34 }
 0x74e   :  { %v12190_v0 = vpop.xlane.xlu0 %4289 }
 0x74f   :  { %14826 = vst [vmem:[#allocation111_spill] sm:$0xff] %v12190_v0  ;;  %v12192_v30 = vpop.xlane.xlu1 %4291  ;;  %v12194_v29 = vpop.f32.mrb[50].mxu0  ;;  %v14837_v0 = vld [vmem:[#allocation43_spill] sm:$0xff] }
 0x750   :  { %14827 = vst [vmem:[#allocation163_spill] sm:$0xff] %v12192_v30  ;;  %14828 = vst [vmem:[#allocation114_spill] sm:$0xff] %v12194_v29  ;;  %v12196_v26 = vpop.f32.mrb[51].mxu0  ;;  %4433 = vadd.xlane.f32.xlu0 %v14830_v38  ;;  %v14841_v38 = vld [vmem:[#allocation46_spill] sm:$0xff] }
 0x751   :  { %14829 = vst [vmem:[#allocation162_spill] sm:$0xff] %v12196_v26  ;;  %4435 = vadd.xlane.f32.xlu1 %v14831_v63 }
 0x752   :  { %v12200_v10 = vpop.xlane.xlu0 %4293 }
 0x753   :  { %14832 = vst [vmem:[#allocation113_spill] sm:$0xff] %v12200_v10  ;;  %v12202_v37 = vpop.xlane.xlu1 %4295 }
 0x754   :  { %14833 = vst [vmem:[#allocation165_spill] sm:$0xff] %v12202_v37  ;;  %v12204_v39 = vpop.f32.mrb[36].mxu1  ;;  %4437 = vadd.xlane.f32.xlu0 %v14835_v60 }
 0x755   :  { %14834 = vst [vmem:[#allocation171_spill] sm:$0xff] %v12204_v39  ;;  %v12207_v34 = vpop.f32.mrb[37].mxu1  ;;  %4439 = vadd.xlane.f32.xlu1 %v14837_v0 }
 0x756   :  { %14836 = vst [vmem:[#allocation116_spill] sm:$0xff] %v12207_v34  ;;  %v12210_v30 = vpop.xlane.xlu0 %4297 }
 0x757   :  { %14838 = vst [vmem:[#allocation61_spill] sm:$0xff] %v12210_v30  ;;  %v12212_v29 = vpop.xlane.xlu1 %4299 }
 0x758   :  { %14839 = vst [vmem:[#allocation115_spill] sm:$0xff] %v12212_v29  ;;  %v12214_v26 = vpop.f32.mrb[38].mxu1  ;;  %4441 = vadd.xlane.f32.xlu0 %v14841_v38 }
 0x759   :  { %14840 = vst [vmem:[#allocation64_spill] sm:$0xff] %v12214_v26  ;;  %v12217_v63 = vpop.f32.mrb[39].mxu1 }
 0x75a   :  { %14842 = vst [vmem:[#allocation118_spill] sm:$0xff] %v12217_v63  ;;  %v12219_v10 = vpop.xlane.xlu0 %4301 }
 0x75b   :  { %14843 = vst [vmem:[#allocation164_spill] sm:$0xff] %v12219_v10  ;;  %v12221_v37 = vpop.xlane.xlu1 %4303 }
 0x75c   :  { %14844 = vst [vmem:[#allocation117_spill] sm:$0xff] %v12221_v37  ;;  %v12223_v39 = vpop.f32.mrb[40].mxu1 }
 0x75d   :  { %14845 = vst [vmem:[#allocation66_spill] sm:$0xff] %v12223_v39  ;;  %v12225_v60 = vpop.f32.mrb[41].mxu1  ;;  %v14856_v39 = vld [vmem:[#allocation15_spill] sm:$0xff] }
 0x75e   :  { %14846 = vst [vmem:[#allocation120_spill] sm:$0xff] %v12225_v60  ;;  %v12227_v34 = vpop.xlane.xlu0 %4305 }
 0x75f   :  { %14847 = vst [vmem:[#allocation169_spill] sm:$0xff] %v12227_v34  ;;  %v12229_v0 = vpop.xlane.xlu1 %4307 }
 0x760   :  { %14848 = vst [vmem:[#allocation119_spill] sm:$0xff] %v12229_v0  ;;  %v12231_v30 = vpop.f32.mrb[42].mxu1 }
 0x761   :  { %14849 = vst [vmem:[#allocation65_spill] sm:$0xff] %v12231_v30  ;;  %v12233_v29 = vpop.f32.mrb[43].mxu1 }
 0x762   :  { %14850 = vst [vmem:[#allocation122_spill] sm:$0xff] %v12233_v29  ;;  %v12235_v26 = vpop.xlane.xlu0 %4309 }
 0x763   :  { %14851 = vst [vmem:[#allocation68_spill] sm:$0xff] %v12235_v26  ;;  %v12237_v38 = vpop.xlane.xlu1 %4311 }
 0x764   :  { %14852 = vst [vmem:[#allocation121_spill] sm:$0xff] %v12237_v38  ;;  %v12239_v63 = vpop.f32.mrb[44].mxu1 }
 0x765   :  { %14853 = vst [vmem:[#allocation168_spill] sm:$0xff] %v12239_v63  ;;  %v12241_v10 = vpop.f32.mrb[45].mxu1 }
 0x766   :  { %14854 = vst [vmem:[#allocation124_spill] sm:$0xff] %v12241_v10  ;;  %v12243_v37 = vpop.xlane.xlu0 %4313  ;;  %4833 = vbcast.lane.b32.xlu1 %v14856_v39, 256 }
 0x767   :  { %14855 = vst [vmem:[#allocation67_spill] sm:$0xff] %v12243_v37  ;;  %v12246_v60 = vpop.xlane.xlu1 %4315 }
 0x768   :  { %14857 = vst [vmem:[#allocation135_spill] sm:$0xff] %v12246_v60  ;;  %v12248_v34 = vpop.f32.mrb[46].mxu1 }
 0x769   :  { %14858 = vst [vmem:[#allocation78_spill] sm:$0xff] %v12248_v34  ;;  %v12250_v0 = vpop.f32.mrb[47].mxu1 }
 0x76a   :  { %14859 = vst [vmem:[#allocation123_spill] sm:$0xff] %v12250_v0  ;;  %v12252_v30 = vpop.xlane.xlu0 %4317  ;;  %4841 = vbcast.lane.b32.xlu1 %v14856_v39, 272 }
 0x76b   :  { %14860 = vst [vmem:[#allocation170_spill] sm:$0xff] %v12252_v30  ;;  %v12255_v29 = vpop.xlane.xlu1 %4319 }
 0x76c   :  { %14861 = vst [vmem:[#allocation126_spill] sm:$0xff] %v12255_v29  ;;  %v12257_v38 = vpop.f32.mrb[48].mxu1 }
 0x76d   :  { %14862 = vst [vmem:[#allocation173_spill] sm:$0xff] %v12257_v38  ;;  %v12259_v63 = vpop.f32.mrb[49].mxu1 }
 0x76e   :  { %14863 = vst [vmem:[#allocation125_spill] sm:$0xff] %v12259_v63  ;;  %v12261_v10 = vpop.xlane.xlu0 %4321  ;;  %4845 = vbcast.lane.b32.xlu1 %v14856_v39, 280  ;;  %4837 = vbcast.lane.b32.xlu0 %v14856_v39, 264 }
 0x76f   :  { %14864 = vst [vmem:[#allocation69_spill] sm:$0xff] %v12261_v10  ;;  %v12264_v37 = vpop.xlane.xlu1 %4323 }
 0x770   :  { %14865 = vst [vmem:[#allocation128_spill] sm:$0xff] %v12264_v37  ;;  %v12267_v34 = vpop.f32.mrb[50].mxu1 }
 0x771   :  { %14866 = vst [vmem:[#allocation72_spill] sm:$0xff] %v12267_v34  ;;  %v12269_v0 = vpop.f32.mrb[51].mxu1 }
 0x772   :  { %14867 = vst [vmem:[#allocation127_spill] sm:$0xff] %v12269_v0  ;;  %v12271_v30 = vpop.xlane.xlu0 %4325  ;;  %4853 = vbcast.lane.b32.xlu1 %v14856_v39, 296  ;;  %4849 = vbcast.lane.b32.xlu0 %v14856_v39, 288  ;;  %v12277_v63 = vpop.f32.mrb[52].mxu0 }
 0x773   :  { %14868 = vst [vmem:[#allocation172_spill] sm:$0xff] %v12271_v30  ;;  %v12274_v29 = vpop.xlane.xlu1 %4327  ;;  %14870 = vst [vmem:[#allocation175_spill] sm:$0xff] %v12277_v63  ;;  %v12279_v38 = vpop.f32.mrb[53].mxu0 }
 0x774   :  { %14869 = vst [vmem:[#allocation130_spill] sm:$0xff] %v12274_v29  ;;  %14871 = vst [vmem:[#allocation179_spill] sm:$0xff] %v12279_v38 }
 0x776   :  { %v12281_v10 = vpop.xlane.xlu0 %4329  ;;  %4861 = vbcast.lane.b32.xlu1 %v14856_v39, 312  ;;  %4857 = vbcast.lane.b32.xlu0 %v14856_v39, 304  ;;  %v12287_v34 = vpop.f32.mrb[54].mxu0 }
 0x777   :  { %14872 = vst [vmem:[#allocation129_spill] sm:$0xff] %v12281_v10  ;;  %v12284_v37 = vpop.xlane.xlu1 %4331  ;;  %14874 = vst [vmem:[#allocation132_spill] sm:$0xff] %v12287_v34  ;;  %v12289_v0 = vpop.f32.mrb[55].mxu0 }
 0x778   :  { %14873 = vst [vmem:[#allocation71_spill] sm:$0xff] %v12284_v37  ;;  %14875 = vst [vmem:[#allocation74_spill] sm:$0xff] %v12289_v0 }
 0x77a   :  { %v12291_v30 = vpop.xlane.xlu0 %4333  ;;  %4869 = vbcast.lane.b32.xlu1 %v14856_v39, 328  ;;  %4865 = vbcast.lane.b32.xlu0 %v14856_v39, 320  ;;  %v12297_v38 = vpop.f32.mrb[56].mxu0 }
 0x77b   :  { %14876 = vst [vmem:[#allocation131_spill] sm:$0xff] %v12291_v30  ;;  %v12294_v29 = vpop.xlane.xlu1 %4335  ;;  %14878 = vst [vmem:[#allocation134_spill] sm:$0xff] %v12297_v38  ;;  %v12299_v63 = vpop.f32.mrb[57].mxu0 }
 0x77c   :  { %14877 = vst [vmem:[#allocation174_spill] sm:$0xff] %v12294_v29  ;;  %14879 = vst [vmem:[#allocation177_spill] sm:$0xff] %v12299_v63 }
 0x77e   :  { %v12301_v10 = vpop.xlane.xlu0 %4337  ;;  %4877 = vbcast.lane.b32.xlu1 %v14856_v39, 344  ;;  %4873 = vbcast.lane.b32.xlu0 %v14856_v39, 336  ;;  %v12307_v0 = vpop.f32.mrb[58].mxu0 }
 0x77f   :  { %14880 = vst [vmem:[#allocation55_spill] sm:$0xff] %v12301_v10  ;;  %v12304_v37 = vpop.xlane.xlu1 %4339  ;;  %14882 = vst [vmem:[#allocation133_spill] sm:$0xff] %v12307_v0  ;;  %v12309_v34 = vpop.f32.mrb[59].mxu0 }
 0x780   :  { %14881 = vst [vmem:[#allocation73_spill] sm:$0xff] %v12304_v37  ;;  %14883 = vst [vmem:[#allocation76_spill] sm:$0xff] %v12309_v34 }
 0x782   :  { %v12311_v30 = vpop.xlane.xlu0 %4341  ;;  %4885 = vbcast.lane.b32.xlu1 %v14856_v39, 360  ;;  %4881 = vbcast.lane.b32.xlu0 %v14856_v39, 352  ;;  %v12317_v63 = vpop.f32.mrb[60].mxu0 }
 0x783   :  { %14884 = vst [vmem:[#allocation136_spill] sm:$0xff] %v12311_v30  ;;  %v12314_v29 = vpop.xlane.xlu1 %4343  ;;  %14886 = vst [vmem:[#allocation161_spill] sm:$0xff] %v12317_v63  ;;  %v12319_v38 = vpop.f32.mrb[61].mxu0 }
 0x784   :  { %14885 = vst [vmem:[#allocation24_spill] sm:$0xff] %v12314_v29  ;;  %14887 = vst [vmem:[#allocation176_spill] sm:$0xff] %v12319_v38  ;;  %v14893_v29 = vld [vmem:[#allocation16_spill] sm:$0xff] }
 0x786   :  { %v12321_v10 = vpop.xlane.xlu0 %4345  ;;  %4893 = vbcast.lane.b32.xlu1 %v14856_v39, 376  ;;  %4889 = vbcast.lane.b32.xlu0 %v14856_v39, 368  ;;  %v12327_v34 = vpop.f32.mrb[62].mxu0 }
 0x787   :  { %14888 = vst [vmem:[#allocation27_spill] sm:$0xff] %v12321_v10  ;;  %v12324_v37 = vpop.xlane.xlu1 %4347  ;;  %14890 = vst [vmem:[#allocation222_spill] sm:$0xff] %v12327_v34  ;;  %v12329_v0 = vpop.f32.mrb[63].mxu0 }
 0x788   :  { %14889 = vst [vmem:[#allocation75_spill] sm:$0xff] %v12324_v37  ;;  %14891 = vst [vmem:[#allocation186_spill] sm:$0xff] %v12329_v0 }
 0x78a   :  { %v12331_v30 = vpop.xlane.xlu0 %4349  ;;  %4904 = vbcast.lane.b32.xlu1 %v14893_v29, 264  ;;  %4900 = vbcast.lane.b32.xlu0 %v14893_v29, 256  ;;  %v12337_v38 = vpop.f32.mrb[64].mxu0 }
 0x78b   :  { %14892 = vst [vmem:[#allocation138_spill] sm:$0xff] %v12331_v30  ;;  %v12334_v60 = vpop.xlane.xlu1 %4351  ;;  %14895 = vst [vmem:[#allocation59_spill] sm:$0xff] %v12337_v38  ;;  %v12339_v10 = vpop.f32.mrb[65].mxu0 }
 0x78c   :  { %14894 = vst [vmem:[#allocation178_spill] sm:$0xff] %v12334_v60  ;;  %14896 = vst [vmem:[#allocation181_spill] sm:$0xff] %v12339_v10 }
 0x78e   :  { %v12341_v63 = vpop.xlane.xlu0 %4353  ;;  %4912 = vbcast.lane.b32.xlu1 %v14893_v29, 280  ;;  %4908 = vbcast.lane.b32.xlu0 %v14893_v29, 272  ;;  %v12347_v0 = vpop.f32.mrb[66].mxu0 }
 0x78f   :  { %14897 = vst [vmem:[#allocation62_spill] sm:$0xff] %v12341_v63  ;;  %v12344_v39 = vpop.xlane.xlu1 %4355  ;;  %14899 = vst [vmem:[#allocation137_spill] sm:$0xff] %v12347_v0  ;;  %v12349_v34 = vpop.f32.mrb[67].mxu0 }
 0x790   :  { %14898 = vst [vmem:[#allocation77_spill] sm:$0xff] %v12344_v39  ;;  %14900 = vst [vmem:[#allocation80_spill] sm:$0xff] %v12349_v34 }
 0x792   :  { %v12351_v37 = vpop.xlane.xlu0 %4357  ;;  %4920 = vbcast.lane.b32.xlu1 %v14893_v29, 296  ;;  %4916 = vbcast.lane.b32.xlu0 %v14893_v29, 288 }
 0x793   :  { %14901 = vst [vmem:[#allocation20_spill] sm:$0xff] %v12351_v37  ;;  %v12354_v60 = vpop.xlane.xlu1 %4359  ;;  %v12357_v38 = vpop.f32.mrb[52].mxu1 }
 0x794   :  { %14902 = vst [vmem:[#allocation180_spill] sm:$0xff] %v12354_v60  ;;  %14903 = vst [vmem:[#allocation21_spill] sm:$0xff] %v12357_v38  ;;  %v12359_v10 = vpop.f32.mrb[53].mxu1 }
 0x795   :  { %14904 = vst [vmem:[#allocation183_spill] sm:$0xff] %v12359_v10 }
 0x796   :  { %v12361_v63 = vpop.xlane.xlu0 %4361  ;;  %4928 = vbcast.lane.b32.xlu1 %v14893_v29, 312  ;;  %4924 = vbcast.lane.b32.xlu0 %v14893_v29, 304 }
 0x797   :  { %14905 = vst [vmem:[#allocation22_spill] sm:$0xff] %v12361_v63  ;;  %v12364_v39 = vpop.xlane.xlu1 %4363  ;;  %v12367_v0 = vpop.f32.mrb[54].mxu1 }
 0x798   :  { %14906 = vst [vmem:[#allocation79_spill] sm:$0xff] %v12364_v39  ;;  %14907 = vst [vmem:[#allocation214_spill] sm:$0xff] %v12367_v0  ;;  %v12369_v34 = vpop.f32.mrb[55].mxu1 }
 0x799   :  { %14908 = vst [vmem:[#allocation82_spill] sm:$0xff] %v12369_v34 }
 0x79a   :  { %v12371_v37 = vpop.xlane.xlu0 %4365  ;;  %4936 = vbcast.lane.b32.xlu1 %v14893_v29, 328  ;;  %4932 = vbcast.lane.b32.xlu0 %v14893_v29, 320 }
 0x79b   :  { %14909 = vst [vmem:[#allocation215_spill] sm:$0xff] %v12371_v37  ;;  %v12374_v60 = vpop.xlane.xlu1 %4367  ;;  %v12377_v10 = vpop.f32.mrb[56].mxu1 }
 0x79c   :  { %14910 = vst [vmem:[#allocation182_spill] sm:$0xff] %v12374_v60  ;;  %14911 = vst [vmem:[#allocation216_spill] sm:$0xff] %v12377_v10  ;;  %v12379_v63 = vpop.f32.mrb[57].mxu1 }
 0x79d   :  { %14912 = vst [vmem:[#allocation81_spill] sm:$0xff] %v12379_v63 }
 0x79e   :  { %v12381_v38 = vpop.xlane.xlu0 %4369  ;;  %4944 = vbcast.lane.b32.xlu1 %v14893_v29, 344  ;;  %4940 = vbcast.lane.b32.xlu0 %v14893_v29, 336 }
 0x79f   :  { %14913 = vst [vmem:[#allocation217_spill] sm:$0xff] %v12381_v38  ;;  %v12384_v39 = vpop.xlane.xlu1 %4371  ;;  %v12387_v34 = vpop.f32.mrb[58].mxu1 }
 0x7a0   :  { %14914 = vst [vmem:[#allocation84_spill] sm:$0xff] %v12384_v39  ;;  %14915 = vst [vmem:[#allocation218_spill] sm:$0xff] %v12387_v34  ;;  %v12389_v37 = vpop.f32.mrb[59].mxu1 }
 0x7a1   :  { %14916 = vst [vmem:[#allocation184_spill] sm:$0xff] %v12389_v37 }
 0x7a2   :  { %v12391_v0 = vpop.xlane.xlu0 %4373  ;;  %4952 = vbcast.lane.b32.xlu1 %v14893_v29, 360  ;;  %4948 = vbcast.lane.b32.xlu0 %v14893_v29, 352 }
 0x7a3   :  { %14917 = vst [vmem:[#allocation219_spill] sm:$0xff] %v12391_v0  ;;  %v12394_v60 = vpop.xlane.xlu1 %4375  ;;  %v12397_v63 = vpop.f32.mrb[60].mxu1 }
 0x7a4   :  { %14918 = vst [vmem:[#allocation185_spill] sm:$0xff] %v12394_v60  ;;  %14919 = vst [vmem:[#allocation220_spill] sm:$0xff] %v12397_v63  ;;  %v12399_v38 = vpop.f32.mrb[61].mxu1  ;;  %v14926_v60 = vld [vmem:[#allocation17_spill] sm:$0xff] }
 0x7a5   :  { %14920 = vst [vmem:[#allocation83_spill] sm:$0xff] %v12399_v38 }
 0x7a6   :  { %v12401_v10 = vpop.xlane.xlu0 %4377  ;;  %4960 = vbcast.lane.b32.xlu1 %v14893_v29, 376  ;;  %4956 = vbcast.lane.b32.xlu0 %v14893_v29, 368 }
 0x7a7   :  { %14921 = vst [vmem:[#allocation221_spill] sm:$0xff] %v12401_v10  ;;  %v12404_v39 = vpop.xlane.xlu1 %4379  ;;  %v12407_v37 = vpop.f32.mrb[62].mxu1 }
 0x7a8   :  { %14922 = vst [vmem:[#allocation86_spill] sm:$0xff] %v12404_v39  ;;  %14923 = vst [vmem:[#allocation223_spill] sm:$0xff] %v12407_v37  ;;  %v12409_v0 = vpop.f32.mrb[63].mxu1 }
 0x7a9   :  { %14924 = vst [vmem:[#allocation187_spill] sm:$0xff] %v12409_v0 }
 0x7aa   :  { %v12411_v34 = vpop.xlane.xlu0 %4381  ;;  %4971 = vbcast.lane.b32.xlu1 %v14926_v60, 264  ;;  %4967 = vbcast.lane.b32.xlu0 %v14926_v60, 256 }
 0x7ab   :  { %14925 = vst [vmem:[#allocation224_spill] sm:$0xff] %v12411_v34  ;;  %v12414_v30 = vpop.xlane.xlu1 %4383  ;;  %v12417_v38 = vpop.f32.mrb[64].mxu1  ;;  %v14962_v34 = vld [vmem:[#allocation19_spill] sm:$0xff] }
 0x7ac   :  { %14927 = vst [vmem:[#allocation85_spill] sm:$0xff] %v12414_v30  ;;  %14928 = vst [vmem:[#allocation25_spill] sm:$0xff] %v12417_v38  ;;  %v12419_v10 = vpop.f32.mrb[65].mxu1 }
 0x7ad   :  { %14929 = vst [vmem:[#allocation88_spill] sm:$0xff] %v12419_v10 }
 0x7ae   :  { %v12421_v63 = vpop.xlane.xlu0 %4385  ;;  %4979 = vbcast.lane.b32.xlu1 %v14926_v60, 280  ;;  %4975 = vbcast.lane.b32.xlu0 %v14926_v60, 272 }
 0x7af   :  { %14930 = vst [vmem:[#allocation225_spill] sm:$0xff] %v12421_v63  ;;  %v12424_v29 = vpop.xlane.xlu1 %4387  ;;  %v12427_v0 = vpop.f32.mrb[66].mxu1 }
 0x7b0   :  { %14931 = vst [vmem:[#allocation188_spill] sm:$0xff] %v12424_v29  ;;  %14932 = vst [vmem:[#allocation226_spill] sm:$0xff] %v12427_v0  ;;  %v12429_v37 = vpop.f32.mrb[67].mxu1 }
 0x7b1   :  { %14933 = vst [vmem:[#allocation189_spill] sm:$0xff] %v12429_v37 }
 0x7b2   :  { %v12431_v39 = vpop.xlane.xlu0 %4389  ;;  %4987 = vbcast.lane.b32.xlu1 %v14926_v60, 296  ;;  %4983 = vbcast.lane.b32.xlu0 %v14926_v60, 288 }
 0x7b3   :  { %14934 = vst [vmem:[#allocation63_spill] sm:$0xff] %v12431_v39  ;;  %v12434_v30 = vpop.xlane.xlu1 %4391 }
 0x7b4   :  { %14935 = vst [vmem:[#allocation227_spill] sm:$0xff] %v12434_v30 }
 0x7b6   :  { %v12437_v38 = vpop.xlane.xlu0 %4393  ;;  %4995 = vbcast.lane.b32.xlu1 %v14926_v60, 312  ;;  %4991 = vbcast.lane.b32.xlu0 %v14926_v60, 304 }
 0x7b7   :  { %14936 = vst [vmem:[#allocation87_spill] sm:$0xff] %v12437_v38  ;;  %v12440_v10 = vpop.xlane.xlu1 %4395 }
 0x7b8   :  { %14937 = vst [vmem:[#allocation193_spill] sm:$0xff] %v12440_v10 }
 0x7ba   :  { %v12443_v29 = vpop.xlane.xlu0 %4397  ;;  %5003 = vbcast.lane.b32.xlu1 %v14926_v60, 328  ;;  %4999 = vbcast.lane.b32.xlu0 %v14926_v60, 320 }
 0x7bb   :  { %14938 = vst [vmem:[#allocation228_spill] sm:$0xff] %v12443_v29  ;;  %v12446_v0 = vpop.xlane.xlu1 %4399 }
 0x7bc   :  { %14939 = vst [vmem:[#allocation90_spill] sm:$0xff] %v12446_v0 }
 0x7be   :  { %v12449_v37 = vpop.xlane.xlu0 %4401  ;;  %5011 = vbcast.lane.b32.xlu1 %v14926_v60, 344  ;;  %5007 = vbcast.lane.b32.xlu0 %v14926_v60, 336 }
 0x7bf   :  { %14940 = vst [vmem:[#allocation26_spill] sm:$0xff] %v12449_v37  ;;  %v12452_v30 = vpop.xlane.xlu1 %4403 }
 0x7c0   :  { %14941 = vst [vmem:[#allocation229_spill] sm:$0xff] %v12452_v30  ;;  %v14947_v30 = vld [vmem:[#allocation18_spill] sm:$0xff] }
 0x7c2   :  { %v12455_v38 = vpop.xlane.xlu0 %4405  ;;  %5019 = vbcast.lane.b32.xlu1 %v14926_v60, 360  ;;  %5015 = vbcast.lane.b32.xlu0 %v14926_v60, 352 }
 0x7c3   :  { %14942 = vst [vmem:[#allocation191_spill] sm:$0xff] %v12455_v38  ;;  %v12458_v10 = vpop.xlane.xlu1 %4407 }
 0x7c4   :  { %14943 = vst [vmem:[#allocation194_spill] sm:$0xff] %v12458_v10 }
 0x7c6   :  { %v12461_v29 = vpop.xlane.xlu0 %4409  ;;  %5027 = vbcast.lane.b32.xlu1 %v14926_v60, 376  ;;  %5023 = vbcast.lane.b32.xlu0 %v14926_v60, 368 }
 0x7c7   :  { %14944 = vst [vmem:[#allocation230_spill] sm:$0xff] %v12461_v29  ;;  %v12464_v0 = vpop.xlane.xlu1 %4411 }
 0x7c8   :  { %14945 = vst [vmem:[#allocation92_spill] sm:$0xff] %v12464_v0 }
 0x7ca   :  { %v12467_v37 = vpop.xlane.xlu0 %4413  ;;  %5038 = vbcast.lane.b32.xlu1 %v14947_v30, 264  ;;  %5034 = vbcast.lane.b32.xlu0 %v14947_v30, 256 }
 0x7cb   :  { %14946 = vst [vmem:[#allocation195_spill] sm:$0xff] %v12467_v37  ;;  %v12470_v39 = vpop.xlane.xlu1 %4415 }
 0x7cc   :  { %14948 = vst [vmem:[#allocation231_spill] sm:$0xff] %v12470_v39 }
 0x7ce   :  { %v12473_v38 = vpop.xlane.xlu0 %4417  ;;  %5046 = vbcast.lane.b32.xlu1 %v14947_v30, 280  ;;  %5042 = vbcast.lane.b32.xlu0 %v14947_v30, 272 }
 0x7cf   :  { %14949 = vst [vmem:[#allocation28_spill] sm:$0xff] %v12473_v38  ;;  %v12476_v10 = vpop.xlane.xlu1 %4419 }
 0x7d0   :  { %14950 = vst [vmem:[#allocation166_spill] sm:$0xff] %v12476_v10 }
 0x7d2   :  { %v12479_v29 = vpop.xlane.xlu0 %4421  ;;  %5054 = vbcast.lane.b32.xlu1 %v14947_v30, 296  ;;  %5050 = vbcast.lane.b32.xlu0 %v14947_v30, 288 }
 0x7d3   :  { %14951 = vst [vmem:[#allocation232_spill] sm:$0xff] %v12479_v29  ;;  %v12482_v60 = vpop.xlane.xlu1 %4423 }
 0x7d4   :  { %14952 = vst [vmem:[#allocation93_spill] sm:$0xff] %v12482_v60 }
 0x7d6   :  { %v12485_v0 = vpop.xlane.xlu0 %4425  ;;  %5062 = vbcast.lane.b32.xlu1 %v14947_v30, 312  ;;  %5058 = vbcast.lane.b32.xlu0 %v14947_v30, 304 }
 0x7d7   :  { %14953 = vst [vmem:[#allocation196_spill] sm:$0xff] %v12485_v0  ;;  %v12488_v39 = vpop.xlane.xlu1 %4427  ;;  %v12511_v0 = vstv %s7189_s27 }
 0x7d8   :  { %14954 = vst [vmem:[#allocation233_spill] sm:$0xff] %v12488_v39 }
 0x7da   :  { %v12491_v38 = vpop.xlane.xlu0 %4429  ;;  %5070 = vbcast.lane.b32.xlu1 %v14947_v30, 328  ;;  %5066 = vbcast.lane.b32.xlu0 %v14947_v30, 320 }
 0x7db   :  { %14955 = vst [vmem:[#allocation96_spill] sm:$0xff] %v12491_v38  ;;  %v12494_v10 = vpop.xlane.xlu1 %4431 }
 0x7dc   :  { %14956 = vst [vmem:[#allocation197_spill] sm:$0xff] %v12494_v10 }
 0x7de   :  { %v12497_v29 = vpop.xlane.xlu0 %4433  ;;  %5078 = vbcast.lane.b32.xlu1 %v14947_v30, 344  ;;  %5074 = vbcast.lane.b32.xlu0 %v14947_v30, 336 }
 0x7df   :  { %14957 = vst [vmem:[#allocation234_spill] sm:$0xff] %v12497_v29  ;;  %v12500_v60 = vpop.xlane.xlu1 %4435 }
 0x7e0   :  { %14958 = vst [vmem:[#allocation97_spill] sm:$0xff] %v12500_v60  ;;  %v4700_v60 = vmul.f32 %v12511_v0, %v11921_v18 }
 0x7e2   :  { %v12503_v39 = vpop.xlane.xlu0 %4437  ;;  %5086 = vbcast.lane.b32.xlu1 %v14947_v30, 360  ;;  %5082 = vbcast.lane.b32.xlu0 %v14947_v30, 352 }
 0x7e3   :  { %14959 = vst [vmem:[#allocation198_spill] sm:$0xff] %v12503_v39  ;;  %v12506_v38 = vpop.xlane.xlu1 %4439  ;;  %v4701_v39 = vmul.f32 %v12511_v0, %v11933_v56  ;;  %v4703_v56 = vmul.f32 %v12511_v0, %v11942_v58 }
 0x7e4   :  { %14960 = vst [vmem:[#allocation235_spill] sm:$0xff] %v12506_v38 }
 0x7e6   :  { %v12509_v10 = vpop.xlane.xlu0 %4441  ;;  %5094 = vbcast.lane.b32.xlu1 %v14947_v30, 376  ;;  %5090 = vbcast.lane.b32.xlu0 %v14947_v30, 368  ;;  %v4702_v30 = vmul.f32 %v12511_v0, %v11930_v1  ;;  %v4705_v1 = vmul.f32 %v12511_v0, %v11954_v14 }
 0x7e7   :  { %14961 = vst [vmem:[#allocation100_spill] sm:$0xff] %v12509_v10  ;;  %v4834_v29 = vpop.permute.xlu1 %4833 }
 0x7e8   :  { %v5492_v63 = vadd.f32 %v4834_v29, %v4700_v60 }
 0x7ea   :  { %v4838_v37 = vpop.permute.xlu0 %4837  ;;  %5105 = vbcast.lane.b32.xlu1 %v14962_v34, 264  ;;  %5101 = vbcast.lane.b32.xlu0 %v14962_v34, 256 }
 0x7eb   :  { %v5493_v38 = vadd.f32 %v4838_v37, %v4701_v39  ;;  %v4842_v26 = vpop.permute.xlu1 %4841 }
 0x7ec   :  { %v5494_v39 = vadd.f32 %v4842_v26, %v4702_v30  ;;  %v4706_v26 = vmul.f32 %v12511_v0, %v11957_v41  ;;  %v4709_v41 = vmul.f32 %v12511_v0, %v11978_v27 }
 0x7ed   :  { %v12521_v10 = vpack.c.bf16 %v5493_v38, %v5492_v63  ;;  %v4704_v63 = vmul.f32 %v12511_v0, %v11945_v46  ;;  %v4707_v46 = vmul.f32 %v12511_v0, %v11966_v55 }
 0x7ee   :  { %v4850_v18 = vpop.permute.xlu0 %4849  ;;  %5113 = vbcast.lane.b32.xlu1 %v14962_v34, 280  ;;  %5109 = vbcast.lane.b32.xlu0 %v14962_v34, 272 }
 0x7ef   :  { %14963 = vst [vmem:[#allocation199_spill] sm:$0xff] %v12521_v10  ;;  %v4846_v37 = vpop.permute.xlu1 %4845  ;;  %v5496_v58 = vadd.f32 %v4850_v18, %v4704_v63  ;;  %v4708_v18 = vmul.f32 %v12511_v0, %v11969_v16  ;;  %v4711_v16 = vmul.f32 %v12511_v0, %v11990_v59 }
 0x7f0   :  { %v5495_v29 = vadd.f32 %v4846_v37, %v4703_v56 }
 0x7f2   :  { %v12531_v38 = vpack.c.bf16 %v5495_v29, %v5494_v39  ;;  %v4858_v12 = vpop.permute.xlu0 %4857  ;;  %5121 = vbcast.lane.b32.xlu1 %v14962_v34, 296  ;;  %5117 = vbcast.lane.b32.xlu0 %v14962_v34, 288 }
 0x7f3   :  { %v4854_v60 = vpop.permute.xlu1 %4853  ;;  %v5498_v14 = vadd.f32 %v4858_v12, %v4706_v26  ;;  %v4710_v12 = vmul.f32 %v12511_v0, %v11981_v49  ;;  %v4713_v49 = vmul.f32 %v12511_v0, %v12002_v44 }
 0x7f4   :  { %v5497_v10 = vadd.f32 %v4854_v60, %v4705_v1 }
 0x7f6   :  { %v12539_v30 = vpack.c.bf16 %v5497_v10, %v5496_v58  ;;  %v4866_v56 = vpop.permute.xlu0 %4865  ;;  %5129 = vbcast.lane.b32.xlu1 %v14962_v34, 312  ;;  %5125 = vbcast.lane.b32.xlu0 %v14962_v34, 304 }
 0x7f7   :  { %v4862_v37 = vpop.permute.xlu1 %4861  ;;  %v5500_v55 = vadd.f32 %v4866_v56, %v4708_v18  ;;  %v4712_v56 = vmul.f32 %v12511_v0, %v11993_v45  ;;  %v4715_v45 = vmul.f32 %v12511_v0, %v12014_v13 }
 0x7f8   :  { %v5499_v39 = vadd.f32 %v4862_v37, %v4707_v46 }
 0x7fa   :  { %v12547_v29 = vpack.c.bf16 %v5499_v39, %v5498_v14  ;;  %v4874_v63 = vpop.permute.xlu0 %4873  ;;  %5137 = vbcast.lane.b32.xlu1 %v14962_v34, 328  ;;  %5133 = vbcast.lane.b32.xlu0 %v14962_v34, 320 }
 0x7fb   :  { %v4870_v10 = vpop.permute.xlu1 %4869  ;;  %v5502_v27 = vadd.f32 %v4874_v63, %v4710_v12  ;;  %v4714_v63 = vmul.f32 %v12511_v0, %v12005_v3  ;;  %v4717_v3 = vmul.f32 %v12511_v0, %v12026_v47 }
 0x7fc   :  { %v5501_v1 = vadd.f32 %v4870_v10, %v4709_v41 }
 0x7fe   :  { %v12555_v60 = vpack.c.bf16 %v5501_v1, %v5500_v55  ;;  %v4882_v58 = vpop.permute.xlu0 %4881  ;;  %5145 = vbcast.lane.b32.xlu1 %v14962_v34, 344  ;;  %5141 = vbcast.lane.b32.xlu0 %v14962_v34, 336  ;;  %v14964_v55 = vld [vmem:[#allocation33_spill] sm:$0xff] }
 0x7ff   :  { %v4878_v26 = vpop.permute.xlu1 %4877  ;;  %v5504_v59 = vadd.f32 %v4882_v58, %v4712_v56  ;;  %v4716_v58 = vmul.f32 %v12511_v0, %v12019_v36  ;;  %v4718_v56 = vmul.f32 %v12511_v0, %v12031_v52  ;;  %v4719_v36 = vmul.f32 %v12511_v0, %v12038_v33 }
 0x800   :  { %v5503_v46 = vadd.f32 %v4878_v26, %v4711_v16  ;;  %v4721_v52 = vmul.f32 %v12511_v0, %v12050_v62  ;;  %v4723_v62 = vmul.f32 %v12511_v0, %v12062_v61  ;;  %v4725_v61 = vmul.f32 %v12511_v0, %v12078_v28 }
 0x801   :  { %v4727_v28 = vmul.f32 %v12511_v0, %v12094_v4 }
 0x802   :  { %v12563_v37 = vpack.c.bf16 %v5503_v46, %v5502_v27  ;;  %v4890_v14 = vpop.permute.xlu0 %4889  ;;  %5153 = vbcast.lane.b32.xlu1 %v14962_v34, 360  ;;  %5149 = vbcast.lane.b32.xlu0 %v14962_v34, 352 }
 0x803   :  { %v4886_v39 = vpop.permute.xlu1 %4885  ;;  %v5506_v44 = vadd.f32 %v4890_v14, %v4714_v63  ;;  %v4720_v63 = vmul.f32 %v12511_v0, %v12043_v23  ;;  %v4722_v23 = vmul.f32 %v12511_v0, %v12055_v21  ;;  %v4724_v21 = vmul.f32 %v12511_v0, %v12069_v31 }
 0x804   :  { %v5505_v18 = vadd.f32 %v4886_v39, %v4713_v49  ;;  %v14965_v39 = vld [vmem:[#allocation35_spill] sm:$0xff]  ;;  %v4726_v31 = vmul.f32 %v12511_v0, %v12085_v35  ;;  %v4601_v35 = vmul.f32 %v8665_v48, %v11916_v20 }
 0x806   :  { %v12571_v41 = vpack.c.bf16 %v5505_v18, %v5504_v59  ;;  %v4901_v10 = vpop.permute.xlu0 %4900  ;;  %5168 = vbcast.lane.b32.xlu1 %v14964_v55, 256  ;;  %5157 = vbcast.lane.b32.xlu0 %v14962_v34, 368 }
 0x807   :  { %v4894_v1 = vpop.permute.xlu1 %4893  ;;  %v5508_v13 = vadd.f32 %v4901_v10, %v4716_v58 }
 0x808   :  { %v5507_v12 = vadd.f32 %v4894_v1, %v4715_v45 }
 0x80a   :  { %v12579_v16 = vpack.c.bf16 %v5507_v12, %v5506_v44  ;;  %v4909_v26 = vpop.permute.xlu0 %4908  ;;  %5176 = vbcast.lane.b32.xlu1 %v14964_v55, 272  ;;  %5172 = vbcast.lane.b32.xlu0 %v14964_v55, 264 }
 0x80b   :  { %v4905_v27 = vpop.permute.xlu1 %4904  ;;  %v5510_v47 = vadd.f32 %v4909_v26, %v4718_v56  ;;  %v14966_v26 = vld [vmem:[#allocation36_spill] sm:$0xff] }
 0x80c   :  { %v5509_v46 = vadd.f32 %v4905_v27, %v4717_v3 }
 0x80e   :  { %v12587_v14 = vpack.c.bf16 %v5509_v46, %v5508_v13  ;;  %v4917_v49 = vpop.permute.xlu0 %4916  ;;  %5235 = vbcast.lane.b32.xlu1 %v14965_v39, 256  ;;  %5180 = vbcast.lane.b32.xlu0 %v14964_v55, 280 }
 0x80f   :  { %v4913_v59 = vpop.permute.xlu1 %4912  ;;  %v5512_v33 = vadd.f32 %v4917_v49, %v4720_v63  ;;  %v4728_v63 = vmul.f32 %v12511_v0, %v12101_v11  ;;  %v4730_v11 = vmul.f32 %v12511_v0, %v4601_v35 }
 0x810   :  { %v5511_v18 = vadd.f32 %v4913_v59, %v4719_v36  ;;  %v8667_v59 = vpop.eup %8666 }
 0x812   :  { %v12595_v10 = vpack.c.bf16 %v5511_v18, %v5510_v47  ;;  %v4925_v45 = vpop.permute.xlu0 %4924  ;;  %5243 = vbcast.lane.b32.xlu1 %v14965_v39, 272  ;;  %5239 = vbcast.lane.b32.xlu0 %v14965_v39, 264  ;;  %v8669_v18 = vpop.eup %8668 }
 0x813   :  { %v4921_v1 = vpop.permute.xlu1 %4920  ;;  %v5514_v53 = vadd.f32 %v4925_v45, %v4722_v23 }
 0x814   :  { %v5513_v44 = vadd.f32 %v4921_v1, %v4721_v52  ;;  %v4729_v52 = vmul.f32 %v12511_v0, %v12110_v25  ;;  %v14967_v1 = vld [vmem:[#allocation32_spill] sm:$0xff]  ;;  %v14968_v25 = vld [vmem:[#allocation149_spill] sm:$0xff] }
 0x816   :  { %v12605_v12 = vpack.c.bf16 %v5513_v44, %v5512_v33  ;;  %v4933_v58 = vpop.permute.xlu0 %4932  ;;  %5302 = vbcast.lane.b32.xlu1 %v14966_v26, 256  ;;  %5247 = vbcast.lane.b32.xlu0 %v14965_v39, 280  ;;  %v4602_v33 = vmul.f32 %v8667_v59, %v14967_v1  ;;  %v8671_v44 = vpop.eup %8670 }
 0x817   :  { %v4929_v3 = vpop.permute.xlu1 %4928  ;;  %v5516_v15 = vadd.f32 %v4933_v58, %v4724_v21  ;;  %v8673_v23 = vpop.eup %8672 }
 0x818   :  { %v5515_v27 = vadd.f32 %v4929_v3, %v4723_v62  ;;  %v4603_v62 = vmul.f32 %v8669_v18, %v14968_v25  ;;  %v14972_v25 = vld [vmem:[#allocation34_spill] sm:$0xff] }
 0x81a   :  { %v12615_v19 = vpack.c.bf16 %v5515_v27, %v5514_v53  ;;  %v4941_v13 = vpop.permute.xlu0 %4940  ;;  %5184 = vbcast.lane.b32.xlu1 %v14964_v55, 288  ;;  %5306 = vbcast.lane.b32.xlu0 %v14966_v26, 264  ;;  %v4731_v53 = vmul.f32 %v12511_v0, %v4602_v33  ;;  %v14969_v27 = vld [vmem:[#allocation146_spill] sm:$0xff] }
 0x81b   :  { %v4937_v46 = vpop.permute.xlu1 %4936  ;;  %v5518_v8 = vadd.f32 %v4941_v13, %v4726_v31  ;;  %v4604_v21 = vmul.f32 %v8671_v44, %v14969_v27  ;;  %v8675_v13 = vpop.eup %8674  ;;  %v14973_v27 = vld [vmem:[#allocation148_spill] sm:$0xff] }
 0x81c   :  { %v5517_v56 = vadd.f32 %v4937_v46, %v4725_v61  ;;  %v4605_v46 = vmul.f32 %v8673_v23, %v11938_v50  ;;  %v14971_v23 = vld [vmem:[#allocation159_spill] sm:$0xff] }
 0x81d   :  { %8696 = vrcp.f32 %v14971_v23 }
 0x81e   :  { %v12625_v49 = vpack.c.bf16 %v5517_v56, %v5516_v15  ;;  %v4949_v36 = vpop.permute.xlu0 %4948  ;;  %5310 = vbcast.lane.b32.xlu1 %v14966_v26, 272  ;;  %5188 = vbcast.lane.b32.xlu0 %v14964_v55, 296  ;;  %v8677_v15 = vpop.eup %8676  ;;  %v4732_v56 = vmul.f32 %v12511_v0, %v4603_v62  ;;  %8698 = vrcp.f32 %v14972_v25  ;;  %v14983_v25 = vld [vmem:[#allocation163_spill] sm:$0xff] }
 0x81f   :  { %v4945_v47 = vpop.permute.xlu1 %4944  ;;  %v5520_v20 = vadd.f32 %v4949_v36, %v4728_v63  ;;  %v4733_v36 = vmul.f32 %v12511_v0, %v4604_v21  ;;  %v8679_v59 = vpop.eup %8678  ;;  %v4607_v35 = vmul.f32 %v8677_v15, %v11950_v2 }
 0x820   :  { %v5519_v40 = vadd.f32 %v4945_v47, %v4727_v28  ;;  %v4606_v28 = vmul.f32 %v8675_v13, %v11935_v43  ;;  %v4734_v47 = vmul.f32 %v12511_v0, %v4605_v46  ;;  %v4608_v63 = vmul.f32 %v8679_v59, %v11947_v57  ;;  %v14977_v59 = vld [vmem:[#allocation47_spill] sm:$0xff] }
 0x821   :  { %v4736_v33 = vmul.f32 %v12511_v0, %v4607_v35 }
 0x822   :  { %v12636_v45 = vpack.c.bf16 %v5519_v40, %v5518_v8  ;;  %v4957_v4 = vpop.permute.xlu0 %4956  ;;  %5251 = vbcast.lane.b32.xlu1 %v14965_v39, 288  ;;  %5314 = vbcast.lane.b32.xlu0 %v14966_v26, 280  ;;  %v8681_v8 = vpop.eup %8680  ;;  %v4735_v18 = vmul.f32 %v12511_v0, %v4606_v28  ;;  %v14976_v28 = vld [vmem:[#allocation109_spill] sm:$0xff] }
 0x823   :  { %v4953_v54 = vpop.permute.xlu1 %4952  ;;  %v5522_v17 = vadd.f32 %v4957_v4, %v4730_v11  ;;  %v8683_v4 = vpop.eup %8682  ;;  %v4609_v1 = vmul.f32 %v8681_v8, %v11962_v51 }
 0x824   :  { %v5521_v7 = vadd.f32 %v4953_v54, %v4729_v52  ;;  %v8685_v2 = vpop.eup %8684  ;;  %v4737_v54 = vmul.f32 %v12511_v0, %v4608_v63 }
 0x825   :  { %v8687_v11 = vpop.eup %8686  ;;  %v4738_v62 = vmul.f32 %v12511_v0, %v4609_v1  ;;  %v4611_v21 = vmul.f32 %v8685_v2, %v14973_v27  ;;  %v14980_v1 = vld [vmem:[#allocation111_spill] sm:$0xff]  ;;  %v14984_v27 = vld [vmem:[#allocation113_spill] sm:$0xff] }
 0x826   :  { %v12646_v58 = vpack.c.bf16 %v5521_v7, %v5520_v20  ;;  %v4968_v3 = vpop.permute.xlu0 %4967  ;;  %5192 = vbcast.lane.b32.xlu1 %v14964_v55, 304  ;;  %5255 = vbcast.lane.b32.xlu0 %v14965_v39, 296  ;;  %v14970_v20 = vld [vmem:[#allocation45_spill] sm:$0xff] }
 0x827   :  { %v4961_v6 = vpop.permute.xlu1 %4960  ;;  %v5524_v32 = vadd.f32 %v4968_v3, %v4732_v56  ;;  %v4610_v7 = vmul.f32 %v8683_v4, %v14970_v20  ;;  %v8689_v3 = vpop.eup %8688  ;;  %v14975_v56 = vld [vmem:[#allocation70_spill] sm:$0xff] }
 0x828   :  { %v5523_v61 = vadd.f32 %v4961_v6, %v4731_v53  ;;  %v8691_v46 = vpop.eup %8690  ;;  %8700 = vrcp.f32 %v14975_v56  ;;  %v14986_v56 = vld [vmem:[#allocation150_spill] sm:$0xff] }
 0x829   :  { %v4739_v6 = vmul.f32 %v12511_v0, %v4610_v7  ;;  %8702 = vrcp.f32 %v14976_v28 }
 0x82a   :  { %v12657_v48 = vpack.c.bf16 %v5523_v61, %v5522_v17  ;;  %v4976_v31 = vpop.permute.xlu0 %4975  ;;  %5318 = vbcast.lane.b32.xlu1 %v14966_v26, 288  ;;  %5196 = vbcast.lane.b32.xlu0 %v14964_v55, 312  ;;  %v14974_v17 = vld [vmem:[#allocation48_spill] sm:$0xff] }
 0x82b   :  { %v4972_v9 = vpop.permute.xlu1 %4971  ;;  %v5526_v42 = vadd.f32 %v4976_v31, %v4734_v47  ;;  %v4612_v61 = vmul.f32 %v8687_v11, %v14974_v17 }
 0x82c   :  { %v5525_v50 = vadd.f32 %v4972_v9, %v4733_v36  ;;  %v4613_v9 = vmul.f32 %v8689_v3, %v14977_v59  ;;  %v14987_v59 = vld [vmem:[#allocation165_spill] sm:$0xff] }
 0x82d   :  { %v4741_v35 = vmul.f32 %v12511_v0, %v4612_v61 }
 0x82e   :  { %v12666_v40 = vpack.c.bf16 %v5525_v50, %v5524_v32  ;;  %v4984_v43 = vpop.permute.xlu0 %4983  ;;  %5259 = vbcast.lane.b32.xlu1 %v14965_v39, 304  ;;  %5322 = vbcast.lane.b32.xlu0 %v14966_v26, 296  ;;  %v8693_v32 = vpop.eup %8692  ;;  %v4740_v50 = vmul.f32 %v12511_v0, %v4611_v21  ;;  %v4742_v2 = vmul.f32 %v12511_v0, %v4613_v9  ;;  %v14985_v21 = vld [vmem:[#allocation89_spill] sm:$0xff] }
 0x82f   :  { %v4980_v22 = vpop.permute.xlu1 %4979  ;;  %v5528_v5 = vadd.f32 %v4984_v43, %v4736_v33  ;;  %v14978_v43 = vld [vmem:[#allocation151_spill] sm:$0xff]  ;;  %v8695_v63 = vpop.eup %8694 }
 0x830   :  { %v5527_v52 = vadd.f32 %v4980_v22, %v4735_v18  ;;  %v4614_v18 = vmul.f32 %v8691_v46, %v14978_v43  ;;  %v14979_v22 = vld [vmem:[#allocation60_spill] sm:$0xff]  ;;  %v8697_v33 = vpop.eup %8696 }
 0x831   :  { %8704 = vrcp.f32 %v14979_v22 }
 0x832   :  { %v12677_v44 = vpack.c.bf16 %v5527_v52, %v5526_v42  ;;  %v4992_v57 = vpop.permute.xlu0 %4991  ;;  %5200 = vbcast.lane.b32.xlu1 %v14964_v55, 320  ;;  %5263 = vbcast.lane.b32.xlu0 %v14965_v39, 312  ;;  %8706 = vrcp.f32 %v14980_v1  ;;  %v4743_v11 = vmul.f32 %v12511_v0, %v4614_v18  ;;  %v14989_v18 = vld [vmem:[#allocation91_spill] sm:$0xff] }
 0x833   :  { %v4988_v24 = vpop.permute.xlu1 %4987  ;;  %v5530_v31 = vadd.f32 %v4992_v57, %v4738_v62  ;;  %8708 = vrcp.f32 %v14983_v25 }
 0x834   :  { %v5529_v51 = vadd.f32 %v4988_v24, %v4737_v54  ;;  %v14981_v54 = vld [vmem:[#allocation192_spill] sm:$0xff]  ;;  %v14982_v24 = vld [vmem:[#allocation158_spill] sm:$0xff]  ;;  %8710 = vrcp.f32 %v14984_v27 }
 0x835   :  { %v4615_v20 = vmul.f32 %v8693_v32, %v14981_v54  ;;  %v4616_v23 = vmul.f32 %v8695_v63, %v14982_v24  ;;  %8712 = vrcp.f32 %v14987_v59 }
 0x836   :  { %v12686_v53 = vpack.c.bf16 %v5529_v51, %v5528_v5  ;;  %v5000_v13 = vpop.permute.xlu0 %4999  ;;  %5326 = vbcast.lane.b32.xlu1 %v14966_v26, 304  ;;  %5204 = vbcast.lane.b32.xlu0 %v14964_v55, 328  ;;  %v8699_v5 = vpop.eup %8698 }
 0x837   :  { %v4996_v15 = vpop.permute.xlu1 %4995  ;;  %v5532_v42 = vadd.f32 %v5000_v13, %v4740_v50  ;;  %v4617_v13 = vmul.f32 %v8697_v33, %v14985_v21  ;;  %v4744_v17 = vmul.f32 %v12511_v0, %v4615_v20  ;;  %v14988_v50 = vld [vmem:[#allocation61_spill] sm:$0xff]  ;;  %v14991_v33 = vld [vmem:[#allocation115_spill] sm:$0xff] }
 0x838   :  { %v5531_v36 = vadd.f32 %v4996_v15, %v4739_v6  ;;  %v8701_v6 = vpop.eup %8700  ;;  %v4745_v15 = vmul.f32 %v12511_v0, %v4616_v23  ;;  %8714 = vrcp.f32 %v14988_v50  ;;  %v14998_v50 = vld [vmem:[#allocation52_spill] sm:$0xff] }
 0x839   :  { %v4619_v63 = vmul.f32 %v8701_v6, %v14989_v18  ;;  %8716 = vrcp.f32 %v14991_v33  ;;  %v14995_v6 = vld [vmem:[#allocation117_spill] sm:$0xff] }
 0x83a   :  { %v12697_v47 = vpack.c.bf16 %v5531_v36, %v5530_v31  ;;  %v5008_v8 = vpop.permute.xlu0 %5007  ;;  %5267 = vbcast.lane.b32.xlu1 %v14965_v39, 320  ;;  %5330 = vbcast.lane.b32.xlu0 %v14966_v26, 312  ;;  %v4618_v31 = vmul.f32 %v8699_v5, %v14986_v56  ;;  %v8703_v36 = vpop.eup %8702 }
 0x83b   :  { %v5004_v4 = vpop.permute.xlu1 %5003  ;;  %v5534_v62 = vadd.f32 %v5008_v8, %v4742_v2  ;;  %v4746_v8 = vmul.f32 %v12511_v0, %v4617_v13  ;;  %v4748_v5 = vmul.f32 %v12511_v0, %v4619_v63  ;;  %v14999_v63 = vld [vmem:[#allocation119_spill] sm:$0xff] }
 0x83c   :  { %v5533_v52 = vadd.f32 %v5004_v4, %v4741_v35  ;;  %v8705_v35 = vpop.eup %8704  ;;  %v4747_v22 = vmul.f32 %v12511_v0, %v4618_v31 }
 0x83d   :  { %v8707_v1 = vpop.eup %8706 }
 0x83e   :  { %v12706_v57 = vpack.c.bf16 %v5533_v52, %v5532_v42  ;;  %v5016_v7 = vpop.permute.xlu0 %5015  ;;  %5208 = vbcast.lane.b32.xlu1 %v14964_v55, 336  ;;  %5271 = vbcast.lane.b32.xlu0 %v14965_v39, 328  ;;  %v14990_v42 = vld [vmem:[#allocation153_spill] sm:$0xff]  ;;  %v8709_v23 = vpop.eup %8708 }
 0x83f   :  { %v5012_v51 = vpop.permute.xlu1 %5011  ;;  %v5536_v9 = vadd.f32 %v5016_v7, %v4744_v17  ;;  %v4620_v52 = vmul.f32 %v8703_v36, %v14990_v42  ;;  %v14992_v7 = vld [vmem:[#allocation164_spill] sm:$0xff]  ;;  %v8711_v21 = vpop.eup %8710 }
 0x840   :  { %v5535_v3 = vadd.f32 %v5012_v51, %v4743_v11  ;;  %8718 = vrcp.f32 %v14992_v7  ;;  %v14993_v11 = vld [vmem:[#allocation94_spill] sm:$0xff]  ;;  %v8713_v31 = vpop.eup %8712  ;;  %v15000_v42 = vld [vmem:[#allocation68_spill] sm:$0xff] }
 0x841   :  { %v4621_v24 = vmul.f32 %v8705_v35, %v14993_v11  ;;  %8720 = vrcp.f32 %v14995_v6  ;;  %v15002_v11 = vld [vmem:[#allocation152_spill] sm:$0xff] }
 0x842   :  { %v12717_v61 = vpack.c.bf16 %v5535_v3, %v5534_v62  ;;  %v5024_v46 = vpop.permute.xlu0 %5023  ;;  %5334 = vbcast.lane.b32.xlu1 %v14966_v26, 320  ;;  %5212 = vbcast.lane.b32.xlu0 %v14964_v55, 344  ;;  %v4749_v62 = vmul.f32 %v12511_v0, %v4620_v52  ;;  %v14994_v3 = vld [vmem:[#allocation49_spill] sm:$0xff]  ;;  %v8715_v35 = vpop.eup %8714  ;;  %v15001_v52 = vld [vmem:[#allocation98_spill] sm:$0xff] }
 0x843   :  { %v5020_v28 = vpop.permute.xlu1 %5019  ;;  %v5538_v54 = vadd.f32 %v5024_v46, %v4746_v8  ;;  %v4622_v27 = vmul.f32 %v8707_v1, %v14994_v3  ;;  %v4750_v56 = vmul.f32 %v12511_v0, %v4621_v24  ;;  %v4624_v8 = vmul.f32 %v8711_v21, %v14998_v50 }
 0x844   :  { %v5537_v32 = vadd.f32 %v5020_v28, %v4745_v15  ;;  %v14996_v15 = vld [vmem:[#allocation169_spill] sm:$0xff]  ;;  %v14997_v28 = vld [vmem:[#allocation95_spill] sm:$0xff]  ;;  %v4625_v1 = vmul.f32 %v8713_v31, %v15001_v52  ;;  %v4626_v24 = vmul.f32 %v8715_v35, %v15002_v11  ;;  %v15009_v35 = vld [vmem:[#allocation102_spill] sm:$0xff] }
 0x845   :  { %8722 = vrcp.f32 %v14996_v15  ;;  %v4623_v59 = vmul.f32 %v8709_v23, %v14997_v28  ;;  %v4753_v7 = vmul.f32 %v12511_v0, %v4624_v8  ;;  %v15008_v8 = vld [vmem:[#allocation170_spill] sm:$0xff] }
 0x846   :  { %v12726_v43 = vpack.c.bf16 %v5537_v32, %v5536_v9  ;;  %v5035_v4 = vpop.permute.xlu0 %5034  ;;  %5275 = vbcast.lane.b32.xlu1 %v14965_v39, 336  ;;  %5338 = vbcast.lane.b32.xlu0 %v14966_v26, 328  ;;  %v4751_v32 = vmul.f32 %v12511_v0, %v4622_v27  ;;  %8724 = vrcp.f32 %v14999_v63  ;;  %v15004_v27 = vld [vmem:[#allocation67_spill] sm:$0xff]  ;;  %v4754_v21 = vmul.f32 %v12511_v0, %v4625_v1 }
 0x847   :  { %v5028_v2 = vpop.permute.xlu1 %5027  ;;  %v5540_v17 = vadd.f32 %v5035_v4, %v4748_v5  ;;  %8726 = vrcp.f32 %v15000_v42  ;;  %v4752_v33 = vmul.f32 %v12511_v0, %v4623_v59  ;;  %v15010_v1 = vld [vmem:[#allocation51_spill] sm:$0xff] }
 0x848   :  { %v5539_v20 = vadd.f32 %v5028_v2, %v4747_v22  ;;  %v8717_v2 = vpop.eup %8716 }
 0x84a   :  { %v12737_v51 = vpack.c.bf16 %v5539_v20, %v5538_v54  ;;  %v5043_v25 = vpop.permute.xlu0 %5042  ;;  %5216 = vbcast.lane.b32.xlu1 %v14964_v55, 352  ;;  %5279 = vbcast.lane.b32.xlu0 %v14965_v39, 344  ;;  %v8719_v23 = vpop.eup %8718 }
 0x84b   :  { %v5039_v13 = vpop.permute.xlu1 %5038  ;;  %v5542_v4 = vadd.f32 %v5043_v25, %v4750_v56  ;;  %v15003_v25 = vld [vmem:[#allocation121_spill] sm:$0xff]  ;;  %v4755_v56 = vmul.f32 %v12511_v0, %v4626_v24 }
 0x84c   :  { %v5541_v46 = vadd.f32 %v5039_v13, %v4749_v62  ;;  %8728 = vrcp.f32 %v15003_v25  ;;  %v8721_v13 = vpop.eup %8720 }
 0x84d   :  { %8730 = vrcp.f32 %v15004_v27 }
 0x84e   :  { %v12746_v36 = vpack.c.bf16 %v5541_v46, %v5540_v17  ;;  %v5051_v9 = vpop.permute.xlu0 %5050  ;;  %5342 = vbcast.lane.b32.xlu1 %v14966_v26, 336  ;;  %5220 = vbcast.lane.b32.xlu0 %v14964_v55, 360  ;;  %v15005_v17 = vld [vmem:[#allocation99_spill] sm:$0xff] }
 0x84f   :  { %v5047_v18 = vpop.permute.xlu1 %5046  ;;  %v5544_v62 = vadd.f32 %v5051_v9, %v4752_v33  ;;  %v4627_v46 = vmul.f32 %v8717_v2, %v15005_v17  ;;  %v8723_v28 = vpop.eup %8722  ;;  %v15007_v9 = vld [vmem:[#allocation135_spill] sm:$0xff]  ;;  %v15014_v17 = vld [vmem:[#allocation54_spill] sm:$0xff] }
 0x850   :  { %v5543_v22 = vadd.f32 %v5047_v18, %v4751_v32  ;;  %8732 = vrcp.f32 %v15007_v9  ;;  %v4629_v18 = vmul.f32 %v8721_v13, %v15009_v35  ;;  %v8725_v63 = vpop.eup %8724  ;;  %v4630_v2 = vmul.f32 %v8723_v28, %v15010_v1  ;;  %v15016_v28 = vld [vmem:[#allocation172_spill] sm:$0xff] }
 0x851   :  { %8734 = vrcp.f32 %v15008_v8  ;;  %v8727_v33 = vpop.eup %8726 }
 0x852   :  { %v12757_v54 = vpack.c.bf16 %v5543_v22, %v5542_v4  ;;  %v5059_v20 = vpop.permute.xlu0 %5058  ;;  %5161 = vbcast.lane.b32.xlu1 %v14962_v34, 376  ;;  %5346 = vbcast.lane.b32.xlu0 %v14966_v26, 344  ;;  %v15006_v34 = vld [vmem:[#allocation155_spill] sm:$0xff]  ;;  %v4756_v4 = vmul.f32 %v12511_v0, %v4627_v46  ;;  %v4759_v13 = vmul.f32 %v12511_v0, %v4630_v2 }
 0x853   :  { %v5055_v5 = vpop.permute.xlu1 %5054  ;;  %v4628_v31 = vmul.f32 %v8719_v23, %v15006_v34  ;;  %v5546_v32 = vadd.f32 %v5059_v20, %v4754_v21  ;;  %v15011_v20 = vld [vmem:[#allocation126_spill] sm:$0xff]  ;;  %v15012_v23 = vld [vmem:[#allocation69_spill] sm:$0xff]  ;;  %v4632_v46 = vmul.f32 %v8727_v33, %v15014_v17 }
 0x854   :  { %v5545_v3 = vadd.f32 %v5055_v5, %v4753_v7  ;;  %8736 = vrcp.f32 %v15011_v20  ;;  %v4758_v5 = vmul.f32 %v12511_v0, %v4629_v18 }
 0x855   :  { %v4757_v52 = vmul.f32 %v12511_v0, %v4628_v31  ;;  %8738 = vrcp.f32 %v15012_v23  ;;  %v4761_v18 = vmul.f32 %v12511_v0, %v4632_v46  ;;  %v15021_v23 = vld [vmem:[#allocation106_spill] sm:$0xff] }
 0x856   :  { %v12766_v6 = vpack.c.bf16 %v5545_v3, %v5544_v62  ;;  %v5067_v15 = vpop.permute.xlu0 %5066  ;;  %5287 = vbcast.lane.b32.xlu1 %v14965_v39, 360  ;;  %5283 = vbcast.lane.b32.xlu0 %v14965_v39, 352  ;;  %v8729_v25 = vpop.eup %8728  ;;  %v15013_v3 = vld [vmem:[#allocation104_spill] sm:$0xff] }
 0x857   :  { %v5063_v59 = vpop.permute.xlu1 %5062  ;;  %v5548_v11 = vadd.f32 %v5067_v15, %v4756_v4  ;;  %v4631_v27 = vmul.f32 %v8725_v63, %v15013_v3  ;;  %v15015_v15 = vld [vmem:[#allocation128_spill] sm:$0xff]  ;;  %v15018_v63 = vld [vmem:[#allocation154_spill] sm:$0xff] }
 0x858   :  { %v5547_v50 = vadd.f32 %v5063_v59, %v4755_v56  ;;  %v8731_v56 = vpop.eup %8730  ;;  %8740 = vrcp.f32 %v15015_v15  ;;  %v15017_v59 = vld [vmem:[#allocation103_spill] sm:$0xff] }
 0x859   :  { %8742 = vrcp.f32 %v15016_v28  ;;  %v4633_v9 = vmul.f32 %v8729_v25, %v15017_v59  ;;  %v4634_v4 = vmul.f32 %v8731_v56, %v15018_v63  ;;  %v15025_v15 = vld [vmem:[#allocation199_spill] sm:$0xff]  ;;  %v15026_v28 = vld [vmem:[#allocation105_spill] sm:$0xff] }
 0x85a   :  { %v12777_v22 = vpack.c.bf16 %v5547_v50, %v5546_v32  ;;  %v5075_v42 = vpop.permute.xlu0 %5074  ;;  %5228 = vbcast.lane.b32.xlu1 %v14964_v55, 376  ;;  %5224 = vbcast.lane.b32.xlu0 %v14964_v55, 368  ;;  %v8733_v32 = vpop.eup %8732  ;;  %v4760_v50 = vmul.f32 %v12511_v0, %v4631_v27  ;;  %v15022_v27 = vld [vmem:[#allocation157_spill] sm:$0xff] }
 0x85b   :  { %v5071_v7 = vpop.permute.xlu1 %5070  ;;  %v5550_v34 = vadd.f32 %v5075_v42, %v4758_v5  ;;  %v15019_v42 = vld [vmem:[#allocation130_spill] sm:$0xff]  ;;  %v4762_v20 = vmul.f32 %v12511_v0, %v4633_v9  ;;  %v4635_v5 = vmul.f32 %v8733_v32, %v15021_v23  ;;  %v4763_v3 = vmul.f32 %v12511_v0, %v4634_v4  ;;  %v15027_v63 = vld [vmem:[#allocation53_spill] sm:$0xff] }
 0x85c   :  { %v5549_v24 = vadd.f32 %v5071_v7, %v4757_v52  ;;  %v8735_v52 = vpop.eup %8734  ;;  %8744 = vrcp.f32 %v15019_v42  ;;  %v15020_v7 = vld [vmem:[#allocation129_spill] sm:$0xff] }
 0x85d   :  { %8746 = vrcp.f32 %v15020_v7  ;;  %v4764_v32 = vmul.f32 %v12511_v0, %v4635_v5  ;;  %v5786_v7 = vunpack.c.l.b16 %v12587_v14 }
 0x85e   :  { %v12786_v62 = vpack.c.bf16 %v5549_v24, %v5548_v11  ;;  %v5083_v21 = vpop.permute.xlu0 %5082  ;;  %5354 = vbcast.lane.b32.xlu1 %v14966_v26, 360  ;;  %5350 = vbcast.lane.b32.xlu0 %v14966_v26, 352  ;;  %v8737_v11 = vpop.eup %8736 }
 0x85f   :  { %v5079_v55 = vpop.permute.xlu1 %5078  ;;  %v5552_v2 = vadd.f32 %v5083_v21, %v4760_v50  ;;  %v8739_v17 = vpop.eup %8738  ;;  %v15023_v21 = vld [vmem:[#allocation71_spill] sm:$0xff]  ;;  %v4637_v59 = vmul.f32 %v8737_v11, %v15026_v28  ;;  %v15034_v28 = vld [vmem:[#allocation29_spill] sm:$0xff] }
 0x860   :  { %v5551_v31 = vadd.f32 %v5079_v55, %v4759_v13  ;;  %v4636_v13 = vmul.f32 %v8735_v52, %v15022_v27  ;;  %8748 = vrcp.f32 %v15023_v21  ;;  %v15024_v55 = vld [vmem:[#allocation131_spill] sm:$0xff]  ;;  %v4638_v4 = vmul.f32 %v8739_v17, %v15027_v63 }
 0x861   :  { %8750 = vrcp.f32 %v15024_v55  ;;  %v4766_v11 = vmul.f32 %v12511_v0, %v4637_v59 }
 0x862   :  { %v12797_v8 = vpack.c.bf16 %v5551_v31, %v5550_v34  ;;  %v5091_v35 = vpop.permute.xlu0 %5090  ;;  %5295 = vbcast.lane.b32.xlu1 %v14965_v39, 376  ;;  %5291 = vbcast.lane.b32.xlu0 %v14965_v39, 368  ;;  %v5770_v34 = vunpack.c.l.b16 %v15025_v15  ;;  %v5771_v31 = vunpack.c.h.b16 %v15025_v15  ;;  %v8741_v9 = vpop.eup %8740  ;;  %v4767_v17 = vmul.f32 %v12511_v0, %v4638_v4  ;;  %v15033_v15 = vld [vmem:[#allocation136_spill] sm:$0xff] }
 0x863   :  { %v5087_v1 = vpop.permute.xlu1 %5086  ;;  %v5554_v46 = vadd.f32 %v5091_v35, %v4762_v20  ;;  %v8743_v35 = vpop.eup %8742  ;;  %v5787_v20 = vunpack.c.h.b16 %v12587_v14 }
 0x864   :  { %v5553_v33 = vadd.f32 %v5087_v1, %v4761_v18  ;;  %v15028_v1 = vld [vmem:[#allocation174_spill] sm:$0xff] }
 0x865   :  { %8752 = vrcp.f32 %v15028_v1  ;;  %v15036_v1 = vld [vmem:[#allocation138_spill] sm:$0xff] }
 0x866   :  { %v12806_v24 = vpack.c.bf16 %v5553_v33, %v5552_v2  ;;  %v5102_v25 = vpop.permute.xlu0 %5101  ;;  %5362 = vbcast.lane.b32.xlu1 %v14966_v26, 376  ;;  %5358 = vbcast.lane.b32.xlu0 %v14966_v26, 368  ;;  %v4765_v26 = vmul.f32 %v12511_v0, %v4636_v13  ;;  %v15029_v33 = vld [vmem:[#allocation55_spill] sm:$0xff]  ;;  %v8745_v23 = vpop.eup %8744 }
 0x867   :  { %v5095_v39 = vpop.permute.xlu1 %5094  ;;  %v5556_v42 = vadd.f32 %v5102_v25, %v4764_v32  ;;  %8754 = vrcp.f32 %v15029_v33  ;;  %v8747_v25 = vpop.eup %8746  ;;  %v4641_v59 = vmul.f32 %v8745_v23, %v15034_v28  ;;  %v5789_v28 = vunpack.c.h.b16 %v12595_v10 }
 0x868   :  { %v5555_v56 = vadd.f32 %v5095_v39, %v4763_v3  ;;  %v15030_v3 = vld [vmem:[#allocation108_spill] sm:$0xff] }
 0x869   :  { %v4639_v27 = vmul.f32 %v8741_v9, %v15030_v3  ;;  %v15031_v39 = vld [vmem:[#allocation56_spill] sm:$0xff]  ;;  %v4770_v23 = vmul.f32 %v12511_v0, %v4641_v59  ;;  %v15042_v59 = vld [vmem:[#allocation57_spill] sm:$0xff] }
 0x86a   :  { %v12819_v50 = vpack.c.bf16 %v5555_v56, %v5554_v46  ;;  %v5110_v18 = vpop.permute.xlu0 %5109  ;;  %5902 = vperm.xlu1 %8315, %v5771_v31   ;;  %5899 = vperm.xlu0 %8314, %v5770_v34   ;;  %v4640_v21 = vmul.f32 %v8743_v35, %v15031_v39  ;;  %v15032_v56 = vld [vmem:[#allocation73_spill] sm:$0xff]  ;;  %v5772_v34 = vunpack.c.l.b16 %v12531_v38  ;;  %v5788_v31 = vunpack.c.l.b16 %v12595_v10  ;;  %v8749_v9 = vpop.eup %8748  ;;  %v15035_v35 = vld [vmem:[#allocation156_spill] sm:$0xff] }
 0x86b   :  { %v5106_v52 = vpop.permute.xlu1 %5105  ;;  %8756 = vrcp.f32 %v15032_v56  ;;  %v5558_v55 = vadd.f32 %v5110_v18, %v4766_v11  ;;  %v4768_v32 = vmul.f32 %v12511_v0, %v4639_v27  ;;  %v8751_v18 = vpop.eup %8750  ;;  %v5803_v11 = vunpack.c.h.b16 %v12666_v40 }
 0x86c   :  { %v5557_v2 = vadd.f32 %v5106_v52, %v4765_v26  ;;  %8758 = vrcp.f32 %v15033_v15  ;;  %v4769_v4 = vmul.f32 %v12511_v0, %v4640_v21  ;;  %v4642_v52 = vmul.f32 %v8747_v25, %v15035_v35 }
 0x86d   :  { %8760 = vrcp.f32 %v15036_v1  ;;  %v15043_v1 = vld [vmem:[#allocation110_spill] sm:$0xff] }
 0x86e   :  { %v12828_v5 = vpack.c.bf16 %v5557_v2, %v5556_v42  ;;  %v5118_v13 = vpop.permute.xlu0 %5117  ;;  %5947 = vperm.xlu1 %8315, %v5786_v7   ;;  %5950 = vperm.xlu0 %8314, %v5787_v20   ;;  %v15037_v7 = vld [vmem:[#allocation75_spill] sm:$0xff]  ;;  %v5802_v20 = vunpack.c.l.b16 %v12666_v40  ;;  %v4771_v25 = vmul.f32 %v12511_v0, %v4642_v52 }
 0x86f   :  { %v5114_v46 = vpop.permute.xlu1 %5113  ;;  %v5560_v2 = vadd.f32 %v5118_v13, %v4768_v32  ;;  %8762 = vrcp.f32 %v15037_v7  ;;  %v8753_v3 = vpop.eup %8752 }
 0x870   :  { %v5559_v14 = vadd.f32 %v5114_v46, %v4767_v17  ;;  %v15038_v17 = vld [vmem:[#allocation58_spill] sm:$0xff]  ;;  %v15039_v46 = vld [vmem:[#allocation107_spill] sm:$0xff] }
 0x871   :  { %v4643_v39 = vmul.f32 %v8749_v9, %v15038_v17  ;;  %v4644_v56 = vmul.f32 %v8751_v18, %v15039_v46  ;;  %v8755_v13 = vpop.eup %8754  ;;  %v4645_v9 = vmul.f32 %v8753_v3, %v15042_v59  ;;  %v15050_v59 = vld [vmem:[#allocation85_spill] sm:$0xff] }
 0x872   :  { %v12839_v26 = vpack.c.bf16 %v5559_v14, %v5558_v55  ;;  %v5126_v63 = vpop.permute.xlu0 %5125  ;;  %5905 = vperm.xlu1 %8315, %v5772_v34   ;;  %5953 = vperm.xlu0 %8314, %v5788_v31   ;;  %v15040_v14 = vld [vmem:[#allocation62_spill] sm:$0xff]  ;;  %v5773_v31 = vunpack.c.h.b16 %v12531_v38 }
 0x873   :  { %v5122_v42 = vpop.permute.xlu1 %5121  ;;  %8764 = vrcp.f32 %v15040_v14  ;;  %v5562_v15 = vadd.f32 %v5126_v63, %v4770_v23  ;;  %v15041_v34 = vld [vmem:[#allocation178_spill] sm:$0xff]  ;;  %v4773_v18 = vmul.f32 %v12511_v0, %v4644_v56  ;;  %v5818_v23 = vunpack.c.l.b16 %v12746_v36 }
 0x874   :  { %v5561_v33 = vadd.f32 %v5122_v42, %v4769_v4  ;;  %8766 = vrcp.f32 %v15041_v34  ;;  %v4772_v4 = vmul.f32 %v12511_v0, %v4643_v39  ;;  %v4646_v42 = vmul.f32 %v8755_v13, %v15043_v1  ;;  %v15046_v39 = vld [vmem:[#allocation160_spill] sm:$0xff] }
 0x875   :  { %v8757_v32 = vpop.eup %8756  ;;  %v4774_v3 = vmul.f32 %v12511_v0, %v4645_v9  ;;  %v15047_v13 = vld [vmem:[#allocation112_spill] sm:$0xff]  ;;  %v5774_v9 = vunpack.c.l.b16 %v12539_v30 }
 0x876   :  { %v12848_v27 = vpack.c.bf16 %v5561_v33, %v5560_v2  ;;  %v5134_v21 = vpop.permute.xlu0 %5133  ;;  %5995 = vperm.xlu1 %8315, %v5802_v20   ;;  %5998 = vperm.xlu0 %8314, %v5803_v11   ;;  %v8759_v63 = vpop.eup %8758  ;;  %v15044_v2 = vld [vmem:[#allocation224_spill] sm:$0xff]  ;;  %v15045_v20 = vld [vmem:[#allocation86_spill] sm:$0xff]  ;;  %v5804_v11 = vunpack.c.l.b16 %v12677_v44  ;;  %v4775_v56 = vmul.f32 %v12511_v0, %v4646_v42 }
 0x877   :  { %v5130_v55 = vpop.permute.xlu1 %5129  ;;  %8768 = vrcp.f32 %v15044_v2  ;;  %v5564_v38 = vadd.f32 %v5134_v21, %v4772_v4  ;;  %v8761_v7 = vpop.eup %8760  ;;  %v15051_v2 = vld [vmem:[#allocation116_spill] sm:$0xff] }
 0x878   :  { %v5563_v40 = vadd.f32 %v5130_v55, %v4771_v25  ;;  %8770 = vrcp.f32 %v15045_v20  ;;  %v4647_v25 = vmul.f32 %v8757_v32, %v15046_v39  ;;  %v4648_v55 = vmul.f32 %v8759_v63, %v15047_v13 }
 0x879   :  { %v8763_v21 = vpop.eup %8762  ;;  %v5819_v32 = vunpack.c.h.b16 %v12746_v36  ;;  %v5805_v39 = vunpack.c.h.b16 %v12677_v44  ;;  %v15058_v44 = vld [vmem:[#allocation77_spill] sm:$0xff] }
 0x87a   :  { %v12859_v35 = vpack.c.bf16 %v5563_v40, %v5562_v15  ;;  %v5142_v52 = vpop.permute.xlu0 %5141  ;;  %5908 = vperm.xlu1 %8315, %v5773_v31   ;;  %5956 = vperm.xlu0 %8314, %v5789_v28   ;;  %v15048_v15 = vld [vmem:[#allocation225_spill] sm:$0xff]  ;;  %v15049_v31 = vld [vmem:[#allocation171_spill] sm:$0xff]  ;;  %v4777_v63 = vmul.f32 %v12511_v0, %v4648_v55 }
 0x87b   :  { %v5138_v33 = vpop.permute.xlu1 %5137  ;;  %8772 = vrcp.f32 %v15048_v15  ;;  %v5566_v40 = vadd.f32 %v5142_v52, %v4774_v3  ;;  %v4652_v28 = vmul.f32 %v8761_v7, %v15049_v31  ;;  %v4651_v52 = vmul.f32 %v8763_v21, %v15051_v2 }
 0x87c   :  { %v5565_v10 = vadd.f32 %v5138_v33, %v4773_v18  ;;  %8774 = vrcp.f32 %v15050_v59  ;;  %v4776_v18 = vmul.f32 %v12511_v0, %v4647_v25  ;;  %v5790_v3 = vunpack.c.l.b16 %v12605_v12  ;;  %v15054_v25 = vld [vmem:[#allocation64_spill] sm:$0xff]  ;;  %v15057_v59 = vld [vmem:[#allocation175_spill] sm:$0xff] }
 0x87d   :  { %v8765_v4 = vpop.eup %8764  ;;  %v4781_v36 = vmul.f32 %v12511_v0, %v4652_v28  ;;  %v4780_v21 = vmul.f32 %v12511_v0, %v4651_v52 }
 0x87e   :  { %v12868_v17 = vpack.c.bf16 %v5565_v10, %v5564_v38  ;;  %v5150_v46 = vpop.permute.xlu0 %5149  ;;  %6001 = vperm.xlu1 %8315, %v5804_v11   ;;  %6043 = vperm.xlu0 %8314, %v5818_v23   ;;  %v8767_v33 = vpop.eup %8766  ;;  %v15052_v10 = vld [vmem:[#allocation195_spill] sm:$0xff]  ;;  %v15053_v23 = vld [vmem:[#allocation92_spill] sm:$0xff] }
 0x87f   :  { %v5146_v14 = vpop.permute.xlu1 %5145  ;;  %8776 = vrcp.f32 %v15052_v10  ;;  %v5568_v7 = vadd.f32 %v5150_v46, %v4776_v18 }
 0x880   :  { %v5567_v34 = vadd.f32 %v5146_v14, %v4775_v56  ;;  %8778 = vrcp.f32 %v15053_v23  ;;  %v4654_v56 = vmul.f32 %v8765_v4, %v15054_v25  ;;  %v15055_v14 = vld [vmem:[#allocation118_spill] sm:$0xff]  ;;  %v5834_v4 = vunpack.c.l.b16 %v12828_v5 }
 0x881   :  { %v8769_v11 = vpop.eup %8768  ;;  %v4653_v15 = vmul.f32 %v8767_v33, %v15055_v14  ;;  %v5775_v25 = vunpack.c.h.b16 %v12539_v30  ;;  %v15065_v30 = vld [vmem:[#allocation63_spill] sm:$0xff] }
 0x882   :  { %v12879_v1 = vpack.c.bf16 %v5567_v34, %v5566_v40  ;;  %v12881_v42 = vpop.permute.xlu0 %5157  ;;  %6046 = vperm.xlu1 %8315, %v5819_v32   ;;  %5911 = vperm.xlu0 %8314, %v5774_v9   ;;  %v8771_v46 = vpop.eup %8770  ;;  %v15056_v40 = vld [vmem:[#allocation20_spill] sm:$0xff]  ;;  %v4668_v9 = vmul.f32 %v8769_v11, %v15057_v59  ;;  %v5820_v32 = vunpack.c.l.b16 %v12757_v54  ;;  %v4783_v18 = vmul.f32 %v12511_v0, %v4654_v56 }
 0x883   :  { %v5154_v38 = vpop.permute.xlu1 %5153  ;;  %8780 = vrcp.f32 %v15056_v40  ;;  %v4782_v33 = vmul.f32 %v12511_v0, %v4653_v15  ;;  %v15060_v11 = vld [vmem:[#allocation28_spill] sm:$0xff]  ;;  %v5835_v56 = vunpack.c.h.b16 %v12828_v5 }
 0x884   :  { %v5569_v20 = vadd.f32 %v5154_v38, %v4777_v63  ;;  %8782 = vrcp.f32 %v15058_v44  ;;  %v15059_v38 = vld [vmem:[#allocation179_spill] sm:$0xff]  ;;  %v15064_v59 = vld [vmem:[#allocation188_spill] sm:$0xff] }
 0x885   :  { %v8773_v63 = vpop.eup %8772  ;;  %v4667_v10 = vmul.f32 %v8771_v46, %v15059_v38  ;;  %8784 = vrcp.f32 %v15060_v11 }
 0x886   :  { %v12891_v13 = vpack.c.bf16 %v5569_v20, %v5568_v7  ;;  %v5173_v55 = vpop.permute.xlu0 %5172  ;;  %5959 = vperm.xlu1 %8315, %v5790_v3   ;;  %6004 = vperm.xlu0 %8314, %v5805_v39   ;;  %v8775_v7 = vpop.eup %8774  ;;  %v4797_v3 = vmul.f32 %v12511_v0, %v4668_v9  ;;  %v15061_v39 = vld [vmem:[#allocation231_spill] sm:$0xff] }
 0x887   :  { %v5573_v34 = vadd.f32 %v5173_v55, %v4781_v36  ;;  %v5169_v31 = vpop.permute.xlu1 %5168  ;;  %8786 = vrcp.f32 %v15061_v39  ;;  %v15062_v55 = vld [vmem:[#allocation132_spill] sm:$0xff]  ;;  %v4796_v40 = vmul.f32 %v12511_v0, %v4667_v10 }
 0x888   :  { %v5572_v28 = vadd.f32 %v5169_v31, %v4780_v21  ;;  %v4670_v21 = vmul.f32 %v8773_v63, %v15062_v55  ;;  %8788 = vrcp.f32 %v15064_v59  ;;  %v15070_v55 = vld [vmem:[#allocation180_spill] sm:$0xff] }
 0x889   :  { %v8777_v14 = vpop.eup %8776  ;;  %8790 = vrcp.f32 %v15065_v30  ;;  %v15071_v59 = vld [vmem:[#allocation120_spill] sm:$0xff] }
 0x88a   :  { %v12901_v2 = vpack.c.bf16 %v5573_v34, %v5572_v28  ;;  %v5181_v52 = vpop.permute.xlu0 %5180  ;;  %6049 = vperm.xlu1 %8315, %v5820_v32   ;;  %6091 = vperm.xlu0 %8314, %v5834_v4   ;;  %v15063_v34 = vld [vmem:[#allocation74_spill] sm:$0xff]  ;;  %v8779_v28 = vpop.eup %8778  ;;  %v5791_v4 = vunpack.c.h.b16 %v12605_v12  ;;  %v4799_v63 = vmul.f32 %v12511_v0, %v4670_v21  ;;  %v5821_v21 = vunpack.c.h.b16 %v12757_v54 }
 0x88b   :  { %v5575_v20 = vadd.f32 %v5181_v52, %v4783_v18  ;;  %v5177_v36 = vpop.permute.xlu1 %5176  ;;  %v4669_v31 = vmul.f32 %v8775_v7, %v15063_v34  ;;  %v5806_v18 = vunpack.c.l.b16 %v12686_v53  ;;  %v15066_v52 = vld [vmem:[#allocation21_spill] sm:$0xff] }
 0x88c   :  { %v5574_v23 = vadd.f32 %v5177_v36, %v4782_v33  ;;  %v4684_v33 = vmul.f32 %v8777_v14, %v15066_v52  ;;  %v5836_v14 = vunpack.c.l.b16 %v12839_v26  ;;  %v5850_v52 = vunpack.c.l.b16 %v12901_v2 }
 0x88d   :  { %v8781_v32 = vpop.eup %8780  ;;  %v4798_v7 = vmul.f32 %v12511_v0, %v4669_v31 }
 0x88e   :  { %v12911_v15 = vpack.c.bf16 %v5575_v20, %v5574_v23  ;;  %v5240_v46 = vpop.permute.xlu0 %5239  ;;  %6094 = vperm.xlu1 %8315, %v5835_v56   ;;  %5914 = vperm.xlu0 %8314, %v5775_v25   ;;  %v15067_v20 = vld [vmem:[#allocation183_spill] sm:$0xff]  ;;  %v8783_v11 = vpop.eup %8782  ;;  %v15068_v23 = vld [vmem:[#allocation22_spill] sm:$0xff] }
 0x88f   :  { %v5589_v9 = vadd.f32 %v5240_v46, %v4797_v3  ;;  %v5236_v44 = vpop.permute.xlu1 %5235  ;;  %v4683_v36 = vmul.f32 %v8779_v28, %v15067_v20  ;;  %8792 = vrcp.f32 %v15068_v23  ;;  %v15069_v25 = vld [vmem:[#allocation66_spill] sm:$0xff]  ;;  %v4813_v46 = vmul.f32 %v12511_v0, %v4684_v33 }
 0x890   :  { %v5588_v5 = vadd.f32 %v5236_v44, %v4796_v40  ;;  %v4656_v56 = vmul.f32 %v8781_v32, %v15069_v25  ;;  %8794 = vrcp.f32 %v15070_v55  ;;  %v8785_v40 = vpop.eup %8784  ;;  %v15072_v32 = vld [vmem:[#allocation232_spill] sm:$0xff]  ;;  %v5851_v33 = vunpack.c.h.b16 %v12901_v2  ;;  %v15077_v55 = vld [vmem:[#allocation87_spill] sm:$0xff] }
 0x891   :  { %v4812_v28 = vmul.f32 %v12511_v0, %v4683_v36  ;;  %v8787_v44 = vpop.eup %8786  ;;  %8796 = vrcp.f32 %v15072_v32 }
 0x892   :  { %v12921_v38 = vpack.c.bf16 %v5589_v9, %v5588_v5  ;;  %v5248_v10 = vpop.permute.xlu0 %5247  ;;  %5962 = vperm.xlu1 %8315, %v5791_v4   ;;  %6007 = vperm.xlu0 %8314, %v5806_v18   ;;  %v4655_v9 = vmul.f32 %v8783_v11, %v15071_v59  ;;  %v4785_v4 = vmul.f32 %v12511_v0, %v4656_v56  ;;  %v8789_v18 = vpop.eup %8788 }
 0x893   :  { %v5591_v3 = vadd.f32 %v5248_v10, %v4799_v63  ;;  %v5244_v39 = vpop.permute.xlu1 %5243  ;;  %v15073_v63 = vld [vmem:[#allocation166_spill] sm:$0xff]  ;;  %v8791_v20 = vpop.eup %8790 }
 0x894   :  { %v5590_v12 = vadd.f32 %v5244_v39, %v4798_v7  ;;  %8798 = vrcp.f32 %v15073_v63  ;;  %v15074_v10 = vld [vmem:[#allocation214_spill] sm:$0xff]  ;;  %v4784_v23 = vmul.f32 %v12511_v0, %v4655_v9 }
 0x895   :  { %v4686_v7 = vmul.f32 %v8785_v40, %v15074_v10 }
 0x896   :  { %v12931_v34 = vpack.c.bf16 %v5591_v3, %v5590_v12  ;;  %v5307_v31 = vpop.permute.xlu0 %5306  ;;  %6052 = vperm.xlu1 %8315, %v5821_v21   ;;  %6097 = vperm.xlu0 %8314, %v5836_v14   ;;  %v15075_v3 = vld [vmem:[#allocation82_spill] sm:$0xff]  ;;  %v15076_v12 = vld [vmem:[#allocation227_spill] sm:$0xff]  ;;  %v5776_v14 = vunpack.c.l.b16 %v12547_v29 }
 0x897   :  { %v5605_v30 = vadd.f32 %v5307_v31, %v4813_v46  ;;  %v5303_v5 = vpop.permute.xlu1 %5302  ;;  %v4685_v39 = vmul.f32 %v8787_v44, %v15075_v3  ;;  %8800 = vrcp.f32 %v15076_v12  ;;  %v5792_v46 = vunpack.c.l.b16 %v12615_v19  ;;  %v15078_v31 = vld [vmem:[#allocation134_spill] sm:$0xff] }
 0x898   :  { %v5604_v54 = vadd.f32 %v5303_v5, %v4812_v28  ;;  %8802 = vrcp.f32 %v15077_v55  ;;  %v4815_v40 = vmul.f32 %v12511_v0, %v4686_v7  ;;  %v4672_v28 = vmul.f32 %v8791_v20, %v15078_v31  ;;  %v15082_v7 = vld [vmem:[#allocation79_spill] sm:$0xff]  ;;  %v15085_v31 = vld [vmem:[#allocation93_spill] sm:$0xff] }
 0x899   :  { %v8793_v2 = vpop.eup %8792  ;;  %v4814_v44 = vmul.f32 %v12511_v0, %v4685_v39  ;;  %v5807_v20 = vunpack.c.h.b16 %v12686_v53 }
 0x89a   :  { %v12941_v36 = vpack.c.bf16 %v5605_v30, %v5604_v54  ;;  %v5189_v11 = vpop.permute.xlu0 %5188  ;;  %6142 = vperm.xlu0 %8314, %v5851_v33   ;;  %6139 = vperm.xlu1 %8315, %v5850_v52   ;;  %v15079_v30 = vld [vmem:[#allocation177_spill] sm:$0xff]  ;;  %v8795_v32 = vpop.eup %8794  ;;  %v15080_v54 = vld [vmem:[#allocation215_spill] sm:$0xff] }
 0x89b   :  { %v5577_v25 = vadd.f32 %v5189_v11, %v4785_v4  ;;  %v5185_v56 = vpop.permute.xlu1 %5184  ;;  %v4671_v5 = vmul.f32 %v8789_v18, %v15079_v30  ;;  %8804 = vrcp.f32 %v15080_v54  ;;  %v15081_v33 = vld [vmem:[#allocation65_spill] sm:$0xff]  ;;  %v5822_v11 = vunpack.c.l.b16 %v12766_v6  ;;  %v8797_v3 = vpop.eup %8796 }
 0x89c   :  { %v5576_v21 = vadd.f32 %v5185_v56, %v4784_v23  ;;  %v4658_v10 = vmul.f32 %v8793_v2, %v15081_v33  ;;  %8806 = vrcp.f32 %v15082_v7  ;;  %v4801_v23 = vmul.f32 %v12511_v0, %v4672_v28  ;;  %v15084_v2 = vld [vmem:[#allocation196_spill] sm:$0xff]  ;;  %v15088_v33 = vld [vmem:[#allocation193_spill] sm:$0xff] }
 0x89d   :  { %v4800_v12 = vmul.f32 %v12511_v0, %v4671_v5  ;;  %8808 = vrcp.f32 %v15084_v2  ;;  %v5837_v28 = vunpack.c.h.b16 %v12839_v26 }
 0x89e   :  { %v12951_v59 = vpack.c.bf16 %v5577_v25, %v5576_v21  ;;  %v5315_v9 = vpop.permute.xlu0 %5314  ;;  %5965 = vperm.xlu0 %8314, %v5792_v46   ;;  %5917 = vperm.xlu1 %8315, %v5776_v14   ;;  %v15083_v25 = vld [vmem:[#allocation122_spill] sm:$0xff]  ;;  %v8799_v55 = vpop.eup %8798  ;;  %v4787_v46 = vmul.f32 %v12511_v0, %v4658_v10  ;;  %8810 = vrcp.f32 %v15085_v31 }
 0x89f   :  { %v5607_v4 = vadd.f32 %v5315_v9, %v4815_v40  ;;  %v5311_v63 = vpop.permute.xlu1 %5310  ;;  %v4657_v56 = vmul.f32 %v8795_v32, %v15083_v25  ;;  %v5852_v9 = vunpack.c.l.b16 %v12911_v15  ;;  %8812 = vrcp.f32 %v15088_v33 }
 0x8a0   :  { %v5606_v52 = vadd.f32 %v5311_v63, %v4814_v44  ;;  %v15086_v44 = vld [vmem:[#allocation216_spill] sm:$0xff]  ;;  %v15087_v63 = vld [vmem:[#allocation81_spill] sm:$0xff] }
 0x8a1   :  { %v8801_v40 = vpop.eup %8800  ;;  %v4688_v30 = vmul.f32 %v8797_v3, %v15086_v44  ;;  %v5867_v3 = vunpack.c.h.b16 %v12921_v38 }
 0x8a2   :  { %v12961_v18 = vpack.c.bf16 %v5607_v4, %v5606_v52  ;;  %v5256_v39 = vpop.permute.xlu0 %5255  ;;  %6055 = vperm.xlu0 %8314, %v5822_v11   ;;  %6010 = vperm.xlu1 %8315, %v5807_v20   ;;  %v8803_v5 = vpop.eup %8802  ;;  %v4786_v4 = vmul.f32 %v12511_v0, %v4657_v56  ;;  %v4687_v52 = vmul.f32 %v8799_v55, %v15087_v63  ;;  %v15089_v20 = vld [vmem:[#allocation228_spill] sm:$0xff] }
 0x8a3   :  { %v5593_v21 = vadd.f32 %v5256_v39, %v4801_v23  ;;  %v5252_v14 = vpop.permute.xlu1 %5251  ;;  %8814 = vrcp.f32 %v15089_v20  ;;  %v5866_v23 = vunpack.c.l.b16 %v12921_v38  ;;  %v4817_v39 = vmul.f32 %v12511_v0, %v4688_v30  ;;  %v15093_v38 = vld [vmem:[#allocation168_spill] sm:$0xff]  ;;  %v15094_v30 = vld [vmem:[#allocation182_spill] sm:$0xff] }
 0x8a4   :  { %v5592_v53 = vadd.f32 %v5252_v14, %v4800_v12  ;;  %v15090_v12 = vld [vmem:[#allocation133_spill] sm:$0xff]  ;;  %v15091_v14 = vld [vmem:[#allocation76_spill] sm:$0xff] }
 0x8a5   :  { %v8805_v11 = vpop.eup %8804  ;;  %v4674_v25 = vmul.f32 %v8803_v5, %v15090_v12  ;;  %v4673_v2 = vmul.f32 %v8801_v40, %v15091_v14  ;;  %v5777_v5 = vunpack.c.h.b16 %v12547_v29  ;;  %v5808_v12 = vunpack.c.l.b16 %v12697_v47 }
 0x8a6   :  { %v12971_v32 = vpack.c.bf16 %v5593_v21, %v5592_v53  ;;  %v5197_v54 = vpop.permute.xlu0 %5196  ;;  %6100 = vperm.xlu1 %8315, %v5837_v28   ;;  %6145 = vperm.xlu0 %8314, %v5852_v9   ;;  %v4816_v21 = vmul.f32 %v12511_v0, %v4687_v52  ;;  %v8807_v53 = vpop.eup %8806  ;;  %v4660_v44 = vmul.f32 %v8805_v11, %v15093_v38  ;;  %v15096_v11 = vld [vmem:[#allocation96_spill] sm:$0xff] }
 0x8a7   :  { %v5579_v10 = vadd.f32 %v5197_v54, %v4787_v46  ;;  %v5193_v7 = vpop.permute.xlu1 %5192  ;;  %v15092_v46 = vld [vmem:[#allocation217_spill] sm:$0xff]  ;;  %v5793_v54 = vunpack.c.h.b16 %v12615_v19  ;;  %v8809_v63 = vpop.eup %8808  ;;  %v4802_v33 = vmul.f32 %v12511_v0, %v4673_v2 }
 0x8a8   :  { %v5578_v26 = vadd.f32 %v5193_v7, %v4786_v4  ;;  %8816 = vrcp.f32 %v15092_v46  ;;  %v4803_v4 = vmul.f32 %v12511_v0, %v4674_v25  ;;  %v8811_v20 = vpop.eup %8810  ;;  %v4789_v19 = vmul.f32 %v12511_v0, %v4660_v44 }
 0x8a9   :  { %8818 = vrcp.f32 %v15094_v30  ;;  %v5823_v25 = vunpack.c.h.b16 %v12766_v6  ;;  %v15101_v30 = vld [vmem:[#allocation26_spill] sm:$0xff] }
 0x8aa   :  { %v12981_v56 = vpack.c.bf16 %v5579_v10, %v5578_v26  ;;  %v5323_v55 = vpop.permute.xlu0 %5322  ;;  %6190 = vperm.xlu0 %8314, %v5867_v3   ;;  %6187 = vperm.xlu1 %8315, %v5866_v23   ;;  %v15095_v10 = vld [vmem:[#allocation124_spill] sm:$0xff]  ;;  %8820 = vrcp.f32 %v15096_v11  ;;  %v8813_v3 = vpop.eup %8812 }
 0x8ab   :  { %v5609_v31 = vadd.f32 %v5323_v55, %v4817_v39  ;;  %v5319_v28 = vpop.permute.xlu1 %5318  ;;  %v4659_v7 = vmul.f32 %v8807_v53, %v15095_v10  ;;  %v15097_v39 = vld [vmem:[#allocation233_spill] sm:$0xff]  ;;  %v15098_v55 = vld [vmem:[#allocation218_spill] sm:$0xff] }
 0x8ac   :  { %v5608_v9 = vadd.f32 %v5319_v28, %v4816_v21  ;;  %8822 = vrcp.f32 %v15097_v39  ;;  %v4690_v21 = vmul.f32 %v8809_v63, %v15098_v55  ;;  %v15106_v55 = vld [vmem:[#allocation84_spill] sm:$0xff] }
 0x8ad   :  { %v8815_v14 = vpop.eup %8814  ;;  %v4788_v46 = vmul.f32 %v12511_v0, %v4659_v7 }
 0x8ae   :  { %v12991_v40 = vpack.c.bf16 %v5609_v31, %v5608_v9  ;;  %v5264_v52 = vpop.permute.xlu0 %5263  ;;  %5968 = vperm.xlu0 %8314, %v5793_v54   ;;  %5920 = vperm.xlu1 %8315, %v5777_v5   ;;  %v15099_v31 = vld [vmem:[#allocation184_spill] sm:$0xff]  ;;  %v15100_v9 = vld [vmem:[#allocation90_spill] sm:$0xff]  ;;  %v5838_v54 = vunpack.c.l.b16 %v12848_v27  ;;  %v4819_v63 = vmul.f32 %v12511_v0, %v4690_v21  ;;  %v5868_v21 = vunpack.c.l.b16 %v12931_v34 }
 0x8af   :  { %v5595_v26 = vadd.f32 %v5264_v52, %v4803_v4  ;;  %v5260_v23 = vpop.permute.xlu1 %5259  ;;  %v4689_v28 = vmul.f32 %v8811_v20, %v15099_v31  ;;  %8824 = vrcp.f32 %v15100_v9  ;;  %v5853_v4 = vunpack.c.h.b16 %v12911_v15  ;;  %v15102_v52 = vld [vmem:[#allocation161_spill] sm:$0xff]  ;;  %v15105_v15 = vld [vmem:[#allocation78_spill] sm:$0xff]  ;;  %v15107_v9 = vld [vmem:[#allocation123_spill] sm:$0xff] }
 0x8b0   :  { %v5594_v29 = vadd.f32 %v5260_v23, %v4802_v33  ;;  %8826 = vrcp.f32 %v15101_v30  ;;  %v4676_v33 = vmul.f32 %v8815_v14, %v15102_v52  ;;  %v5882_v14 = vunpack.c.l.b16 %v12941_v36  ;;  %v15109_v52 = vld [vmem:[#allocation197_spill] sm:$0xff] }
 0x8b1   :  { %v4818_v20 = vmul.f32 %v12511_v0, %v4689_v28 }
 0x8b2   :  { %v13001_v2 = vpack.c.bf16 %v5595_v26, %v5594_v29  ;;  %v5205_v53 = vpop.permute.xlu0 %5204  ;;  %6058 = vperm.xlu0 %8314, %v5823_v25   ;;  %6013 = vperm.xlu1 %8315, %v5808_v12   ;;  %v8817_v6 = vpop.eup %8816  ;;  %v15103_v26 = vld [vmem:[#allocation176_spill] sm:$0xff]  ;;  %v15104_v29 = vld [vmem:[#allocation219_spill] sm:$0xff] }
 0x8b3   :  { %v5581_v38 = vadd.f32 %v5205_v53, %v4789_v19  ;;  %v5201_v44 = vpop.permute.xlu1 %5200  ;;  %v4675_v23 = vmul.f32 %v8813_v3, %v15103_v26  ;;  %v8819_v11 = vpop.eup %8818  ;;  %8828 = vrcp.f32 %v15104_v29  ;;  %v4662_v25 = vmul.f32 %v8817_v6, %v15105_v15  ;;  %v15108_v6 = vld [vmem:[#allocation234_spill] sm:$0xff]  ;;  %v15112_v15 = vld [vmem:[#allocation24_spill] sm:$0xff] }
 0x8b4   :  { %v5580_v5 = vadd.f32 %v5201_v44, %v4788_v46  ;;  %8830 = vrcp.f32 %v15106_v55  ;;  %v4805_v53 = vmul.f32 %v12511_v0, %v4676_v33  ;;  %v8821_v46 = vpop.eup %8820  ;;  %v5778_v33 = vunpack.c.l.b16 %v12555_v60 }
 0x8b5   :  { %v4804_v28 = vmul.f32 %v12511_v0, %v4675_v23  ;;  %8832 = vrcp.f32 %v15108_v6 }
 0x8b6   :  { %v13011_v10 = vpack.c.bf16 %v5581_v38, %v5580_v5  ;;  %v5331_v7 = vpop.permute.xlu0 %5330  ;;  %6148 = vperm.xlu0 %8314, %v5853_v4   ;;  %6103 = vperm.xlu1 %8315, %v5838_v54   ;;  %v4661_v38 = vmul.f32 %v8819_v11, %v15107_v9  ;;  %v8823_v44 = vpop.eup %8822  ;;  %v4791_v4 = vmul.f32 %v12511_v0, %v4662_v25  ;;  %8834 = vrcp.f32 %v15109_v52 }
 0x8b7   :  { %v5611_v19 = vadd.f32 %v5331_v7, %v4819_v63  ;;  %v5327_v39 = vpop.permute.xlu1 %5326  ;;  %v5883_v7 = vunpack.c.h.b16 %v12941_v36  ;;  %8836 = vrcp.f32 %v15112_v15 }
 0x8b8   :  { %v5610_v12 = vadd.f32 %v5327_v39, %v4818_v20  ;;  %v15110_v20 = vld [vmem:[#allocation220_spill] sm:$0xff]  ;;  %v15111_v39 = vld [vmem:[#allocation83_spill] sm:$0xff] }
 0x8b9   :  { %v8825_v63 = vpop.eup %8824  ;;  %v4692_v26 = vmul.f32 %v8821_v46, %v15110_v20  ;;  %v5809_v46 = vunpack.c.h.b16 %v12697_v47  ;;  %v15117_v47 = vld [vmem:[#allocation173_spill] sm:$0xff] }
 0x8ba   :  { %v13021_v3 = vpack.c.bf16 %v5611_v19, %v5610_v12  ;;  %v5272_v31 = vpop.permute.xlu0 %5271  ;;  %6193 = vperm.xlu1 %8315, %v5868_v21   ;;  %6235 = vperm.xlu0 %8314, %v5882_v14   ;;  %v8827_v23 = vpop.eup %8826  ;;  %v4790_v19 = vmul.f32 %v12511_v0, %v4661_v38  ;;  %v4691_v12 = vmul.f32 %v8823_v44, %v15111_v39  ;;  %v15113_v21 = vld [vmem:[#allocation27_spill] sm:$0xff] }
 0x8bb   :  { %v5597_v30 = vadd.f32 %v5272_v31, %v4805_v53  ;;  %v5268_v5 = vpop.permute.xlu1 %5267  ;;  %8838 = vrcp.f32 %v15113_v21  ;;  %v5794_v53 = vunpack.c.l.b16 %v12625_v49  ;;  %v4821_v31 = vmul.f32 %v12511_v0, %v4692_v26  ;;  %v15118_v26 = vld [vmem:[#allocation191_spill] sm:$0xff] }
 0x8bc   :  { %v5596_v54 = vadd.f32 %v5268_v5, %v4804_v28  ;;  %v15114_v28 = vld [vmem:[#allocation222_spill] sm:$0xff] }
 0x8bd   :  { %v8829_v36 = vpop.eup %8828  ;;  %v4678_v9 = vmul.f32 %v8827_v23, %v15114_v28  ;;  %v15115_v5 = vld [vmem:[#allocation186_spill] sm:$0xff]  ;;  %v5824_v23 = vunpack.c.l.b16 %v12777_v22  ;;  %v5869_v28 = vunpack.c.h.b16 %v12931_v34 }
 0x8be   :  { %v13031_v11 = vpack.c.bf16 %v5597_v30, %v5596_v54  ;;  %v5213_v29 = vpop.permute.xlu0 %5212  ;;  %6238 = vperm.xlu1 %8315, %v5883_v7   ;;  %5923 = vperm.xlu0 %8314, %v5778_v33   ;;  %v4820_v30 = vmul.f32 %v12511_v0, %v4691_v12  ;;  %v4677_v6 = vmul.f32 %v8825_v63, %v15115_v5  ;;  %v8831_v54 = vpop.eup %8830  ;;  %v15116_v33 = vld [vmem:[#allocation229_spill] sm:$0xff]  ;;  %v15125_v34 = vld [vmem:[#allocation162_spill] sm:$0xff] }
 0x8bf   :  { %v5583_v25 = vadd.f32 %v5213_v29, %v4791_v4  ;;  %v5209_v55 = vpop.permute.xlu1 %5208  ;;  %8840 = vrcp.f32 %v15116_v33  ;;  %v4664_v20 = vmul.f32 %v8829_v36, %v15117_v47  ;;  %v5839_v29 = vunpack.c.h.b16 %v12848_v27  ;;  %v8833_v39 = vpop.eup %8832  ;;  %v15123_v33 = vld [vmem:[#allocation187_spill] sm:$0xff] }
 0x8c0   :  { %v5582_v14 = vadd.f32 %v5209_v55, %v4790_v19  ;;  %8842 = vrcp.f32 %v15118_v26  ;;  %v4807_v19 = vmul.f32 %v12511_v0, %v4678_v9  ;;  %v4806_v15 = vmul.f32 %v12511_v0, %v4677_v6  ;;  %v8835_v21 = vpop.eup %8834 }
 0x8c1   :  { %v5854_v9 = vunpack.c.l.b16 %v12951_v59 }
 0x8c2   :  { %v13041_v38 = vpack.c.bf16 %v5583_v25, %v5582_v14  ;;  %v5339_v44 = vpop.permute.xlu0 %5338  ;;  %5971 = vperm.xlu1 %8315, %v5794_v53   ;;  %6016 = vperm.xlu0 %8314, %v5809_v46   ;;  %v15119_v25 = vld [vmem:[#allocation125_spill] sm:$0xff] }
 0x8c3   :  { %v5613_v4 = vadd.f32 %v5339_v44, %v4821_v31  ;;  %v5335_v52 = vpop.permute.xlu1 %5334  ;;  %v4663_v55 = vmul.f32 %v8831_v54, %v15119_v25  ;;  %v15120_v14 = vld [vmem:[#allocation185_spill] sm:$0xff]  ;;  %v8837_v31 = vpop.eup %8836  ;;  %v4793_v44 = vmul.f32 %v12511_v0, %v4664_v20  ;;  %v15126_v20 = vld [vmem:[#allocation198_spill] sm:$0xff] }
 0x8c4   :  { %v5612_v7 = vadd.f32 %v5335_v52, %v4820_v30  ;;  %8844 = vrcp.f32 %v15120_v14  ;;  %v15121_v46 = vld [vmem:[#allocation221_spill] sm:$0xff]  ;;  %v15122_v30 = vld [vmem:[#allocation223_spill] sm:$0xff] }
 0x8c5   :  { %8846 = vrcp.f32 %v15121_v46  ;;  %v4694_v5 = vmul.f32 %v8833_v39, %v15122_v30  ;;  %v8839_v6 = vpop.eup %8838  ;;  %v4792_v52 = vmul.f32 %v12511_v0, %v4663_v55  ;;  %v5779_v39 = vunpack.c.h.b16 %v12555_v60 }
 0x8c6   :  { %v13051_v63 = vpack.c.bf16 %v5613_v4, %v5612_v7  ;;  %v5280_v12 = vpop.permute.xlu0 %5279  ;;  %6061 = vperm.xlu1 %8315, %v5824_v23   ;;  %6106 = vperm.xlu0 %8314, %v5839_v29   ;;  %v4693_v7 = vmul.f32 %v8835_v21, %v15123_v33  ;;  %v15124_v23 = vld [vmem:[#allocation97_spill] sm:$0xff]  ;;  %v4649_v29 = vmul.f32 %v8837_v31, %v15125_v34  ;;  %v5795_v30 = vunpack.c.h.b16 %v12625_v49 }
 0x8c7   :  { %v5599_v36 = vadd.f32 %v5280_v12, %v4807_v19  ;;  %v5276_v53 = vpop.permute.xlu1 %5275  ;;  %8848 = vrcp.f32 %v15124_v23  ;;  %v5884_v12 = vunpack.c.l.b16 %v12961_v18  ;;  %v15132_v23 = vld [vmem:[#allocation59_spill] sm:$0xff] }
 0x8c8   :  { %v5598_v27 = vadd.f32 %v5276_v53, %v4806_v15  ;;  %8850 = vrcp.f32 %v15126_v20  ;;  %v4823_v15 = vmul.f32 %v12511_v0, %v4694_v5  ;;  %v4822_v14 = vmul.f32 %v12511_v0, %v4693_v7  ;;  %v15133_v20 = vld [vmem:[#allocation235_spill] sm:$0xff] }
 0x8c9   :  { %v8841_v25 = vpop.eup %8840  ;;  %v5810_v5 = vunpack.c.l.b16 %v12706_v57 }
 0x8ca   :  { %v13061_v54 = vpack.c.bf16 %v5599_v36, %v5598_v27  ;;  %v5221_v4 = vpop.permute.xlu0 %5220  ;;  %6196 = vperm.xlu0 %8314, %v5869_v28   ;;  %6151 = vperm.xlu1 %8315, %v5854_v9   ;;  %v15127_v36 = vld [vmem:[#allocation114_spill] sm:$0xff]  ;;  %v8843_v46 = vpop.eup %8842 }
 0x8cb   :  { %v5585_v47 = vadd.f32 %v5221_v4, %v4793_v44  ;;  %v5217_v26 = vpop.permute.xlu1 %5216  ;;  %v4650_v53 = vmul.f32 %v8839_v6, %v15127_v36  ;;  %v15128_v28 = vld [vmem:[#allocation194_spill] sm:$0xff]  ;;  %v4778_v4 = vmul.f32 %v12511_v0, %v4649_v29  ;;  %v15131_v6 = vld [vmem:[#allocation181_spill] sm:$0xff]  ;;  %v4680_v34 = vmul.f32 %v8843_v46, %v15132_v23 }
 0x8cc   :  { %v5584_v19 = vadd.f32 %v5217_v26, %v4792_v52  ;;  %8852 = vrcp.f32 %v15128_v28  ;;  %v15129_v44 = vld [vmem:[#allocation230_spill] sm:$0xff]  ;;  %v4679_v7 = vmul.f32 %v8841_v25, %v15131_v6  ;;  %v5825_v29 = vunpack.c.h.b16 %v12777_v22  ;;  %v15135_v25 = vld [vmem:[#allocation127_spill] sm:$0xff] }
 0x8cd   :  { %8854 = vrcp.f32 %v15129_v44  ;;  %v4779_v26 = vmul.f32 %v12511_v0, %v4650_v53  ;;  %v5570_v49 = vadd.f32 %v12881_v42, %v4778_v4 }
 0x8ce   :  { %v13071_v55 = vpack.c.bf16 %v5585_v47, %v5584_v19  ;;  %v5347_v21 = vpop.permute.xlu0 %5346  ;;  %5926 = vperm.xlu0 %8314, %v5779_v39   ;;  %6241 = vperm.xlu1 %8315, %v5884_v12   ;;  %v8845_v9 = vpop.eup %8844  ;;  %8856 = vrcp.f32 %v15133_v20  ;;  %v15134_v12 = vld [vmem:[#allocation100_spill] sm:$0xff]  ;;  %v4808_v36 = vmul.f32 %v12511_v0, %v4679_v7 }
 0x8cf   :  { %v5615_v27 = vadd.f32 %v5347_v21, %v4823_v15  ;;  %v5343_v31 = vpop.permute.xlu1 %5342  ;;  %v8847_v52 = vpop.eup %8846  ;;  %8858 = vrcp.f32 %v15134_v12  ;;  %v5840_v15 = vunpack.c.l.b16 %v12859_v35  ;;  %v4665_v21 = vmul.f32 %v8845_v9, %v15135_v25  ;;  %v15139_v7 = vld [vmem:[#allocation88_spill] sm:$0xff] }
 0x8d0   :  { %v5614_v60 = vadd.f32 %v5343_v31, %v4822_v14  ;;  %v15137_v31 = vld [vmem:[#allocation72_spill] sm:$0xff]  ;;  %v5870_v9 = vunpack.c.l.b16 %v12971_v32  ;;  %v5885_v12 = vunpack.c.h.b16 %v12961_v18  ;;  %v5796_v18 = vunpack.c.l.b16 %v12636_v45 }
 0x8d1   :  { %v8849_v14 = vpop.eup %8848  ;;  %v4666_v28 = vmul.f32 %v8847_v52, %v15137_v31 }
 0x8d2   :  { %v13080_v33 = vpack.c.bf16 %v5615_v27, %v5614_v60  ;;  %v5284_v47 = vpop.permute.xlu0 %5283  ;;  %6019 = vperm.xlu0 %8314, %v5810_v5   ;;  %5974 = vperm.xlu1 %8315, %v5795_v30   ;;  %v4809_v27 = vmul.f32 %v12511_v0, %v4680_v34  ;;  %v8851_v42 = vpop.eup %8850  ;;  %v5855_v30 = vunpack.c.h.b16 %v12951_v59  ;;  %v4794_v5 = vmul.f32 %v12511_v0, %v4665_v21  ;;  %v15140_v34 = vld [vmem:[#allocation25_spill] sm:$0xff] }
 0x8d3   :  { %v5162_v19 = vpop.permute.xlu1 %5161  ;;  %v5600_v44 = vadd.f32 %v5284_v47, %v4808_v36  ;;  %v4795_v52 = vmul.f32 %v12511_v0, %v4666_v28 }
 0x8d4   :  { %15130 = vst [vmem:[#allocation236_spill] sm:$0xff] %v13080_v33  ;;  %v5571_v39 = vadd.f32 %v5162_v19, %v4779_v26  ;;  %v4695_v26 = vmul.f32 %v8849_v14, %v15139_v7  ;;  %v4696_v19 = vmul.f32 %v8851_v42, %v15140_v34 }
 0x8d6   :  { %v13092_v53 = vpack.c.bf16 %v5571_v39, %v5570_v49  ;;  %v5225_v46 = vpop.permute.xlu0 %5224  ;;  %6109 = vperm.xlu0 %8314, %v5840_v15   ;;  %6064 = vperm.xlu1 %8315, %v5825_v29   ;;  %v8853_v4 = vpop.eup %8852  ;;  %v5780_v39 = vunpack.c.l.b16 %v12563_v37  ;;  %v15141_v29 = vld [vmem:[#allocation80_spill] sm:$0xff]  ;;  %v4824_v21 = vmul.f32 %v12511_v0, %v4695_v26  ;;  %v4825_v36 = vmul.f32 %v12511_v0, %v4696_v19  ;;  %v15146_v26 = vld [vmem:[#allocation226_spill] sm:$0xff] }
 0x8d7   :  { %v5288_v60 = vpop.permute.xlu1 %5287  ;;  %v8855_v20 = vpop.eup %8854  ;;  %v5586_v47 = vadd.f32 %v5225_v46, %v4794_v5  ;;  %v4681_v15 = vmul.f32 %v8853_v4, %v15141_v29  ;;  %v15145_v5 = vld [vmem:[#allocation189_spill] sm:$0xff] }
 0x8d8   :  { %15136 = vst [vmem:[#allocation101_spill] sm:$0xff] %v13092_v53  ;;  %v5601_v22 = vadd.f32 %v5288_v60, %v4809_v27  ;;  %v8857_v25 = vpop.eup %8856  ;;  %v15143_v27 = vld [vmem:[#allocation137_spill] sm:$0xff] }
 0x8d9   :  { %v4682_v31 = vmul.f32 %v8855_v20, %v15143_v27  ;;  %v8859_v28 = vpop.eup %8858  ;;  %v4697_v4 = vmul.f32 %v8857_v25, %v15145_v5  ;;  %v5826_v20 = vunpack.c.l.b16 %v12786_v62  ;;  %v5871_v25 = vunpack.c.h.b16 %v12971_v32 }
 0x8da   :  { %v13099_v6 = vpack.c.bf16 %v5601_v22, %v5600_v44  ;;  %v5351_v23 = vpop.permute.xlu0 %5350  ;;  %6154 = vperm.xlu1 %8315, %v5855_v30   ;;  %6199 = vperm.xlu0 %8314, %v5870_v9   ;;  %v5811_v22 = vunpack.c.h.b16 %v12706_v57  ;;  %v4810_v30 = vmul.f32 %v12511_v0, %v4681_v15  ;;  %v5797_v32 = vunpack.c.h.b16 %v12636_v45 }
 0x8db   :  { %v5229_v49 = vpop.permute.xlu1 %5228  ;;  %v5616_v46 = vadd.f32 %v5351_v23, %v4824_v21  ;;  %v4811_v7 = vmul.f32 %v12511_v0, %v4682_v31  ;;  %v5856_v21 = vunpack.c.l.b16 %v12981_v56  ;;  %v5781_v31 = vunpack.c.h.b16 %v12563_v37 }
 0x8dc   :  { %15138 = vst [vmem:[#allocation200_spill] sm:$0xff] %v13099_v6  ;;  %v5587_v59 = vadd.f32 %v5229_v49, %v4795_v52  ;;  %v4698_v52 = vmul.f32 %v8859_v28, %v15146_v26  ;;  %v5841_v49 = vunpack.c.h.b16 %v12859_v35  ;;  %v5827_v37 = vunpack.c.h.b16 %v12786_v62 }
 0x8dd   :  { %v5857_v45 = vunpack.c.h.b16 %v12981_v56  ;;  %v5872_v5 = vunpack.c.l.b16 %v13001_v2  ;;  %v5782_v62 = vunpack.c.l.b16 %v12571_v41  ;;  %v5887_v26 = vunpack.c.h.b16 %v12991_v40 }
 0x8de   :  { %v13108_v14 = vpack.c.bf16 %v5587_v59, %v5586_v47  ;;  %v5292_v42 = vpop.permute.xlu0 %5291  ;;  %6244 = vperm.xlu1 %8315, %v5885_v12   ;;  %5929 = vperm.xlu0 %8314, %v5780_v39   ;;  %v4826_v47 = vmul.f32 %v12511_v0, %v4697_v4  ;;  %v4827_v39 = vmul.f32 %v12511_v0, %v4698_v52  ;;  %v5886_v0 = vunpack.c.l.b16 %v12991_v40 }
 0x8df   :  { %v5355_v60 = vpop.permute.xlu1 %5354  ;;  %v5602_v19 = vadd.f32 %v5292_v42, %v4810_v30  ;;  %v5798_v56 = vunpack.c.l.b16 %v12646_v58  ;;  %v5843_v40 = vunpack.c.h.b16 %v12868_v17  ;;  %v5831_v6 = vunpack.c.h.b16 %v12806_v24 }
 0x8e0   :  { %15142 = vst [vmem:[#allocation201_spill] sm:$0xff] %v13108_v14  ;;  %v5617_v44 = vadd.f32 %v5355_v60, %v4825_v36  ;;  %v5812_v60 = vunpack.c.l.b16 %v12717_v61 }
 0x8e2   :  { %v13115_v9 = vpack.c.bf16 %v5617_v44, %v5616_v46  ;;  %5977 = vperm.xlu1 %8315, %v5796_v18   ;;  %6022 = vperm.xlu0 %8314, %v5811_v22   ;;  %v5359_v57 = vpop.permute.xlu0 %5358  ;;  %v5842_v18 = vunpack.c.l.b16 %v12868_v17  ;;  %v5888_v17 = vunpack.c.l.b16 %v13021_v3 }
 0x8e3   :  { %v5296_v34 = vpop.permute.xlu1 %5295  ;;  %v5618_v29 = vadd.f32 %v5359_v57, %v4826_v47 }
 0x8e4   :  { %15144 = vst [vmem:[#allocation30_spill] sm:$0xff] %v13115_v9  ;;  %v5603_v23 = vadd.f32 %v5296_v34, %v4811_v7 }
 0x8e6   :  { %v13123_v59 = vpack.c.bf16 %v5603_v23, %v5602_v19  ;;  %6067 = vperm.xlu1 %8315, %v5826_v20   ;;  %6112 = vperm.xlu0 %8314, %v5841_v49   ;;  %v5813_v19 = vunpack.c.h.b16 %v12717_v61  ;;  %v5828_v49 = vunpack.c.l.b16 %v12797_v8  ;;  %v5858_v61 = vunpack.c.l.b16 %v13011_v10 }
 0x8e7   :  { %v5363_v12 = vpop.permute.xlu1 %5362 }
 0x8e8   :  { %15147 = vst [vmem:[#allocation202_spill] sm:$0xff] %v13123_v59  ;;  %v5619_v15 = vadd.f32 %v5363_v12, %v4827_v39  ;;  %v5873_v39 = vunpack.c.h.b16 %v13001_v2  ;;  %v5799_v2 = vunpack.c.h.b16 %v12646_v58  ;;  %v5859_v58 = vunpack.c.h.b16 %v13011_v10 }
 0x8e9   :  { %v13130_v27 = vpop.permute.xlu0 %5899  ;;  %v5800_v10 = vunpack.c.l.b16 %v12657_v48 }
 0x8ea   :  { %v13128_v36 = vpack.c.bf16 %v5619_v15, %v5618_v29  ;;  %6202 = vperm.xlu0 %8314, %v5871_v25   ;;  %6157 = vperm.xlu1 %8315, %v5856_v21   ;;  %v5783_v15 = vunpack.c.h.b16 %v12571_v41  ;;  %v5829_v41 = vunpack.c.h.b16 %v12797_v8  ;;  %v5784_v8 = vunpack.c.l.b16 %v12579_v16 }
 0x8eb   :  { %v13132_v35 = vpop.permute.xlu1 %5902 }
 0x8ec   :  { %15148 = vst [vmem:[#allocation203_spill] sm:$0xff] %v13128_v36  ;;  %v5890_v36 = vunpack.c.l.b16 %v13051_v63 }
 0x8ed   :  { %v13136_v28 = vpop.permute.xlu0 %5950 }
 0x8ee   :  { %5932 = vperm.xlu0 %8314, %v5781_v31   ;;  %6247 = vperm.xlu1 %8315, %v5886_v0   ;;  %v5814_v31 = vunpack.c.l.b16 %v12726_v43 }
 0x8ef   :  { %v13138_v42 = vpop.permute.xlu1 %5947 }
 0x8f1   :  { %v13142_v46 = vpop.permute.xlu0 %5953 }
 0x8f2   :  { %5980 = vperm.xlu1 %8315, %v5797_v32   ;;  %6025 = vperm.xlu0 %8314, %v5812_v60   ;;  %v5844_v60 = vunpack.c.l.b16 %v12879_v1 }
 0x8f3   :  { %v13144_v44 = vpop.permute.xlu1 %5905 }
 0x8f5   :  { %v13148_v22 = vpop.permute.xlu0 %5998 }
 0x8f6   :  { %6070 = vperm.xlu1 %8315, %v5827_v37   ;;  %6115 = vperm.xlu0 %8314, %v5842_v18  }
 0x8f7   :  { %v13150_v30 = vpop.permute.xlu1 %5995 }
 0x8f9   :  { %v13154_v4 = vpop.permute.xlu0 %5956 }
 0x8fa   :  { %6160 = vperm.xlu1 %8315, %v5857_v45   ;;  %6205 = vperm.xlu0 %8314, %v5872_v5   ;;  %v5874_v45 = vunpack.c.l.b16 %v13031_v11 }
 0x8fb   :  { %v13156_v7 = vpop.permute.xlu1 %5908 }
 0x8fd   :  { %v13160_v52 = vpop.permute.xlu0 %6043 }
 0x8fe   :  { %6250 = vperm.xlu1 %8315, %v5887_v26   ;;  %5935 = vperm.xlu0 %8314, %v5782_v62   ;;  %v5889_v26 = vunpack.c.h.b16 %v13021_v3  ;;  %v5845_v3 = vunpack.c.h.b16 %v12879_v1 }
 0x8ff   :  { %v13162_v34 = vpop.permute.xlu1 %6001 }
 0x901   :  { %v13166_v23 = vpop.permute.xlu0 %5911 }
 0x902   :  { %5983 = vperm.xlu1 %8315, %v5798_v56   ;;  %6028 = vperm.xlu0 %8314, %v5813_v19  }
 0x903   :  { %v13168_v20 = vpop.permute.xlu1 %6046 }
 0x905   :  { %v13172_v57 = vpop.permute.xlu0 %6004 }
 0x906   :  { %6073 = vperm.xlu1 %8315, %v5828_v49   ;;  %6118 = vperm.xlu0 %8314, %v5843_v40   ;;  %v5815_v49 = vunpack.c.h.b16 %v12726_v43  ;;  %v5875_v43 = vunpack.c.h.b16 %v13031_v11 }
 0x907   :  { %v13174_v47 = vpop.permute.xlu1 %5959 }
 0x909   :  { %v13178_v12 = vpop.permute.xlu0 %6091 }
 0x90a   :  { %6163 = vperm.xlu1 %8315, %v5858_v61   ;;  %6208 = vperm.xlu0 %8314, %v5873_v39   ;;  %v5830_v61 = vunpack.c.l.b16 %v12806_v24  ;;  %v5846_v24 = vunpack.c.l.b16 %v12891_v13 }
 0x90b   :  { %v13180_v29 = vpop.permute.xlu1 %6049 }
 0x90d   :  { %v13184_v25 = vpop.permute.xlu0 %5914 }
 0x90e   :  { %6253 = vperm.xlu1 %8315, %v5888_v17   ;;  %5938 = vperm.xlu0 %8314, %v5783_v15   ;;  %v15150_v15 = vld [vmem:[#allocation190_spill] sm:$0xff] }
 0x90f   :  { %v13186_v21 = vpop.permute.xlu1 %6094  ;;  %v6286_v17 = vadd.s32 4294967288, %v15150_v15  ;;  %v6293_v11 = vadd.s32 4294967280, %v15150_v15  ;;  %v6314_v59 = vadd.s32 4294967256, %v15150_v15  ;;  %v6328_v9 = vadd.s32 4294967240, %v15150_v15 }
 0x911   :  { %v13190_v0 = vpop.permute.xlu0 %6007 }
 0x912   :  { %5986 = vperm.xlu1 %8315, %v5799_v2   ;;  %6031 = vperm.xlu0 %8314, %v5814_v31  }
 0x913   :  { %v13192_v32 = vpop.permute.xlu1 %5962 }
 0x915   :  { %v13196_v37 = vpop.permute.xlu0 %6097 }
 0x916   :  { %6076 = vperm.xlu1 %8315, %v5829_v41   ;;  %6121 = vperm.xlu0 %8314, %v5844_v60   ;;  %v5860_v41 = vunpack.c.l.b16 %v13041_v38  ;;  %v15151_v60 = vld [vmem:[#allocation14_spill] sm:$0xff] }
 0x917   :  { %v13198_v18 = vpop.permute.xlu1 %6052  ;;  %v13234_v1 = vsub.s32 %v15150_v15, %v15151_v60  ;;  %v13260_v33 = vsub.s32 %v6293_v11, %v15151_v60 }
 0x919   :  { %v13202_v5 = vpop.permute.xlu0 %6142 }
 0x91a   :  { %6166 = vperm.xlu1 %8315, %v5859_v58   ;;  %6211 = vperm.xlu0 %8314, %v5874_v45   ;;  %v13228_v58 = vsub.s32 %v6286_v17, %v15151_v60  ;;  %v5785_v45 = vunpack.c.h.b16 %v12579_v16  ;;  %v6300_v16 = vadd.s32 4294967272, %v15150_v15 }
 0x91b   :  { %v13204_v62 = vpop.permute.xlu1 %6139 }
 0x91d   :  { %v13208_v56 = vpop.permute.xlu0 %5965 }
 0x91e   :  { %6256 = vperm.xlu1 %8315, %v5889_v26   ;;  %5941 = vperm.xlu0 %8314, %v5784_v8   ;;  %v5801_v8 = vunpack.c.h.b16 %v12657_v48  ;;  %v6307_v48 = vadd.s32 4294967264, %v15150_v15 }
 0x91f   :  { %v13210_v19 = vpop.permute.xlu1 %5917 }
 0x921   :  { %v13214_v40 = vpop.permute.xlu0 %6055 }
 0x922   :  { %15149 = vst [vmem:[#allocation204_spill] sm:$0xff] %v13214_v40  ;;  %5989 = vperm.xlu1 %8315, %v5800_v10   ;;  %6034 = vperm.xlu0 %8314, %v5815_v49   ;;  %v5816_v10 = vunpack.c.l.b16 %v12737_v51  ;;  %v6321_v49 = vadd.s32 4294967248, %v15150_v15 }
 0x923   :  { %v13216_v39 = vpop.permute.xlu1 %6010 }
 0x925   :  { %v13221_v2 = vpop.permute.xlu0 %6145 }
 0x926   :  { %6079 = vperm.xlu1 %8315, %v5830_v61   ;;  %6124 = vperm.xlu0 %8314, %v5845_v3  }
 0x927   :  { %v13223_v31 = vpop.permute.xlu1 %6100 }
 0x929   :  { %v6191_v26 = vpop.permute.xlu0 %6190 }
 0x92a   :  { %v6793_v61 = vrot.slane %v6191_v26, %v13228_v58  ;;  %6169 = vperm.xlu1 %8315, %v5860_v41   ;;  %6214 = vperm.xlu0 %8314, %v5875_v43   ;;  %v6285_v26 = vrot.slane %v13130_v27, %v13234_v1  ;;  %v6290_v43 = vrot.slane %v13132_v35, %v13228_v58 }
 0x92b   :  { %v6188_v3 = vpop.permute.xlu1 %6187  ;;  %v6398_v27 = vrot.slane %v13136_v28, %v13228_v58  ;;  %v6394_v35 = vrot.slane %v13138_v42, %v13234_v1  ;;  %v13281_v42 = vsub.s32 %v6321_v49, %v15151_v60  ;;  %v6710_v49 = vrot.slane %v13204_v62, %v13234_v1 }
 0x92c   :  { %v6789_v17 = vrot.slane %v6188_v3, %v13234_v1  ;;  %v6335_v3 = vadd.s32 4294967232, %v15150_v15  ;;  %v6292_v28 = vsel %vm6291_vm2, %v6290_v43, %v6285_v26  ;;  %v6714_v26 = vrot.slane %v13202_v5, %v13228_v58 }
 0x92d   :  { %v13254_v14 = vpop.permute.xlu0 %5968  ;;  %v6297_v5 = vrot.slane %v13144_v44, %v13260_v33  ;;  %v6477_v62 = vrot.slane %v13148_v22, %v13228_v58  ;;  %v6482_v44 = vrot.slane %v13162_v34, %v13260_v33 }
 0x92e   :  { %v13252_v41 = vsel %vm6291_vm2, %v6793_v61, %v6789_v17  ;;  %6259 = vperm.xlu1 %8315, %v5890_v36   ;;  %5944 = vperm.xlu0 %8314, %v5785_v45   ;;  %v13269_v61 = vsub.s32 %v6300_v16, %v15151_v60  ;;  %v13274_v17 = vsub.s32 %v6307_v48, %v15151_v60  ;;  %v5861_v48 = vunpack.c.h.b16 %v13041_v38 }
 0x92f   :  { %v13262_v40 = vpop.permute.xlu1 %5920  ;;  %v13277_v36 = vsub.s32 %v6314_v59, %v15151_v60  ;;  %v13284_v45 = vsub.s32 %v6328_v9, %v15151_v60  ;;  %v13289_v11 = vsub.s32 %v6335_v3, %v15151_v60  ;;  %v6635_v59 = vrot.slane %v13186_v21, %v13228_v58 }
 0x930   :  { %v6399_v9 = vsel %vm6291_vm2, %v6398_v27, %v6394_v35  ;;  %v6403_v3 = vrot.slane %v13142_v46, %v13260_v33  ;;  %v6640_v38 = vrot.slane %v13196_v37, %v13260_v33  ;;  %v6719_v21 = vrot.slane %v13221_v2, %v13260_v33 }
 0x931   :  { %v13286_v16 = vpop.permute.xlu0 %6058  ;;  %v6473_v46 = vrot.slane %v13150_v30, %v13234_v1  ;;  %v6408_v37 = vrot.slane %v13154_v4, %v13269_v61  ;;  %v6304_v2 = vrot.slane %v13156_v7, %v13269_v61  ;;  %v6311_v4 = vrot.slane %v13166_v23, %v13274_v17 }
 0x932   :  { %5992 = vperm.xlu1 %8315, %v5801_v8   ;;  %6037 = vperm.xlu0 %8314, %v5816_v10   ;;  %v6631_v8 = vrot.slane %v13178_v12, %v13234_v1  ;;  %v6645_v10 = vrot.slane %v13223_v31, %v13269_v61  ;;  %v5876_v12 = vunpack.c.l.b16 %v13061_v54  ;;  %v6715_v31 = vsel %vm6291_vm2, %v6714_v26, %v6710_v49 }
 0x933   :  { %v13298_v43 = vpop.permute.xlu1 %6013  ;;  %v6720_v34 = vsel %vm6298_vm3, %v6719_v21, %v6715_v31  ;;  %v6404_v60 = vsel %vm6298_vm3, %v6403_v3, %v6399_v9  ;;  %v6478_v23 = vsel %vm6291_vm2, %v6477_v62, %v6473_v46  ;;  %v5891_v9 = vunpack.c.h.b16 %v13051_v63 }
 0x934   :  { %v6636_v27 = vsel %vm6291_vm2, %v6635_v59, %v6631_v8  ;;  %v6318_v59 = vrot.slane %v13184_v25, %v13277_v36  ;;  %v6552_v25 = vrot.slane %v13160_v52, %v13234_v1  ;;  %v6325_v8 = vrot.slane %v13210_v19, %v13281_v42 }
 0x935   :  { %v6149_v22 = vpop.permute.xlu0 %6148  ;;  %v6641_v7 = vsel %vm6298_vm3, %v6640_v38, %v6636_v27  ;;  %v6487_v52 = vrot.slane %v13172_v57, %v13269_v61  ;;  %v6413_v19 = vrot.slane %v13174_v47, %v13274_v17  ;;  %v6492_v62 = vrot.slane %v13190_v0, %v13274_v17 }
 0x936   :  { %v6724_v35 = vrot.slane %v6149_v22, %v13269_v61  ;;  %6082 = vperm.xlu1 %8315, %v5831_v6   ;;  %6127 = vperm.xlu0 %8314, %v5846_v24   ;;  %v6646_v26 = vsel %vm6305_vm4, %v6645_v10, %v6641_v7  ;;  %v6299_v6 = vsel %vm6298_vm3, %v6297_v5, %v6292_v28  ;;  %v5877_v57 = vunpack.c.h.b16 %v13061_v54 }
 0x937   :  { %v6104_v30 = vpop.permute.xlu1 %6103  ;;  %v6409_v24 = vsel %vm6305_vm4, %v6408_v37, %v6404_v60  ;;  %v6306_v3 = vsel %vm6305_vm4, %v6304_v2, %v6299_v6  ;;  %v6483_v28 = vsel %vm6298_vm3, %v6482_v44, %v6478_v23  ;;  %v6556_v5 = vrot.slane %v13168_v20, %v13228_v58  ;;  %v15155_v6 = vld [vmem:[#allocation204_spill] sm:$0xff] }
 0x938   :  { %v6650_v53 = vrot.slane %v6104_v30, %v13274_v17  ;;  %v13337_v49 = vsel %vm6305_vm4, %v6724_v35, %v6720_v34  ;;  %v6313_v60 = vsel %vm6312_vm5, %v6311_v4, %v6306_v3  ;;  %v6418_v46 = vrot.slane %v13192_v32, %v13277_v36 }
 0x939   :  { %v6236_v21 = vpop.permute.xlu0 %6235  ;;  %v6497_v2 = vrot.slane %v13216_v39, %v13277_v36  ;;  %v15152_v32 = vunpack.c.h.b16 %v12737_v51  ;;  %v6414_v39 = vsel %vm6312_vm5, %v6413_v19, %v6409_v24  ;;  %v6428_v27 = vrot.slane %v13254_v14, %v13284_v45  ;;  %v15156_v19 = vld [vmem:[#allocation236_spill] sm:$0xff] }
 0x93a   :  { %v13343_v38 = vsel %vm6312_vm5, %v6650_v53, %v6646_v26  ;;  %6172 = vperm.xlu1 %8315, %v5861_v48   ;;  %6217 = vperm.xlu0 %8314, %v5876_v12   ;;  %v6332_v53 = vrot.slane %v13262_v40, %v13284_v45  ;;  %v6320_v48 = vsel %vm6319_vm6, %v6318_v59, %v6313_v60  ;;  %v15153_v59 = vunpack.c.l.b16 %v12819_v50 }
 0x93b   :  { %v6194_v10 = vpop.permute.xlu1 %6193  ;;  %v6423_v40 = vrot.slane %v13208_v56, %v13281_v42  ;;  %v6327_v47 = vsel %vm6326_vm7, %v6325_v8, %v6320_v48  ;;  %v6868_v22 = vrot.slane %v6236_v21, %v13234_v1  ;;  %v6488_v12 = vsel %vm6305_vm4, %v6487_v52, %v6483_v28 }
 0x93c   :  { %v6798_v63 = vrot.slane %v6194_v10, %v13260_v33  ;;  %v6334_v56 = vsel %vm6333_vm8, %v6332_v53, %v6327_v47  ;;  %v6561_v51 = vrot.slane %v13180_v29, %v13260_v33  ;;  %v6493_v35 = vsel %vm6312_vm5, %v6492_v62, %v6488_v12 }
 0x93d   :  { %v5924_v37 = vpop.permute.xlu0 %5923  ;;  %v6566_v4 = vrot.slane %v13198_v18, %v13269_v61  ;;  %v6498_v7 = vsel %vm6319_vm6, %v6497_v2, %v6493_v35  ;;  %v15154_v29 = vunpack.c.h.b16 %v12891_v13  ;;  %v6571_v23 = vrot.slane %v15155_v6, %v13274_v17  ;;  %v15157_v2 = vld [vmem:[#allocation14_spill] sm:$0xff] }
 0x93e   :  { %v13371_v20 = vsel %vm6298_vm3, %v6798_v63, %v13252_v41  ;;  %v6339_v0 = vrot.slane %v5924_v37, %v13289_v11  ;;  %6262 = vperm.xlu1 %8315, %v5891_v9   ;;  %6040 = vperm.xlu0 %8314, %v15152_v32   ;;  %v6502_v41 = vrot.slane %v13298_v43, %v13281_v42  ;;  %v5833_v52 = vunpack.c.h.b16 %v12819_v50  ;;  %v15158_v32 = vld [vmem:[#allocation101_spill] sm:$0xff] }
 0x93f   :  { %v6239_v44 = vpop.permute.xlu1 %6238  ;;  %v6419_v43 = vsel %vm6319_vm6, %v6418_v46, %v6414_v39  ;;  %v6557_v21 = vsel %vm6291_vm2, %v6556_v5, %v6552_v25  ;;  %v6576_v3 = vrot.slane %v13286_v16, %v13277_v36  ;;  %v6342_v25 = vadd.s32 4294967224, %v15150_v15 }
 0x940   :  { %v6872_v54 = vrot.slane %v6239_v44, %v13228_v58  ;;  %v6341_v31 = vsel %vm6340_vm9, %v6339_v0, %v6334_v56  ;;  %v5862_v58 = vunpack.c.l.b16 %v13071_v55  ;;  %v6424_v26 = vsel %vm6326_vm7, %v6423_v40, %v6419_v43  ;;  %v8332_v43 = vld [vmem:[#allocation6 + $0x80] sm:$0xff]  }
 0x941   :  { %v6017_v30 = vpop.permute.xlu0 %6016  ;;  %v6503_v24 = vsel %vm6326_vm7, %v6502_v41, %v6498_v7  ;;  %v6429_v9 = vsel %vm6333_vm8, %v6428_v27, %v6424_v26  ;;  %v6562_v13 = vsel %vm6298_vm3, %v6561_v51, %v6557_v21  ;;  %v5892_v48 = vunpack.c.l.b16 %v15156_v19  ;;  %8008 = vmatpush3.bf16.msra.mxu0 %v8332_v43  ;;  %v15160_v7 = vld [vmem:[#allocation201_spill] sm:$0xff]  ;;  %v15162_v21 = vld [vmem:[#allocation30_spill] sm:$0xff] }
 0x942   :  { %v6873_v1 = vsel %vm6291_vm2, %v6872_v54, %v6868_v22  ;;  %v6507_v14 = vrot.slane %v6017_v30, %v13284_v45  ;;  %6085 = vperm.xlu1 %8315, %v15153_v59   ;;  %6130 = vperm.xlu0 %8314, %v15154_v29   ;;  %v6567_v60 = vsel %vm6305_vm4, %v6566_v4, %v6562_v13  ;;  %v5863_v44 = vunpack.c.h.b16 %v13071_v55  ;;  %v15159_v55 = vld [vmem:[#allocation200_spill] sm:$0xff] }
 0x943   :  { %v5972_v34 = vpop.permute.xlu1 %5971  ;;  %v6572_v5 = vsel %vm6312_vm5, %v6571_v23, %v6567_v60  ;;  %v13429_v0 = vsub.s32 %v6342_v25, %v15157_v2  ;;  %v5848_v56 = vunpack.c.l.b16 %v15158_v32  ;;  %v5893_v27 = vunpack.c.h.b16 %v15156_v19  ;;  %v8335_v19 = vld [vmem:[#allocation6 + $0x98] sm:$0xff]  }
 0x944   :  { %v6433_v18 = vrot.slane %v5972_v34, %v13289_v11  ;;  %v6508_v8 = vsel %vm6333_vm8, %v6507_v14, %v6503_v24  ;;  %v6577_v62 = vsel %vm6319_vm6, %v6576_v3, %v6572_v5  ;;  %v5878_v51 = vunpack.c.l.b16 %v15159_v55  ;;  %v15163_v5 = vld [vmem:[#allocation202_spill] sm:$0xff] }
 0x945   :  { %v6107_v28 = vpop.permute.xlu0 %6106  ;;  %v5864_v14 = vunpack.c.l.b16 %v15160_v7  ;;  %v15161_v59 = vmov 0.0   ;;  %v6349_v23 = vadd.s32 4294967216, %v15150_v15  ;;  %v5865_v25 = vunpack.c.h.b16 %v15160_v7 }
 0x946   :  { %v6434_v10 = vsel %vm6340_vm9, %v6433_v18, %v6429_v9  ;;  %v6655_v53 = vrot.slane %v6107_v28, %v13277_v36  ;;  %6175 = vperm.xlu1 %8315, %v5862_v58   ;;  %6220 = vperm.xlu0 %8314, %v5877_v57   ;;  %v5879_v18 = vunpack.c.h.b16 %v15159_v55  ;;  %v5894_v9 = vunpack.c.l.b16 %v15162_v21 }
 0x947   :  { %v6062_v63 = vpop.permute.xlu1 %6061  ;;  %8009 = vmatprep.subr.bf16.mxu0 %v15161_v59  ;;  %vm6946_vm2 = vcmask 1042434  }
 0x948   :  { %v6581_v16 = vrot.slane %v6062_v63, %v13281_v42  ;;  %v6656_v46 = vsel %vm6319_vm6, %v6655_v53, %v13343_v38  ;;  %v13461_v53 = vsub.s32 %v6349_v23, %v15157_v2 }
 0x949   :  { %v6197_v37 = vpop.permute.xlu0 %6196 }
 0x94a   :  { %v6582_v40 = vsel %vm6326_vm7, %v6581_v16, %v6577_v62  ;;  %v6803_v57 = vrot.slane %v6197_v37, %v13269_v61  ;;  %6265 = vperm.xlu1 %8315, %v5892_v48   ;;  %6088 = vperm.xlu0 %8314, %v5833_v52   ;;  %v5880_v16 = vunpack.c.l.b16 %v15163_v5 }
 0x94b   :  { %v6152_v47 = vpop.permute.xlu1 %6151 }
 0x94c   :  { %v6729_v50 = vrot.slane %v6152_v47, %v13274_v17  ;;  %v6804_v38 = vsel %vm6305_vm4, %v6803_v57, %v13371_v20  ;;  %v5895_v57 = vunpack.c.h.b16 %v15162_v21  ;;  %v5881_v47 = vunpack.c.h.b16 %v15163_v5 }
 0x94d   :  { %v5927_v22 = vpop.permute.xlu0 %5926 }
 0x94e   :  { %v6730_v41 = vsel %vm6312_vm5, %v6729_v50, %v13337_v49  ;;  %v6346_v54 = vrot.slane %v5927_v22, %v13429_v0  ;;  %6133 = vperm.xlu1 %8315, %v5848_v56   ;;  %6178 = vperm.xlu0 %8314, %v5863_v44   ;;  %v8336_v44 = vld [vmem:[#allocation6 + $0xa0] sm:$0xff]   ;;  %v15164_v22 = vld [vmem:[#allocation203_spill] sm:$0xff] }
 0x94f   :  { %v6242_v12 = vpop.permute.xlu1 %6241 }
 0x950   :  { %v6877_v39 = vrot.slane %v6242_v12, %v13260_v33  ;;  %v6348_v35 = vsel %vm6347_vm10, %v6346_v54, %v6341_v31  ;;  %v5849_v33 = vunpack.c.h.b16 %v15158_v32  ;;  %v8333_v31 = vld [vmem:[#allocation6 + $0x88] sm:$0xff]   ;;  %v5896_v54 = vunpack.c.l.b16 %v15164_v22 }
 0x951   :  { %v6020_v30 = vpop.permute.xlu0 %6019  ;;  %8010 = vmatpush3.bf16.msra.mxu0 %v8333_v31  ;;  %v5897_v12 = vunpack.c.h.b16 %v15164_v22 }
 0x952   :  { %v6878_v20 = vsel %vm6298_vm3, %v6877_v39, %v6873_v1  ;;  %v6512_v49 = vrot.slane %v6020_v30, %v13289_v11  ;;  %6223 = vperm.xlu1 %8315, %v5878_v51   ;;  %6268 = vperm.xlu0 %8314, %v5893_v27   ;;  %v8337_v51 = vld [vmem:[#allocation6 + $0xa8] sm:$0xff]   ;;  %vm6948_vm3 = vcmask 1043459  }
 0x953   :  { %v5975_v58 = vpop.permute.xlu1 %5974  ;;  %8011 = vmatprep.subr.bf16.mxu0 %v15161_v59 }
 0x954   :  { %v6438_v4 = vrot.slane %v5975_v58, %v13429_v0  ;;  %v6513_v34 = vsel %vm6340_vm9, %v6512_v49, %v6508_v8  ;;  %v8334_v8 = vld [vmem:[#allocation6 + $0x90] sm:$0xff]  }
 0x955   :  { %v6110_v29 = vpop.permute.xlu0 %6109  ;;  %8012 = vmatpush3.bf16.msra.mxu0 %v8334_v8  ;;  %v8338_v49 = vld [vmem:[#allocation6 + $0xb0] sm:$0xff]  }
 0x956   :  { %v6439_v1 = vsel %vm6347_vm10, %v6438_v4, %v6434_v10  ;;  %v6660_v26 = vrot.slane %v6110_v29, %v13281_v42  ;;  %6136 = vperm.xlu1 %8315, %v5849_v33   ;;  %6181 = vperm.xlu0 %8314, %v5864_v14   ;;  %v8339_v29 = vld [vmem:[#allocation6 + $0xb8] sm:$0xff]  }
 0x957   :  { %v6065_v6 = vpop.permute.xlu1 %6064  ;;  %8013 = vmatprep.subr.bf16.mxu0 %v15161_v59 }
 0x958   :  { %v6586_v24 = vrot.slane %v6065_v6, %v13284_v45  ;;  %v6661_v3 = vsel %vm6326_vm7, %v6660_v26, %v6656_v46 }
 0x959   :  { %v6200_v10 = vpop.permute.xlu0 %6199  ;;  %8014 = vmatpush3.bf16.msra.mxu0 %v8335_v19  ;;  %v6363_v19 = vadd.s32 4294967200, %v15150_v15 }
 0x95a   :  { %v6587_v13 = vsel %vm6333_vm8, %v6586_v24, %v6582_v40  ;;  %v6808_v28 = vrot.slane %v6200_v10, %v13274_v17  ;;  %6226 = vperm.xlu1 %8315, %v5879_v18   ;;  %6271 = vperm.xlu0 %8314, %v5894_v9   ;;  %v8340_v18 = vld [vmem:[#allocation6 + $0xc0] sm:$0xff]  }
 0x95b   :  { %v6155_v60 = vpop.permute.xlu1 %6154  ;;  %8015 = vmatprep.subr.bf16.mxu0 %v15161_v59  ;;  %8028 = vmatpush3.bf16.msra.mxu1 %v8340_v18 }
 0x95c   :  { %v6734_v63 = vrot.slane %v6155_v60, %v13277_v36  ;;  %v6809_v52 = vsel %vm6312_vm5, %v6808_v28, %v6804_v38  ;;  %8029 = vmatprep.subr.bf16.mxu1 %v15161_v59 }
 0x95d   :  { %v5930_v62 = vpop.permute.xlu0 %5929  ;;  %8016 = vmatpush3.bf16.msra.mxu0 %v8336_v44 }
 0x95e   :  { %v6735_v48 = vsel %vm6319_vm6, %v6734_v63, %v6730_v41  ;;  %v6353_v46 = vrot.slane %v5930_v62, %v13461_v53  ;;  %6184 = vperm.xlu1 %8315, %v5865_v25   ;;  %6229 = vperm.xlu0 %8314, %v5880_v16   ;;  %v8342_v25 = vld [vmem:[#allocation6 + $0xd0] sm:$0xff]  }
 0x95f   :  { %v6245_v40 = vpop.permute.xlu1 %6244  ;;  %8017 = vmatprep.subr.bf16.mxu0 %v15161_v59 }
 0x960   :  { %v6882_v37 = vrot.slane %v6245_v40, %v13269_v61  ;;  %v6355_v50 = vsel %vm6354_vm11, %v6353_v46, %v6348_v35  ;;  %v8343_v46 = vld [vmem:[#allocation6 + $0xd8] sm:$0xff]  }
 0x961   :  { %v6023_v56 = vpop.permute.xlu0 %6022  ;;  %8018 = vmatpush3.bf16.msra.mxu0 %v8337_v51 }
 0x962   :  { %v6883_v32 = vsel %vm6305_vm4, %v6882_v37, %v6878_v20  ;;  %v6517_v38 = vrot.slane %v6023_v56, %v13429_v0  ;;  %6274 = vperm.xlu1 %8315, %v5895_v57   ;;  %6232 = vperm.xlu0 %8314, %v5881_v47   ;;  %v6356_v20 = vadd.s32 4294967208, %v15150_v15  ;;  %v8344_v56 = vld [vmem:[#allocation6 + $0xe0] sm:$0xff]   ;;  %vm6950_vm4 = vcmask 1044484  }
 0x963   :  { %v5978_v41 = vpop.permute.xlu1 %5977  ;;  %8019 = vmatprep.subr.bf16.mxu0 %v15161_v59 }
 0x964   :  { %v6443_v61 = vrot.slane %v5978_v41, %v13461_v53  ;;  %v6518_v39 = vsel %vm6347_vm10, %v6517_v38, %v6513_v34  ;;  %v13491_v34 = vsub.s32 %v6356_v20, %v15157_v2 }
 0x965   :  { %v6113_v55 = vpop.permute.xlu0 %6112  ;;  %8020 = vmatpush3.bf16.msra.mxu0 %v8338_v49 }
 0x966   :  { %v6444_v27 = vsel %vm6354_vm11, %v6443_v61, %v6439_v1  ;;  %v6665_v35 = vrot.slane %v6113_v55, %v13284_v45  ;;  %6277 = vperm.xlu1 %8315, %v5896_v54   ;;  %6280 = vperm.xlu0 %8314, %v5897_v12  }
 0x967   :  { %v6068_v43 = vpop.permute.xlu1 %6067  ;;  %8021 = vmatprep.subr.bf16.mxu0 %v15161_v59 }
 0x968   :  { %v6591_v30 = vrot.slane %v6068_v43, %v13289_v11  ;;  %v6666_v58 = vsel %vm6333_vm8, %v6665_v35, %v6661_v3  ;;  %v8341_v3 = vld [vmem:[#allocation6 + $0xc8] sm:$0xff]  }
 0x969   :  { %v6203_v33 = vpop.permute.xlu0 %6202  ;;  %8022 = vmatpush3.bf16.msra.mxu0 %v8339_v29  ;;  %8030 = vmatpush3.bf16.msra.mxu1 %v8341_v3 }
 0x96a   :  { %v6592_v4 = vsel %vm6340_vm9, %v6591_v30, %v6587_v13  ;;  %v6813_v7 = vrot.slane %v6203_v33, %v13277_v36  ;;  %8031 = vmatprep.subr.bf16.mxu1 %v15161_v59  ;;  %v8346_v30 = vld [vmem:[#allocation6 + $0xf0] sm:$0xff]   ;;  %v6370_v33 = vadd.s32 4294967192, %v15150_v15 }
 0x96b   :  { %v6158_v14 = vpop.permute.xlu1 %6157 }
 0x96c   :  { %v6739_v31 = vrot.slane %v6158_v14, %v13281_v42  ;;  %v6814_v1 = vsel %vm6319_vm6, %v6813_v7, %v6809_v52 }
 0x96d   :  { %v5933_v6 = vpop.permute.xlu0 %5932  ;;  %8032 = vmatpush3.bf16.msra.mxu1 %v8342_v25 }
 0x96e   :  { %v6740_v26 = vsel %vm6326_vm7, %v6739_v31, %v6735_v48  ;;  %v6360_v23 = vrot.slane %v5933_v6, %v13491_v34  ;;  %8033 = vmatprep.subr.bf16.mxu1 %v15161_v59  ;;  %v13539_v6 = vsub.s32 %v6370_v33, %v15157_v2 }
 0x96f   :  { %v6248_v24 = vpop.permute.xlu1 %6247 }
 0x970   :  { %v6887_v21 = vrot.slane %v6248_v24, %v13274_v17  ;;  %v6362_v9 = vsel %vm6361_vm12, %v6360_v23, %v6355_v50  ;;  %v13515_v50 = vsub.s32 %v6363_v19, %v15157_v2 }
 0x971   :  { %v6026_v13 = vpop.permute.xlu0 %6025  ;;  %8034 = vmatpush3.bf16.msra.mxu1 %v8343_v46 }
 0x972   :  { %v6888_v8 = vsel %vm6312_vm5, %v6887_v21, %v6883_v32  ;;  %v6522_v10 = vrot.slane %v6026_v13, %v13461_v53  ;;  %8035 = vmatprep.subr.bf16.mxu1 %v15161_v59  ;;  %vm6952_vm5 = vcmask 1045509  }
 0x973   :  { %v5981_v28 = vpop.permute.xlu1 %5980 }
 0x974   :  { %v6448_v60 = vrot.slane %v5981_v28, %v13491_v34  ;;  %v6523_v63 = vsel %vm6354_vm11, %v6522_v10, %v6518_v39  ;;  %v8345_v39 = vld [vmem:[#allocation6 + $0xe8] sm:$0xff]  }
 0x975   :  { %v6116_v5 = vpop.permute.xlu0 %6115  ;;  %8036 = vmatpush3.bf16.msra.mxu1 %v8344_v56 }
 0x976   :  { %v6449_v17 = vsel %vm6361_vm12, %v6448_v60, %v6444_v27  ;;  %v6670_v16 = vrot.slane %v6116_v5, %v13289_v11  ;;  %8037 = vmatprep.subr.bf16.mxu1 %v15161_v59 }
 0x977   :  { %v6071_v52 = vpop.permute.xlu1 %6070 }
 0x978   :  { %v6596_v48 = vrot.slane %v6071_v52, %v13429_v0  ;;  %v6671_v62 = vsel %vm6340_vm9, %v6670_v16, %v6666_v58 }
 0x979   :  { %v6206_v37 = vpop.permute.xlu0 %6205  ;;  %8038 = vmatpush3.bf16.msra.mxu1 %v8345_v39 }
 0x97a   :  { %v6597_v40 = vsel %vm6347_vm10, %v6596_v48, %v6592_v4  ;;  %v6818_v57 = vrot.slane %v6206_v37, %v13281_v42  ;;  %8039 = vmatprep.subr.bf16.mxu1 %v15161_v59 }
 0x97b   :  { %v6161_v47 = vpop.permute.xlu1 %6160 }
 0x97c   :  { %v6744_v44 = vrot.slane %v6161_v47, %v13284_v45  ;;  %v6819_v32 = vsel %vm6326_vm7, %v6818_v57, %v6814_v1 }
 0x97d   :  { %v5936_v41 = vpop.permute.xlu0 %5935  ;;  %8040 = vmatpush3.bf16.msra.mxu1 %v8346_v30 }
 0x97e   :  { %v6745_v38 = vsel %vm6333_vm8, %v6744_v44, %v6740_v26  ;;  %v6367_v61 = vrot.slane %v5936_v41, %v13515_v50  ;;  %8041 = vmatprep.subr.bf16.mxu1 %v15161_v59 }
 0x97f   :  { %v6251_v22 = vpop.permute.xlu1 %6250 }
 0x980   :  { %v6892_v54 = vrot.slane %v6251_v22, %v13277_v36  ;;  %v6369_v12 = vsel %vm6368_vm13, %v6367_v61, %v6362_v9 }
 0x981   :  { %v6029_v55 = vpop.permute.xlu0 %6028 }
 0x982   :  { %v6893_v27 = vsel %vm6319_vm6, %v6892_v54, %v6888_v8  ;;  %v6527_v51 = vrot.slane %v6029_v55, %v13491_v34  ;;  %vm6954_vm6 = vcmask 1046534  }
 0x983   :  { %v5984_v35 = vpop.permute.xlu1 %5983 }
 0x984   :  { %v6453_v43 = vrot.slane %v5984_v35, %v13515_v50  ;;  %v6528_v20 = vsel %vm6361_vm12, %v6527_v51, %v6523_v63  ;;  %v6384_v35 = vadd.s32 4294967176, %v15150_v15 }
 0x985   :  { %v6119_v49 = vpop.permute.xlu0 %6118 }
 0x986   :  { %v6454_v36 = vsel %vm6368_vm13, %v6453_v43, %v6449_v17  ;;  %v6675_v58 = vrot.slane %v6119_v49, %v13429_v0 }
 0x987   :  { %v6074_v4 = vpop.permute.xlu1 %6073 }
 0x988   :  { %v6601_v7 = vrot.slane %v6074_v4, %v13461_v53  ;;  %v6676_v14 = vsel %vm6347_vm10, %v6675_v58, %v6671_v62 }
 0x989   :  { %v6209_v1 = vpop.permute.xlu0 %6208 }
 0x98a   :  { %v6602_v31 = vsel %vm6354_vm11, %v6601_v7, %v6597_v40  ;;  %v6823_v29 = vrot.slane %v6209_v1, %v13284_v45 }
 0x98b   :  { %v6164_v26 = vpop.permute.xlu1 %6163 }
 0x98c   :  { %v6749_v23 = vrot.slane %v6164_v26, %v13289_v11  ;;  %v6824_v24 = vsel %vm6333_vm8, %v6823_v29, %v6819_v32 }
 0x98d   :  { %v5939_v21 = vpop.permute.xlu0 %5938 }
 0x98e   :  { %v6750_v18 = vsel %vm6340_vm9, %v6749_v23, %v6745_v38  ;;  %v6374_v9 = vrot.slane %v5939_v21, %v13539_v6 }
 0x98f   :  { %v6254_v3 = vpop.permute.xlu1 %6253 }
 0x990   :  { %v6897_v8 = vrot.slane %v6254_v3, %v13281_v42  ;;  %v6376_v59 = vsel %vm6375_vm14, %v6374_v9, %v6369_v12  ;;  %v6377_v42 = vadd.s32 4294967184, %v15150_v15 }
 0x991   :  { %v6032_v10 = vpop.permute.xlu0 %6031 }
 0x992   :  { %v6898_v13 = vsel %vm6326_vm7, %v6897_v8, %v6893_v27  ;;  %v6532_v28 = vrot.slane %v6032_v10, %v13515_v50  ;;  %v13561_v57 = vsub.s32 %v6377_v42, %v15157_v2  ;;  %vm6956_vm7 = vcmask 1047559  }
 0x993   :  { %v5987_v60 = vpop.permute.xlu1 %5986 }
 0x994   :  { %v6458_v63 = vrot.slane %v5987_v60, %v13539_v6  ;;  %v6533_v25 = vsel %vm6368_vm13, %v6532_v28, %v6528_v20  ;;  %v13582_v20 = vsub.s32 %v6384_v35, %v15157_v2 }
 0x995   :  { %v6122_v5 = vpop.permute.xlu0 %6121 }
 0x996   :  { %v6459_v17 = vsel %vm6375_vm14, %v6458_v63, %v6454_v36  ;;  %v6680_v16 = vrot.slane %v6122_v5, %v13461_v53 }
 0x997   :  { %v6077_v52 = vpop.permute.xlu1 %6076 }
 0x998   :  { %v6606_v19 = vrot.slane %v6077_v52, %v13491_v34  ;;  %v13556_v48 = vsel %vm6354_vm11, %v6680_v16, %v6676_v14 }
 0x999   :  { %v6212_v46 = vpop.permute.xlu0 %6211 }
 0x99a   :  { %v6607_v62 = vsel %vm6361_vm12, %v6606_v19, %v6602_v31  ;;  %v6828_v40 = vrot.slane %v6212_v46, %v13289_v11 }
 0x99b   :  { %v6167_v37 = vpop.permute.xlu1 %6166 }
 0x99c   :  { %v6754_v47 = vrot.slane %v6167_v37, %v13429_v0  ;;  %v13565_v44 = vsel %vm6340_vm9, %v6828_v40, %v6824_v24 }
 0x99d   :  { %v5942_v56 = vpop.permute.xlu0 %5941 }
 0x99e   :  { %v13568_v32 = vsel %vm6347_vm10, %v6754_v47, %v6750_v18  ;;  %v6381_v38 = vrot.slane %v5942_v56, %v13561_v57 }
 0x99f   :  { %v6257_v41 = vpop.permute.xlu1 %6256 }
 0x9a0   :  { %v6902_v61 = vrot.slane %v6257_v41, %v13284_v45  ;;  %v6383_v22 = vsel %vm6382_vm15, %v6381_v38, %v6376_v59 }
 0x9a1   :  { %v6035_v12 = vpop.permute.xlu0 %6034 }
 0x9a2   :  { %v13574_v54 = vsel %vm6333_vm8, %v6902_v61, %v6898_v13  ;;  %v6537_v26 = vrot.slane %v6035_v12, %v13539_v6 }
 0x9a3   :  { %v5990_v39 = vpop.permute.xlu1 %5989 }
 0x9a4   :  { %v6463_v36 = vrot.slane %v5990_v39, %v13561_v57  ;;  %v6538_v21 = vsel %vm6375_vm14, %v6537_v26, %v6533_v25 }
 0x9a5   :  { %v6125_v27 = vpop.permute.xlu0 %6124 }
 0x9a6   :  { %v6464_v15 = vsel %vm6382_vm15, %v6463_v36, %v6459_v17  ;;  %v6685_v41 = vrot.slane %v6125_v27, %v13491_v34 }
 0x9a7   :  { %v6080_v55 = vpop.permute.xlu1 %6079 }
 0x9a8   :  { %v6611_v60 = vrot.slane %v6080_v55, %v13515_v50  ;;  %v6686_v55 = vsel %vm6361_vm12, %v6685_v41, %v13556_v48 }
 0x9a9   :  { %v13576_v51 = vpop.permute.xlu0 %6214 }
 0x9aa   :  { %v6612_v16 = vsel %vm6368_vm13, %v6611_v60, %v6607_v62  ;;  %v6833_v48 = vrot.slane %v13576_v51, %v13429_v0 }
 0x9ab   :  { %v13579_v43 = vpop.permute.xlu1 %6169 }
 0x9ad   :  { %v5945_v30 = vpop.permute.xlu0 %5944 }
 0x9ae   :  { %v6388_v49 = vrot.slane %v5945_v30, %v13582_v20 }
 0x9af   :  { %v13584_v45 = vpop.permute.xlu1 %6259 }
 0x9b0   :  { %v6390_v7 = vsel %vm6389_vm0, %v6388_v49, %v6383_v22 }
 0x9b1   :  { %v6038_v58 = vpop.permute.xlu0 %6037 }
 0x9b2   :  { %v6542_v24 = vrot.slane %v6038_v58, %v13561_v57  ;;  %v6759_v58 = vrot.slane %v13579_v43, %v13461_v53 }
 0x9b3   :  { %v5993_v4 = vpop.permute.xlu1 %5992 }
 0x9b4   :  { %v6468_v33 = vrot.slane %v5993_v4, %v13582_v20  ;;  %v6543_v8 = vsel %vm6382_vm15, %v6542_v24, %v6538_v21  ;;  %v6760_v43 = vsel %vm6354_vm11, %v6759_v58, %v13568_v32 }
 0x9b5   :  { %v6128_v14 = vpop.permute.xlu0 %6127 }
 0x9b6   :  { %v6469_v2 = vsel %vm6389_vm0, %v6468_v33, %v6464_v15  ;;  %v6690_v62 = vrot.slane %v6128_v14, %v13515_v50 }
 0x9b7   :  { %v6945_v31 = vsel %vm6944_vm1, %v6469_v2, %v6390_v7  ;;  %v6083_v1 = vpop.permute.xlu1 %6082 }
 0x9b8   :  { %v6616_v17 = vrot.slane %v6083_v1, %v13539_v6  ;;  %v6691_v30 = vsel %vm6368_vm13, %v6690_v62, %v6686_v55 }
 0x9b9   :  { %v13592_v29 = vpop.permute.xlu0 %6217 }
 0x9ba   :  { %v6617_v42 = vsel %vm6375_vm14, %v6616_v17, %v6612_v16  ;;  %v6838_v1 = vrot.slane %v13592_v29, %v13461_v53  ;;  %v6907_v29 = vrot.slane %v13584_v45, %v13289_v11 }
 0x9bb   :  { %v6173_v23 = vpop.permute.xlu1 %6172 }
 0x9bc   :  { %v6764_v33 = vrot.slane %v6173_v23, %v13491_v34 }
 0x9bd   :  { %v6041_v18 = vpop.permute.xlu0 %6040 }
 0x9be   :  { %v6547_v9 = vrot.slane %v6041_v18, %v13582_v20  ;;  %v6765_v18 = vsel %vm6361_vm12, %v6764_v33, %v6760_v43  ;;  %v7217_v33 = vld [vmem:[%s13698_s2 + $0x3] ss:$0 sm:$0xff] }
 0x9bf   :  { %v13598_v3 = vpop.permute.xlu1 %6262 }
 0x9c0   :  { %v6548_v59 = vsel %vm6389_vm0, %v6547_v9, %v6543_v8  ;;  %v6834_v9 = vsel %vm6347_vm10, %v6833_v48, %v13565_v44 }
 0x9c1   :  { %v6947_v13 = vsel %vm6946_vm2, %v6548_v59, %v6945_v31  ;;  %v6131_v10 = vpop.permute.xlu0 %6130 }
 0x9c2   :  { %v6695_v12 = vrot.slane %v6131_v10, %v13539_v6 }
 0x9c3   :  { %v6086_v28 = vpop.permute.xlu1 %6085 }
 0x9c4   :  { %v6621_v25 = vrot.slane %v6086_v28, %v13561_v57  ;;  %v6696_v49 = vsel %vm6375_vm14, %v6695_v12, %v6691_v30  ;;  %v7208_v30 = vld [vmem:[%s13698_s2 + $0x2] ss:$0 sm:$0xff] }
 0x9c5   :  { %v6221_v63 = vpop.permute.xlu0 %6220 }
 0x9c6   :  { %v6622_v40 = vsel %vm6382_vm15, %v6621_v25, %v6617_v42  ;;  %v6843_v23 = vrot.slane %v6221_v63, %v13491_v34  ;;  %v6912_v63 = vrot.slane %v13598_v3, %v13429_v0 }
 0x9c7   :  { %v6176_v5 = vpop.permute.xlu1 %6175 }
 0x9c8   :  { %v6769_v2 = vrot.slane %v6176_v5, %v13515_v50 }
 0x9c9   :  { %v6089_v52 = vpop.permute.xlu0 %6088 }
 0x9ca   :  { %v6626_v19 = vrot.slane %v6089_v52, %v13582_v20  ;;  %v6770_v8 = vsel %vm6368_vm13, %v6769_v2, %v6765_v18 }
 0x9cb   :  { %v13608_v46 = vpop.permute.xlu1 %6265 }
 0x9cc   :  { %v6627_v37 = vsel %vm6389_vm0, %v6626_v19, %v6622_v40  ;;  %v6917_v45 = vrot.slane %v13608_v46, %v13461_v53  ;;  %v6908_v19 = vsel %vm6340_vm9, %v6907_v29, %v13574_v54 }
 0x9cd   :  { %v6949_v47 = vsel %vm6948_vm3, %v6627_v37, %v6947_v13  ;;  %v6179_v56 = vpop.permute.xlu0 %6178  ;;  %v6839_v13 = vsel %vm6354_vm11, %v6838_v1, %v6834_v9  ;;  %v6913_v40 = vsel %vm6347_vm10, %v6912_v63, %v6908_v19 }
 0x9ce   :  { %v6774_v26 = vrot.slane %v6179_v56, %v13539_v6  ;;  %v6844_v44 = vsel %vm6361_vm12, %v6843_v23, %v6839_v13 }
 0x9cf   :  { %v6134_v38 = vpop.permute.xlu1 %6133 }
 0x9d0   :  { %v6700_v39 = vrot.slane %v6134_v38, %v13561_v57  ;;  %v6775_v10 = vsel %vm6375_vm14, %v6774_v26, %v6770_v8 }
 0x9d1   :  { %v13613_v61 = vpop.permute.xlu0 %6268 }
 0x9d2   :  { %v6701_v4 = vsel %vm6382_vm15, %v6700_v39, %v6696_v49  ;;  %v6922_v16 = vrot.slane %v13613_v61, %v13491_v34 }
 0x9d3   :  { %v6224_v22 = vpop.permute.xlu1 %6223 }
 0x9d4   :  { %v6848_v51 = vrot.slane %v6224_v22, %v13515_v50 }
 0x9d5   :  { %v6182_v35 = vpop.permute.xlu0 %6181 }
 0x9d6   :  { %v6779_v24 = vrot.slane %v6182_v35, %v13561_v57  ;;  %v6849_v17 = vsel %vm6368_vm13, %v6848_v51, %v6844_v44  ;;  %v8347_v35 = vld [vmem:[#allocation6 + $0xf8] sm:$0xff]  }
 0x9d7   :  { %v6137_v36 = vpop.permute.xlu1 %6136  ;;  %8042 = vmatpush3.bf16.msra.mxu1 %v8347_v35 }
 0x9d8   :  { %v6705_v27 = vrot.slane %v6137_v36, %v13582_v20  ;;  %v6780_v11 = vsel %vm6382_vm15, %v6779_v24, %v6775_v10 }
 0x9d9   :  { %v6272_v7 = vpop.permute.xlu0 %6271 }
 0x9da   :  { %v6706_v15 = vsel %vm6389_vm0, %v6705_v27, %v6701_v4  ;;  %v6927_v53 = vrot.slane %v6272_v7, %v13515_v50 }
 0x9db   :  { %v6951_v14 = vsel %vm6950_vm4, %v6706_v15, %v6949_v47  ;;  %v6227_v31 = vpop.permute.xlu1 %6226  ;;  %v6918_v47 = vsel %vm6354_vm11, %v6917_v45, %v6913_v40 }
 0x9dc   :  { %v6853_v32 = vrot.slane %v6227_v31, %v13539_v6  ;;  %v6923_v41 = vsel %vm6361_vm12, %v6922_v16, %v6918_v47 }
 0x9dd   :  { %v6230_v21 = vpop.permute.xlu0 %6229  ;;  %v6928_v62 = vsel %vm6368_vm13, %v6927_v53, %v6923_v41 }
 0x9de   :  { %v6858_v28 = vrot.slane %v6230_v21, %v13561_v57  ;;  %v6854_v52 = vsel %vm6375_vm14, %v6853_v32, %v6849_v17 }
 0x9df   :  { %v6185_v59 = vpop.permute.xlu1 %6184 }
 0x9e0   :  { %v6784_v60 = vrot.slane %v6185_v59, %v13582_v20  ;;  %v6859_v46 = vsel %vm6382_vm15, %v6858_v28, %v6854_v52 }
 0x9e1   :  { %v6233_v25 = vpop.permute.xlu0 %6232 }
 0x9e2   :  { %v6785_v5 = vsel %vm6389_vm0, %v6784_v60, %v6780_v11  ;;  %v6863_v3 = vrot.slane %v6233_v25, %v13582_v20 }
 0x9e3   :  { %v6953_v0 = vsel %vm6952_vm5, %v6785_v5, %v6951_v14  ;;  %v6275_v42 = vpop.permute.xlu1 %6274 }
 0x9e4   :  { %v6864_v37 = vsel %vm6389_vm0, %v6863_v3, %v6859_v46  ;;  %v6932_v34 = vrot.slane %v6275_v42, %v13539_v6 }
 0x9e5   :  { %v6955_v56 = vsel %vm6954_vm6, %v6864_v37, %v6953_v0  ;;  %v6281_v38 = vpop.permute.xlu0 %6280 }
 0x9e6   :  { %v6933_v50 = vsel %vm6375_vm14, %v6932_v34, %v6928_v62  ;;  %v6942_v22 = vrot.slane %v6281_v38, %v13582_v20 }
 0x9e7   :  { %v6278_v61 = vpop.permute.xlu1 %6277 }
 0x9e8   :  { %v6937_v54 = vrot.slane %v6278_v61, %v13561_v57 }
 0x9ea   :  { %v6938_v12 = vsel %vm6382_vm15, %v6937_v54, %v6933_v50 }
 0x9eb   :  { %v6943_v6 = vsel %vm6389_vm0, %v6942_v22, %v6938_v12 }
 0x9ec   :  { %v6957_v39 = vsel %vm6956_vm7, %v6943_v6, %v6955_v56 }
 0x9ed   :  { %v6958_v55 = vpack.c.b16 %v6957_v39, %v6957_v39 }
 0x9ef   :  { %8024 = vmatmul.mubr.bf16.vlgmr.msra.gmra.mrb[68].mxu0 %v6958_v55 }
 0xac2   :  { %v7042_v36 = vpop.f32.mrb[68].mxu0 }
 0xac3   :  { %v7043_v57 = vadd.f32 %v7208_v30, %v7042_v36  ;;  %v8025_v49 = vpop.f32.mrb[69].mxu0 }
 0xac4   :  { %v7045_v27 = vpop.f32.mrb[70].mxu0 }
 0xac5   :  { %v7048_v58 = vmax.f32 %v7043_v57, 0.0  ;;  %v8026_v20 = vpop.f32.mrb[71].mxu0 }
 0xac7   :  { %v7049_v4 = vpack.c.bf16 %v7048_v58, %v7048_v58 }
 0xac9   :  { %8044 = vmatmul.mubr.bf16.vlgmr.msra.gmra.mrb[68].mxu1 %v7049_v4 }
 0xb9c   :  { %v7154_v15 = vpop.f32.mrb[68].mxu1 }
 0xb9d   :  { %v7155_v7 = vadd.f32 %v7217_v33, %v7154_v15  ;;  %v8045_v48 = vpop.f32.mrb[69].mxu1 }
 0xb9e   :  { %v7157_v2 = vpop.f32.mrb[70].mxu1 }
 0xb9f   :  { %v7226_v14 = vmul.f32 -1.442695, %v7155_v7  ;;  %v8046_v31 = vpop.f32.mrb[71].mxu1 }
 0xba1   :  { %8860 = vpow2.f32 %v7226_v14 }
 0xbab   :  { %v8861_v1 = vpop.eup %8860 }
 0xbac   :  { %v7163_v26 = vadd.f32 1.0, %v8861_v1 }
 0xbae   :  { %8862 = vrcp.f32 %v7163_v26 }
 0xbb8   :  { %v8863_v43 = vpop.eup %8862 }
 0xbb9   :  { %7166 = vst [vmem:[#allocation9] sm:$0xff] %v8863_v43 }
 0xbba   :  { %8931 = shalt.err (!%p8928_p11)
}
 0xbbb   :  { %s8932_s10 = scalar_lea.hbm %s13700_s4, 128 }
 0xbbc   :  { %p8933_p12 = scmp.ne.s32.totalorder %s13700_s4, %s8932_s10  ;;  %p8936_p13 = scmp.lt.u32.totalorder %s8932_s10, %s13700_s4 }
 0xbbe   :  { %p8938_p0 = pnand %p8936_p13, %p8933_p12 }
 0xbc0   :  { %8941 = shalt.err (!%p8938_p0)
}
 0xbc1   :  { %7176 = dma.vmem_to_hbm [thread:$0]  %s7174_s7, 128, %s13700_s4, [#allocation4]  }
 0xbc2   :  { %8948 = dma.done.wait [#allocation4], 128  }
 0xbc3   :  { %8949 = vsyncadd [#allocation4], 4294967168 }
 0xbc4   :  { %7180 = vsyncpa [#allocation3], 1 }
 0xbc5   :  { %7181 = vsyncpa [#allocation7], 1 }
 0xbc6   :  { %7182 = vsyncpa [#allocation4], 1 }
 0xbc7   :  { %7183 = vsyncpa [#allocation5], 1 }

</bundles_post_ra>
